<compile_context>
chip_gen: v7x
topology: tpu7x:2x2x1
jax: 0.10.0
libtpu: 0.0.40
codegen_flags: <defaults>
</compile_context>

<pallas_src>
import math
import functools

import jax
import jax.numpy as jnp
from jax.experimental import pallas as pl
from jax.experimental.pallas import tpu as pltpu


NUM_CLASSES = 2
LANE = 128
VMEM_LIMIT = 32 * 1024 * 1024  # portable across v5e/v6e/v7x; far above actual use


def _round_up(x, m):
    return ((x + m - 1) // m) * m


def _pick_tile(total, max_tile, mult):
    """Largest t <= max_tile with t % mult == 0 and total % t == 0 (or None)."""
    t = min(max_tile, total)
    t = (t // mult) * mult
    while t >= mult:
        if total % t == 0:
            return t
        t -= mult
    return None


# ----------------------------------------------------------------------------
# Tiled matmul + bias (+ReLU) kernel — bf16 operands, f32 accumulation
# ----------------------------------------------------------------------------
def _mm_bias_kernel(x_ref, w_ref, b_ref, o_ref, acc_ref, *, relu):
    @pl.when(pl.program_id(2) == 0)
    def _():
        acc_ref[...] = jnp.zeros_like(acc_ref)

    acc_ref[...] += jnp.dot(x_ref[...], w_ref[...],
                            preferred_element_type=jnp.float32)

    @pl.when(pl.program_id(2) == pl.num_programs(2) - 1)
    def _():
        y = acc_ref[...] + b_ref[...]
        if relu:
            y = jnp.maximum(y, 0.0)
        o_ref[...] = y.astype(o_ref.dtype)


def pallas_matmul_bias(x, w, b, relu, out_dtype=jnp.bfloat16):
    """x:[M,K] @ w:[K,N] + b:[N] (optional ReLU). K, N must be 128-multiples."""
    M, K = x.shape
    K2, N = w.shape
    assert K == K2 and K % LANE == 0 and N % LANE == 0, (K, N)

    M_out = M
    tm = _pick_tile(M, 256, 8)
    if tm is None:                      # pad M up to a multiple of 8
        Mp = _round_up(M, 8)
        x = jnp.pad(x, ((0, Mp - M), (0, 0)))
        M = Mp
        tm = _pick_tile(M, 256, 8)
    tk = _pick_tile(K, 512, LANE)
    tn = _pick_tile(N, 256, LANE)

    grid = (M // tm, N // tn, K // tk)
    kernel = functools.partial(_mm_bias_kernel, relu=relu)
    out = pl.pallas_call(
        kernel,
        out_shape=jax.ShapeDtypeStruct((M, N), out_dtype),
        grid=grid,
        in_specs=[
            pl.BlockSpec((tm, tk), lambda i, j, k: (i, k)),
            pl.BlockSpec((tk, tn), lambda i, j, k: (k, j)),
            pl.BlockSpec((1, tn), lambda i, j, k: (0, j)),
        ],
        out_specs=pl.BlockSpec((tm, tn), lambda i, j, k: (i, j)),
        scratch_shapes=[pltpu.VMEM((tm, tn), jnp.float32)],
        compiler_params=pltpu.CompilerParams(
            dimension_semantics=("parallel", "parallel", "arbitrary"),
            vmem_limit_bytes=VMEM_LIMIT),
    )(x.astype(jnp.bfloat16), w.astype(jnp.bfloat16),
      b.reshape(1, N).astype(jnp.float32))
    return out[:M_out]


# ----------------------------------------------------------------------------
# SCSE: tiled channel-sum reduction + gate-apply kernels
# ----------------------------------------------------------------------------
def _channel_sum_kernel(f_ref, o_ref):
    @pl.when(pl.program_id(1) == 0)
    def _():
        o_ref[...] = jnp.zeros_like(o_ref)
    o_ref[...] += jnp.sum(f_ref[...].astype(jnp.float32), axis=1, keepdims=True)


def pallas_channel_sum(feat_flat):
    """feat_flat: [B, HW, C] -> per-batch channel sums [B, 1, C] (f32)."""
    B, HW, C = feat_flat.shape
    thw = _pick_tile(HW, 512, 8) or HW
    return pl.pallas_call(
        _channel_sum_kernel,
        out_shape=jax.ShapeDtypeStruct((B, 1, C), jnp.float32),
        grid=(B, HW // thw),
        in_specs=[pl.BlockSpec((1, thw, C), lambda b, t: (b, t, 0))],
        out_specs=pl.BlockSpec((1, 1, C), lambda b, t: (b, 0, 0)),
        compiler_params=pltpu.CompilerParams(
            dimension_semantics=("parallel", "arbitrary"),
            vmem_limit_bytes=VMEM_LIMIT),
    )(feat_flat)


def _scse_gate(feat_flat, p, hw):
    """cSE gate s: sigmoid(W2 relu(W1 mean + b1) + b2)  -> [B, 1, C] f32."""
    sums = pallas_channel_sum(feat_flat)                 # [B, 1, C]
    pool = sums[:, 0, :] / float(hw)                     # [B, C]  (tiny)
    z = jnp.maximum(pool @ p["w1"] + p["b1"], 0.0)
    s = jax.nn.sigmoid(z @ p["w2"] + p["b2"])            # [B, C]
    return s[:, None, :]


def _scse_apply_kernel(f_ref, s_ref, ws_ref, bs_ref, o_ref):
    f = f_ref[0].astype(jnp.float32)                                   # [thw, C]
    cse = f * s_ref[0]                                                 # cSE gate
    # sSE (C->1 projection): VPU reduce instead of a 1-lane MXU matmul.
    q = jax.nn.sigmoid(jnp.sum(f * ws_ref[0], axis=-1, keepdims=True)
                       + bs_ref[...])                                  # [thw, 1]
    o_ref[0] = (cse + f * q).astype(o_ref.dtype)


def _scse_apply_seg_kernel(f_ref, s_ref, ws_ref, bs_ref,
                           wseg_ref, bseg_ref, o_ref):
    f = f_ref[0].astype(jnp.float32)
    cse = f * s_ref[0]
    q = jax.nn.sigmoid(jnp.sum(f * ws_ref[0], axis=-1, keepdims=True)
                       + bs_ref[...])
    g = cse + f * q                                                    # gated feat
    seg = jnp.dot(g.astype(jnp.bfloat16), wseg_ref[...],
                  preferred_element_type=jnp.float32) + bseg_ref[...]
    o_ref[0] = seg                                                     # lane-dense


def pallas_scse(feat_nhwc, p):
    """Concurrent spatial + channel squeeze-excitation (SCSE)."""
    B, H, W, C = feat_nhwc.shape
    HW = H * W
    f = feat_nhwc.reshape(B, HW, C)
    s = _scse_gate(f, p, HW)
    thw = _pick_tile(HW, 512, 8) or HW
    out = pl.pallas_call(
        _scse_apply_kernel,
        out_shape=jax.ShapeDtypeStruct((B, HW, C), jnp.bfloat16),
        grid=(B, HW // thw),
        in_specs=[
            pl.BlockSpec((1, thw, C), lambda b, t: (b, t, 0)),
            pl.BlockSpec((1, 1, C), lambda b, t: (b, 0, 0)),
            pl.BlockSpec((1, 1, C), lambda b, t: (0, 0, 0)),
            pl.BlockSpec((1, 1), lambda b, t: (0, 0)),
        ],
        out_specs=pl.BlockSpec((1, thw, C), lambda b, t: (b, t, 0)),
        compiler_params=pltpu.CompilerParams(
            dimension_semantics=("parallel", "parallel"),
            vmem_limit_bytes=VMEM_LIMIT),
    )(f, s, p["ws"].reshape(1, 1, C), p["bs"].reshape(1, 1))
    return out.reshape(B, H, W, C)


def pallas_scse_seg(feat_nhwc, p, seg_w, seg_b):
    """SCSE gate-apply fused with the (128-lane padded) segmentation head."""
    B, H, W, C = feat_nhwc.shape
    HW = H * W
    Np = seg_w.shape[1]
    f = feat_nhwc.reshape(B, HW, C)
    s = _scse_gate(f, p, HW)
    thw = _pick_tile(HW, 512, 8) or HW
    out = pl.pallas_call(
        _scse_apply_seg_kernel,
        out_shape=jax.ShapeDtypeStruct((B, HW, Np), jnp.float32),
        grid=(B, HW // thw),
        in_specs=[
            pl.BlockSpec((1, thw, C), lambda b, t: (b, t, 0)),
            pl.BlockSpec((1, 1, C), lambda b, t: (b, 0, 0)),
            pl.BlockSpec((1, 1, C), lambda b, t: (0, 0, 0)),
            pl.BlockSpec((1, 1), lambda b, t: (0, 0)),
            pl.BlockSpec((C, Np), lambda b, t: (0, 0)),
            pl.BlockSpec((1, Np), lambda b, t: (0, 0)),
        ],
        out_specs=pl.BlockSpec((1, thw, Np), lambda b, t: (b, t, 0)),
        compiler_params=pltpu.CompilerParams(
            dimension_semantics=("parallel", "parallel"),
            vmem_limit_bytes=VMEM_LIMIT),
    )(f, s, p["ws"].reshape(1, 1, C), p["bs"].reshape(1, 1),
      seg_w.astype(jnp.bfloat16), seg_b.reshape(1, Np).astype(jnp.float32))
    return out  # [B, HW, Np] f32


# ----------------------------------------------------------------------------
# Glue (im2col, upsampling) — plain JAX
# ----------------------------------------------------------------------------
def _im2col(x, kh, kw, stride, pad):
    # x: [B, H, W, C] -> patches [B*oh*ow, kh*kw*C]
    x = jnp.pad(x, ((0, 0), (pad, pad), (pad, pad), (0, 0)))
    B, H, W, C = x.shape
    oh = (H - kh) // stride + 1
    ow = (W - kw) // stride + 1
    cols = []
    for i in range(kh):
        for j in range(kw):
            cols.append(x[:, i:i + stride * oh:stride, j:j + stride * ow:stride, :])
    patches = jnp.concatenate(cols, axis=-1)            # [B,oh,ow,kh*kw*C]
    return patches.reshape(B * oh * ow, kh * kw * C), (B, oh, ow)


def conv_block(x, p, kh=3, kw=3, stride=1, pad=1, relu=True):
    patches, (B, oh, ow) = _im2col(x, kh, kw, stride, pad)
    Kp = p["w"].shape[0]
    if patches.shape[1] != Kp:                          # pad K to 128-multiple
        patches = jnp.pad(patches, ((0, 0), (0, Kp - patches.shape[1])))
    cout = p["w"].shape[1]
    y = pallas_matmul_bias(patches, p["w"], p["b"], relu=relu)
    return y.reshape(B, oh, ow, cout)


def upsample2x(x):
    # TODO(synk): fold into decoder conv's tile load via an index_map gather.
    return jnp.repeat(jnp.repeat(x, 2, axis=1), 2, axis=2)


# ----------------------------------------------------------------------------
# Parameter init (deterministic). Channel widths rounded to 128-multiples.
# ----------------------------------------------------------------------------
def _init_conv(key, k, cin, cout):
    kreal = k * k * cin
    kp = _round_up(kreal, LANE)
    w = jax.random.normal(key, (kreal, cout), jnp.float32) / math.sqrt(kreal)
    w = jnp.pad(w, ((0, kp - kreal), (0, 0))).astype(jnp.bfloat16)
    return {"w": w, "b": jnp.zeros((cout,), jnp.float32)}


def _init_scse(key, c, r=4):
    k1, k2, k3 = jax.random.split(key, 3)
    cr = max(c // r, 1)
    return {
        "w1": jax.random.normal(k1, (c, cr), jnp.float32) / math.sqrt(c),
        "b1": jnp.zeros((cr,), jnp.float32),
        "w2": jax.random.normal(k2, (cr, c), jnp.float32) / math.sqrt(cr),
        "b2": jnp.zeros((c,), jnp.float32),
        "ws": jax.random.normal(k3, (c,), jnp.float32) / math.sqrt(c),
        "bs": jnp.zeros((1,), jnp.float32),
    }


def init_params(key, cin=3, num_classes=NUM_CLASSES, fc_classes=1):
    ks = jax.random.split(key, 12)
    C1, C2, C3 = 128, 128, 256          # lane-dense channel widths
    seg_w = jax.random.normal(ks[10], (C1, num_classes), jnp.float32) / math.sqrt(C1)
    seg_w = jnp.pad(seg_w, ((0, 0), (0, LANE - num_classes)))   # pad N -> 128 lanes
    return {
        "conv1": _init_conv(ks[0], 3, cin, C1),
        "scse1": _init_scse(ks[1], C1),
        "conv2": _init_conv(ks[2], 3, C1, C2),
        "scse2": _init_scse(ks[3], C2),
        "conv3": _init_conv(ks[4], 3, C2, C3),
        "scse3": _init_scse(ks[5], C3),
        "dconv1": _init_conv(ks[6], 3, C3 + C2, C2),
        "dscse1": _init_scse(ks[7], C2),
        "dconv2": _init_conv(ks[8], 3, C2 + C1, C1),
        "dscse2": _init_scse(ks[9], C1),
        "seg_w": seg_w.astype(jnp.bfloat16),
        "seg_b": jnp.zeros((LANE,), jnp.float32),
        "fc_w": jax.random.normal(ks[11], (C3, fc_classes), jnp.float32) / math.sqrt(C3),
        "fc_b": jnp.zeros((fc_classes,), jnp.float32),
    }


# ----------------------------------------------------------------------------
# Model forward (backbone -> decoder heads), NCHW in / NCHW seg out
# ----------------------------------------------------------------------------
def model_forward(x_nchw, params):
    x = jnp.transpose(x_nchw, (0, 2, 3, 1)).astype(jnp.bfloat16)   # -> NHWC

    # ---- encoder (SCSE backbone) ----
    e1 = pallas_scse(conv_block(x, params["conv1"], stride=1), params["scse1"])   # H,   128
    e2 = pallas_scse(conv_block(e1, params["conv2"], stride=2), params["scse2"])  # H/2, 128
    e3 = pallas_scse(conv_block(e2, params["conv3"], stride=2), params["scse3"])  # H/4, 256

    # ---- decoder ----
    d1 = conv_block(jnp.concatenate([upsample2x(e3), e2], axis=-1),
                    params["dconv1"], stride=1)                                   # H/2, 128
    d1 = pallas_scse(d1, params["dscse1"])
    d2 = conv_block(jnp.concatenate([upsample2x(d1), e1], axis=-1),
                    params["dconv2"], stride=1)                                   # H,   128

    # ---- heads ----
    B, H, W, _ = d2.shape
    seg = pallas_scse_seg(d2, params["dscse2"], params["seg_w"], params["seg_b"])
    seg = seg[:, :, :NUM_CLASSES].reshape(B, H, W, NUM_CLASSES)
    seg = jnp.transpose(seg, (0, 3, 1, 2))                          # NCHW, 2 classes

    gp = jnp.mean(e3.astype(jnp.float32), axis=(1, 2))              # [B, 256]
    fc = gp @ params["fc_w"] + params["fc_b"]                       # tiny: plain JAX
    return seg, fc


if __name__ == "__main__":
    key = jax.random.PRNGKey(0)
    pkey, xkey = jax.random.split(key)
    params = init_params(pkey, cin=3, num_classes=NUM_CLASSES, fc_classes=1)

    x = jax.random.normal(xkey, (2, 3, 16, 16), jnp.float32)        # NCHW input

    fwd = jax.jit(model_forward)
    seg, fc = fwd(x, params)
    jax.block_until_ready((seg, fc))

    assert seg.shape == (2, NUM_CLASSES, 16, 16), seg.shape
    assert fc.shape == (2, 1), fc.shape
    assert bool(jnp.all(jnp.isfinite(seg))) and bool(jnp.all(jnp.isfinite(fc)))
    print("KERNEL_OK")
</pallas_src>

<mosaic_0001>
module attributes {stable_mosaic.version = 11 : i64} {
  func.func @_channel_sum_kernel(%arg0: i32, %arg1: i32, %arg2: memref<1x256x128xbf16, #tpu.memory_space<vmem>>, %arg3: memref<1x1x128xf32, #tpu.memory_space<vmem>>) attributes {dimension_semantics = [#tpu.dimension_semantics<parallel>, #tpu.dimension_semantics<arbitrary>], iteration_bounds = array<i64: 2, 1>, scalar_prefetch = 0 : i64, scratch_operands = 0 : i64, tpu.core_type = #tpu.core_type<tc>, window_params = [{transform_indices = @transform_0, window_bounds = array<i64: 1, 256, 128>}, {transform_indices = @transform_1, window_bounds = array<i64: 1, 1, 128>}]} {
    %c0_i32 = arith.constant 0 : i32
    %0 = arith.cmpi eq, %arg1, %c0_i32 : i32
    %1 = arith.extui %0 : i1 to i32
    %c0_i32_0 = arith.constant 0 : i32
    %2 = arith.cmpi ne, %1, %c0_i32_0 : i32
    scf.if %2 {
      %cst_9 = arith.constant 0.000000e+00 : f32
      %10 = vector.broadcast %cst_9 : f32 to vector<1x1x128xf32>
      %c0_10 = arith.constant 0 : index
      %c0_11 = arith.constant 0 : index
      %c0_12 = arith.constant 0 : index
      %11 = vector.load %arg3[%c0_10, %c0_11, %c0_12] : memref<1x1x128xf32, #tpu.memory_space<vmem>>, vector<1x1x128xf32>
      tpu.vector_store %arg3[%c0_10, %c0_11, %c0_12], %10 {strides = array<i32>} : memref<1x1x128xf32, #tpu.memory_space<vmem>>, vector<1x1x128xf32>,
    } else {
    }
    %c0 = arith.constant 0 : index
    %c0_1 = arith.constant 0 : index
    %c0_2 = arith.constant 0 : index
    %3 = vector.load %arg3[%c0, %c0_1, %c0_2] : memref<1x1x128xf32, #tpu.memory_space<vmem>>, vector<1x1x128xf32>
    %c0_3 = arith.constant 0 : index
    %c0_4 = arith.constant 0 : index
    %c0_5 = arith.constant 0 : index
    %4 = vector.load %arg2[%c0_3, %c0_4, %c0_5] : memref<1x256x128xbf16, #tpu.memory_space<vmem>>, vector<1x256x128xbf16>
    %5 = arith.extf %4 : vector<1x256x128xbf16> to vector<1x256x128xf32>
    %cst = arith.constant dense<0.000000e+00> : vector<1x128xf32>
    %6 = vector.multi_reduction <add>, %5, %cst [1] : vector<1x256x128xf32> to vector<1x128xf32>
    %7 = vector.shape_cast %6 : vector<1x128xf32> to vector<1x1x128xf32>
    %8 = arith.addf %3, %7 : vector<1x1x128xf32>
    %c0_6 = arith.constant 0 : index
    %c0_7 = arith.constant 0 : index
    %c0_8 = arith.constant 0 : index
    %9 = vector.load %arg3[%c0_6, %c0_7, %c0_8] : memref<1x1x128xf32, #tpu.memory_space<vmem>>, vector<1x1x128xf32>
    tpu.vector_store %arg3[%c0_6, %c0_7, %c0_8], %8 {strides = array<i32>} : memref<1x1x128xf32, #tpu.memory_space<vmem>>, vector<1x1x128xf32>,
    return
  }
  func.func @transform_0(%arg0: i32, %arg1: i32) -> (i32, i32, i32) {
    %c0_i32 = arith.constant 0 : i32
    %c0_i32_0 = arith.constant 0 : i32
    return %arg0, %arg1, %c0_i32 : i32, i32, i32
  }
  func.func @transform_1(%arg0: i32, %arg1: i32) -> (i32, i32, i32) {
    %c0_i32 = arith.constant 0 : i32
    %c0_i32_0 = arith.constant 0 : i32
    %c0_i32_1 = arith.constant 0 : i32
    return %arg0, %c0_i32, %c0_i32_0 : i32, i32, i32
  }
}

module attributes {stable_mosaic.version = 11 : i64} {
  func.func @_mm_bias_kernel(%arg0: i32, %arg1: i32, %arg2: i32, %arg3: memref<256x128xbf16, #tpu.memory_space<vmem>>, %arg4: memref<128x128xbf16, #tpu.memory_space<vmem>>, %arg5: memref<1x128xf32, #tpu.memory_space<vmem>>, %arg6: memref<256x128xbf16, #tpu.memory_space<vmem>>, %arg7: memref<256x128xf32, #tpu.memory_space<vmem>>) attributes {dimension_semantics = [#tpu.dimension_semantics<parallel>, #tpu.dimension_semantics<parallel>, #tpu.dimension_semantics<arbitrary>], iteration_bounds = array<i64: 2, 1, 1>, scalar_prefetch = 0 : i64, scratch_operands = 1 : i64, tpu.core_type = #tpu.core_type<tc>, window_params = [{transform_indices = @transform_0, window_bounds = array<i64: 256, 128>}, {transform_indices = @transform_1, window_bounds = array<i64: 128, 128>}, {transform_indices = @transform_2, window_bounds = array<i64: 1, 128>}, {transform_indices = @transform_3, window_bounds = array<i64: 256, 128>}]} {
    %c0_i32 = arith.constant 0 : i32
    %0 = arith.cmpi eq, %arg2, %c0_i32 : i32
    %1 = arith.extui %0 : i1 to i32
    %c0_i32_0 = arith.constant 0 : i32
    %2 = arith.cmpi ne, %1, %c0_i32_0 : i32
    scf.if %2 {
      %cst_10 = arith.constant 0.000000e+00 : f32
      %12 = vector.broadcast %cst_10 : f32 to vector<256x128xf32>
      %c0_11 = arith.constant 0 : index
      %c0_12 = arith.constant 0 : index
      %13 = vector.load %arg7[%c0_11, %c0_12] : memref<256x128xf32, #tpu.memory_space<vmem>>, vector<256x128xf32>
      tpu.vector_store %arg7[%c0_11, %c0_12], %12 {strides = array<i32>} : memref<256x128xf32, #tpu.memory_space<vmem>>, vector<256x128xf32>,
    } else {
    }
    %c0 = arith.constant 0 : index
    %c0_1 = arith.constant 0 : index
    %3 = vector.load %arg7[%c0, %c0_1] : memref<256x128xf32, #tpu.memory_space<vmem>>, vector<256x128xf32>
    %c0_2 = arith.constant 0 : index
    %c0_3 = arith.constant 0 : index
    %4 = vector.load %arg3[%c0_2, %c0_3] : memref<256x128xbf16, #tpu.memory_space<vmem>>, vector<256x128xbf16>
    %c0_4 = arith.constant 0 : index
    %c0_5 = arith.constant 0 : index
    %5 = vector.load %arg4[%c0_4, %c0_5] : memref<128x128xbf16, #tpu.memory_space<vmem>>, vector<128x128xbf16>
    %cst = arith.constant dense<0.000000e+00> : vector<256x128xf32>
    %6 = tpu.matmul %4, %5, %cst {dimension_numbers = #tpu.dot_dimension_numbers<[1], [0], [0], [1], [0, 0, 1, 1], [], []>} : vector<256x128xbf16>, vector<128x128xbf16>, vector<256x128xf32> -> vector<256x128xf32>
    %7 = arith.addf %3, %6 : vector<256x128xf32>
    %c0_6 = arith.constant 0 : index
    %c0_7 = arith.constant 0 : index
    %8 = vector.load %arg7[%c0_6, %c0_7] : memref<256x128xf32, #tpu.memory_space<vmem>>, vector<256x128xf32>
    tpu.vector_store %arg7[%c0_6, %c0_7], %7 {strides = array<i32>} : memref<256x128xf32, #tpu.memory_space<vmem>>, vector<256x128xf32>,
    %c0_i32_8 = arith.constant 0 : i32
    %9 = arith.cmpi eq, %arg2, %c0_i32_8 : i32
    %10 = arith.extui %9 : i1 to i32
    %c0_i32_9 = arith.constant 0 : i32
    %11 = arith.cmpi ne, %10, %c0_i32_9 : i32
    scf.if %11 {
      %c0_10 = arith.constant 0 : index
      %c0_11 = arith.constant 0 : index
      %12 = vector.load %arg7[%c0_10, %c0_11] : memref<256x128xf32, #tpu.memory_space<vmem>>, vector<256x128xf32>
      %c0_12 = arith.constant 0 : index
      %c0_13 = arith.constant 0 : index
      %13 = vector.load %arg5[%c0_12, %c0_13] : memref<1x128xf32, #tpu.memory_space<vmem>>, vector<1x128xf32>
      %14 = vector.broadcast %13 : vector<1x128xf32> to vector<256x128xf32>
      %15 = arith.addf %12, %14 : vector<256x128xf32>
      %cst_14 = arith.constant 0.000000e+00 : f32
      %16 = vector.broadcast %cst_14 : f32 to vector<256x128xf32>
      %17 = arith.maximumf %15, %16 : vector<256x128xf32>
      %18 = arith.truncf %17 : vector<256x128xf32> to vector<256x128xbf16>
      %c0_15 = arith.constant 0 : index
      %c0_16 = arith.constant 0 : index
      %19 = vector.load %arg6[%c0_15, %c0_16] : memref<256x128xbf16, #tpu.memory_space<vmem>>, vector<256x128xbf16>
      tpu.vector_store %arg6[%c0_15, %c0_16], %18 {strides = array<i32>} : memref<256x128xbf16, #tpu.memory_space<vmem>>, vector<256x128xbf16>,
    } else {
    }
    return
  }
  func.func @transform_0(%arg0: i32, %arg1: i32, %arg2: i32) -> (i32, i32) {
    %c0_i32 = arith.constant 0 : i32
    return %arg0, %arg2 : i32, i32
  }
  func.func @transform_1(%arg0: i32, %arg1: i32, %arg2: i32) -> (i32, i32) {
    %c0_i32 = arith.constant 0 : i32
    return %arg2, %arg1 : i32, i32
  }
  func.func @transform_2(%arg0: i32, %arg1: i32, %arg2: i32) -> (i32, i32) {
    %c0_i32 = arith.constant 0 : i32
    %c0_i32_0 = arith.constant 0 : i32
    return %c0_i32, %arg1 : i32, i32
  }
  func.func @transform_3(%arg0: i32, %arg1: i32, %arg2: i32) -> (i32, i32) {
    %c0_i32 = arith.constant 0 : i32
    return %arg0, %arg1 : i32, i32
  }
}

module attributes {stable_mosaic.version = 11 : i64} {
  func.func @_scse_apply_kernel(%arg0: i32, %arg1: i32, %arg2: memref<1x256x128xbf16, #tpu.memory_space<vmem>>, %arg3: memref<1x1x128xf32, #tpu.memory_space<vmem>>, %arg4: memref<1x1x128xf32, #tpu.memory_space<vmem>>, %arg5: memref<1x1xf32, #tpu.memory_space<vmem>>, %arg6: memref<1x256x128xbf16, #tpu.memory_space<vmem>>) attributes {dimension_semantics = [#tpu.dimension_semantics<parallel>, #tpu.dimension_semantics<parallel>], iteration_bounds = array<i64: 2, 1>, scalar_prefetch = 0 : i64, scratch_operands = 0 : i64, tpu.core_type = #tpu.core_type<tc>, window_params = [{transform_indices = @transform_0, window_bounds = array<i64: 1, 256, 128>}, {transform_indices = @transform_1, window_bounds = array<i64: 1, 1, 128>}, {pipeline_mode = #tpu.pipeline_mode<synchronous>, transform_indices = @transform_2, window_bounds = array<i64: 1, 1, 128>}, {pipeline_mode = #tpu.pipeline_mode<synchronous>, transform_indices = @transform_3, window_bounds = array<i64: 1, 1>}, {transform_indices = @transform_4, window_bounds = array<i64: 1, 256, 128>}]} {
    %c0 = arith.constant 0 : index
    %c0_0 = arith.constant 0 : index
    %c0_1 = arith.constant 0 : index
    %0 = vector.load %arg2[%c0, %c0_0, %c0_1] : memref<1x256x128xbf16, #tpu.memory_space<vmem>>, vector<1x256x128xbf16>
    %1 = vector.shape_cast %0 : vector<1x256x128xbf16> to vector<256x128xbf16>
    %2 = arith.extf %1 : vector<256x128xbf16> to vector<256x128xf32>
    %c0_2 = arith.constant 0 : index
    %c0_3 = arith.constant 0 : index
    %c0_4 = arith.constant 0 : index
    %3 = vector.load %arg3[%c0_2, %c0_3, %c0_4] : memref<1x1x128xf32, #tpu.memory_space<vmem>>, vector<1x1x128xf32>
    %4 = vector.shape_cast %3 : vector<1x1x128xf32> to vector<1x128xf32>
    %5 = vector.broadcast %4 : vector<1x128xf32> to vector<256x128xf32>
    %6 = arith.mulf %2, %5 : vector<256x128xf32>
    %c0_5 = arith.constant 0 : index
    %c0_6 = arith.constant 0 : index
    %c0_7 = arith.constant 0 : index
    %7 = vector.load %arg4[%c0_5, %c0_6, %c0_7] : memref<1x1x128xf32, #tpu.memory_space<vmem>>, vector<1x1x128xf32>
    %8 = vector.shape_cast %7 : vector<1x1x128xf32> to vector<1x128xf32>
    %9 = vector.broadcast %8 : vector<1x128xf32> to vector<256x128xf32>
    %10 = arith.mulf %2, %9 : vector<256x128xf32>
    %cst = arith.constant dense<0.000000e+00> : vector<256xf32>
    %11 = vector.multi_reduction <add>, %10, %cst [1] : vector<256x128xf32> to vector<256xf32>
    %12 = vector.shape_cast %11 : vector<256xf32> to vector<256x1xf32>
    %c0_8 = arith.constant 0 : index
    %c0_9 = arith.constant 0 : index
    %13 = vector.load %arg5[%c0_8, %c0_9] : memref<1x1xf32, #tpu.memory_space<vmem>>, vector<1x1xf32>
    %14 = vector.broadcast %13 : vector<1x1xf32> to vector<256x1xf32>
    %15 = arith.addf %12, %14 : vector<256x1xf32>
    %16 = arith.negf %15 : vector<256x1xf32>
    %17 = math.exp %16 : vector<256x1xf32>
    %cst_10 = arith.constant 1.000000e+00 : f32
    %18 = vector.broadcast %cst_10 : f32 to vector<256x1xf32>
    %19 = arith.addf %18, %17 : vector<256x1xf32>
    %20 = arith.divf %18, %19 : vector<256x1xf32>
    %21 = vector.broadcast %20 : vector<256x1xf32> to vector<256x128xf32>
    %22 = arith.mulf %2, %21 : vector<256x128xf32>
    %23 = arith.addf %6, %22 : vector<256x128xf32>
    %24 = arith.truncf %23 : vector<256x128xf32> to vector<256x128xbf16>
    %c0_11 = arith.constant 0 : index
    %c0_12 = arith.constant 0 : index
    %c0_13 = arith.constant 0 : index
    %25 = vector.load %arg6[%c0_11, %c0_12, %c0_13] : memref<1x256x128xbf16, #tpu.memory_space<vmem>>, vector<1x256x128xbf16>
    %26 = vector.shape_cast %25 : vector<1x256x128xbf16> to vector<256x128xbf16>
    %27 = vector.shape_cast %24 : vector<256x128xbf16> to vector<1x256x128xbf16>
    tpu.vector_store %arg6[%c0_11, %c0_12, %c0_13], %27 {strides = array<i32>} : memref<1x256x128xbf16, #tpu.memory_space<vmem>>, vector<1x256x128xbf16>,
    return
  }
  func.func @transform_0(%arg0: i32, %arg1: i32) -> (i32, i32, i32) {
    %c0_i32 = arith.constant 0 : i32
    %c0_i32_0 = arith.constant 0 : i32
    return %arg0, %arg1, %c0_i32 : i32, i32, i32
  }
  func.func @transform_1(%arg0: i32, %arg1: i32) -> (i32, i32, i32) {
    %c0_i32 = arith.constant 0 : i32
    %c0_i32_0 = arith.constant 0 : i32
    %c0_i32_1 = arith.constant 0 : i32
    return %arg0, %c0_i32, %c0_i32_0 : i32, i32, i32
  }
  func.func @transform_2(%arg0: i32, %arg1: i32) -> (i32, i32, i32) {
    %c0_i32 = arith.constant 0 : i32
    %c0_i32_0 = arith.constant 0 : i32
    %c0_i32_1 = arith.constant 0 : i32
    %c0_i32_2 = arith.constant 0 : i32
    return %c0_i32, %c0_i32_0, %c0_i32_1 : i32, i32, i32
  }
  func.func @transform_3(%arg0: i32, %arg1: i32) -> (i32, i32) {
    %c0_i32 = arith.constant 0 : i32
    %c0_i32_0 = arith.constant 0 : i32
    %c0_i32_1 = arith.constant 0 : i32
    return %c0_i32, %c0_i32_0 : i32, i32
  }
  func.func @transform_4(%arg0: i32, %arg1: i32) -> (i32, i32, i32) {
    %c0_i32 = arith.constant 0 : i32
    %c0_i32_0 = arith.constant 0 : i32
    return %arg0, %arg1, %c0_i32 : i32, i32, i32
  }
}

module attributes {stable_mosaic.version = 11 : i64} {
  func.func @_scse_apply_kernel(%arg0: i32, %arg1: i32, %arg2: memref<1x64x128xbf16, #tpu.memory_space<vmem>>, %arg3: memref<1x1x128xf32, #tpu.memory_space<vmem>>, %arg4: memref<1x1x128xf32, #tpu.memory_space<vmem>>, %arg5: memref<1x1xf32, #tpu.memory_space<vmem>>, %arg6: memref<1x64x128xbf16, #tpu.memory_space<vmem>>) attributes {dimension_semantics = [#tpu.dimension_semantics<parallel>, #tpu.dimension_semantics<parallel>], iteration_bounds = array<i64: 2, 1>, scalar_prefetch = 0 : i64, scratch_operands = 0 : i64, tpu.core_type = #tpu.core_type<tc>, window_params = [{transform_indices = @transform_0, window_bounds = array<i64: 1, 64, 128>}, {transform_indices = @transform_1, window_bounds = array<i64: 1, 1, 128>}, {pipeline_mode = #tpu.pipeline_mode<synchronous>, transform_indices = @transform_2, window_bounds = array<i64: 1, 1, 128>}, {pipeline_mode = #tpu.pipeline_mode<synchronous>, transform_indices = @transform_3, window_bounds = array<i64: 1, 1>}, {transform_indices = @transform_4, window_bounds = array<i64: 1, 64, 128>}]} {
    %c0 = arith.constant 0 : index
    %c0_0 = arith.constant 0 : index
    %c0_1 = arith.constant 0 : index
    %0 = vector.load %arg2[%c0, %c0_0, %c0_1] : memref<1x64x128xbf16, #tpu.memory_space<vmem>>, vector<1x64x128xbf16>
    %1 = vector.shape_cast %0 : vector<1x64x128xbf16> to vector<64x128xbf16>
    %2 = arith.extf %1 : vector<64x128xbf16> to vector<64x128xf32>
    %c0_2 = arith.constant 0 : index
    %c0_3 = arith.constant 0 : index
    %c0_4 = arith.constant 0 : index
    %3 = vector.load %arg3[%c0_2, %c0_3, %c0_4] : memref<1x1x128xf32, #tpu.memory_space<vmem>>, vector<1x1x128xf32>
    %4 = vector.shape_cast %3 : vector<1x1x128xf32> to vector<1x128xf32>
    %5 = vector.broadcast %4 : vector<1x128xf32> to vector<64x128xf32>
    %6 = arith.mulf %2, %5 : vector<64x128xf32>
    %c0_5 = arith.constant 0 : index
    %c0_6 = arith.constant 0 : index
    %c0_7 = arith.constant 0 : index
    %7 = vector.load %arg4[%c0_5, %c0_6, %c0_7] : memref<1x1x128xf32, #tpu.memory_space<vmem>>, vector<1x1x128xf32>
    %8 = vector.shape_cast %7 : vector<1x1x128xf32> to vector<1x128xf32>
    %9 = vector.broadcast %8 : vector<1x128xf32> to vector<64x128xf32>
    %10 = arith.mulf %2, %9 : vector<64x128xf32>
    %cst = arith.constant dense<0.000000e+00> : vector<64xf32>
    %11 = vector.multi_reduction <add>, %10, %cst [1] : vector<64x128xf32> to vector<64xf32>
    %12 = vector.shape_cast %11 : vector<64xf32> to vector<64x1xf32>
    %c0_8 = arith.constant 0 : index
    %c0_9 = arith.constant 0 : index
    %13 = vector.load %arg5[%c0_8, %c0_9] : memref<1x1xf32, #tpu.memory_space<vmem>>, vector<1x1xf32>
    %14 = vector.broadcast %13 : vector<1x1xf32> to vector<64x1xf32>
    %15 = arith.addf %12, %14 : vector<64x1xf32>
    %16 = arith.negf %15 : vector<64x1xf32>
    %17 = math.exp %16 : vector<64x1xf32>
    %cst_10 = arith.constant 1.000000e+00 : f32
    %18 = vector.broadcast %cst_10 : f32 to vector<64x1xf32>
    %19 = arith.addf %18, %17 : vector<64x1xf32>
    %20 = arith.divf %18, %19 : vector<64x1xf32>
    %21 = vector.broadcast %20 : vector<64x1xf32> to vector<64x128xf32>
    %22 = arith.mulf %2, %21 : vector<64x128xf32>
    %23 = arith.addf %6, %22 : vector<64x128xf32>
    %24 = arith.truncf %23 : vector<64x128xf32> to vector<64x128xbf16>
    %c0_11 = arith.constant 0 : index
    %c0_12 = arith.constant 0 : index
    %c0_13 = arith.constant 0 : index
    %25 = vector.load %arg6[%c0_11, %c0_12, %c0_13] : memref<1x64x128xbf16, #tpu.memory_space<vmem>>, vector<1x64x128xbf16>
    %26 = vector.shape_cast %25 : vector<1x64x128xbf16> to vector<64x128xbf16>
    %27 = vector.shape_cast %24 : vector<64x128xbf16> to vector<1x64x128xbf16>
    tpu.vector_store %arg6[%c0_11, %c0_12, %c0_13], %27 {strides = array<i32>} : memref<1x64x128xbf16, #tpu.memory_space<vmem>>, vector<1x64x128xbf16>,
    return
  }
  func.func @transform_0(%arg0: i32, %arg1: i32) -> (i32, i32, i32) {
    %c0_i32 = arith.constant 0 : i32
    %c0_i32_0 = arith.constant 0 : i32
    return %arg0, %arg1, %c0_i32 : i32, i32, i32
  }
  func.func @transform_1(%arg0: i32, %arg1: i32) -> (i32, i32, i32) {
    %c0_i32 = arith.constant 0 : i32
    %c0_i32_0 = arith.constant 0 : i32
    %c0_i32_1 = arith.constant 0 : i32
    return %arg0, %c0_i32, %c0_i32_0 : i32, i32, i32
  }
  func.func @transform_2(%arg0: i32, %arg1: i32) -> (i32, i32, i32) {
    %c0_i32 = arith.constant 0 : i32
    %c0_i32_0 = arith.constant 0 : i32
    %c0_i32_1 = arith.constant 0 : i32
    %c0_i32_2 = arith.constant 0 : i32
    return %c0_i32, %c0_i32_0, %c0_i32_1 : i32, i32, i32
  }
  func.func @transform_3(%arg0: i32, %arg1: i32) -> (i32, i32) {
    %c0_i32 = arith.constant 0 : i32
    %c0_i32_0 = arith.constant 0 : i32
    %c0_i32_1 = arith.constant 0 : i32
    return %c0_i32, %c0_i32_0 : i32, i32
  }
  func.func @transform_4(%arg0: i32, %arg1: i32) -> (i32, i32, i32) {
    %c0_i32 = arith.constant 0 : i32
    %c0_i32_0 = arith.constant 0 : i32
    return %arg0, %arg1, %c0_i32 : i32, i32, i32
  }
}

module attributes {stable_mosaic.version = 11 : i64} {
  func.func @_channel_sum_kernel(%arg0: i32, %arg1: i32, %arg2: memref<1x64x128xbf16, #tpu.memory_space<vmem>>, %arg3: memref<1x1x128xf32, #tpu.memory_space<vmem>>) attributes {dimension_semantics = [#tpu.dimension_semantics<parallel>, #tpu.dimension_semantics<arbitrary>], iteration_bounds = array<i64: 2, 1>, scalar_prefetch = 0 : i64, scratch_operands = 0 : i64, tpu.core_type = #tpu.core_type<tc>, window_params = [{transform_indices = @transform_0, window_bounds = array<i64: 1, 64, 128>}, {transform_indices = @transform_1, window_bounds = array<i64: 1, 1, 128>}]} {
    %c0_i32 = arith.constant 0 : i32
    %0 = arith.cmpi eq, %arg1, %c0_i32 : i32
    %1 = arith.extui %0 : i1 to i32
    %c0_i32_0 = arith.constant 0 : i32
    %2 = arith.cmpi ne, %1, %c0_i32_0 : i32
    scf.if %2 {
      %cst_9 = arith.constant 0.000000e+00 : f32
      %10 = vector.broadcast %cst_9 : f32 to vector<1x1x128xf32>
      %c0_10 = arith.constant 0 : index
      %c0_11 = arith.constant 0 : index
      %c0_12 = arith.constant 0 : index
      %11 = vector.load %arg3[%c0_10, %c0_11, %c0_12] : memref<1x1x128xf32, #tpu.memory_space<vmem>>, vector<1x1x128xf32>
      tpu.vector_store %arg3[%c0_10, %c0_11, %c0_12], %10 {strides = array<i32>} : memref<1x1x128xf32, #tpu.memory_space<vmem>>, vector<1x1x128xf32>,
    } else {
    }
    %c0 = arith.constant 0 : index
    %c0_1 = arith.constant 0 : index
    %c0_2 = arith.constant 0 : index
    %3 = vector.load %arg3[%c0, %c0_1, %c0_2] : memref<1x1x128xf32, #tpu.memory_space<vmem>>, vector<1x1x128xf32>
    %c0_3 = arith.constant 0 : index
    %c0_4 = arith.constant 0 : index
    %c0_5 = arith.constant 0 : index
    %4 = vector.load %arg2[%c0_3, %c0_4, %c0_5] : memref<1x64x128xbf16, #tpu.memory_space<vmem>>, vector<1x64x128xbf16>
    %5 = arith.extf %4 : vector<1x64x128xbf16> to vector<1x64x128xf32>
    %cst = arith.constant dense<0.000000e+00> : vector<1x128xf32>
    %6 = vector.multi_reduction <add>, %5, %cst [1] : vector<1x64x128xf32> to vector<1x128xf32>
    %7 = vector.shape_cast %6 : vector<1x128xf32> to vector<1x1x128xf32>
    %8 = arith.addf %3, %7 : vector<1x1x128xf32>
    %c0_6 = arith.constant 0 : index
    %c0_7 = arith.constant 0 : index
    %c0_8 = arith.constant 0 : index
    %9 = vector.load %arg3[%c0_6, %c0_7, %c0_8] : memref<1x1x128xf32, #tpu.memory_space<vmem>>, vector<1x1x128xf32>
    tpu.vector_store %arg3[%c0_6, %c0_7, %c0_8], %8 {strides = array<i32>} : memref<1x1x128xf32, #tpu.memory_space<vmem>>, vector<1x1x128xf32>,
    return
  }
  func.func @transform_0(%arg0: i32, %arg1: i32) -> (i32, i32, i32) {
    %c0_i32 = arith.constant 0 : i32
    %c0_i32_0 = arith.constant 0 : i32
    return %arg0, %arg1, %c0_i32 : i32, i32, i32
  }
  func.func @transform_1(%arg0: i32, %arg1: i32) -> (i32, i32, i32) {
    %c0_i32 = arith.constant 0 : i32
    %c0_i32_0 = arith.constant 0 : i32
    %c0_i32_1 = arith.constant 0 : i32
    return %arg0, %c0_i32, %c0_i32_0 : i32, i32, i32
  }
}

module attributes {stable_mosaic.version = 11 : i64} {
  func.func @_mm_bias_kernel(%arg0: i32, %arg1: i32, %arg2: i32, %arg3: memref<128x384xbf16, #tpu.memory_space<vmem>>, %arg4: memref<384x128xbf16, #tpu.memory_space<vmem>>, %arg5: memref<1x128xf32, #tpu.memory_space<vmem>>, %arg6: memref<128x128xbf16, #tpu.memory_space<vmem>>, %arg7: memref<128x128xf32, #tpu.memory_space<vmem>>) attributes {dimension_semantics = [#tpu.dimension_semantics<parallel>, #tpu.dimension_semantics<parallel>, #tpu.dimension_semantics<arbitrary>], iteration_bounds = array<i64: 1, 1, 3>, scalar_prefetch = 0 : i64, scratch_operands = 1 : i64, tpu.core_type = #tpu.core_type<tc>, window_params = [{transform_indices = @transform_0, window_bounds = array<i64: 128, 384>}, {transform_indices = @transform_1, window_bounds = array<i64: 384, 128>}, {transform_indices = @transform_2, window_bounds = array<i64: 1, 128>}, {transform_indices = @transform_3, window_bounds = array<i64: 128, 128>}]} {
    %c0_i32 = arith.constant 0 : i32
    %0 = arith.cmpi eq, %arg2, %c0_i32 : i32
    %1 = arith.extui %0 : i1 to i32
    %c0_i32_0 = arith.constant 0 : i32
    %2 = arith.cmpi ne, %1, %c0_i32_0 : i32
    scf.if %2 {
      %cst_9 = arith.constant 0.000000e+00 : f32
      %12 = vector.broadcast %cst_9 : f32 to vector<128x128xf32>
      %c0_10 = arith.constant 0 : index
      %c0_11 = arith.constant 0 : index
      %13 = vector.load %arg7[%c0_10, %c0_11] : memref<128x128xf32, #tpu.memory_space<vmem>>, vector<128x128xf32>
      tpu.vector_store %arg7[%c0_10, %c0_11], %12 {strides = array<i32>} : memref<128x128xf32, #tpu.memory_space<vmem>>, vector<128x128xf32>,
    } else {
    }
    %c0 = arith.constant 0 : index
    %c0_1 = arith.constant 0 : index
    %3 = vector.load %arg7[%c0, %c0_1] : memref<128x128xf32, #tpu.memory_space<vmem>>, vector<128x128xf32>
    %c0_2 = arith.constant 0 : index
    %c0_3 = arith.constant 0 : index
    %4 = vector.load %arg3[%c0_2, %c0_3] : memref<128x384xbf16, #tpu.memory_space<vmem>>, vector<128x384xbf16>
    %c0_4 = arith.constant 0 : index
    %c0_5 = arith.constant 0 : index
    %5 = vector.load %arg4[%c0_4, %c0_5] : memref<384x128xbf16, #tpu.memory_space<vmem>>, vector<384x128xbf16>
    %cst = arith.constant dense<0.000000e+00> : vector<128x128xf32>
    %6 = tpu.matmul %4, %5, %cst {dimension_numbers = #tpu.dot_dimension_numbers<[1], [0], [0], [1], [0, 0, 1, 1], [], []>} : vector<128x384xbf16>, vector<384x128xbf16>, vector<128x128xf32> -> vector<128x128xf32>
    %7 = arith.addf %3, %6 : vector<128x128xf32>
    %c0_6 = arith.constant 0 : index
    %c0_7 = arith.constant 0 : index
    %8 = vector.load %arg7[%c0_6, %c0_7] : memref<128x128xf32, #tpu.memory_space<vmem>>, vector<128x128xf32>
    tpu.vector_store %arg7[%c0_6, %c0_7], %7 {strides = array<i32>} : memref<128x128xf32, #tpu.memory_space<vmem>>, vector<128x128xf32>,
    %c2_i32 = arith.constant 2 : i32
    %9 = arith.cmpi eq, %arg2, %c2_i32 : i32
    %10 = arith.extui %9 : i1 to i32
    %c0_i32_8 = arith.constant 0 : i32
    %11 = arith.cmpi ne, %10, %c0_i32_8 : i32
    scf.if %11 {
      %c0_9 = arith.constant 0 : index
      %c0_10 = arith.constant 0 : index
      %12 = vector.load %arg7[%c0_9, %c0_10] : memref<128x128xf32, #tpu.memory_space<vmem>>, vector<128x128xf32>
      %c0_11 = arith.constant 0 : index
      %c0_12 = arith.constant 0 : index
      %13 = vector.load %arg5[%c0_11, %c0_12] : memref<1x128xf32, #tpu.memory_space<vmem>>, vector<1x128xf32>
      %14 = vector.broadcast %13 : vector<1x128xf32> to vector<128x128xf32>
      %15 = arith.addf %12, %14 : vector<128x128xf32>
      %cst_13 = arith.constant 0.000000e+00 : f32
      %16 = vector.broadcast %cst_13 : f32 to vector<128x128xf32>
      %17 = arith.maximumf %15, %16 : vector<128x128xf32>
      %18 = arith.truncf %17 : vector<128x128xf32> to vector<128x128xbf16>
      %c0_14 = arith.constant 0 : index
      %c0_15 = arith.constant 0 : index
      %19 = vector.load %arg6[%c0_14, %c0_15] : memref<128x128xbf16, #tpu.memory_space<vmem>>, vector<128x128xbf16>
      tpu.vector_store %arg6[%c0_14, %c0_15], %18 {strides = array<i32>} : memref<128x128xbf16, #tpu.memory_space<vmem>>, vector<128x128xbf16>,
    } else {
    }
    return
  }
  func.func @transform_0(%arg0: i32, %arg1: i32, %arg2: i32) -> (i32, i32) {
    %c0_i32 = arith.constant 0 : i32
    return %arg0, %arg2 : i32, i32
  }
  func.func @transform_1(%arg0: i32, %arg1: i32, %arg2: i32) -> (i32, i32) {
    %c0_i32 = arith.constant 0 : i32
    return %arg2, %arg1 : i32, i32
  }
  func.func @transform_2(%arg0: i32, %arg1: i32, %arg2: i32) -> (i32, i32) {
    %c0_i32 = arith.constant 0 : i32
    %c0_i32_0 = arith.constant 0 : i32
    return %c0_i32, %arg1 : i32, i32
  }
  func.func @transform_3(%arg0: i32, %arg1: i32, %arg2: i32) -> (i32, i32) {
    %c0_i32 = arith.constant 0 : i32
    return %arg0, %arg1 : i32, i32
  }
}

module attributes {stable_mosaic.version = 11 : i64} {
  func.func @_mm_bias_kernel(%arg0: i32, %arg1: i32, %arg2: i32, %arg3: memref<32x384xbf16, #tpu.memory_space<vmem>>, %arg4: memref<384x256xbf16, #tpu.memory_space<vmem>>, %arg5: memref<1x256xf32, #tpu.memory_space<vmem>>, %arg6: memref<32x256xbf16, #tpu.memory_space<vmem>>, %arg7: memref<32x256xf32, #tpu.memory_space<vmem>>) attributes {dimension_semantics = [#tpu.dimension_semantics<parallel>, #tpu.dimension_semantics<parallel>, #tpu.dimension_semantics<arbitrary>], iteration_bounds = array<i64: 1, 1, 3>, scalar_prefetch = 0 : i64, scratch_operands = 1 : i64, tpu.core_type = #tpu.core_type<tc>, window_params = [{transform_indices = @transform_0, window_bounds = array<i64: 32, 384>}, {transform_indices = @transform_1, window_bounds = array<i64: 384, 256>}, {transform_indices = @transform_2, window_bounds = array<i64: 1, 256>}, {transform_indices = @transform_3, window_bounds = array<i64: 32, 256>}]} {
    %c0_i32 = arith.constant 0 : i32
    %0 = arith.cmpi eq, %arg2, %c0_i32 : i32
    %1 = arith.extui %0 : i1 to i32
    %c0_i32_0 = arith.constant 0 : i32
    %2 = arith.cmpi ne, %1, %c0_i32_0 : i32
    scf.if %2 {
      %cst_9 = arith.constant 0.000000e+00 : f32
      %12 = vector.broadcast %cst_9 : f32 to vector<32x256xf32>
      %c0_10 = arith.constant 0 : index
      %c0_11 = arith.constant 0 : index
      %13 = vector.load %arg7[%c0_10, %c0_11] : memref<32x256xf32, #tpu.memory_space<vmem>>, vector<32x256xf32>
      tpu.vector_store %arg7[%c0_10, %c0_11], %12 {strides = array<i32>} : memref<32x256xf32, #tpu.memory_space<vmem>>, vector<32x256xf32>,
    } else {
    }
    %c0 = arith.constant 0 : index
    %c0_1 = arith.constant 0 : index
    %3 = vector.load %arg7[%c0, %c0_1] : memref<32x256xf32, #tpu.memory_space<vmem>>, vector<32x256xf32>
    %c0_2 = arith.constant 0 : index
    %c0_3 = arith.constant 0 : index
    %4 = vector.load %arg3[%c0_2, %c0_3] : memref<32x384xbf16, #tpu.memory_space<vmem>>, vector<32x384xbf16>
    %c0_4 = arith.constant 0 : index
    %c0_5 = arith.constant 0 : index
    %5 = vector.load %arg4[%c0_4, %c0_5] : memref<384x256xbf16, #tpu.memory_space<vmem>>, vector<384x256xbf16>
    %cst = arith.constant dense<0.000000e+00> : vector<32x256xf32>
    %6 = tpu.matmul %4, %5, %cst {dimension_numbers = #tpu.dot_dimension_numbers<[1], [0], [0], [1], [0, 0, 1, 1], [], []>} : vector<32x384xbf16>, vector<384x256xbf16>, vector<32x256xf32> -> vector<32x256xf32>
    %7 = arith.addf %3, %6 : vector<32x256xf32>
    %c0_6 = arith.constant 0 : index
    %c0_7 = arith.constant 0 : index
    %8 = vector.load %arg7[%c0_6, %c0_7] : memref<32x256xf32, #tpu.memory_space<vmem>>, vector<32x256xf32>
    tpu.vector_store %arg7[%c0_6, %c0_7], %7 {strides = array<i32>} : memref<32x256xf32, #tpu.memory_space<vmem>>, vector<32x256xf32>,
    %c2_i32 = arith.constant 2 : i32
    %9 = arith.cmpi eq, %arg2, %c2_i32 : i32
    %10 = arith.extui %9 : i1 to i32
    %c0_i32_8 = arith.constant 0 : i32
    %11 = arith.cmpi ne, %10, %c0_i32_8 : i32
    scf.if %11 {
      %c0_9 = arith.constant 0 : index
      %c0_10 = arith.constant 0 : index
      %12 = vector.load %arg7[%c0_9, %c0_10] : memref<32x256xf32, #tpu.memory_space<vmem>>, vector<32x256xf32>
      %c0_11 = arith.constant 0 : index
      %c0_12 = arith.constant 0 : index
      %13 = vector.load %arg5[%c0_11, %c0_12] : memref<1x256xf32, #tpu.memory_space<vmem>>, vector<1x256xf32>
      %14 = vector.broadcast %13 : vector<1x256xf32> to vector<32x256xf32>
      %15 = arith.addf %12, %14 : vector<32x256xf32>
      %cst_13 = arith.constant 0.000000e+00 : f32
      %16 = vector.broadcast %cst_13 : f32 to vector<32x256xf32>
      %17 = arith.maximumf %15, %16 : vector<32x256xf32>
      %18 = arith.truncf %17 : vector<32x256xf32> to vector<32x256xbf16>
      %c0_14 = arith.constant 0 : index
      %c0_15 = arith.constant 0 : index
      %19 = vector.load %arg6[%c0_14, %c0_15] : memref<32x256xbf16, #tpu.memory_space<vmem>>, vector<32x256xbf16>
      tpu.vector_store %arg6[%c0_14, %c0_15], %18 {strides = array<i32>} : memref<32x256xbf16, #tpu.memory_space<vmem>>, vector<32x256xbf16>,
    } else {
    }
    return
  }
  func.func @transform_0(%arg0: i32, %arg1: i32, %arg2: i32) -> (i32, i32) {
    %c0_i32 = arith.constant 0 : i32
    return %arg0, %arg2 : i32, i32
  }
  func.func @transform_1(%arg0: i32, %arg1: i32, %arg2: i32) -> (i32, i32) {
    %c0_i32 = arith.constant 0 : i32
    return %arg2, %arg1 : i32, i32
  }
  func.func @transform_2(%arg0: i32, %arg1: i32, %arg2: i32) -> (i32, i32) {
    %c0_i32 = arith.constant 0 : i32
    %c0_i32_0 = arith.constant 0 : i32
    return %c0_i32, %arg1 : i32, i32
  }
  func.func @transform_3(%arg0: i32, %arg1: i32, %arg2: i32) -> (i32, i32) {
    %c0_i32 = arith.constant 0 : i32
    return %arg0, %arg1 : i32, i32
  }
}

module attributes {stable_mosaic.version = 11 : i64} {
  func.func @_channel_sum_kernel(%arg0: i32, %arg1: i32, %arg2: memref<1x16x256xbf16, #tpu.memory_space<vmem>>, %arg3: memref<1x1x256xf32, #tpu.memory_space<vmem>>) attributes {dimension_semantics = [#tpu.dimension_semantics<parallel>, #tpu.dimension_semantics<arbitrary>], iteration_bounds = array<i64: 2, 1>, scalar_prefetch = 0 : i64, scratch_operands = 0 : i64, tpu.core_type = #tpu.core_type<tc>, window_params = [{transform_indices = @transform_0, window_bounds = array<i64: 1, 16, 256>}, {transform_indices = @transform_1, window_bounds = array<i64: 1, 1, 256>}]} {
    %c0_i32 = arith.constant 0 : i32
    %0 = arith.cmpi eq, %arg1, %c0_i32 : i32
    %1 = arith.extui %0 : i1 to i32
    %c0_i32_0 = arith.constant 0 : i32
    %2 = arith.cmpi ne, %1, %c0_i32_0 : i32
    scf.if %2 {
      %cst_9 = arith.constant 0.000000e+00 : f32
      %10 = vector.broadcast %cst_9 : f32 to vector<1x1x256xf32>
      %c0_10 = arith.constant 0 : index
      %c0_11 = arith.constant 0 : index
      %c0_12 = arith.constant 0 : index
      %11 = vector.load %arg3[%c0_10, %c0_11, %c0_12] : memref<1x1x256xf32, #tpu.memory_space<vmem>>, vector<1x1x256xf32>
      tpu.vector_store %arg3[%c0_10, %c0_11, %c0_12], %10 {strides = array<i32>} : memref<1x1x256xf32, #tpu.memory_space<vmem>>, vector<1x1x256xf32>,
    } else {
    }
    %c0 = arith.constant 0 : index
    %c0_1 = arith.constant 0 : index
    %c0_2 = arith.constant 0 : index
    %3 = vector.load %arg3[%c0, %c0_1, %c0_2] : memref<1x1x256xf32, #tpu.memory_space<vmem>>, vector<1x1x256xf32>
    %c0_3 = arith.constant 0 : index
    %c0_4 = arith.constant 0 : index
    %c0_5 = arith.constant 0 : index
    %4 = vector.load %arg2[%c0_3, %c0_4, %c0_5] : memref<1x16x256xbf16, #tpu.memory_space<vmem>>, vector<1x16x256xbf16>
    %5 = arith.extf %4 : vector<1x16x256xbf16> to vector<1x16x256xf32>
    %cst = arith.constant dense<0.000000e+00> : vector<1x256xf32>
    %6 = vector.multi_reduction <add>, %5, %cst [1] : vector<1x16x256xf32> to vector<1x256xf32>
    %7 = vector.shape_cast %6 : vector<1x256xf32> to vector<1x1x256xf32>
    %8 = arith.addf %3, %7 : vector<1x1x256xf32>
    %c0_6 = arith.constant 0 : index
    %c0_7 = arith.constant 0 : index
    %c0_8 = arith.constant 0 : index
    %9 = vector.load %arg3[%c0_6, %c0_7, %c0_8] : memref<1x1x256xf32, #tpu.memory_space<vmem>>, vector<1x1x256xf32>
    tpu.vector_store %arg3[%c0_6, %c0_7, %c0_8], %8 {strides = array<i32>} : memref<1x1x256xf32, #tpu.memory_space<vmem>>, vector<1x1x256xf32>,
    return
  }
  func.func @transform_0(%arg0: i32, %arg1: i32) -> (i32, i32, i32) {
    %c0_i32 = arith.constant 0 : i32
    %c0_i32_0 = arith.constant 0 : i32
    return %arg0, %arg1, %c0_i32 : i32, i32, i32
  }
  func.func @transform_1(%arg0: i32, %arg1: i32) -> (i32, i32, i32) {
    %c0_i32 = arith.constant 0 : i32
    %c0_i32_0 = arith.constant 0 : i32
    %c0_i32_1 = arith.constant 0 : i32
    return %arg0, %c0_i32, %c0_i32_0 : i32, i32, i32
  }
}

module attributes {stable_mosaic.version = 11 : i64} {
  func.func @_scse_apply_kernel(%arg0: i32, %arg1: i32, %arg2: memref<1x16x256xbf16, #tpu.memory_space<vmem>>, %arg3: memref<1x1x256xf32, #tpu.memory_space<vmem>>, %arg4: memref<1x1x256xf32, #tpu.memory_space<vmem>>, %arg5: memref<1x1xf32, #tpu.memory_space<vmem>>, %arg6: memref<1x16x256xbf16, #tpu.memory_space<vmem>>) attributes {dimension_semantics = [#tpu.dimension_semantics<parallel>, #tpu.dimension_semantics<parallel>], iteration_bounds = array<i64: 2, 1>, scalar_prefetch = 0 : i64, scratch_operands = 0 : i64, tpu.core_type = #tpu.core_type<tc>, window_params = [{transform_indices = @transform_0, window_bounds = array<i64: 1, 16, 256>}, {transform_indices = @transform_1, window_bounds = array<i64: 1, 1, 256>}, {pipeline_mode = #tpu.pipeline_mode<synchronous>, transform_indices = @transform_2, window_bounds = array<i64: 1, 1, 256>}, {pipeline_mode = #tpu.pipeline_mode<synchronous>, transform_indices = @transform_3, window_bounds = array<i64: 1, 1>}, {transform_indices = @transform_4, window_bounds = array<i64: 1, 16, 256>}]} {
    %c0 = arith.constant 0 : index
    %c0_0 = arith.constant 0 : index
    %c0_1 = arith.constant 0 : index
    %0 = vector.load %arg2[%c0, %c0_0, %c0_1] : memref<1x16x256xbf16, #tpu.memory_space<vmem>>, vector<1x16x256xbf16>
    %1 = vector.shape_cast %0 : vector<1x16x256xbf16> to vector<16x256xbf16>
    %2 = arith.extf %1 : vector<16x256xbf16> to vector<16x256xf32>
    %c0_2 = arith.constant 0 : index
    %c0_3 = arith.constant 0 : index
    %c0_4 = arith.constant 0 : index
    %3 = vector.load %arg3[%c0_2, %c0_3, %c0_4] : memref<1x1x256xf32, #tpu.memory_space<vmem>>, vector<1x1x256xf32>
    %4 = vector.shape_cast %3 : vector<1x1x256xf32> to vector<1x256xf32>
    %5 = vector.broadcast %4 : vector<1x256xf32> to vector<16x256xf32>
    %6 = arith.mulf %2, %5 : vector<16x256xf32>
    %c0_5 = arith.constant 0 : index
    %c0_6 = arith.constant 0 : index
    %c0_7 = arith.constant 0 : index
    %7 = vector.load %arg4[%c0_5, %c0_6, %c0_7] : memref<1x1x256xf32, #tpu.memory_space<vmem>>, vector<1x1x256xf32>
    %8 = vector.shape_cast %7 : vector<1x1x256xf32> to vector<1x256xf32>
    %9 = vector.broadcast %8 : vector<1x256xf32> to vector<16x256xf32>
    %10 = arith.mulf %2, %9 : vector<16x256xf32>
    %cst = arith.constant dense<0.000000e+00> : vector<16xf32>
    %11 = vector.multi_reduction <add>, %10, %cst [1] : vector<16x256xf32> to vector<16xf32>
    %12 = vector.shape_cast %11 : vector<16xf32> to vector<16x1xf32>
    %c0_8 = arith.constant 0 : index
    %c0_9 = arith.constant 0 : index
    %13 = vector.load %arg5[%c0_8, %c0_9] : memref<1x1xf32, #tpu.memory_space<vmem>>, vector<1x1xf32>
    %14 = vector.broadcast %13 : vector<1x1xf32> to vector<16x1xf32>
    %15 = arith.addf %12, %14 : vector<16x1xf32>
    %16 = arith.negf %15 : vector<16x1xf32>
    %17 = math.exp %16 : vector<16x1xf32>
    %cst_10 = arith.constant 1.000000e+00 : f32
    %18 = vector.broadcast %cst_10 : f32 to vector<16x1xf32>
    %19 = arith.addf %18, %17 : vector<16x1xf32>
    %20 = arith.divf %18, %19 : vector<16x1xf32>
    %21 = vector.broadcast %20 : vector<16x1xf32> to vector<16x256xf32>
    %22 = arith.mulf %2, %21 : vector<16x256xf32>
    %23 = arith.addf %6, %22 : vector<16x256xf32>
    %24 = arith.truncf %23 : vector<16x256xf32> to vector<16x256xbf16>
    %c0_11 = arith.constant 0 : index
    %c0_12 = arith.constant 0 : index
    %c0_13 = arith.constant 0 : index
    %25 = vector.load %arg6[%c0_11, %c0_12, %c0_13] : memref<1x16x256xbf16, #tpu.memory_space<vmem>>, vector<1x16x256xbf16>
    %26 = vector.shape_cast %25 : vector<1x16x256xbf16> to vector<16x256xbf16>
    %27 = vector.shape_cast %24 : vector<16x256xbf16> to vector<1x16x256xbf16>
    tpu.vector_store %arg6[%c0_11, %c0_12, %c0_13], %27 {strides = array<i32>} : memref<1x16x256xbf16, #tpu.memory_space<vmem>>, vector<1x16x256xbf16>,
    return
  }
  func.func @transform_0(%arg0: i32, %arg1: i32) -> (i32, i32, i32) {
    %c0_i32 = arith.constant 0 : i32
    %c0_i32_0 = arith.constant 0 : i32
    return %arg0, %arg1, %c0_i32 : i32, i32, i32
  }
  func.func @transform_1(%arg0: i32, %arg1: i32) -> (i32, i32, i32) {
    %c0_i32 = arith.constant 0 : i32
    %c0_i32_0 = arith.constant 0 : i32
    %c0_i32_1 = arith.constant 0 : i32
    return %arg0, %c0_i32, %c0_i32_0 : i32, i32, i32
  }
  func.func @transform_2(%arg0: i32, %arg1: i32) -> (i32, i32, i32) {
    %c0_i32 = arith.constant 0 : i32
    %c0_i32_0 = arith.constant 0 : i32
    %c0_i32_1 = arith.constant 0 : i32
    %c0_i32_2 = arith.constant 0 : i32
    return %c0_i32, %c0_i32_0, %c0_i32_1 : i32, i32, i32
  }
  func.func @transform_3(%arg0: i32, %arg1: i32) -> (i32, i32) {
    %c0_i32 = arith.constant 0 : i32
    %c0_i32_0 = arith.constant 0 : i32
    %c0_i32_1 = arith.constant 0 : i32
    return %c0_i32, %c0_i32_0 : i32, i32
  }
  func.func @transform_4(%arg0: i32, %arg1: i32) -> (i32, i32, i32) {
    %c0_i32 = arith.constant 0 : i32
    %c0_i32_0 = arith.constant 0 : i32
    return %arg0, %arg1, %c0_i32 : i32, i32, i32
  }
}

module attributes {stable_mosaic.version = 11 : i64} {
  func.func @_mm_bias_kernel(%arg0: i32, %arg1: i32, %arg2: i32, %arg3: memref<128x384xbf16, #tpu.memory_space<vmem>>, %arg4: memref<384x128xbf16, #tpu.memory_space<vmem>>, %arg5: memref<1x128xf32, #tpu.memory_space<vmem>>, %arg6: memref<128x128xbf16, #tpu.memory_space<vmem>>, %arg7: memref<128x128xf32, #tpu.memory_space<vmem>>) attributes {dimension_semantics = [#tpu.dimension_semantics<parallel>, #tpu.dimension_semantics<parallel>, #tpu.dimension_semantics<arbitrary>], iteration_bounds = array<i64: 1, 1, 9>, scalar_prefetch = 0 : i64, scratch_operands = 1 : i64, tpu.core_type = #tpu.core_type<tc>, window_params = [{transform_indices = @transform_0, window_bounds = array<i64: 128, 384>}, {transform_indices = @transform_1, window_bounds = array<i64: 384, 128>}, {transform_indices = @transform_2, window_bounds = array<i64: 1, 128>}, {transform_indices = @transform_3, window_bounds = array<i64: 128, 128>}]} {
    %c0_i32 = arith.constant 0 : i32
    %0 = arith.cmpi eq, %arg2, %c0_i32 : i32
    %1 = arith.extui %0 : i1 to i32
    %c0_i32_0 = arith.constant 0 : i32
    %2 = arith.cmpi ne, %1, %c0_i32_0 : i32
    scf.if %2 {
      %cst_9 = arith.constant 0.000000e+00 : f32
      %12 = vector.broadcast %cst_9 : f32 to vector<128x128xf32>
      %c0_10 = arith.constant 0 : index
      %c0_11 = arith.constant 0 : index
      %13 = vector.load %arg7[%c0_10, %c0_11] : memref<128x128xf32, #tpu.memory_space<vmem>>, vector<128x128xf32>
      tpu.vector_store %arg7[%c0_10, %c0_11], %12 {strides = array<i32>} : memref<128x128xf32, #tpu.memory_space<vmem>>, vector<128x128xf32>,
    } else {
    }
    %c0 = arith.constant 0 : index
    %c0_1 = arith.constant 0 : index
    %3 = vector.load %arg7[%c0, %c0_1] : memref<128x128xf32, #tpu.memory_space<vmem>>, vector<128x128xf32>
    %c0_2 = arith.constant 0 : index
    %c0_3 = arith.constant 0 : index
    %4 = vector.load %arg3[%c0_2, %c0_3] : memref<128x384xbf16, #tpu.memory_space<vmem>>, vector<128x384xbf16>
    %c0_4 = arith.constant 0 : index
    %c0_5 = arith.constant 0 : index
    %5 = vector.load %arg4[%c0_4, %c0_5] : memref<384x128xbf16, #tpu.memory_space<vmem>>, vector<384x128xbf16>
    %cst = arith.constant dense<0.000000e+00> : vector<128x128xf32>
    %6 = tpu.matmul %4, %5, %cst {dimension_numbers = #tpu.dot_dimension_numbers<[1], [0], [0], [1], [0, 0, 1, 1], [], []>} : vector<128x384xbf16>, vector<384x128xbf16>, vector<128x128xf32> -> vector<128x128xf32>
    %7 = arith.addf %3, %6 : vector<128x128xf32>
    %c0_6 = arith.constant 0 : index
    %c0_7 = arith.constant 0 : index
    %8 = vector.load %arg7[%c0_6, %c0_7] : memref<128x128xf32, #tpu.memory_space<vmem>>, vector<128x128xf32>
    tpu.vector_store %arg7[%c0_6, %c0_7], %7 {strides = array<i32>} : memref<128x128xf32, #tpu.memory_space<vmem>>, vector<128x128xf32>,
    %c8_i32 = arith.constant 8 : i32
    %9 = arith.cmpi eq, %arg2, %c8_i32 : i32
    %10 = arith.extui %9 : i1 to i32
    %c0_i32_8 = arith.constant 0 : i32
    %11 = arith.cmpi ne, %10, %c0_i32_8 : i32
    scf.if %11 {
      %c0_9 = arith.constant 0 : index
      %c0_10 = arith.constant 0 : index
      %12 = vector.load %arg7[%c0_9, %c0_10] : memref<128x128xf32, #tpu.memory_space<vmem>>, vector<128x128xf32>
      %c0_11 = arith.constant 0 : index
      %c0_12 = arith.constant 0 : index
      %13 = vector.load %arg5[%c0_11, %c0_12] : memref<1x128xf32, #tpu.memory_space<vmem>>, vector<1x128xf32>
      %14 = vector.broadcast %13 : vector<1x128xf32> to vector<128x128xf32>
      %15 = arith.addf %12, %14 : vector<128x128xf32>
      %cst_13 = arith.constant 0.000000e+00 : f32
      %16 = vector.broadcast %cst_13 : f32 to vector<128x128xf32>
      %17 = arith.maximumf %15, %16 : vector<128x128xf32>
      %18 = arith.truncf %17 : vector<128x128xf32> to vector<128x128xbf16>
      %c0_14 = arith.constant 0 : index
      %c0_15 = arith.constant 0 : index
      %19 = vector.load %arg6[%c0_14, %c0_15] : memref<128x128xbf16, #tpu.memory_space<vmem>>, vector<128x128xbf16>
      tpu.vector_store %arg6[%c0_14, %c0_15], %18 {strides = array<i32>} : memref<128x128xbf16, #tpu.memory_space<vmem>>, vector<128x128xbf16>,
    } else {
    }
    return
  }
  func.func @transform_0(%arg0: i32, %arg1: i32, %arg2: i32) -> (i32, i32) {
    %c0_i32 = arith.constant 0 : i32
    return %arg0, %arg2 : i32, i32
  }
  func.func @transform_1(%arg0: i32, %arg1: i32, %arg2: i32) -> (i32, i32) {
    %c0_i32 = arith.constant 0 : i32
    return %arg2, %arg1 : i32, i32
  }
  func.func @transform_2(%arg0: i32, %arg1: i32, %arg2: i32) -> (i32, i32) {
    %c0_i32 = arith.constant 0 : i32
    %c0_i32_0 = arith.constant 0 : i32
    return %c0_i32, %arg1 : i32, i32
  }
  func.func @transform_3(%arg0: i32, %arg1: i32, %arg2: i32) -> (i32, i32) {
    %c0_i32 = arith.constant 0 : i32
    return %arg0, %arg1 : i32, i32
  }
}

module attributes {stable_mosaic.version = 11 : i64} {
  func.func @_mm_bias_kernel(%arg0: i32, %arg1: i32, %arg2: i32, %arg3: memref<256x384xbf16, #tpu.memory_space<vmem>>, %arg4: memref<384x128xbf16, #tpu.memory_space<vmem>>, %arg5: memref<1x128xf32, #tpu.memory_space<vmem>>, %arg6: memref<256x128xbf16, #tpu.memory_space<vmem>>, %arg7: memref<256x128xf32, #tpu.memory_space<vmem>>) attributes {dimension_semantics = [#tpu.dimension_semantics<parallel>, #tpu.dimension_semantics<parallel>, #tpu.dimension_semantics<arbitrary>], iteration_bounds = array<i64: 2, 1, 6>, scalar_prefetch = 0 : i64, scratch_operands = 1 : i64, tpu.core_type = #tpu.core_type<tc>, window_params = [{transform_indices = @transform_0, window_bounds = array<i64: 256, 384>}, {transform_indices = @transform_1, window_bounds = array<i64: 384, 128>}, {transform_indices = @transform_2, window_bounds = array<i64: 1, 128>}, {transform_indices = @transform_3, window_bounds = array<i64: 256, 128>}]} {
    %c0_i32 = arith.constant 0 : i32
    %0 = arith.cmpi eq, %arg2, %c0_i32 : i32
    %1 = arith.extui %0 : i1 to i32
    %c0_i32_0 = arith.constant 0 : i32
    %2 = arith.cmpi ne, %1, %c0_i32_0 : i32
    scf.if %2 {
      %cst_9 = arith.constant 0.000000e+00 : f32
      %12 = vector.broadcast %cst_9 : f32 to vector<256x128xf32>
      %c0_10 = arith.constant 0 : index
      %c0_11 = arith.constant 0 : index
      %13 = vector.load %arg7[%c0_10, %c0_11] : memref<256x128xf32, #tpu.memory_space<vmem>>, vector<256x128xf32>
      tpu.vector_store %arg7[%c0_10, %c0_11], %12 {strides = array<i32>} : memref<256x128xf32, #tpu.memory_space<vmem>>, vector<256x128xf32>,
    } else {
    }
    %c0 = arith.constant 0 : index
    %c0_1 = arith.constant 0 : index
    %3 = vector.load %arg7[%c0, %c0_1] : memref<256x128xf32, #tpu.memory_space<vmem>>, vector<256x128xf32>
    %c0_2 = arith.constant 0 : index
    %c0_3 = arith.constant 0 : index
    %4 = vector.load %arg3[%c0_2, %c0_3] : memref<256x384xbf16, #tpu.memory_space<vmem>>, vector<256x384xbf16>
    %c0_4 = arith.constant 0 : index
    %c0_5 = arith.constant 0 : index
    %5 = vector.load %arg4[%c0_4, %c0_5] : memref<384x128xbf16, #tpu.memory_space<vmem>>, vector<384x128xbf16>
    %cst = arith.constant dense<0.000000e+00> : vector<256x128xf32>
    %6 = tpu.matmul %4, %5, %cst {dimension_numbers = #tpu.dot_dimension_numbers<[1], [0], [0], [1], [0, 0, 1, 1], [], []>} : vector<256x384xbf16>, vector<384x128xbf16>, vector<256x128xf32> -> vector<256x128xf32>
    %7 = arith.addf %3, %6 : vector<256x128xf32>
    %c0_6 = arith.constant 0 : index
    %c0_7 = arith.constant 0 : index
    %8 = vector.load %arg7[%c0_6, %c0_7] : memref<256x128xf32, #tpu.memory_space<vmem>>, vector<256x128xf32>
    tpu.vector_store %arg7[%c0_6, %c0_7], %7 {strides = array<i32>} : memref<256x128xf32, #tpu.memory_space<vmem>>, vector<256x128xf32>,
    %c5_i32 = arith.constant 5 : i32
    %9 = arith.cmpi eq, %arg2, %c5_i32 : i32
    %10 = arith.extui %9 : i1 to i32
    %c0_i32_8 = arith.constant 0 : i32
    %11 = arith.cmpi ne, %10, %c0_i32_8 : i32
    scf.if %11 {
      %c0_9 = arith.constant 0 : index
      %c0_10 = arith.constant 0 : index
      %12 = vector.load %arg7[%c0_9, %c0_10] : memref<256x128xf32, #tpu.memory_space<vmem>>, vector<256x128xf32>
      %c0_11 = arith.constant 0 : index
      %c0_12 = arith.constant 0 : index
      %13 = vector.load %arg5[%c0_11, %c0_12] : memref<1x128xf32, #tpu.memory_space<vmem>>, vector<1x128xf32>
      %14 = vector.broadcast %13 : vector<1x128xf32> to vector<256x128xf32>
      %15 = arith.addf %12, %14 : vector<256x128xf32>
      %cst_13 = arith.constant 0.000000e+00 : f32
      %16 = vector.broadcast %cst_13 : f32 to vector<256x128xf32>
      %17 = arith.maximumf %15, %16 : vector<256x128xf32>
      %18 = arith.truncf %17 : vector<256x128xf32> to vector<256x128xbf16>
      %c0_14 = arith.constant 0 : index
      %c0_15 = arith.constant 0 : index
      %19 = vector.load %arg6[%c0_14, %c0_15] : memref<256x128xbf16, #tpu.memory_space<vmem>>, vector<256x128xbf16>
      tpu.vector_store %arg6[%c0_14, %c0_15], %18 {strides = array<i32>} : memref<256x128xbf16, #tpu.memory_space<vmem>>, vector<256x128xbf16>,
    } else {
    }
    return
  }
  func.func @transform_0(%arg0: i32, %arg1: i32, %arg2: i32) -> (i32, i32) {
    %c0_i32 = arith.constant 0 : i32
    return %arg0, %arg2 : i32, i32
  }
  func.func @transform_1(%arg0: i32, %arg1: i32, %arg2: i32) -> (i32, i32) {
    %c0_i32 = arith.constant 0 : i32
    return %arg2, %arg1 : i32, i32
  }
  func.func @transform_2(%arg0: i32, %arg1: i32, %arg2: i32) -> (i32, i32) {
    %c0_i32 = arith.constant 0 : i32
    %c0_i32_0 = arith.constant 0 : i32
    return %c0_i32, %arg1 : i32, i32
  }
  func.func @transform_3(%arg0: i32, %arg1: i32, %arg2: i32) -> (i32, i32) {
    %c0_i32 = arith.constant 0 : i32
    return %arg0, %arg1 : i32, i32
  }
}

module attributes {stable_mosaic.version = 11 : i64} {
  func.func @_scse_apply_seg_kernel(%arg0: i32, %arg1: i32, %arg2: memref<1x256x128xbf16, #tpu.memory_space<vmem>>, %arg3: memref<1x1x128xf32, #tpu.memory_space<vmem>>, %arg4: memref<1x1x128xf32, #tpu.memory_space<vmem>>, %arg5: memref<1x1xf32, #tpu.memory_space<vmem>>, %arg6: memref<128x128xbf16, #tpu.memory_space<vmem>>, %arg7: memref<1x128xf32, #tpu.memory_space<vmem>>, %arg8: memref<1x256x128xf32, #tpu.memory_space<vmem>>) attributes {dimension_semantics = [#tpu.dimension_semantics<parallel>, #tpu.dimension_semantics<parallel>], iteration_bounds = array<i64: 2, 1>, scalar_prefetch = 0 : i64, scratch_operands = 0 : i64, tpu.core_type = #tpu.core_type<tc>, window_params = [{transform_indices = @transform_0, window_bounds = array<i64: 1, 256, 128>}, {transform_indices = @transform_1, window_bounds = array<i64: 1, 1, 128>}, {pipeline_mode = #tpu.pipeline_mode<synchronous>, transform_indices = @transform_2, window_bounds = array<i64: 1, 1, 128>}, {pipeline_mode = #tpu.pipeline_mode<synchronous>, transform_indices = @transform_3, window_bounds = array<i64: 1, 1>}, {pipeline_mode = #tpu.pipeline_mode<synchronous>, transform_indices = @transform_4, window_bounds = array<i64: 128, 128>}, {pipeline_mode = #tpu.pipeline_mode<synchronous>, transform_indices = @transform_5, window_bounds = array<i64: 1, 128>}, {transform_indices = @transform_6, window_bounds = array<i64: 1, 256, 128>}]} {
    %c0 = arith.constant 0 : index
    %c0_0 = arith.constant 0 : index
    %c0_1 = arith.constant 0 : index
    %0 = vector.load %arg2[%c0, %c0_0, %c0_1] : memref<1x256x128xbf16, #tpu.memory_space<vmem>>, vector<1x256x128xbf16>
    %1 = vector.shape_cast %0 : vector<1x256x128xbf16> to vector<256x128xbf16>
    %2 = arith.extf %1 : vector<256x128xbf16> to vector<256x128xf32>
    %c0_2 = arith.constant 0 : index
    %c0_3 = arith.constant 0 : index
    %c0_4 = arith.constant 0 : index
    %3 = vector.load %arg3[%c0_2, %c0_3, %c0_4] : memref<1x1x128xf32, #tpu.memory_space<vmem>>, vector<1x1x128xf32>
    %4 = vector.shape_cast %3 : vector<1x1x128xf32> to vector<1x128xf32>
    %5 = vector.broadcast %4 : vector<1x128xf32> to vector<256x128xf32>
    %6 = arith.mulf %2, %5 : vector<256x128xf32>
    %c0_5 = arith.constant 0 : index
    %c0_6 = arith.constant 0 : index
    %c0_7 = arith.constant 0 : index
    %7 = vector.load %arg4[%c0_5, %c0_6, %c0_7] : memref<1x1x128xf32, #tpu.memory_space<vmem>>, vector<1x1x128xf32>
    %8 = vector.shape_cast %7 : vector<1x1x128xf32> to vector<1x128xf32>
    %9 = vector.broadcast %8 : vector<1x128xf32> to vector<256x128xf32>
    %10 = arith.mulf %2, %9 : vector<256x128xf32>
    %cst = arith.constant dense<0.000000e+00> : vector<256xf32>
    %11 = vector.multi_reduction <add>, %10, %cst [1] : vector<256x128xf32> to vector<256xf32>
    %12 = vector.shape_cast %11 : vector<256xf32> to vector<256x1xf32>
    %c0_8 = arith.constant 0 : index
    %c0_9 = arith.constant 0 : index
    %13 = vector.load %arg5[%c0_8, %c0_9] : memref<1x1xf32, #tpu.memory_space<vmem>>, vector<1x1xf32>
    %14 = vector.broadcast %13 : vector<1x1xf32> to vector<256x1xf32>
    %15 = arith.addf %12, %14 : vector<256x1xf32>
    %16 = arith.negf %15 : vector<256x1xf32>
    %17 = math.exp %16 : vector<256x1xf32>
    %cst_10 = arith.constant 1.000000e+00 : f32
    %18 = vector.broadcast %cst_10 : f32 to vector<256x1xf32>
    %19 = arith.addf %18, %17 : vector<256x1xf32>
    %20 = arith.divf %18, %19 : vector<256x1xf32>
    %21 = vector.broadcast %20 : vector<256x1xf32> to vector<256x128xf32>
    %22 = arith.mulf %2, %21 : vector<256x128xf32>
    %23 = arith.addf %6, %22 : vector<256x128xf32>
    %24 = arith.truncf %23 : vector<256x128xf32> to vector<256x128xbf16>
    %c0_11 = arith.constant 0 : index
    %c0_12 = arith.constant 0 : index
    %25 = vector.load %arg6[%c0_11, %c0_12] : memref<128x128xbf16, #tpu.memory_space<vmem>>, vector<128x128xbf16>
    %cst_13 = arith.constant dense<0.000000e+00> : vector<256x128xf32>
    %26 = tpu.matmul %24, %25, %cst_13 {dimension_numbers = #tpu.dot_dimension_numbers<[1], [0], [0], [1], [0, 0, 1, 1], [], []>} : vector<256x128xbf16>, vector<128x128xbf16>, vector<256x128xf32> -> vector<256x128xf32>
    %c0_14 = arith.constant 0 : index
    %c0_15 = arith.constant 0 : index
    %27 = vector.load %arg7[%c0_14, %c0_15] : memref<1x128xf32, #tpu.memory_space<vmem>>, vector<1x128xf32>
    %28 = vector.broadcast %27 : vector<1x128xf32> to vector<256x128xf32>
    %29 = arith.addf %26, %28 : vector<256x128xf32>
    %c0_16 = arith.constant 0 : index
    %c0_17 = arith.constant 0 : index
    %c0_18 = arith.constant 0 : index
    %30 = vector.load %arg8[%c0_16, %c0_17, %c0_18] : memref<1x256x128xf32, #tpu.memory_space<vmem>>, vector<1x256x128xf32>
    %31 = vector.shape_cast %30 : vector<1x256x128xf32> to vector<256x128xf32>
    %32 = vector.shape_cast %29 : vector<256x128xf32> to vector<1x256x128xf32>
    tpu.vector_store %arg8[%c0_16, %c0_17, %c0_18], %32 {strides = array<i32>} : memref<1x256x128xf32, #tpu.memory_space<vmem>>, vector<1x256x128xf32>,
    return
  }
  func.func @transform_0(%arg0: i32, %arg1: i32) -> (i32, i32, i32) {
    %c0_i32 = arith.constant 0 : i32
    %c0_i32_0 = arith.constant 0 : i32
    return %arg0, %arg1, %c0_i32 : i32, i32, i32
  }
  func.func @transform_1(%arg0: i32, %arg1: i32) -> (i32, i32, i32) {
    %c0_i32 = arith.constant 0 : i32
    %c0_i32_0 = arith.constant 0 : i32
    %c0_i32_1 = arith.constant 0 : i32
    return %arg0, %c0_i32, %c0_i32_0 : i32, i32, i32
  }
  func.func @transform_2(%arg0: i32, %arg1: i32) -> (i32, i32, i32) {
    %c0_i32 = arith.constant 0 : i32
    %c0_i32_0 = arith.constant 0 : i32
    %c0_i32_1 = arith.constant 0 : i32
    %c0_i32_2 = arith.constant 0 : i32
    return %c0_i32, %c0_i32_0, %c0_i32_1 : i32, i32, i32
  }
  func.func @transform_3(%arg0: i32, %arg1: i32) -> (i32, i32) {
    %c0_i32 = arith.constant 0 : i32
    %c0_i32_0 = arith.constant 0 : i32
    %c0_i32_1 = arith.constant 0 : i32
    return %c0_i32, %c0_i32_0 : i32, i32
  }
  func.func @transform_4(%arg0: i32, %arg1: i32) -> (i32, i32) {
    %c0_i32 = arith.constant 0 : i32
    %c0_i32_0 = arith.constant 0 : i32
    %c0_i32_1 = arith.constant 0 : i32
    return %c0_i32, %c0_i32_0 : i32, i32
  }
  func.func @transform_5(%arg0: i32, %arg1: i32) -> (i32, i32) {
    %c0_i32 = arith.constant 0 : i32
    %c0_i32_0 = arith.constant 0 : i32
    %c0_i32_1 = arith.constant 0 : i32
    return %c0_i32, %c0_i32_0 : i32, i32
  }
  func.func @transform_6(%arg0: i32, %arg1: i32) -> (i32, i32, i32) {
    %c0_i32 = arith.constant 0 : i32
    %c0_i32_0 = arith.constant 0 : i32
    return %arg0, %arg1, %c0_i32 : i32, i32, i32
  }
}

</mosaic_0001>

<bundles_post_ra>
// kernel: model_forward.16
= control target key start
LH: loop header
LB: loop body
LE: loop exit
PB: predicated region body
PF: predicated region fallthrough
CT: control target
= control target key end

     0   :  { %s460_s6 = smov 0   ;;  %s462_s7 = smov 0   ;;  %s516_s0 = inlined_call_operand.vmem [shape: bf16[2,256,128], index: 0, kind: input, shape index: {}]   ;;  %s517_s1 = inlined_call_operand.vmem [shape: f32[2,1,128], index: 1, kind: output, shape index: {}]  }
   0x1   :  { %s464_s8 = smov 0  }
   0x2 LB: > { %s23_s9 = sadd.s32 1, %s443_s7  ;;  %p315_p0 = scmp.ge.s32.totalorder %s447_s8, 1  ;;  %s447_s8 = sphi %s464_s8, %s11_s8   ;;  %s443_s7 = sphi %s462_s7, %s519_s7   ;;  %s439_s6 = sphi %s460_s6, %s518_s6  }
   0x3   : > { %p25_p1 = scmp.ge.s32.totalorder %s23_s9, 2  ;;  %p106_p2 = scmp.lt.s32.totalorder %s447_s8, 3 }
   0x5   : > { %s521_s9 = smov (%p25_p1, %s23_s9), 0  ;;  %p107_p3 = pnand %p315_p0, %p106_p2 }
   0x6   : > { %p129_p4 = scmp.lt.s32.totalorder (!%p107_p3), %s439_s6, 1  ;;  %v449_v0 = vmov (!%p107_p3), 0.0  }
   0x7   : > { %110 = sbr.rel (%p107_p3) target bundleno = 97 (0x61), region = 24 }
   0xe   : > { %s523_s6 = smov (!%p129_p4, %s439_s6), 1 }
   0xf   : > { %s320_s10 = sshll.u32 %s523_s6, 7  ;;  %s481_s13 = scalar_lea.vmem %s517_s1, %s523_s6 }
  0x10   : > { %s486_s16 = scalar_lea.vmem %s516_s0, %s320_s10  ;;  %145 = vst [vmem:[%s481_s13] sm:$0x1] %v449_v0 }
  0x11   : > { %v322_v1 = vld [vmem:[%s486_s16] sm:$0xff]   ;;  %v385_v2 = vld [vmem:[%s486_s16 + $0x8] sm:$0xff]   ;;  %v386_v6 = vld [vmem:[%s486_s16 + $0x10] sm:$0xff]  }
  0x12   : > { %v323_v3 = vunpack.c.l.bf16 %v322_v1  ;;  %v324_v4 = vunpack.c.h.bf16 %v322_v1  ;;  %v327_v5 = vunpack.c.l.bf16 %v385_v2  ;;  %v328_v7 = vunpack.c.h.bf16 %v385_v2  ;;  %v387_v11 = vld [vmem:[%s486_s16 + $0x18] sm:$0xff]   ;;  %v388_v16 = vld [vmem:[%s486_s16 + $0x20] sm:$0xff]   ;;  %v389_v21 = vld [vmem:[%s486_s16 + $0x28] sm:$0xff]  }
  0x13   : > { %v331_v9 = vunpack.c.l.bf16 %v386_v6  ;;  %v332_v12 = vunpack.c.h.bf16 %v386_v6  ;;  %v335_v14 = vunpack.c.l.bf16 %v387_v11  ;;  %v336_v17 = vunpack.c.h.bf16 %v387_v11  ;;  %v390_v26 = vld [vmem:[%s486_s16 + $0x30] sm:$0xff]   ;;  %v391_v31 = vld [vmem:[%s486_s16 + $0x38] sm:$0xff]   ;;  %v392_v36 = vld [vmem:[%s486_s16 + $0x40] sm:$0xff]  }
  0x14   : > { %v211_v8 = vadd.f32 %v324_v4, %v323_v3  ;;  %v339_v19 = vunpack.c.l.bf16 %v388_v16  ;;  %v340_v22 = vunpack.c.h.bf16 %v388_v16  ;;  %v343_v24 = vunpack.c.l.bf16 %v389_v21  ;;  %v393_v41 = vld [vmem:[%s486_s16 + $0x48] sm:$0xff]   ;;  %v394_v46 = vld [vmem:[%s486_s16 + $0x50] sm:$0xff]   ;;  %v395_v51 = vld [vmem:[%s486_s16 + $0x58] sm:$0xff]  }
  0x15   : > { %v344_v27 = vunpack.c.h.bf16 %v389_v21  ;;  %v347_v29 = vunpack.c.l.bf16 %v390_v26  ;;  %v348_v32 = vunpack.c.h.bf16 %v390_v26  ;;  %v351_v34 = vunpack.c.l.bf16 %v391_v31  ;;  %v396_v56 = vld [vmem:[%s486_s16 + $0x60] sm:$0xff]   ;;  %v397_v61 = vld [vmem:[%s486_s16 + $0x68] sm:$0xff]   ;;  %v398_v2 = vld [vmem:[%s486_s16 + $0x70] sm:$0xff]  }
  0x16   : > { %v212_v10 = vadd.f32 %v327_v5, %v211_v8  ;;  %v352_v37 = vunpack.c.h.bf16 %v391_v31  ;;  %v355_v39 = vunpack.c.l.bf16 %v392_v36  ;;  %v356_v42 = vunpack.c.h.bf16 %v392_v36 }
  0x17   : > { %v359_v44 = vunpack.c.l.bf16 %v393_v41  ;;  %v360_v47 = vunpack.c.h.bf16 %v393_v41  ;;  %v363_v49 = vunpack.c.l.bf16 %v394_v46  ;;  %v364_v52 = vunpack.c.h.bf16 %v394_v46  ;;  %v146_v21 = vld [vmem:[%s481_s13] sm:$0x1] }
  0x18   : > { %v213_v13 = vadd.f32 %v328_v7, %v212_v10  ;;  %v367_v54 = vunpack.c.l.bf16 %v395_v51  ;;  %v368_v57 = vunpack.c.h.bf16 %v395_v51  ;;  %v371_v59 = vunpack.c.l.bf16 %v396_v56  ;;  %v399_v7 = vld [vmem:[%s486_s16 + $0x78] sm:$0xff]  }
  0x19   : > { %v372_v62 = vunpack.c.h.bf16 %v396_v56  ;;  %v375_v0 = vunpack.c.l.bf16 %v397_v61  ;;  %v376_v3 = vunpack.c.h.bf16 %v397_v61  ;;  %v379_v5 = vunpack.c.l.bf16 %v398_v2 }
  0x1a   : > { %v214_v15 = vadd.f32 %v331_v9, %v213_v13  ;;  %v380_v8 = vunpack.c.h.bf16 %v398_v2  ;;  %v383_v10 = vunpack.c.l.bf16 %v399_v7 }
  0x1c   : > { %v215_v18 = vadd.f32 %v332_v12, %v214_v15  ;;  %v384_v12 = vunpack.c.h.bf16 %v399_v7 }
  0x1e   : > { %v216_v20 = vadd.f32 %v335_v14, %v215_v18 }
  0x20   : > { %v217_v23 = vadd.f32 %v336_v17, %v216_v20 }
  0x22   : > { %v218_v25 = vadd.f32 %v339_v19, %v217_v23 }
  0x24   : > { %v219_v28 = vadd.f32 %v340_v22, %v218_v25 }
  0x26   : > { %v220_v30 = vadd.f32 %v343_v24, %v219_v28 }
  0x28   : > { %v221_v33 = vadd.f32 %v344_v27, %v220_v30 }
  0x2a   : > { %v222_v35 = vadd.f32 %v347_v29, %v221_v33 }
  0x2c   : > { %v223_v38 = vadd.f32 %v348_v32, %v222_v35 }
  0x2e   : > { %v224_v40 = vadd.f32 %v351_v34, %v223_v38 }
  0x30   : > { %v225_v43 = vadd.f32 %v352_v37, %v224_v40 }
  0x32   : > { %v226_v45 = vadd.f32 %v355_v39, %v225_v43 }
  0x34   : > { %v227_v48 = vadd.f32 %v356_v42, %v226_v45 }
  0x36   : > { %v228_v50 = vadd.f32 %v359_v44, %v227_v48 }
  0x38   : > { %v229_v53 = vadd.f32 %v360_v47, %v228_v50 }
  0x3a   : > { %v230_v55 = vadd.f32 %v363_v49, %v229_v53 }
  0x3c   : > { %v231_v58 = vadd.f32 %v364_v52, %v230_v55 }
  0x3e   : > { %v232_v60 = vadd.f32 %v367_v54, %v231_v58 }
  0x40   : > { %v233_v63 = vadd.f32 %v368_v57, %v232_v60 }
  0x42   : > { %v234_v1 = vadd.f32 %v371_v59, %v233_v63 }
  0x44   : > { %v235_v4 = vadd.f32 %v372_v62, %v234_v1 }
  0x46   : > { %v236_v6 = vadd.f32 %v375_v0, %v235_v4 }
  0x48   : > { %v237_v9 = vadd.f32 %v376_v3, %v236_v6 }
  0x4a   : > { %v238_v11 = vadd.f32 %v379_v5, %v237_v9 }
  0x4c   : > { %v239_v13 = vadd.f32 %v380_v8, %v238_v11 }
  0x4e   : > { %v240_v14 = vadd.f32 %v383_v10, %v239_v13 }
  0x50   : > { %v241_v15 = vadd.f32 %v384_v12, %v240_v14 }
  0x52   : > { %v242_v16 = vrot.slane %v241_v15, 4 }
  0x54   : > { %v243_v17 = vadd.f32 %v242_v16, %v241_v15 }
  0x56   : > { %v244_v18 = vrot.slane %v243_v17, 2 }
  0x58   : > { %v245_v19 = vadd.f32 %v244_v18, %v243_v17 }
  0x5a   : > { %v246_v20 = vrot.slane %v245_v19, 1 }
  0x5c   : > { %v247_v22 = vadd.f32 %v246_v20, %v245_v19 }
  0x5e   : > { %v248_v23 = vadd.f32 %v247_v22, %v146_v21 }
  0x60   : > { %249 = vst [vmem:[%s481_s13] sm:$0x1] %v248_v23 }
  0x61 PF: > { %s11_s8 = sadd.s32 1, %s447_s8   ;;  %s518_s6 = smov %s443_s7 }
  0x62   : > { %p8_p5 = scmp.ge.s32.totalorder %s11_s8, 4   ;;  %s519_s7 = smov %s521_s9 }
  0x64   :  { %10 = sbr.rel (!%p8_p5) target bundleno = 2 (0x2), region = 58 }

// kernel: model_forward.15
= control target key start
LH: loop header
LB: loop body
LE: loop exit
PB: predicated region body
PF: predicated region fallthrough
CT: control target
= control target key end

     0   :  { %8 = vsyncpa [#allocation4], 0  ;;  %s1780_s0 = inlined_call_operand.vmem [shape: bf16[512,128], index: 0, kind: input, shape index: {}]   ;;  %s1781_s1 = inlined_call_operand.hbm [shape: bf16[128,128], index: 1, kind: input, shape index: {}]   ;;  %s1782_s2 = inlined_call_operand.hbm [shape: f32[1,128], index: 2, kind: input, shape index: {}]   ;;  %s1783_s3 = inlined_call_operand.vmem [shape: bf16[512,128], index: 3, kind: output, shape index: {}]  }
   0x1   :  { %9 = vsyncpa [#allocation6], 0  ;;  %s1590_s12 = smov 0   ;;  %s1592_s13 = smov 0  }
   0x2   :  { %s1594_s14 = smov 0  }
   0x3 LB: > { %s1120_s15 = sadd.s32 4294967295, %s1564_s14   ;;  %s34_s16 = sadd.s32 1, %s1560_s13  ;;  %s1564_s14 = sphi %s1594_s14, %s15_s14   ;;  %s1560_s13 = sphi %s1592_s13, %s1793_s13   ;;  %s1556_s12 = sphi %s1590_s12, %s1792_s12  }
   0x4   : > { %p36_p0 = scmp.ge.s32.totalorder %s34_s16, 2  ;;  %p1122_p1 = scmp.ge.s32.totalorder %s1564_s14, 1 }
   0x5   : > { %p149_p2 = scmp.lt.s32.totalorder %s1564_s14, 3  ;;  %p1615_p4 = scmp.eq.s32.totalorder %s1120_s15, 0 }
   0x6   : > { %s1795_s16 = smov (%p36_p0, %s34_s16), 0  ;;  %s1566_s19 = smov [#allocation3]  }
   0x7   : > { %p1611_p3 = pnand %p1122_p1, %p149_p2  ;;  %s165_s20 = sshll.u32 %s1566_s19, 4  ;;  %s166_s20 = int_to_ptr.vmem [resolvable:$true] %s165_s20 }
   0x8   : > { %s1788_s18 = scalar_select %p1615_p4, 1, 0 }
   0x9   : > { %s1787_s17 = scalar_select %p1611_p3, 1, 0 }
   0xa   : > { %p1415_p5 = pneg %p1611_p3  ;;  %s1567_s22 = smov [#allocation5]  }
   0xb   : > { %s181_s23 = sshll.u32 %s1567_s22, 4  ;;  %s1478_s26 = scalar_lea.hbm %s1781_s1, 1024  ;;  %s1627_s23 = int_to_ptr.vmem [resolvable:$true] %s181_s23 }
   0xc   : > { %p1623_p6 = pnand %p1615_p4, %p1415_p5  ;;  %p1479_p7 = scmp.ne.s32.totalorder %s1781_s1, %s1478_s26 }
   0xd   : > { %p1485_p11 = scmp.lt.u32.totalorder %s1478_s26, %s1781_s1 }
   0xe   : > { %p1480_p8 = pneg %p1623_p6 }
  0x10   : > { %p1481_p9 = pnand %p1480_p8, %p1479_p7 }
  0x12   : > { %p1482_p10 = pneg %p1481_p9 }
  0x14   : > { %p1487_p12 = pnand %p1485_p11, %p1482_p10 }
  0x16   : > { %1490 = shalt.err (!%p1487_p12)
}
  0x17   : > { %s1491_s4 = scalar_lea.vmem %s166_s20, 1024  ;;  %p1499_p2 = scmp.lt.s32.totalorder %s166_s20, %s166_s20 }
  0x18   : > { %p1492_p13 = scmp.ne.s32.totalorder %s166_s20, %s1491_s4  ;;  %p1500_p5 = scmp.lt.s32.totalorder %s1491_s4, %s1491_s4 }
  0x1a   : > { %p1494_p0 = pnand %p1492_p13, %p1480_p8  ;;  %p1501_p4 = por %p1500_p5, %p1499_p2 }
  0x1c   : > { %p1495_p1 = pneg %p1494_p0 }
  0x1e   : > { %p1502_p3 = pnand %p1501_p4, %p1495_p1 }
  0x20   : > { %1505 = shalt.err (!%p1502_p3)
}
  0x21   : > { %s1568_s5 = smov 64   ;;  %s1569_s6 = smov 4  }
  0x22   : > { %1418 = dma.hbm_to_vmem [thread:$0]  (!%p1623_p6), %s1781_s1, 1024, %s166_s20, [#allocation4], %s1568_s5, %s1568_s5, %s1569_s6  }
  0x23   : > { %s1506_s11 = scalar_lea.hbm %s1782_s2, 16 }
  0x24   : > { %p1507_p7 = scmp.ne.s32.totalorder %s1782_s2, %s1506_s11  ;;  %p1513_p9 = scmp.lt.u32.totalorder %s1506_s11, %s1782_s2 }
  0x26   : > { %p1509_p3 = pnand %p1507_p7, %p1480_p8 }
  0x28   : > { %p1510_p4 = pneg %p1509_p3 }
  0x2a   : > { %p1515_p10 = pnand %p1513_p9, %p1510_p4 }
  0x2c   : > { %1518 = shalt.err (!%p1515_p10)
}
  0x2d   : > { %s1519_s20 = scalar_lea.vmem %s1627_s23, 16  ;;  %s1526_s25 = scalar_lea.vmem %s1627_s23, 32 }
  0x2e   : > { %p1520_p11 = scmp.ne.s32.totalorder %s1627_s23, %s1519_s20  ;;  %p1527_p0 = scmp.lt.s32.totalorder %s1627_s23, %s1627_s23 }
  0x2f   : > { %p1528_p1 = scmp.lt.s32.totalorder %s1526_s25, %s1519_s20 }
  0x30   : > { %p1522_p12 = pnand %p1520_p11, %p1480_p8 }
  0x31   : > { %p1529_p2 = por %p1528_p1, %p1527_p0 }
  0x32   : > { %p1523_p13 = pneg %p1522_p12 }
  0x34   : > { %p1530_p5 = pnand %p1529_p2, %p1523_p13 }
  0x36   : > { %1533 = shalt.err (!%p1530_p5)
}
  0x37   : > { %1421 = dma.hbm_to_vmem [thread:$0]  (!%p1623_p6), %s1782_s2, 16, %s1627_s23, [#allocation6]  }
  0x38   : > { %p1790_p7 = scmp.ne.s32.totalorder %s1787_s17, 0 }
  0x39   : > { %p1791_p8 = scmp.ne.s32.totalorder (!%p1790_p7), %s1788_s18, 0 }
  0x3a   : > { %206 = sbr.rel (%p1790_p7) target bundleno = 347 (0x15b), region = 32 }
  0x41   : > { %1547 = dma.done.wait (%p1791_p8), [#allocation4], 1024  }
  0x42   : > { %1549 = vsyncadd (%p1791_p8), [#allocation4], 4294966272 }
  0x43   : > { %1551 = dma.done.wait (%p1791_p8), [#allocation6], 16  }
  0x44   : > { %1553 = vsyncadd (%p1791_p8), [#allocation6], 4294967280  ;;  %s1129_s21 = sshll.u32 %s1556_s12, 5  ;;  %v1454_v0 = vld [vmem:[#allocation3] sm:$0xff]   ;;  %v1455_v1 = vld [vmem:[#allocation3 + $0x8] sm:$0xff]  }
  0x45   : > { %p241_p3 = scmp.lt.s32.totalorder %s1129_s21, 63  ;;  %1343 = vmatprep.subr.bf16.mxu0 %v1454_v0  ;;  %1391 = vmatprep.subr.bf16.mxu1 %v1454_v0  ;;  %v1456_v2 = vld [vmem:[#allocation3 + $0x10] sm:$0xff]   ;;  %v1457_v3 = vld [vmem:[#allocation3 + $0x18] sm:$0xff]   ;;  %v1458_v6 = vld [vmem:[#allocation3 + $0x20] sm:$0xff]  }
  0x46   : > { %1344 = vmatpush3.bf16.msra.mxu0 %v1454_v0  ;;  %1399 = vmatpush3.bf16.msra.mxu1 %v1454_v0  ;;  %v1459_v7 = vld [vmem:[#allocation3 + $0x28] sm:$0xff]   ;;  %v1460_v8 = vld [vmem:[#allocation3 + $0x30] sm:$0xff]   ;;  %v1461_v9 = vld [vmem:[#allocation3 + $0x38] sm:$0xff]  }
  0x47   : > { %s1797_s21 = smov (!%p241_p3, %s1129_s21), 63  ;;  %1345 = vmatprep.subr.bf16.mxu0 %v1455_v1  ;;  %1392 = vmatprep.subr.bf16.mxu1 %v1455_v1  ;;  %v1714_v24 = vld [vmem:[#allocation5] ss:$0 sm:$0xff] }
  0x48   : > { %s1130_s17 = sshll.u32 %s1797_s21, 2 }
  0x49   : > { %s1696_s12 = scalar_lea.vmem %s1780_s0, %s1130_s17  ;;  %s1729_s30 = scalar_lea.vmem %s1783_s3, %s1130_s17 }
  0x4a   : > { %1346 = vmatpush3.bf16.msra.mxu0 %v1455_v1  ;;  %1400 = vmatpush3.bf16.msra.mxu1 %v1455_v1  ;;  %v1462_v4 = vld [vmem:[%s1696_s12] sm:$0xff]   ;;  %v1464_v10 = vld [vmem:[%s1696_s12 + $0x8] sm:$0xff]   ;;  %v1466_v12 = vld [vmem:[%s1696_s12 + $0x10] sm:$0xff]  }
  0x4b   : > { %1347 = vmatprep.subr.bf16.mxu0 %v1456_v2  ;;  %1393 = vmatprep.subr.bf16.mxu1 %v1456_v2  ;;  %v1463_v5 = vld [vmem:[%s1696_s12 + $0x40] sm:$0xff]   ;;  %v1465_v11 = vld [vmem:[%s1696_s12 + $0x48] sm:$0xff]   ;;  %v1467_v13 = vld [vmem:[%s1696_s12 + $0x50] sm:$0xff]  }
  0x4c   : > { %1359 = vmatprep.mubr.bf16.mxu0 %v1462_v4  ;;  %1375 = vmatprep.mubr.bf16.mxu1 %v1463_v5  ;;  %v1468_v14 = vld [vmem:[%s1696_s12 + $0x18] sm:$0xff]   ;;  %v1470_v16 = vld [vmem:[%s1696_s12 + $0x20] sm:$0xff]   ;;  %v1472_v18 = vld [vmem:[%s1696_s12 + $0x28] sm:$0xff]  }
  0x4d   : > { %v1469_v15 = vld [vmem:[%s1696_s12 + $0x58] sm:$0xff]   ;;  %v1471_v17 = vld [vmem:[%s1696_s12 + $0x60] sm:$0xff]   ;;  %v1473_v19 = vld [vmem:[%s1696_s12 + $0x68] sm:$0xff]  }
  0x4e   : > { %1348 = vmatpush3.bf16.msra.mxu0 %v1456_v2  ;;  %1401 = vmatpush3.bf16.msra.mxu1 %v1456_v2  ;;  %v1474_v20 = vld [vmem:[%s1696_s12 + $0x30] sm:$0xff]   ;;  %v1476_v22 = vld [vmem:[%s1696_s12 + $0x38] sm:$0xff]  }
  0x4f   : > { %1349 = vmatprep.subr.bf16.mxu0 %v1457_v3  ;;  %1394 = vmatprep.subr.bf16.mxu1 %v1457_v3  ;;  %v1475_v21 = vld [vmem:[%s1696_s12 + $0x70] sm:$0xff]   ;;  %v1477_v23 = vld [vmem:[%s1696_s12 + $0x78] sm:$0xff]  }
  0x52   : > { %1350 = vmatpush3.bf16.msra.mxu0 %v1457_v3  ;;  %1402 = vmatpush3.bf16.msra.mxu1 %v1457_v3 }
  0x53   : > { %1351 = vmatprep.subr.bf16.mxu0 %v1458_v6  ;;  %1395 = vmatprep.subr.bf16.mxu1 %v1458_v6 }
  0x56   : > { %1352 = vmatpush3.bf16.msra.mxu0 %v1458_v6  ;;  %1403 = vmatpush3.bf16.msra.mxu1 %v1458_v6 }
  0x57   : > { %1353 = vmatprep.subr.bf16.mxu0 %v1459_v7  ;;  %1396 = vmatprep.subr.bf16.mxu1 %v1459_v7 }
  0x5a   : > { %1354 = vmatpush3.bf16.msra.mxu0 %v1459_v7  ;;  %1404 = vmatpush3.bf16.msra.mxu1 %v1459_v7 }
  0x5b   : > { %1355 = vmatprep.subr.bf16.mxu0 %v1460_v8  ;;  %1397 = vmatprep.subr.bf16.mxu1 %v1460_v8 }
  0x5e   : > { %1356 = vmatpush3.bf16.msra.mxu0 %v1460_v8  ;;  %1405 = vmatpush3.bf16.msra.mxu1 %v1460_v8 }
  0x5f   : > { %1357 = vmatprep.subr.bf16.mxu0 %v1461_v9  ;;  %1398 = vmatprep.subr.bf16.mxu1 %v1461_v9 }
  0x62   : > { %1358 = vmatpush3.bf16.msra.mxu0 %v1461_v9  ;;  %1406 = vmatpush3.bf16.msra.mxu1 %v1461_v9 }
  0x65   : > { %1360 = vmatmul.mubr.bf16.vlgmr.msra.gmra.mrb[0].mxu0 %v1464_v10  ;;  %1376 = vmatmul.mubr.bf16.vlgmr.msra.gmra.mrb[0].mxu1 %v1465_v11 }
  0x66   : > { %1363 = vmatprep.mubr.bf16.mxu0 %v1466_v12  ;;  %1379 = vmatprep.mubr.bf16.mxu1 %v1467_v13 }
  0x6d   : > { %1364 = vmatmul.mubr.bf16.gmra.mrb[4].mxu0 %v1468_v14  ;;  %1380 = vmatmul.mubr.bf16.gmra.mrb[4].mxu1 %v1469_v15 }
  0x6e   : > { %1367 = vmatprep.mubr.bf16.mxu0 %v1470_v16  ;;  %1383 = vmatprep.mubr.bf16.mxu1 %v1471_v17 }
  0x75   : > { %1368 = vmatmul.mubr.bf16.gmra.mrb[8].mxu0 %v1472_v18  ;;  %1384 = vmatmul.mubr.bf16.gmra.mrb[8].mxu1 %v1473_v19 }
  0x76   : > { %1371 = vmatprep.mubr.bf16.mxu0 %v1474_v20  ;;  %1387 = vmatprep.mubr.bf16.mxu1 %v1475_v21 }
  0x7d   : > { %1372 = vmatmul.mubr.bf16.gmra.mrb[12].mxu0 %v1476_v22  ;;  %1388 = vmatmul.mubr.bf16.gmra.mrb[12].mxu1 %v1477_v23 }
 0x138   : > { %v1361_v25 = vpop.f32.mrb[0].mxu0  ;;  %v1377_v26 = vpop.f32.mrb[0].mxu1 }
 0x139   : > { %v789_v27 = vadd.f32 %v1361_v25, %v1714_v24  ;;  %v805_v28 = vadd.f32 %v1377_v26, %v1714_v24  ;;  %v554_v29 = vpop.f32.mrb[1].mxu0  ;;  %v618_v30 = vpop.f32.mrb[1].mxu1 }
 0x13a   : > { %v787_v31 = vadd.f32 %v1714_v24, %v554_v29  ;;  %v803_v32 = vadd.f32 %v1714_v24, %v618_v30  ;;  %v1362_v33 = vpop.f32.mrb[2].mxu0  ;;  %v1378_v34 = vpop.f32.mrb[2].mxu1 }
 0x13b   : > { %v790_v35 = vadd.f32 %v1362_v33, %v1714_v24  ;;  %v806_v36 = vadd.f32 %v1378_v34, %v1714_v24  ;;  %v557_v37 = vpop.f32.mrb[3].mxu0  ;;  %v621_v38 = vpop.f32.mrb[3].mxu1  ;;  %v821_v41 = vmax.f32 %v789_v27, 0.0  ;;  %v837_v42 = vmax.f32 %v805_v28, 0.0 }
 0x13c   : > { %v788_v39 = vadd.f32 %v1714_v24, %v557_v37  ;;  %v804_v40 = vadd.f32 %v1714_v24, %v621_v38  ;;  %v819_v45 = vmax.f32 %v787_v31, 0.0  ;;  %v835_v46 = vmax.f32 %v803_v32, 0.0 }
 0x13d   : > { %v822_v43 = vmax.f32 %v790_v35, 0.0  ;;  %v838_v44 = vmax.f32 %v806_v36, 0.0 }
 0x13e   : > { %v820_v47 = vmax.f32 %v788_v39, 0.0  ;;  %v836_v48 = vmax.f32 %v804_v40, 0.0 }
 0x13f   : > { %v1232_v49 = vpack.c.bf16 %v822_v43, %v821_v41  ;;  %v1272_v50 = vpack.c.bf16 %v838_v44, %v837_v42 }
 0x140   : > { %v1227_v51 = vpack.c.bf16 %v820_v47, %v819_v45  ;;  %v1267_v52 = vpack.c.bf16 %v836_v48, %v835_v46  ;;  %v1365_v53 = vpop.f32.mrb[4].mxu0  ;;  %v1381_v54 = vpop.f32.mrb[4].mxu1 }
 0x141   : > { %1304 = vst [vmem:[%s1729_s30 + $0x8] sm:$0xff] %v1232_v49   ;;  %1312 = vst [vmem:[%s1729_s30 + $0x48] sm:$0xff] %v1272_v50   ;;  %v793_v55 = vadd.f32 %v1365_v53, %v1714_v24  ;;  %v809_v56 = vadd.f32 %v1381_v54, %v1714_v24  ;;  %v570_v57 = vpop.f32.mrb[5].mxu0  ;;  %v634_v58 = vpop.f32.mrb[5].mxu1 }
 0x142   : > { %1228 = vst [vmem:[%s1729_s30] sm:$0xff] %v1227_v51   ;;  %1311 = vst [vmem:[%s1729_s30 + $0x40] sm:$0xff] %v1267_v52   ;;  %v791_v59 = vadd.f32 %v1714_v24, %v570_v57  ;;  %v807_v60 = vadd.f32 %v1714_v24, %v634_v58  ;;  %v1366_v61 = vpop.f32.mrb[6].mxu0  ;;  %v1382_v62 = vpop.f32.mrb[6].mxu1 }
 0x143   : > { %v794_v63 = vadd.f32 %v1366_v61, %v1714_v24  ;;  %v810_v0 = vadd.f32 %v1382_v62, %v1714_v24  ;;  %v573_v1 = vpop.f32.mrb[7].mxu0  ;;  %v637_v2 = vpop.f32.mrb[7].mxu1  ;;  %v825_v5 = vmax.f32 %v793_v55, 0.0  ;;  %v841_v6 = vmax.f32 %v809_v56, 0.0 }
 0x144   : > { %v792_v3 = vadd.f32 %v1714_v24, %v573_v1  ;;  %v808_v4 = vadd.f32 %v1714_v24, %v637_v2  ;;  %v823_v9 = vmax.f32 %v791_v59, 0.0  ;;  %v839_v10 = vmax.f32 %v807_v60, 0.0 }
 0x145   : > { %v826_v7 = vmax.f32 %v794_v63, 0.0  ;;  %v842_v8 = vmax.f32 %v810_v0, 0.0 }
 0x146   : > { %v824_v11 = vmax.f32 %v792_v3, 0.0  ;;  %v840_v12 = vmax.f32 %v808_v4, 0.0 }
 0x147   : > { %v1242_v13 = vpack.c.bf16 %v826_v7, %v825_v5  ;;  %v1282_v14 = vpack.c.bf16 %v842_v8, %v841_v6 }
 0x148   : > { %v1237_v15 = vpack.c.bf16 %v824_v11, %v823_v9  ;;  %v1277_v16 = vpack.c.bf16 %v840_v12, %v839_v10  ;;  %v1369_v17 = vpop.f32.mrb[8].mxu0  ;;  %v1385_v18 = vpop.f32.mrb[8].mxu1 }
 0x149   : > { %1306 = vst [vmem:[%s1729_s30 + $0x18] sm:$0xff] %v1242_v13   ;;  %1314 = vst [vmem:[%s1729_s30 + $0x58] sm:$0xff] %v1282_v14   ;;  %v797_v19 = vadd.f32 %v1369_v17, %v1714_v24  ;;  %v813_v20 = vadd.f32 %v1385_v18, %v1714_v24  ;;  %v586_v21 = vpop.f32.mrb[9].mxu0  ;;  %v650_v22 = vpop.f32.mrb[9].mxu1 }
 0x14a   : > { %1305 = vst [vmem:[%s1729_s30 + $0x10] sm:$0xff] %v1237_v15   ;;  %1313 = vst [vmem:[%s1729_s30 + $0x50] sm:$0xff] %v1277_v16   ;;  %v795_v23 = vadd.f32 %v1714_v24, %v586_v21  ;;  %v811_v25 = vadd.f32 %v1714_v24, %v650_v22  ;;  %v1370_v26 = vpop.f32.mrb[10].mxu0  ;;  %v1386_v27 = vpop.f32.mrb[10].mxu1 }
 0x14b   : > { %v798_v28 = vadd.f32 %v1370_v26, %v1714_v24  ;;  %v814_v29 = vadd.f32 %v1386_v27, %v1714_v24  ;;  %v589_v30 = vpop.f32.mrb[11].mxu0  ;;  %v653_v31 = vpop.f32.mrb[11].mxu1  ;;  %v829_v34 = vmax.f32 %v797_v19, 0.0  ;;  %v845_v35 = vmax.f32 %v813_v20, 0.0 }
 0x14c   : > { %v796_v32 = vadd.f32 %v1714_v24, %v589_v30  ;;  %v812_v33 = vadd.f32 %v1714_v24, %v653_v31  ;;  %v827_v38 = vmax.f32 %v795_v23, 0.0  ;;  %v843_v39 = vmax.f32 %v811_v25, 0.0 }
 0x14d   : > { %v830_v36 = vmax.f32 %v798_v28, 0.0  ;;  %v846_v37 = vmax.f32 %v814_v29, 0.0 }
 0x14e   : > { %v828_v40 = vmax.f32 %v796_v32, 0.0  ;;  %v844_v41 = vmax.f32 %v812_v33, 0.0 }
 0x14f   : > { %v1252_v42 = vpack.c.bf16 %v830_v36, %v829_v34  ;;  %v1292_v43 = vpack.c.bf16 %v846_v37, %v845_v35 }
 0x150   : > { %v1247_v44 = vpack.c.bf16 %v828_v40, %v827_v38  ;;  %v1287_v45 = vpack.c.bf16 %v844_v41, %v843_v39  ;;  %v1373_v46 = vpop.f32.mrb[12].mxu0  ;;  %v1389_v47 = vpop.f32.mrb[12].mxu1 }
 0x151   : > { %1308 = vst [vmem:[%s1729_s30 + $0x28] sm:$0xff] %v1252_v42   ;;  %1316 = vst [vmem:[%s1729_s30 + $0x68] sm:$0xff] %v1292_v43   ;;  %v801_v48 = vadd.f32 %v1373_v46, %v1714_v24  ;;  %v817_v49 = vadd.f32 %v1389_v47, %v1714_v24  ;;  %v602_v50 = vpop.f32.mrb[13].mxu0  ;;  %v666_v51 = vpop.f32.mrb[13].mxu1 }
 0x152   : > { %1307 = vst [vmem:[%s1729_s30 + $0x20] sm:$0xff] %v1247_v44   ;;  %1315 = vst [vmem:[%s1729_s30 + $0x60] sm:$0xff] %v1287_v45   ;;  %v799_v52 = vadd.f32 %v1714_v24, %v602_v50  ;;  %v815_v53 = vadd.f32 %v1714_v24, %v666_v51  ;;  %v1374_v54 = vpop.f32.mrb[14].mxu0  ;;  %v1390_v55 = vpop.f32.mrb[14].mxu1 }
 0x153   : > { %v802_v56 = vadd.f32 %v1374_v54, %v1714_v24  ;;  %v818_v57 = vadd.f32 %v1390_v55, %v1714_v24  ;;  %v605_v58 = vpop.f32.mrb[15].mxu0  ;;  %v669_v59 = vpop.f32.mrb[15].mxu1  ;;  %v833_v62 = vmax.f32 %v801_v48, 0.0  ;;  %v849_v63 = vmax.f32 %v817_v49, 0.0 }
 0x154   : > { %v800_v60 = vadd.f32 %v1714_v24, %v605_v58  ;;  %v816_v61 = vadd.f32 %v1714_v24, %v669_v59  ;;  %v831_v2 = vmax.f32 %v799_v52, 0.0  ;;  %v847_v3 = vmax.f32 %v815_v53, 0.0 }
 0x155   : > { %v834_v0 = vmax.f32 %v802_v56, 0.0  ;;  %v850_v1 = vmax.f32 %v818_v57, 0.0 }
 0x156   : > { %v832_v4 = vmax.f32 %v800_v60, 0.0  ;;  %v848_v5 = vmax.f32 %v816_v61, 0.0 }
 0x157   : > { %v1262_v6 = vpack.c.bf16 %v834_v0, %v833_v62  ;;  %v1302_v7 = vpack.c.bf16 %v850_v1, %v849_v63 }
 0x158   : > { %v1257_v8 = vpack.c.bf16 %v832_v4, %v831_v2  ;;  %v1297_v9 = vpack.c.bf16 %v848_v5, %v847_v3 }
 0x159   : > { %1310 = vst [vmem:[%s1729_s30 + $0x38] sm:$0xff] %v1262_v6   ;;  %1318 = vst [vmem:[%s1729_s30 + $0x78] sm:$0xff] %v1302_v7  }
 0x15a   : > { %1309 = vst [vmem:[%s1729_s30 + $0x30] sm:$0xff] %v1257_v8   ;;  %1317 = vst [vmem:[%s1729_s30 + $0x70] sm:$0xff] %v1297_v9  }
 0x15b PF: > { %s15_s14 = sadd.s32 1, %s1564_s14   ;;  %s1792_s12 = smov %s1560_s13 }
 0x15c   : > { %p12_p6 = scmp.ge.s32.totalorder %s15_s14, 4   ;;  %s1793_s13 = smov %s1795_s16 }
 0x15e   :  { %14 = sbr.rel (!%p12_p6) target bundleno = 3 (0x3), region = 81 }
 0x165   :  { %1039 = vsyncpa [#allocation4], 1 }
 0x166   :  { %1041 = vsyncpa [#allocation4 + $0x1], 1 }
 0x167   :  { %1042 = vsyncpa [#allocation6], 1 }

// kernel: model_forward.17
= control target key start
LH: loop header
LB: loop body
LE: loop exit
PB: predicated region body
PF: predicated region fallthrough
CT: control target
= control target key end

     0   :  { %s2120_s0 = inlined_call_operand.vmem [shape: bf16[2,256,128], index: 0, kind: input, shape index: {}]   ;;  %s2121_s1 = inlined_call_operand.vmem [shape: f32[2,1,128], index: 1, kind: input, shape index: {}]   ;;  %s2122_s2 = inlined_call_operand.hbm [shape: f32[1,1,128], index: 2, kind: input, shape index: {}]   ;;  %s2123_s3 = inlined_call_operand.<no memory space> [shape: f32[1,1], index: 3, kind: input, shape index: {}]   ;;  %s2124_s4 = inlined_call_operand.vmem [shape: bf16[2,256,128], index: 4, kind: output, shape index: {}]  }
   0x1   :  { %v9_v0 = vstv %s2123_s3 }
   0x2   :  { %10 = vst [vmem:[#allocation2] sm:$0x1] %v9_v0 }
   0x3   :  { %11 = vsyncpa [#allocation4], 0  ;;  %s1735_s17 = smov 0   ;;  %s1737_s18 = smov 0  }
   0x4   :  { %s1739_s19 = smov 0  }
   0x5 LB: > { %s1195_s3 = sadd.s32 4294967295, %s1703_s19   ;;  %s29_s20 = sadd.s32 1, %s1699_s18  ;;  %s1703_s19 = sphi %s1739_s19, %s17_s19   ;;  %s1699_s18 = sphi %s1737_s18, %s2134_s18   ;;  %s1695_s17 = sphi %s1735_s17, %s2133_s17  }
   0x6   : > { %p31_p0 = scmp.ge.s32.totalorder %s29_s20, 2  ;;  %p1197_p1 = scmp.ge.s32.totalorder %s1703_s19, 1 }
   0x7   : > { %p158_p2 = scmp.lt.s32.totalorder %s1703_s19, 3  ;;  %p1760_p4 = scmp.eq.s32.totalorder %s1195_s3, 0 }
   0x8   : > { %s2136_s20 = smov (%p31_p0, %s29_s20), 0  ;;  %s1705_s23 = smov [#allocation3]  }
   0x9   : > { %p1756_p3 = pnand %p1197_p1, %p158_p2  ;;  %s171_s24 = sshll.u32 %s1705_s23, 4  ;;  %s172_s24 = int_to_ptr.vmem [resolvable:$true] %s171_s24 }
   0xa   : > { %s2129_s22 = scalar_select %p1760_p4, 1, 0 }
   0xb   : > { %s2128_s21 = scalar_select %p1756_p3, 1, 0 }
   0xc   : > { %p1487_p5 = pneg %p1756_p3  ;;  %s1649_s28 = scalar_lea.hbm %s2122_s2, 16 }
   0xd   : > { %p1650_p7 = scmp.ne.s32.totalorder %s2122_s2, %s1649_s28  ;;  %p1656_p11 = scmp.lt.u32.totalorder %s1649_s28, %s2122_s2 }
   0xe   : > { %p1768_p6 = pnand %p1760_p4, %p1487_p5 }
  0x10   : > { %p1651_p8 = pneg %p1768_p6 }
  0x12   : > { %p1652_p9 = pnand %p1651_p8, %p1650_p7 }
  0x14   : > { %p1653_p10 = pneg %p1652_p9 }
  0x16   : > { %p1658_p12 = pnand %p1656_p11, %p1653_p10 }
  0x18   : > { %1661 = shalt.err (!%p1658_p12)
}
  0x19   : > { %s1662_s7 = scalar_lea.vmem %s172_s24, 16  ;;  %s1669_s8 = scalar_lea.vmem %s172_s24, 32 }
  0x1a   : > { %p1663_p13 = scmp.ne.s32.totalorder %s172_s24, %s1662_s7  ;;  %p1670_p2 = scmp.lt.s32.totalorder %s172_s24, %s172_s24 }
  0x1b   : > { %p1671_p5 = scmp.lt.s32.totalorder %s1669_s8, %s1662_s7 }
  0x1c   : > { %p1665_p0 = pnand %p1663_p13, %p1651_p8 }
  0x1d   : > { %p1672_p4 = por %p1671_p5, %p1670_p2 }
  0x1e   : > { %p1666_p1 = pneg %p1665_p0 }
  0x20   : > { %p1673_p3 = pnand %p1672_p4, %p1666_p1 }
  0x22   : > { %1676 = shalt.err (!%p1673_p3)
}
  0x23   : > { %1490 = dma.hbm_to_vmem [thread:$0]  (!%p1768_p6), %s2122_s2, 16, %s172_s24, [#allocation4]  }
  0x24   : > { %p2131_p7 = scmp.ne.s32.totalorder %s2128_s21, 0 }
  0x25   : > { %p2132_p9 = scmp.ne.s32.totalorder (!%p2131_p7), %s2129_s22, 0 }
  0x26   : > { %206 = sbr.rel (%p2131_p7) target bundleno = 438 (0x1b6), region = 36 }
  0x2d   : > { %1690 = dma.done.wait (%p2132_p9), [#allocation4], 16  }
  0x2e   : > { %1692 = vsyncadd (%p2132_p9), [#allocation4], 4294967280  ;;  %p244_p8 = scmp.lt.s32.totalorder %s1695_s17, 1  ;;  %v1807_v2 = vld [vmem:[#allocation3] ss:$0 sm:$0xff] }
  0x30   : > { %s2138_s17 = smov (!%p244_p8, %s1695_s17), 1 }
  0x31   : > { %s1275_s11 = sshll.u32 %s2138_s17, 7  ;;  %s255_s3 = scalar_lea.vmem %s2121_s1, %s2138_s17 }
  0x32   : > { %s1804_s14 = scalar_lea.vmem %s2120_s0, %s1275_s11  ;;  %s2003_s23 = scalar_lea.vmem %s2124_s4, %s1275_s11 }
  0x33   : > { %v1453_v1 = vld [vmem:[%s1804_s14 + $0x8] sm:$0xff]   ;;  %v1310_v4 = vld [vmem:[%s1804_s14] sm:$0xff]   ;;  %v1454_v8 = vld [vmem:[%s1804_s14 + $0x10] sm:$0xff]  }
  0x34   : > { %v1809_v3 = vunpack.c.l.bf16 %v1453_v1  ;;  %v1812_v5 = vunpack.c.h.bf16 %v1453_v1  ;;  %v1814_v6 = vunpack.c.l.bf16 %v1310_v4  ;;  %v1816_v7 = vunpack.c.h.bf16 %v1310_v4  ;;  %v1455_v14 = vld [vmem:[%s1804_s14 + $0x18] sm:$0xff]   ;;  %v1456_v18 = vld [vmem:[%s1804_s14 + $0x20] sm:$0xff]   ;;  %v1457_v23 = vld [vmem:[%s1804_s14 + $0x28] sm:$0xff]  }
  0x35   : > { %v1825_v12 = vunpack.c.h.bf16 %v1454_v8  ;;  %v1830_v15 = vunpack.c.l.bf16 %v1454_v8  ;;  %v1834_v17 = vunpack.c.h.bf16 %v1455_v14  ;;  %v1839_v20 = vunpack.c.l.bf16 %v1455_v14  ;;  %v1458_v28 = vld [vmem:[%s1804_s14 + $0x30] sm:$0xff]   ;;  %v1459_v33 = vld [vmem:[%s1804_s14 + $0x38] sm:$0xff]   ;;  %v1460_v38 = vld [vmem:[%s1804_s14 + $0x40] sm:$0xff]  }
  0x36   : > { %v378_v9 = vmul.f32 %v1809_v3, %v1807_v2  ;;  %v376_v10 = vmul.f32 %v1814_v6, %v1807_v2  ;;  %v379_v11 = vmul.f32 %v1812_v5, %v1807_v2  ;;  %v377_v13 = vmul.f32 %v1816_v7, %v1807_v2  ;;  %v1461_v43 = vld [vmem:[%s1804_s14 + $0x48] sm:$0xff]   ;;  %v1462_v48 = vld [vmem:[%s1804_s14 + $0x50] sm:$0xff]   ;;  %v1463_v53 = vld [vmem:[%s1804_s14 + $0x58] sm:$0xff]  }
  0x37   : > { %v381_v16 = vmul.f32 %v1825_v12, %v1807_v2  ;;  %v380_v19 = vmul.f32 %v1830_v15, %v1807_v2  ;;  %v383_v21 = vmul.f32 %v1834_v17, %v1807_v2  ;;  %v1843_v22 = vunpack.c.h.bf16 %v1456_v18  ;;  %v1464_v58 = vld [vmem:[%s1804_s14 + $0x60] sm:$0xff]   ;;  %v1465_v63 = vld [vmem:[%s1804_s14 + $0x68] sm:$0xff]  }
  0x38   : > { %412 = vadd.xlane.f32.xlu1 %v378_v9  ;;  %408 = vadd.xlane.f32.xlu0 %v376_v10  ;;  %v382_v24 = vmul.f32 %v1839_v20, %v1807_v2  ;;  %v1848_v25 = vunpack.c.l.bf16 %v1456_v18  ;;  %v1852_v27 = vunpack.c.h.bf16 %v1457_v23  ;;  %v1857_v30 = vunpack.c.l.bf16 %v1457_v23  ;;  %v1466_v10 = vld [vmem:[%s1804_s14 + $0x70] sm:$0xff]   ;;  %v1467_v18 = vld [vmem:[%s1804_s14 + $0x78] sm:$0xff]  }
  0x39   : > { %v385_v26 = vmul.f32 %v1843_v22, %v1807_v2  ;;  %v1861_v32 = vunpack.c.h.bf16 %v1458_v28  ;;  %v1866_v35 = vunpack.c.l.bf16 %v1458_v28  ;;  %v1870_v37 = vunpack.c.h.bf16 %v1459_v33 }
  0x3a   : > { %v384_v29 = vmul.f32 %v1848_v25, %v1807_v2  ;;  %v387_v31 = vmul.f32 %v1852_v27, %v1807_v2  ;;  %v386_v34 = vmul.f32 %v1857_v30, %v1807_v2  ;;  %v1875_v40 = vunpack.c.l.bf16 %v1459_v33  ;;  %v1952_v33 = vld [vmem:[#allocation2] ss:$0 sm:$0xff] }
  0x3b   : > { %v389_v36 = vmul.f32 %v1861_v32, %v1807_v2  ;;  %v388_v39 = vmul.f32 %v1866_v35, %v1807_v2  ;;  %v391_v41 = vmul.f32 %v1870_v37, %v1807_v2  ;;  %v1879_v42 = vunpack.c.h.bf16 %v1460_v38 }
  0x3c   : > { %414 = vadd.xlane.f32.xlu1 %v379_v11  ;;  %410 = vadd.xlane.f32.xlu0 %v377_v13  ;;  %v390_v44 = vmul.f32 %v1875_v40, %v1807_v2  ;;  %v1884_v45 = vunpack.c.l.bf16 %v1460_v38  ;;  %v1888_v47 = vunpack.c.h.bf16 %v1461_v43  ;;  %v1893_v50 = vunpack.c.l.bf16 %v1461_v43 }
  0x3d   : > { %v393_v46 = vmul.f32 %v1879_v42, %v1807_v2  ;;  %v1897_v52 = vunpack.c.h.bf16 %v1462_v48  ;;  %v1902_v55 = vunpack.c.l.bf16 %v1462_v48  ;;  %v1906_v57 = vunpack.c.h.bf16 %v1463_v53 }
  0x3e   : > { %v392_v49 = vmul.f32 %v1884_v45, %v1807_v2  ;;  %v395_v51 = vmul.f32 %v1888_v47, %v1807_v2  ;;  %v394_v54 = vmul.f32 %v1893_v50, %v1807_v2  ;;  %v1911_v60 = vunpack.c.l.bf16 %v1463_v53 }
  0x3f   : > { %v397_v56 = vmul.f32 %v1897_v52, %v1807_v2  ;;  %v396_v59 = vmul.f32 %v1902_v55, %v1807_v2  ;;  %v399_v61 = vmul.f32 %v1906_v57, %v1807_v2  ;;  %v1915_v62 = vunpack.c.h.bf16 %v1464_v58 }
  0x40   : > { %418 = vadd.xlane.f32.xlu1 %v381_v16  ;;  %416 = vadd.xlane.f32.xlu0 %v380_v19  ;;  %v398_v0 = vmul.f32 %v1911_v60, %v1807_v2  ;;  %v1920_v1 = vunpack.c.l.bf16 %v1464_v58  ;;  %v1706_v4 = vmov 0   ;;  %v1924_v9 = vunpack.c.h.bf16 %v1465_v63 }
  0x41   : > { %1519 = vset.pattern.permute.xlu0 %v1706_v4  ;;  %1520 = vset.pattern.permute.xlu1 %v1706_v4  ;;  %v401_v8 = vmul.f32 %v1915_v62, %v1807_v2  ;;  %v1929_v13 = vunpack.c.l.bf16 %v1465_v63  ;;  %v1933_v16 = vunpack.c.h.bf16 %v1466_v10  ;;  %v1946_v28 = vunpack.c.l.bf16 %v1467_v18 }
  0x42   : > { %v400_v11 = vmul.f32 %v1920_v1, %v1807_v2  ;;  %v403_v14 = vmul.f32 %v1924_v9, %v1807_v2 }
  0x43   : > { %v402_v19 = vmul.f32 %v1929_v13, %v1807_v2  ;;  %v405_v23 = vmul.f32 %v1933_v16, %v1807_v2 }
  0x44   : > { %422 = vadd.xlane.f32.xlu1 %v383_v21  ;;  %420 = vadd.xlane.f32.xlu0 %v382_v24  ;;  %v1938_v21 = vunpack.c.l.bf16 %v1466_v10  ;;  %v1942_v24 = vunpack.c.h.bf16 %v1467_v18 }
  0x48   : > { %426 = vadd.xlane.f32.xlu1 %v385_v26  ;;  %424 = vadd.xlane.f32.xlu0 %v384_v29  ;;  %v404_v26 = vmul.f32 %v1938_v21, %v1807_v2  ;;  %v407_v29 = vmul.f32 %v1942_v24, %v1807_v2 }
  0x4c   : > { %430 = vadd.xlane.f32.xlu1 %v387_v31  ;;  %428 = vadd.xlane.f32.xlu0 %v386_v34  ;;  %v406_v31 = vmul.f32 %v1946_v28, %v1807_v2 }
  0x50   : > { %434 = vadd.xlane.f32.xlu1 %v389_v36  ;;  %432 = vadd.xlane.f32.xlu0 %v388_v39 }
  0x54   : > { %438 = vadd.xlane.f32.xlu1 %v391_v41  ;;  %436 = vadd.xlane.f32.xlu0 %v390_v44 }
  0x58   : > { %442 = vadd.xlane.f32.xlu1 %v393_v46  ;;  %440 = vadd.xlane.f32.xlu0 %v392_v49 }
  0x5c   : > { %446 = vadd.xlane.f32.xlu1 %v395_v51  ;;  %444 = vadd.xlane.f32.xlu0 %v394_v54 }
  0x60   : > { %450 = vadd.xlane.f32.xlu1 %v397_v56  ;;  %448 = vadd.xlane.f32.xlu0 %v396_v59 }
  0x64   : > { %454 = vadd.xlane.f32.xlu1 %v399_v61  ;;  %452 = vadd.xlane.f32.xlu0 %v398_v0 }
  0x68   : > { %458 = vadd.xlane.f32.xlu1 %v401_v8  ;;  %456 = vadd.xlane.f32.xlu0 %v400_v11 }
  0x6c   : > { %462 = vadd.xlane.f32.xlu1 %v403_v14  ;;  %460 = vadd.xlane.f32.xlu0 %v402_v19 }
  0x70   : > { %466 = vadd.xlane.f32.xlu1 %v405_v23  ;;  %464 = vadd.xlane.f32.xlu0 %v404_v26 }
  0x74   : > { %470 = vadd.xlane.f32.xlu1 %v407_v29  ;;  %468 = vadd.xlane.f32.xlu0 %v406_v31 }
  0xc5   : > { %v413_v34 = vpop.xlane.xlu1 %412  ;;  %v409_v38 = vpop.xlane.xlu0 %408 }
  0xc6   : > { %v481_v36 = vadd.f32 %v1952_v33, %v413_v34  ;;  %v479_v39 = vadd.f32 %v1952_v33, %v409_v38 }
  0xc8   : > { %v1211_v41 = vmul.f32 -1.442695, %v481_v36  ;;  %v1209_v43 = vmul.f32 -1.442695, %v479_v39 }
  0xc9   : > { %v415_v44 = vpop.xlane.xlu1 %414  ;;  %v411_v48 = vpop.xlane.xlu0 %410 }
  0xca   : > { %v482_v46 = vadd.f32 %v1952_v33, %v415_v44  ;;  %1521 = vpow2.f32 %v1209_v43  ;;  %v480_v49 = vadd.f32 %v1952_v33, %v411_v48 }
  0xcb   : > { %1523 = vpow2.f32 %v1211_v41 }
  0xcc   : > { %v1212_v2 = vmul.f32 -1.442695, %v482_v46  ;;  %v1210_v51 = vmul.f32 -1.442695, %v480_v49 }
  0xcd   : > { %v419_v53 = vpop.xlane.xlu1 %418  ;;  %v417_v56 = vpop.xlane.xlu0 %416 }
  0xce   : > { %v484_v54 = vadd.f32 %v1952_v33, %v419_v53  ;;  %1525 = vpow2.f32 %v1210_v51  ;;  %v483_v58 = vadd.f32 %v1952_v33, %v417_v56 }
  0xcf   : > { %1527 = vpow2.f32 %v1212_v2 }
  0xd0   : > { %v1214_v59 = vmul.f32 -1.442695, %v484_v54  ;;  %v1213_v63 = vmul.f32 -1.442695, %v483_v58 }
  0xd1   : > { %v423_v61 = vpop.xlane.xlu1 %422  ;;  %v421_v0 = vpop.xlane.xlu0 %420 }
  0xd2   : > { %1529 = vpow2.f32 %v1214_v59  ;;  %v485_v4 = vadd.f32 %v1952_v33, %v421_v0  ;;  %v486_v26 = vadd.f32 %v1952_v33, %v423_v61 }
  0xd3   : > { %1531 = vpow2.f32 %v1213_v63 }
  0xd4   : > { %v1522_v8 = vpop.eup %1521  ;;  %v1215_v23 = vmul.f32 -1.442695, %v485_v4  ;;  %v1216_v46 = vmul.f32 -1.442695, %v486_v26 }
  0xd5   : > { %v427_v10 = vpop.xlane.xlu1 %426  ;;  %v1524_v11 = vpop.eup %1523  ;;  %v607_v14 = vadd.f32 1.0, %v1522_v8 }
  0xd6   : > { %v488_v18 = vadd.f32 %v1952_v33, %v427_v10  ;;  %v425_v19 = vpop.xlane.xlu0 %424  ;;  %v609_v34 = vadd.f32 1.0, %v1524_v11 }
  0xd7   : > { %1533 = vrcp.f32 %v607_v14  ;;  %v487_v44 = vadd.f32 %v1952_v33, %v425_v19 }
  0xd8   : > { %v1218_v29 = vmul.f32 -1.442695, %v488_v18  ;;  %v1526_v31 = vpop.eup %1525 }
  0xd9   : > { %v431_v36 = vpop.xlane.xlu1 %430  ;;  %v1528_v38 = vpop.eup %1527  ;;  %v608_v39 = vadd.f32 1.0, %v1526_v31  ;;  %v1217_v59 = vmul.f32 -1.442695, %v487_v44 }
  0xda   : > { %1535 = vpow2.f32 %v1218_v29  ;;  %v490_v41 = vadd.f32 %v1952_v33, %v431_v36  ;;  %v429_v43 = vpop.xlane.xlu0 %428  ;;  %v610_v2 = vadd.f32 1.0, %v1528_v38 }
  0xdb   : > { %1537 = vpow2.f32 %v1215_v23  ;;  %v489_v56 = vadd.f32 %v1952_v33, %v429_v43 }
  0xdc   : > { %1539 = vrcp.f32 %v608_v39  ;;  %v1220_v48 = vmul.f32 -1.442695, %v490_v41  ;;  %v1530_v49 = vpop.eup %1529 }
  0xdd   : > { %1541 = vrcp.f32 %v609_v34  ;;  %v435_v51 = vpop.xlane.xlu1 %434  ;;  %v1532_v53 = vpop.eup %1531  ;;  %v612_v61 = vadd.f32 1.0, %v1530_v49  ;;  %v1219_v14 = vmul.f32 -1.442695, %v489_v56 }
  0xde   : > { %1543 = vpow2.f32 %v1220_v48  ;;  %v492_v54 = vadd.f32 %v1952_v33, %v435_v51  ;;  %v433_v58 = vpop.xlane.xlu0 %432  ;;  %v611_v0 = vadd.f32 1.0, %v1532_v53 }
  0xdf   : > { %1545 = vpow2.f32 %v1216_v46  ;;  %v491_v8 = vadd.f32 %v1952_v33, %v433_v58 }
  0xe0   : > { %v1222_v63 = vmul.f32 -1.442695, %v492_v54  ;;  %1547 = vrcp.f32 %v610_v2 }
  0xe1   : > { %v439_v4 = vpop.xlane.xlu1 %438  ;;  %v1534_v10 = vpop.eup %1533  ;;  %v1221_v34 = vmul.f32 -1.442695, %v491_v8 }
  0xe2   : > { %1549 = vpow2.f32 %v1222_v63  ;;  %v494_v11 = vadd.f32 %v1952_v33, %v439_v4  ;;  %v437_v18 = vpop.xlane.xlu0 %436  ;;  %705 = vperm.xlu0 %1519, %v1534_v10  }
  0xe3   : > { %1551 = vpow2.f32 %v1217_v59  ;;  %v493_v36 = vadd.f32 %v1952_v33, %v437_v18 }
  0xe4   : > { %v1536_v19 = vpop.eup %1535  ;;  %1553 = vrcp.f32 %v612_v61  ;;  %v1224_v23 = vmul.f32 -1.442695, %v494_v11 }
  0xe5   : > { %v1538_v26 = vpop.eup %1537  ;;  %v616_v29 = vadd.f32 1.0, %v1536_v19  ;;  %1555 = vrcp.f32 %v611_v0  ;;  %v443_v31 = vpop.xlane.xlu1 %442  ;;  %v1223_v51 = vmul.f32 -1.442695, %v493_v36 }
  0xe6   : > { %v1540_v38 = vpop.eup %1539  ;;  %v496_v39 = vadd.f32 %v1952_v33, %v443_v31  ;;  %1557 = vpow2.f32 %v1219_v14  ;;  %v441_v41 = vpop.xlane.xlu0 %440  ;;  %v613_v46 = vadd.f32 1.0, %v1538_v26 }
  0xe7   : > { %v1542_v43 = vpop.eup %1541  ;;  %1559 = vrcp.f32 %v616_v29  ;;  %710 = vperm.xlu1 %1520, %v1540_v38   ;;  %v495_v59 = vadd.f32 %v1952_v33, %v441_v41 }
  0xe8   : > { %v1544_v44 = vpop.eup %1543  ;;  %1561 = vpow2.f32 %v1224_v23  ;;  %v1226_v48 = vmul.f32 -1.442695, %v496_v39 }
  0xe9   : > { %v618_v49 = vadd.f32 1.0, %v1544_v44  ;;  %v447_v2 = vpop.xlane.xlu1 %446  ;;  %1563 = vpow2.f32 %v1221_v34  ;;  %v1546_v53 = vpop.eup %1545  ;;  %v1225_v23 = vmul.f32 -1.442695, %v495_v59 }
  0xea   : > { %1565 = vpow2.f32 %v1226_v48  ;;  %v498_v54 = vadd.f32 %v1952_v33, %v447_v2  ;;  %v445_v56 = vpop.xlane.xlu0 %444  ;;  %v1548_v58 = vpop.eup %1547  ;;  %v614_v4 = vadd.f32 1.0, %v1546_v53 }
  0xeb   : > { %1567 = vrcp.f32 %v618_v49  ;;  %715 = vperm.xlu1 %1520, %v1542_v43   ;;  %v497_v38 = vadd.f32 %v1952_v33, %v445_v56 }
  0xec   : > { %v1550_v61 = vpop.eup %1549  ;;  %1569 = vrcp.f32 %v613_v46  ;;  %v1228_v63 = vmul.f32 -1.442695, %v498_v54 }
  0xed   : > { %v1552_v0 = vpop.eup %1551  ;;  %v620_v8 = vadd.f32 1.0, %v1550_v61  ;;  %v451_v10 = vpop.xlane.xlu1 %450  ;;  %1571 = vpow2.f32 %v1223_v51 }
  0xee   : > { %v1554_v11 = vpop.eup %1553  ;;  %1573 = vpow2.f32 %v1228_v63  ;;  %v500_v14 = vadd.f32 %v1952_v33, %v451_v10  ;;  %v449_v18 = vpop.xlane.xlu0 %448  ;;  %v615_v29 = vadd.f32 1.0, %v1552_v0 }
  0xef   : > { %v1556_v19 = vpop.eup %1555  ;;  %1575 = vrcp.f32 %v620_v8  ;;  %720 = vperm.xlu1 %1520, %v1548_v58   ;;  %v1227_v58 = vmul.f32 -1.442695, %v497_v38  ;;  %v499_v56 = vadd.f32 %v1952_v33, %v449_v18 }
  0xf0   : > { %v1558_v26 = vpop.eup %1557  ;;  %v1230_v31 = vmul.f32 -1.442695, %v500_v14  ;;  %1577 = vrcp.f32 %v614_v4 }
  0xf1   : > { %v1560_v34 = vpop.eup %1559  ;;  %v455_v36 = vpop.xlane.xlu1 %454  ;;  %v617_v49 = vadd.f32 1.0, %v1558_v26  ;;  %v1229_v26 = vmul.f32 -1.442695, %v499_v56 }
  0xf2   : > { %v1562_v39 = vpop.eup %1561  ;;  %1579 = vpow2.f32 %v1230_v31  ;;  %v502_v41 = vadd.f32 %v1952_v33, %v455_v36  ;;  %750 = vperm.xlu0 %1519, %v1560_v34   ;;  %v453_v43 = vpop.xlane.xlu0 %452 }
  0xf3   : > { %v1564_v44 = vpop.eup %1563  ;;  %v622_v46 = vadd.f32 1.0, %v1562_v39  ;;  %725 = vperm.xlu1 %1520, %v1556_v19   ;;  %1581 = vpow2.f32 %v1225_v23  ;;  %v501_v18 = vadd.f32 %v1952_v33, %v453_v43 }
  0xf4   : > { %v1566_v48 = vpop.eup %1565  ;;  %1583 = vrcp.f32 %v615_v29  ;;  %v1232_v2 = vmul.f32 -1.442695, %v502_v41  ;;  %v619_v8 = vadd.f32 1.0, %v1564_v44 }
  0xf5   : > { %v1568_v51 = vpop.eup %1567  ;;  %1585 = vrcp.f32 %v622_v46  ;;  %v624_v53 = vadd.f32 1.0, %v1566_v48  ;;  %v459_v54 = vpop.xlane.xlu1 %458  ;;  %v1231_v46 = vmul.f32 -1.442695, %v501_v18 }
  0xf6   : > { %v1570_v59 = vpop.eup %1569  ;;  %1587 = vpow2.f32 %v1232_v2  ;;  %v504_v61 = vadd.f32 %v1952_v33, %v459_v54  ;;  %760 = vperm.xlu0 %1519, %v1568_v51   ;;  %v457_v63 = vpop.xlane.xlu0 %456 }
  0xf7   : > { %v1572_v0 = vpop.eup %1571  ;;  %1589 = vrcp.f32 %v624_v53  ;;  %730 = vperm.xlu1 %1520, %v1554_v11   ;;  %v503_v48 = vadd.f32 %v1952_v33, %v457_v63 }
  0xf8   : > { %v1574_v4 = vpop.eup %1573  ;;  %1591 = vrcp.f32 %v617_v49  ;;  %v1234_v10 = vmul.f32 -1.442695, %v504_v61  ;;  %v621_v36 = vadd.f32 1.0, %v1572_v0 }
  0xf9   : > { %v1576_v14 = vpop.eup %1575  ;;  %v626_v19 = vadd.f32 1.0, %v1574_v4  ;;  %v463_v23 = vpop.xlane.xlu1 %462  ;;  %1593 = vpow2.f32 %v1227_v58  ;;  %v1233_v0 = vmul.f32 -1.442695, %v503_v48 }
  0xfa   : > { %1595 = vpow2.f32 %v1234_v10  ;;  %v506_v29 = vadd.f32 %v1952_v33, %v463_v23  ;;  %770 = vperm.xlu0 %1519, %v1576_v14   ;;  %v461_v31 = vpop.xlane.xlu0 %460  ;;  %v1578_v34 = vpop.eup %1577 }
  0xfb   : > { %1597 = vrcp.f32 %v626_v19  ;;  %735 = vperm.xlu1 %1520, %v1570_v59   ;;  %v505_v63 = vadd.f32 %v1952_v33, %v461_v31 }
  0xfc   : > { %v1580_v11 = vpop.eup %1579  ;;  %1599 = vrcp.f32 %v619_v8  ;;  %v1236_v38 = vmul.f32 -1.442695, %v506_v29 }
  0xfd   : > { %v1582_v39 = vpop.eup %1581  ;;  %v628_v41 = vadd.f32 1.0, %v1580_v11  ;;  %v467_v44 = vpop.xlane.xlu1 %466  ;;  %1601 = vpow2.f32 %v1229_v26  ;;  %v1235_v18 = vmul.f32 -1.442695, %v505_v63 }
  0xfe   : > { %v1584_v43 = vpop.eup %1583  ;;  %1603 = vpow2.f32 %v1236_v38  ;;  %v508_v49 = vadd.f32 %v1952_v33, %v467_v44  ;;  %v623_v53 = vadd.f32 1.0, %v1582_v39  ;;  %v465_v58 = vpop.xlane.xlu0 %464 }
  0xff   : > { %v1586_v2 = vpop.eup %1585  ;;  %1605 = vrcp.f32 %v628_v41  ;;  %740 = vperm.xlu1 %1520, %v1578_v34   ;;  %v507_v29 = vadd.f32 %v1952_v33, %v465_v58 }
 0x100   : > { %v1588_v51 = vpop.eup %1587  ;;  %1607 = vrcp.f32 %v621_v36  ;;  %v1238_v54 = vmul.f32 -1.442695, %v508_v49  ;;  %780 = vperm.xlu0 %1519, %v1586_v2  }
 0x101   : > { %v1590_v56 = vpop.eup %1589  ;;  %v630_v59 = vadd.f32 1.0, %v1588_v51  ;;  %v471_v61 = vpop.xlane.xlu1 %470  ;;  %1609 = vpow2.f32 %v1231_v46  ;;  %v1237_v44 = vmul.f32 -1.442695, %v507_v29 }
 0x102   : > { %v1592_v4 = vpop.eup %1591  ;;  %1611 = vpow2.f32 %v1238_v54  ;;  %v510_v8 = vadd.f32 %v1952_v33, %v471_v61  ;;  %v469_v31 = vpop.xlane.xlu0 %468 }
 0x103   : > { %v1594_v10 = vpop.eup %1593  ;;  %1613 = vrcp.f32 %v630_v59  ;;  %745 = vperm.xlu1 %1520, %v1584_v43   ;;  %v509_v46 = vadd.f32 %v1952_v33, %v469_v31 }
 0x104   : > { %v1596_v14 = vpop.eup %1595  ;;  %1615 = vrcp.f32 %v623_v53  ;;  %v1240_v19 = vmul.f32 -1.442695, %v510_v8  ;;  %790 = vperm.xlu0 %1519, %v1590_v56   ;;  %v625_v11 = vadd.f32 1.0, %v1594_v10 }
 0x105   : > { %v1598_v23 = vpop.eup %1597  ;;  %v632_v26 = vadd.f32 1.0, %v1596_v14  ;;  %1617 = vpow2.f32 %v1233_v0  ;;  %v1239_v54 = vmul.f32 -1.442695, %v509_v46 }
 0x106   : > { %v1600_v34 = vpop.eup %1599  ;;  %1619 = vpow2.f32 %v1240_v19 }
 0x107   : > { %v1602_v36 = vpop.eup %1601  ;;  %1621 = vrcp.f32 %v632_v26  ;;  %755 = vperm.xlu1 %1520, %v1592_v4  }
 0x108   : > { %v1604_v38 = vpop.eup %1603  ;;  %800 = vperm.xlu0 %1519, %v1598_v23   ;;  %1623 = vpow2.f32 %v1235_v18  ;;  %v627_v43 = vadd.f32 1.0, %v1602_v36 }
 0x109   : > { %v1606_v39 = vpop.eup %1605  ;;  %v634_v41 = vadd.f32 1.0, %v1604_v38  ;;  %1625 = vrcp.f32 %v625_v11 }
 0x10a   : > { %v1608_v48 = vpop.eup %1607 }
 0x10b   : > { %v1610_v49 = vpop.eup %1609  ;;  %1627 = vrcp.f32 %v634_v41  ;;  %765 = vperm.xlu1 %1520, %v1600_v34  }
 0x10c   : > { %v1612_v2 = vpop.eup %1611  ;;  %810 = vperm.xlu0 %1519, %v1606_v39   ;;  %1629 = vpow2.f32 %v1237_v44  ;;  %v629_v56 = vadd.f32 1.0, %v1610_v49  ;;  %v1990_v44 = vld [vmem:[%s255_s3] ss:$0 sm:$0xff] }
 0x10d   : > { %v1614_v51 = vpop.eup %1613  ;;  %v636_v53 = vadd.f32 1.0, %v1612_v2  ;;  %1631 = vrcp.f32 %v627_v43  ;;  %v338_v49 = vmul.f32 %v1816_v7, %v1990_v44 }
 0x10e   : > { %v1616_v58 = vpop.eup %1615 }
 0x10f   : > { %v1618_v59 = vpop.eup %1617  ;;  %1633 = vrcp.f32 %v636_v53  ;;  %775 = vperm.xlu1 %1520, %v1608_v48   ;;  %v337_v48 = vmul.f32 %v1814_v6, %v1990_v44 }
 0x110   : > { %v1620_v61 = vpop.eup %1619  ;;  %820 = vperm.xlu0 %1519, %v1614_v51   ;;  %1635 = vpow2.f32 %v1239_v54  ;;  %v631_v63 = vadd.f32 1.0, %v1618_v59 }
 0x111   : > { %v1622_v33 = vpop.eup %1621  ;;  %v638_v0 = vadd.f32 1.0, %v1620_v61  ;;  %1637 = vrcp.f32 %v629_v56 }
 0x112   : > { %v1624_v4 = vpop.eup %1623 }
 0x113   : > { %1639 = vrcp.f32 %v638_v0  ;;  %785 = vperm.xlu1 %1520, %v1616_v58   ;;  %v1626_v8 = vpop.eup %1625  ;;  %v633_v14 = vadd.f32 1.0, %v1624_v4 }
 0x114   : > { %830 = vperm.xlu0 %1519, %v1622_v33   ;;  %1641 = vrcp.f32 %v631_v63 }
 0x115   : > { %v1628_v10 = vpop.eup %1627  ;;  %1643 = vrcp.f32 %v633_v14  ;;  %v341_v14 = vmul.f32 %v1830_v15, %v1990_v44 }
 0x116   : > { %v1630_v19 = vpop.eup %1629 }
 0x117   : > { %795 = vperm.xlu1 %1520, %v1626_v8   ;;  %v1632_v23 = vpop.eup %1631  ;;  %v635_v18 = vadd.f32 1.0, %v1630_v19 }
 0x118   : > { %840 = vperm.xlu0 %1519, %v1628_v10  }
 0x119   : > { %v1634_v26 = vpop.eup %1633  ;;  %1645 = vrcp.f32 %v635_v18 }
 0x11a   : > { %v1636_v29 = vpop.eup %1635 }
 0x11b   : > { %805 = vperm.xlu1 %1520, %v1632_v23   ;;  %v1638_v34 = vpop.eup %1637  ;;  %v637_v31 = vadd.f32 1.0, %v1636_v29 }
 0x11c   : > { %850 = vperm.xlu0 %1519, %v1634_v26  }
 0x11d   : > { %v1640_v11 = vpop.eup %1639  ;;  %1647 = vrcp.f32 %v637_v31 }
 0x11e   : > { %v1642_v36 = vpop.eup %1641 }
 0x11f   : > { %815 = vperm.xlu1 %1520, %v1638_v34   ;;  %v1644_v38 = vpop.eup %1643 }
 0x120   : > { %860 = vperm.xlu0 %1519, %v1640_v11  }
 0x123   : > { %825 = vperm.xlu1 %1520, %v1642_v36   ;;  %v1646_v39 = vpop.eup %1645  ;;  %v343_v36 = vmul.f32 %v1839_v20, %v1990_v44 }
 0x127   : > { %835 = vperm.xlu1 %1520, %v1644_v38   ;;  %v1648_v41 = vpop.eup %1647 }
 0x12b   : > { %845 = vperm.xlu1 %1520, %v1646_v39  }
 0x12f   : > { %855 = vperm.xlu1 %1520, %v1648_v41  }
 0x161   : > { %v706_v46 = vpop.permute.xlu0 %705 }
 0x162   : > { %v863_v43 = vmul.f32 %v1814_v6, %v706_v46  ;;  %v339_v6 = vmul.f32 %v1809_v3, %v1990_v44 }
 0x164   : > { %v895_v53 = vadd.f32 %v863_v43, %v337_v48 }
 0x166   : > { %v711_v2 = vpop.permute.xlu1 %710 }
 0x167   : > { %v864_v51 = vmul.f32 %v1816_v7, %v711_v2  ;;  %v340_v7 = vmul.f32 %v1812_v5, %v1990_v44  ;;  %v345_v2 = vmul.f32 %v1848_v25, %v1990_v44 }
 0x169   : > { %v896_v54 = vadd.f32 %v864_v51, %v338_v49 }
 0x16a   : > { %v716_v58 = vpop.permute.xlu1 %715 }
 0x16b   : > { %v1376_v56 = vpack.c.bf16 %v896_v54, %v895_v53  ;;  %v865_v59 = vmul.f32 %v1809_v3, %v716_v58  ;;  %v342_v3 = vmul.f32 %v1825_v12, %v1990_v44 }
 0x16d   : > { %1377 = vst [vmem:[%s2003_s23] sm:$0xff] %v1376_v56   ;;  %v897_v0 = vadd.f32 %v865_v59, %v339_v6 }
 0x16e   : > { %v721_v61 = vpop.permute.xlu1 %720 }
 0x16f   : > { %v866_v33 = vmul.f32 %v1812_v5, %v721_v61 }
 0x171   : > { %v898_v63 = vadd.f32 %v866_v33, %v340_v7  ;;  %v751_v4 = vpop.permute.xlu0 %750 }
 0x172   : > { %v726_v8 = vpop.permute.xlu1 %725  ;;  %v872_v48 = vmul.f32 %v1843_v22, %v751_v4 }
 0x173   : > { %v1381_v10 = vpack.c.bf16 %v898_v63, %v897_v0  ;;  %v867_v19 = vmul.f32 %v1830_v15, %v726_v8  ;;  %v344_v15 = vmul.f32 %v1834_v17, %v1990_v44 }
 0x175   : > { %1468 = vst [vmem:[%s2003_s23 + $0x8] sm:$0xff] %v1381_v10   ;;  %v761_v23 = vpop.permute.xlu0 %760  ;;  %v899_v5 = vadd.f32 %v867_v19, %v341_v14 }
 0x176   : > { %v731_v26 = vpop.permute.xlu1 %730  ;;  %v874_v56 = vmul.f32 %v1852_v27, %v761_v23 }
 0x177   : > { %v868_v18 = vmul.f32 %v1825_v12, %v731_v26  ;;  %v346_v12 = vmul.f32 %v1843_v22, %v1990_v44  ;;  %v347_v22 = vmul.f32 %v1857_v30, %v1990_v44 }
 0x179   : > { %v900_v29 = vadd.f32 %v868_v18, %v342_v3  ;;  %v771_v34 = vpop.permute.xlu0 %770  ;;  %v904_v58 = vadd.f32 %v872_v48, %v346_v12 }
 0x17a   : > { %v736_v11 = vpop.permute.xlu1 %735  ;;  %v876_v63 = vmul.f32 %v1861_v32, %v771_v34 }
 0x17b   : > { %v1386_v31 = vpack.c.bf16 %v900_v29, %v899_v5  ;;  %v869_v38 = vmul.f32 %v1839_v20, %v736_v11 }
 0x17d   : > { %1469 = vst [vmem:[%s2003_s23 + $0x10] sm:$0xff] %v1386_v31   ;;  %v901_v43 = vadd.f32 %v869_v38, %v343_v36 }
 0x17e   : > { %v741_v39 = vpop.permute.xlu1 %740 }
 0x17f   : > { %v870_v41 = vmul.f32 %v1834_v17, %v741_v39  ;;  %v781_v46 = vpop.permute.xlu0 %780  ;;  %v348_v17 = vmul.f32 %v1852_v27, %v1990_v44  ;;  %v349_v27 = vmul.f32 %v1866_v35, %v1990_v44 }
 0x180   : > { %v878_v23 = vmul.f32 %v1870_v37, %v781_v46 }
 0x181   : > { %v902_v49 = vadd.f32 %v870_v41, %v344_v15  ;;  %v906_v0 = vadd.f32 %v874_v56, %v348_v17 }
 0x182   : > { %v746_v51 = vpop.permute.xlu1 %745 }
 0x183   : > { %v1391_v20 = vpack.c.bf16 %v902_v49, %v901_v43  ;;  %v871_v53 = vmul.f32 %v1848_v25, %v746_v51  ;;  %v791_v54 = vpop.permute.xlu0 %790  ;;  %v350_v25 = vmul.f32 %v1861_v32, %v1990_v44  ;;  %v351_v32 = vmul.f32 %v1875_v40, %v1990_v44 }
 0x184   : > { %v880_v11 = vmul.f32 %v1879_v42, %v791_v54 }
 0x185   : > { %1470 = vst [vmem:[%s2003_s23 + $0x18] sm:$0xff] %v1391_v20   ;;  %v903_v6 = vadd.f32 %v871_v53, %v345_v2  ;;  %v908_v3 = vadd.f32 %v876_v63, %v350_v25  ;;  %v358_v2 = vmul.f32 %v1897_v52, %v1990_v44 }
 0x186   : > { %v756_v59 = vpop.permute.xlu1 %755 }
 0x187   : > { %v1396_v7 = vpack.c.bf16 %v904_v58, %v903_v6  ;;  %v873_v61 = vmul.f32 %v1857_v30, %v756_v59  ;;  %v801_v33 = vpop.permute.xlu0 %800  ;;  %v352_v30 = vmul.f32 %v1870_v37, %v1990_v44  ;;  %v353_v37 = vmul.f32 %v1884_v45, %v1990_v44 }
 0x188   : > { %v882_v46 = vmul.f32 %v1888_v47, %v801_v33 }
 0x189   : > { %1471 = vst [vmem:[%s2003_s23 + $0x20] sm:$0xff] %v1396_v7   ;;  %v905_v4 = vadd.f32 %v873_v61, %v347_v22  ;;  %v910_v34 = vadd.f32 %v878_v23, %v352_v30 }
 0x18a   : > { %v766_v8 = vpop.permute.xlu1 %765 }
 0x18b   : > { %v1401_v10 = vpack.c.bf16 %v906_v0, %v905_v4  ;;  %v875_v14 = vmul.f32 %v1866_v35, %v766_v8  ;;  %v811_v19 = vpop.permute.xlu0 %810  ;;  %v354_v35 = vmul.f32 %v1879_v42, %v1990_v44  ;;  %v355_v42 = vmul.f32 %v1893_v50, %v1990_v44 }
 0x18c   : > { %v884_v20 = vmul.f32 %v1897_v52, %v811_v19  ;;  %v359_v52 = vmul.f32 %v1911_v60, %v1990_v44 }
 0x18d   : > { %1472 = vst [vmem:[%s2003_s23 + $0x28] sm:$0xff] %v1401_v10   ;;  %v907_v26 = vadd.f32 %v875_v14, %v349_v27  ;;  %v912_v41 = vadd.f32 %v880_v11, %v354_v35  ;;  %v364_v10 = vmul.f32 %v1924_v9, %v1990_v44 }
 0x18e   : > { %v776_v18 = vpop.permute.xlu1 %775  ;;  %v916_v56 = vadd.f32 %v884_v20, %v358_v2 }
 0x18f   : > { %v1406_v5 = vpack.c.bf16 %v908_v3, %v907_v26  ;;  %v877_v29 = vmul.f32 %v1875_v40, %v776_v18  ;;  %v821_v36 = vpop.permute.xlu0 %820  ;;  %v356_v40 = vmul.f32 %v1888_v47, %v1990_v44  ;;  %v357_v47 = vmul.f32 %v1902_v55, %v1990_v44 }
 0x190   : > { %v886_v6 = vmul.f32 %v1906_v57, %v821_v36  ;;  %v367_v36 = vmul.f32 %v1946_v28, %v1990_v44 }
 0x191   : > { %1473 = vst [vmem:[%s2003_s23 + $0x30] sm:$0xff] %v1406_v5   ;;  %v909_v31 = vadd.f32 %v877_v29, %v351_v32  ;;  %v914_v51 = vadd.f32 %v882_v46, %v356_v40 }
 0x192   : > { %v786_v38 = vpop.permute.xlu1 %785 }
 0x193   : > { %v1411_v15 = vpack.c.bf16 %v910_v34, %v909_v31  ;;  %v879_v39 = vmul.f32 %v1884_v45, %v786_v38  ;;  %v831_v45 = vpop.permute.xlu0 %830 }
 0x194   : > { %v888_v0 = vmul.f32 %v1915_v62, %v831_v45 }
 0x195   : > { %1474 = vst [vmem:[%s2003_s23 + $0x38] sm:$0xff] %v1411_v15   ;;  %v911_v12 = vadd.f32 %v879_v39, %v353_v37 }
 0x196   : > { %v796_v48 = vpop.permute.xlu1 %795 }
 0x197   : > { %v1416_v43 = vpack.c.bf16 %v912_v41, %v911_v12  ;;  %v881_v49 = vmul.f32 %v1893_v50, %v796_v48  ;;  %v360_v50 = vmul.f32 %v1906_v57, %v1990_v44  ;;  %v841_v59 = vpop.permute.xlu0 %840  ;;  %v361_v57 = vmul.f32 %v1920_v1, %v1990_v44 }
 0x198   : > { %v890_v30 = vmul.f32 %v1924_v9, %v841_v59  ;;  %v365_v9 = vmul.f32 %v1938_v21, %v1990_v44 }
 0x199   : > { %1475 = vst [vmem:[%s2003_s23 + $0x40] sm:$0xff] %v1416_v43   ;;  %v913_v53 = vadd.f32 %v881_v49, %v355_v42  ;;  %v918_v25 = vadd.f32 %v886_v6, %v360_v50 }
 0x19a   : > { %v806_v54 = vpop.permute.xlu1 %805  ;;  %v922_v32 = vadd.f32 %v890_v30, %v364_v10 }
 0x19b   : > { %v1421_v17 = vpack.c.bf16 %v914_v51, %v913_v53  ;;  %v883_v58 = vmul.f32 %v1902_v55, %v806_v54  ;;  %v362_v55 = vmul.f32 %v1915_v62, %v1990_v44  ;;  %v363_v62 = vmul.f32 %v1929_v13, %v1990_v44 }
 0x19d   : > { %1476 = vst [vmem:[%s2003_s23 + $0x48] sm:$0xff] %v1421_v17   ;;  %v915_v22 = vadd.f32 %v883_v58, %v357_v47  ;;  %v920_v14 = vadd.f32 %v888_v0, %v362_v55 }
 0x19e   : > { %v816_v7 = vpop.permute.xlu1 %815 }
 0x19f   : > { %v1426_v61 = vpack.c.bf16 %v916_v56, %v915_v22  ;;  %v885_v33 = vmul.f32 %v1911_v60, %v816_v7  ;;  %v851_v60 = vpop.permute.xlu0 %850 }
 0x1a0   : > { %v892_v18 = vmul.f32 %v1933_v16, %v851_v60 }
 0x1a1   : > { %1477 = vst [vmem:[%s2003_s23 + $0x50] sm:$0xff] %v1426_v61   ;;  %v917_v63 = vadd.f32 %v885_v33, %v359_v52 }
 0x1a2   : > { %v826_v4 = vpop.permute.xlu1 %825 }
 0x1a3   : > { %v1431_v27 = vpack.c.bf16 %v918_v25, %v917_v63  ;;  %v887_v8 = vmul.f32 %v1920_v1, %v826_v4  ;;  %v366_v1 = vmul.f32 %v1933_v16, %v1990_v44  ;;  %v861_v29 = vpop.permute.xlu0 %860 }
 0x1a4   : > { %v894_v37 = vmul.f32 %v1942_v24, %v861_v29 }
 0x1a5   : > { %1478 = vst [vmem:[%s2003_s23 + $0x58] sm:$0xff] %v1431_v27   ;;  %v919_v19 = vadd.f32 %v887_v8, %v361_v57  ;;  %v924_v31 = vadd.f32 %v892_v18, %v366_v1 }
 0x1a6   : > { %v836_v3 = vpop.permute.xlu1 %835 }
 0x1a7   : > { %v1436_v23 = vpack.c.bf16 %v920_v14, %v919_v19  ;;  %v889_v26 = vmul.f32 %v1929_v13, %v836_v3  ;;  %v368_v13 = vmul.f32 %v1942_v24, %v1990_v44 }
 0x1a9   : > { %1479 = vst [vmem:[%s2003_s23 + $0x60] sm:$0xff] %v1436_v23   ;;  %v921_v5 = vadd.f32 %v889_v26, %v363_v62  ;;  %v926_v40 = vadd.f32 %v894_v37, %v368_v13 }
 0x1aa   : > { %v846_v35 = vpop.permute.xlu1 %845 }
 0x1ab   : > { %v1441_v34 = vpack.c.bf16 %v922_v32, %v921_v5  ;;  %v891_v11 = vmul.f32 %v1938_v21, %v846_v35 }
 0x1ad   : > { %1480 = vst [vmem:[%s2003_s23 + $0x68] sm:$0xff] %v1441_v34   ;;  %v923_v16 = vadd.f32 %v891_v11, %v365_v9 }
 0x1ae   : > { %v856_v38 = vpop.permute.xlu1 %855 }
 0x1af   : > { %v1446_v15 = vpack.c.bf16 %v924_v31, %v923_v16  ;;  %v893_v39 = vmul.f32 %v1946_v28, %v856_v38 }
 0x1b1   : > { %1481 = vst [vmem:[%s2003_s23 + $0x70] sm:$0xff] %v1446_v15   ;;  %v925_v41 = vadd.f32 %v893_v39, %v367_v36 }
 0x1b3   : > { %v1451_v46 = vpack.c.bf16 %v926_v40, %v925_v41 }
 0x1b5   : > { %1482 = vst [vmem:[%s2003_s23 + $0x78] sm:$0xff] %v1451_v46  }
 0x1b6 PF: > { %s17_s19 = sadd.s32 1, %s1703_s19   ;;  %s2133_s17 = smov %s1699_s18 }
 0x1b7   : > { %p14_p3 = scmp.ge.s32.totalorder %s17_s19, 4   ;;  %s2134_s18 = smov %s2136_s20 }
 0x1b9   :  { %16 = sbr.rel (!%p14_p3) target bundleno = 5 (0x5), region = 74 }
 0x1c0   :  { %1117 = vsyncpa [#allocation4], 1 }
 0x1c1   :  { %1119 = vsyncpa [#allocation4 + $0x1], 1 }

// kernel: model_forward.19
= control target key start
LH: loop header
LB: loop body
LE: loop exit
PB: predicated region body
PF: predicated region fallthrough
CT: control target
= control target key end

     0   :  { %s328_s6 = smov 0   ;;  %s330_s7 = smov 0   ;;  %s366_s0 = inlined_call_operand.vmem [shape: bf16[2,64,128], index: 0, kind: input, shape index: {}]   ;;  %s367_s1 = inlined_call_operand.vmem [shape: f32[2,1,128], index: 1, kind: output, shape index: {}]  }
   0x1   :  { %s332_s8 = smov 0  }
   0x2 LB: > { %s23_s9 = sadd.s32 1, %s311_s7  ;;  %p243_p0 = scmp.ge.s32.totalorder %s315_s8, 1  ;;  %s315_s8 = sphi %s332_s8, %s11_s8   ;;  %s311_s7 = sphi %s330_s7, %s369_s7   ;;  %s307_s6 = sphi %s328_s6, %s368_s6  }
   0x3   : > { %p25_p1 = scmp.ge.s32.totalorder %s23_s9, 2  ;;  %p106_p2 = scmp.lt.s32.totalorder %s315_s8, 3 }
   0x5   : > { %s371_s9 = smov (%p25_p1, %s23_s9), 0  ;;  %p107_p3 = pnand %p243_p0, %p106_p2 }
   0x6   : > { %p129_p4 = scmp.lt.s32.totalorder (!%p107_p3), %s307_s6, 1  ;;  %v317_v0 = vmov (!%p107_p3), 0.0  }
   0x7   : > { %110 = sbr.rel (%p107_p3) target bundleno = 49 (0x31), region = 24 }
   0xe   : > { %s373_s6 = smov (!%p129_p4, %s307_s6), 1 }
   0xf   : > { %s248_s10 = sshll.u32 %s373_s6, 5  ;;  %s349_s13 = scalar_lea.vmem %s367_s1, %s373_s6 }
  0x10   : > { %s136_s16 = scalar_lea.vmem %s366_s0, %s248_s10  ;;  %145 = vst [vmem:[%s349_s13] sm:$0x1] %v317_v0 }
  0x11   : > { %v250_v1 = vld [vmem:[%s136_s16] sm:$0xff]   ;;  %v265_v2 = vld [vmem:[%s136_s16 + $0x8] sm:$0xff]   ;;  %v266_v6 = vld [vmem:[%s136_s16 + $0x10] sm:$0xff]  }
  0x12   : > { %v251_v3 = vunpack.c.l.bf16 %v250_v1  ;;  %v252_v4 = vunpack.c.h.bf16 %v250_v1  ;;  %v255_v5 = vunpack.c.l.bf16 %v265_v2  ;;  %v256_v7 = vunpack.c.h.bf16 %v265_v2  ;;  %v267_v11 = vld [vmem:[%s136_s16 + $0x18] sm:$0xff]  }
  0x13   : > { %v259_v9 = vunpack.c.l.bf16 %v266_v6  ;;  %v260_v12 = vunpack.c.h.bf16 %v266_v6  ;;  %v263_v14 = vunpack.c.l.bf16 %v267_v11  ;;  %v264_v16 = vunpack.c.h.bf16 %v267_v11 }
  0x14   : > { %v163_v8 = vadd.f32 %v252_v4, %v251_v3 }
  0x16   : > { %v164_v10 = vadd.f32 %v255_v5, %v163_v8 }
  0x17   : > { %v146_v25 = vld [vmem:[%s349_s13] sm:$0x1] }
  0x18   : > { %v165_v13 = vadd.f32 %v256_v7, %v164_v10 }
  0x1a   : > { %v166_v15 = vadd.f32 %v259_v9, %v165_v13 }
  0x1c   : > { %v167_v17 = vadd.f32 %v260_v12, %v166_v15 }
  0x1e   : > { %v168_v18 = vadd.f32 %v263_v14, %v167_v17 }
  0x20   : > { %v169_v19 = vadd.f32 %v264_v16, %v168_v18 }
  0x22   : > { %v170_v20 = vrot.slane %v169_v19, 4 }
  0x24   : > { %v171_v21 = vadd.f32 %v170_v20, %v169_v19 }
  0x26   : > { %v172_v22 = vrot.slane %v171_v21, 2 }
  0x28   : > { %v173_v23 = vadd.f32 %v172_v22, %v171_v21 }
  0x2a   : > { %v174_v24 = vrot.slane %v173_v23, 1 }
  0x2c   : > { %v175_v26 = vadd.f32 %v174_v24, %v173_v23 }
  0x2e   : > { %v176_v27 = vadd.f32 %v175_v26, %v146_v25 }
  0x30   : > { %177 = vst [vmem:[%s349_s13] sm:$0x1] %v176_v27 }
  0x31 PF: > { %s11_s8 = sadd.s32 1, %s315_s8   ;;  %s368_s6 = smov %s311_s7 }
  0x32   : > { %p8_p5 = scmp.ge.s32.totalorder %s11_s8, 4   ;;  %s369_s7 = smov %s371_s9 }
  0x34   :  { %10 = sbr.rel (!%p8_p5) target bundleno = 2 (0x2), region = 58 }

// kernel: model_forward.20
= control target key start
LH: loop header
LB: loop body
LE: loop exit
PB: predicated region body
PF: predicated region fallthrough
CT: control target
= control target key end

     0   :  { %s764_s17 = smov 0   ;;  %s766_s18 = smov 0   ;;  %s857_s0 = inlined_call_operand.vmem [shape: bf16[2,64,128], index: 0, kind: input, shape index: {}]   ;;  %s858_s1 = inlined_call_operand.vmem [shape: f32[2,1,128], index: 1, kind: input, shape index: {}]   ;;  %s859_s2 = inlined_call_operand.vmem [shape: f32[1,1,128], index: 2, kind: input, shape index: {}]   ;;  %s860_s3 = inlined_call_operand.<no memory space> [shape: f32[1,1], index: 3, kind: input, shape index: {}]   ;;  %s861_s4 = inlined_call_operand.vmem [shape: bf16[2,64,128], index: 4, kind: output, shape index: {}]  }
   0x1   :  { %v9_v0 = vstv %s860_s3  ;;  %s768_s19 = smov 0  }
   0x2   :  { %10 = vst [vmem:[#allocation2] sm:$0x1] %v9_v0 }
   0x3 LB: > { %s28_s3 = sadd.s32 1, %s729_s18  ;;  %p574_p0 = scmp.ge.s32.totalorder %s733_s19, 1  ;;  %s733_s19 = sphi %s768_s19, %s16_s19   ;;  %s729_s18 = sphi %s766_s18, %s863_s18   ;;  %s725_s17 = sphi %s764_s17, %s862_s17  }
   0x4   : > { %p30_p1 = scmp.ge.s32.totalorder %s28_s3, 2  ;;  %p193_p2 = scmp.lt.s32.totalorder %s733_s19, 3 }
   0x6   : > { %s865_s3 = smov (%p30_p1, %s28_s3), 0  ;;  %p194_p3 = pnand %p574_p0, %p193_p2 }
   0x7   : > { %p231_p4 = scmp.lt.s32.totalorder (!%p194_p3), %s725_s17, 1  ;;  %v580_v2 = vld [vmem:[%s859_s2] ss:$0 sm:$0xff] (!%p194_p3)  ;;  %v735_v22 = vmov (!%p194_p3), 0  }
   0x8   : > { %197 = sbr.rel (%p194_p3) target bundleno = 356 (0x164), region = 36  ;;  %677 = vset.pattern.permute.xlu0 (!%p194_p3), %v735_v22  ;;  %678 = vset.pattern.permute.xlu1 (!%p194_p3), %v735_v22 }
   0x9   : > { %v581_v23 = vld [vmem:[#allocation2] ss:$0 sm:$0xff] (!%p194_p3) }
   0xf   : > { %s867_s17 = smov (!%p231_p4, %s725_s17), 1 }
  0x10   : > { %s600_s20 = sshll.u32 %s867_s17, 5  ;;  %s242_s28 = scalar_lea.vmem %s858_s1, %s867_s17 }
  0x11   : > { %s238_s23 = scalar_lea.vmem %s857_s0, %s600_s20  ;;  %s830_s5 = scalar_lea.vmem %s861_s4, %s600_s20 }
  0x12   : > { %v611_v1 = vld [vmem:[%s238_s23] sm:$0xff]   ;;  %v646_v3 = vld [vmem:[%s238_s23 + $0x8] sm:$0xff]   ;;  %v647_v8 = vld [vmem:[%s238_s23 + $0x10] sm:$0xff]  }
  0x13   : > { %v793_v4 = vunpack.c.l.bf16 %v611_v1  ;;  %v795_v5 = vunpack.c.h.bf16 %v611_v1  ;;  %v797_v6 = vunpack.c.l.bf16 %v646_v3  ;;  %v799_v7 = vunpack.c.h.bf16 %v646_v3  ;;  %v648_v15 = vld [vmem:[%s238_s23 + $0x18] sm:$0xff]  }
  0x14   : > { %v805_v13 = vunpack.c.l.bf16 %v647_v8  ;;  %v807_v14 = vunpack.c.h.bf16 %v647_v8  ;;  %v811_v18 = vunpack.c.l.bf16 %v648_v15  ;;  %v813_v19 = vunpack.c.h.bf16 %v648_v15 }
  0x15   : > { %v291_v9 = vmul.f32 %v793_v4, %v580_v2  ;;  %v293_v10 = vmul.f32 %v797_v6, %v580_v2  ;;  %v292_v11 = vmul.f32 %v795_v5, %v580_v2  ;;  %v294_v12 = vmul.f32 %v799_v7, %v580_v2 }
  0x16   : > { %v295_v16 = vmul.f32 %v805_v13, %v580_v2  ;;  %v296_v17 = vmul.f32 %v807_v14, %v580_v2  ;;  %v297_v20 = vmul.f32 %v811_v18, %v580_v2  ;;  %v298_v21 = vmul.f32 %v813_v19, %v580_v2 }
  0x17   : > { %299 = vadd.xlane.f32.xlu0 %v291_v9  ;;  %303 = vadd.xlane.f32.xlu1 %v293_v10 }
  0x1b   : > { %301 = vadd.xlane.f32.xlu0 %v292_v11  ;;  %305 = vadd.xlane.f32.xlu1 %v294_v12  ;;  %v579_v12 = vld [vmem:[%s242_s28] ss:$0 sm:$0xff] }
  0x1f   : > { %307 = vadd.xlane.f32.xlu0 %v295_v16  ;;  %309 = vadd.xlane.f32.xlu1 %v296_v17  ;;  %v276_v16 = vmul.f32 %v793_v4, %v579_v12 }
  0x23   : > { %311 = vadd.xlane.f32.xlu0 %v297_v20  ;;  %313 = vadd.xlane.f32.xlu1 %v298_v21  ;;  %v277_v20 = vmul.f32 %v795_v5, %v579_v12 }
  0xa4   : > { %v300_v24 = vpop.xlane.xlu0 %299  ;;  %v304_v25 = vpop.xlane.xlu1 %303 }
  0xa5   : > { %v322_v26 = vadd.f32 %v581_v23, %v300_v24  ;;  %v324_v27 = vadd.f32 %v581_v23, %v304_v25 }
  0xa7   : > { %v582_v28 = vmul.f32 -1.442695, %v322_v26  ;;  %v584_v29 = vmul.f32 -1.442695, %v324_v27 }
  0xa8   : > { %v302_v30 = vpop.xlane.xlu0 %301  ;;  %v306_v31 = vpop.xlane.xlu1 %305 }
  0xa9   : > { %679 = vpow2.f32 %v582_v28  ;;  %v323_v32 = vadd.f32 %v581_v23, %v302_v30  ;;  %v325_v33 = vadd.f32 %v581_v23, %v306_v31  ;;  %v279_v28 = vmul.f32 %v799_v7, %v579_v12 }
  0xaa   : > { %681 = vpow2.f32 %v584_v29 }
  0xab   : > { %v583_v34 = vmul.f32 -1.442695, %v323_v32  ;;  %v585_v35 = vmul.f32 -1.442695, %v325_v33 }
  0xac   : > { %v308_v36 = vpop.xlane.xlu0 %307  ;;  %v310_v37 = vpop.xlane.xlu1 %309 }
  0xad   : > { %683 = vpow2.f32 %v583_v34  ;;  %v326_v38 = vadd.f32 %v581_v23, %v308_v36  ;;  %v327_v40 = vadd.f32 %v581_v23, %v310_v37  ;;  %v280_v34 = vmul.f32 %v805_v13, %v579_v12 }
  0xae   : > { %685 = vpow2.f32 %v585_v35  ;;  %v281_v36 = vmul.f32 %v807_v14, %v579_v12 }
  0xaf   : > { %v586_v39 = vmul.f32 -1.442695, %v326_v38  ;;  %v587_v43 = vmul.f32 -1.442695, %v327_v40 }
  0xb0   : > { %v312_v41 = vpop.xlane.xlu0 %311  ;;  %v314_v46 = vpop.xlane.xlu1 %313 }
  0xb1   : > { %687 = vpow2.f32 %v586_v39  ;;  %v328_v44 = vadd.f32 %v581_v23, %v312_v41  ;;  %v329_v50 = vadd.f32 %v581_v23, %v314_v46 }
  0xb3   : > { %v680_v42 = vpop.eup %679  ;;  %v588_v49 = vmul.f32 -1.442695, %v328_v44  ;;  %v589_v54 = vmul.f32 -1.442695, %v329_v50 }
  0xb4   : > { %v354_v45 = vadd.f32 1.0, %v680_v42  ;;  %v682_v47 = vpop.eup %681 }
  0xb5   : > { %v356_v52 = vadd.f32 1.0, %v682_v47 }
  0xb6   : > { %689 = vrcp.f32 %v354_v45 }
  0xb7   : > { %v684_v48 = vpop.eup %683  ;;  %691 = vpow2.f32 %v587_v43  ;;  %v283_v43 = vmul.f32 %v813_v19, %v579_v12 }
  0xb8   : > { %v355_v51 = vadd.f32 1.0, %v684_v48  ;;  %v686_v53 = vpop.eup %685 }
  0xb9   : > { %v357_v55 = vadd.f32 1.0, %v686_v53 }
  0xba   : > { %693 = vrcp.f32 %v355_v51 }
  0xbb   : > { %695 = vpow2.f32 %v588_v49  ;;  %v688_v56 = vpop.eup %687 }
  0xbc   : > { %697 = vrcp.f32 %v356_v52  ;;  %v358_v58 = vadd.f32 1.0, %v688_v56 }
  0xbd   : > { %699 = vpow2.f32 %v589_v54 }
  0xbe   : > { %701 = vrcp.f32 %v357_v55 }
  0xbf   : > { %703 = vrcp.f32 %v358_v58 }
  0xc0   : > { %v690_v57 = vpop.eup %689 }
  0xc1   : > { %v692_v59 = vpop.eup %691  ;;  %380 = vperm.xlu0 %677, %v690_v57  }
  0xc2   : > { %v359_v61 = vadd.f32 1.0, %v692_v59 }
  0xc4   : > { %v694_v60 = vpop.eup %693  ;;  %705 = vrcp.f32 %v359_v61 }
  0xc5   : > { %v696_v62 = vpop.eup %695  ;;  %385 = vperm.xlu1 %678, %v694_v60  }
  0xc6   : > { %v698_v63 = vpop.eup %697  ;;  %v360_v0 = vadd.f32 1.0, %v696_v62 }
  0xc7   : > { %v700_v1 = vpop.eup %699 }
  0xc8   : > { %v702_v2 = vpop.eup %701  ;;  %707 = vrcp.f32 %v360_v0  ;;  %v361_v3 = vadd.f32 1.0, %v700_v1 }
  0xc9   : > { %390 = vperm.xlu1 %678, %v698_v63   ;;  %v704_v8 = vpop.eup %703 }
  0xca   : > { %709 = vrcp.f32 %v361_v3 }
  0xcd   : > { %395 = vperm.xlu1 %678, %v702_v2  }
  0xce   : > { %v706_v9 = vpop.eup %705 }
  0xd1   : > { %400 = vperm.xlu1 %678, %v704_v8  }
  0xd2   : > { %v708_v10 = vpop.eup %707 }
  0xd4   : > { %v710_v11 = vpop.eup %709 }
  0xd5   : > { %405 = vperm.xlu1 %678, %v706_v9  }
  0xd9   : > { %410 = vperm.xlu1 %678, %v708_v10  }
  0xdd   : > { %415 = vperm.xlu1 %678, %v710_v11  }
 0x140   : > { %v381_v15 = vpop.permute.xlu0 %380 }
 0x141   : > { %v418_v17 = vmul.f32 %v793_v4, %v381_v15  ;;  %v278_v4 = vmul.f32 %v797_v6, %v579_v12 }
 0x143   : > { %v426_v23 = vadd.f32 %v418_v17, %v276_v16 }
 0x144   : > { %v386_v21 = vpop.permute.xlu1 %385 }
 0x145   : > { %v419_v22 = vmul.f32 %v795_v5, %v386_v21 }
 0x147   : > { %v427_v24 = vadd.f32 %v419_v22, %v277_v20 }
 0x148   : > { %v391_v25 = vpop.permute.xlu1 %390 }
 0x149   : > { %v629_v26 = vpack.c.bf16 %v427_v24, %v426_v23  ;;  %v420_v27 = vmul.f32 %v797_v6, %v391_v25 }
 0x14b   : > { %630 = vst [vmem:[%s830_s5] sm:$0xff] %v629_v26   ;;  %v428_v30 = vadd.f32 %v420_v27, %v278_v4 }
 0x14c   : > { %v396_v5 = vpop.permute.xlu1 %395 }
 0x14d   : > { %v421_v29 = vmul.f32 %v799_v7, %v396_v5  ;;  %v282_v7 = vmul.f32 %v811_v18, %v579_v12 }
 0x14f   : > { %v429_v31 = vadd.f32 %v421_v29, %v279_v28 }
 0x150   : > { %v401_v32 = vpop.permute.xlu1 %400 }
 0x151   : > { %v634_v33 = vpack.c.bf16 %v429_v31, %v428_v30  ;;  %v422_v35 = vmul.f32 %v805_v13, %v401_v32 }
 0x153   : > { %649 = vst [vmem:[%s830_s5 + $0x8] sm:$0xff] %v634_v33   ;;  %v430_v38 = vadd.f32 %v422_v35, %v280_v34 }
 0x154   : > { %v406_v37 = vpop.permute.xlu1 %405 }
 0x155   : > { %v423_v6 = vmul.f32 %v807_v14, %v406_v37 }
 0x157   : > { %v431_v39 = vadd.f32 %v423_v6, %v281_v36 }
 0x158   : > { %v411_v40 = vpop.permute.xlu1 %410 }
 0x159   : > { %v639_v41 = vpack.c.bf16 %v431_v39, %v430_v38  ;;  %v424_v42 = vmul.f32 %v811_v18, %v411_v40 }
 0x15b   : > { %650 = vst [vmem:[%s830_s5 + $0x10] sm:$0xff] %v639_v41   ;;  %v432_v45 = vadd.f32 %v424_v42, %v282_v7 }
 0x15c   : > { %v416_v44 = vpop.permute.xlu1 %415 }
 0x15d   : > { %v425_v13 = vmul.f32 %v813_v19, %v416_v44 }
 0x15f   : > { %v433_v46 = vadd.f32 %v425_v13, %v283_v43 }
 0x161   : > { %v644_v47 = vpack.c.bf16 %v433_v46, %v432_v45 }
 0x163   : > { %651 = vst [vmem:[%s830_s5 + $0x18] sm:$0xff] %v644_v47  }
 0x164 PF: > { %s16_s19 = sadd.s32 1, %s733_s19   ;;  %s862_s17 = smov %s729_s18 }
 0x165   : > { %p13_p5 = scmp.ge.s32.totalorder %s16_s19, 4   ;;  %s863_s18 = smov %s865_s3 }
 0x167   :  { %15 = sbr.rel (!%p13_p5) target bundleno = 3 (0x3), region = 69 }

// kernel: model_forward.18
= control target key start
LH: loop header
LB: loop body
LE: loop exit
PB: predicated region body
PF: predicated region fallthrough
CT: control target
= control target key end

     0   :  { %s1659_s12 = smov 0   ;;  %s1661_s13 = smov 0   ;;  %s1873_s0 = inlined_call_operand.vmem [shape: bf16[128,1152], index: 0, kind: input, shape index: {}]   ;;  %s1874_s1 = inlined_call_operand.vmem [shape: bf16[1152,128], index: 1, kind: input, shape index: {}]   ;;  %s1875_s2 = inlined_call_operand.vmem [shape: f32[1,128], index: 2, kind: input, shape index: {}]   ;;  %s1876_s3 = inlined_call_operand.vmem [shape: bf16[128,128], index: 3, kind: output, shape index: {}]  }
   0x1   :  { %s1663_s14 = smov 0   ;;  %s1665_s15 = smov 0  }
   0x2   :  { %s1667_s16 = smov 0  }
   0x3 LB: > { %s25_s17 = sadd.s32 1, %s1632_s15  ;;  %p48_p1 = scmp.ne.s32.totalorder %s1624_s13, %s1620_s12  ;;  %s1636_s16 = sphi %s1667_s16, %s13_s16   ;;  %s1632_s15 = sphi %s1665_s15, %s1880_s15   ;;  %s1628_s14 = sphi %s1663_s14, %s1879_s14   ;;  %s1624_s13 = sphi %s1661_s13, %s1878_s13   ;;  %s1620_s12 = sphi %s1659_s12, %s1877_s12  }
   0x4   : > { %p26_p0 = scmp.ge.s32.totalorder %s25_s17, 3  ;;  %p49_p2 = scmp.eq.s32.totalorder %s1636_s16, 0 }
   0x5   : > { %s41_s19 = sadd.s32 1, %s1624_s13  ;;  %p1216_p5 = scmp.ge.s32.totalorder %s1636_s16, 3 }
   0x6   : > { %s1882_s17 = smov (%p26_p0, %s25_s17), 0  ;;  %p50_p3 = por %p49_p2, %p48_p1 }
   0x7   : > { %s37_s18 = ssub.s32 %s1632_s15, %s1882_s17  ;;  %162 = sbr.rel (%p1216_p5) target bundleno = 37 (0x25), region = 20 }
   0x8   : > { %p39_p4 = scmp.eq.s32.totalorder %s37_s18, 0 }
   0xa   : > { %s1694_s20 = scalar_select %p39_p4, %s1624_s13, %s41_s19  }
   0xe   : > { %165 = sbr.rel (!%p50_p3) target bundleno = 37 (0x25), region = 24  ;;  %s167_s21 = sand.u32 (%p50_p3), 1, %s1624_s13  }
   0xf   : > { %s1323_s22 = smul.u32 (%p50_p3), 12, %s1632_s15 }
  0x10   : > { %s1499_s23 = smul.u32 (%p50_p3), 192, %s167_s21 }
  0x11   : > { %s1702_s26 = scalar_lea.vmem (%p50_p3), %s1873_s0, %s1323_s22 }
  0x12   : > { %v190_v0 = vld [vmem:[%s1702_s26] sm:$0xff] (%p50_p3)  ;;  %v194_v2 = vld [vmem:[%s1702_s26 + $0x48] sm:$0xff] (%p50_p3)  ;;  %s1707_s27 = scalar_lea.vmem (%p50_p3), [#allocation3], %s1499_s23  ;;  %v198_v4 = vld [vmem:[%s1702_s26 + $0x90] sm:$0xff] (%p50_p3) }
  0x13   : > { %v192_v1 = vld [vmem:[%s1702_s26 + $0x24] sm:$0xff] (%p50_p3)  ;;  %191 = vst [vmem:[%s1707_s27] sm:$0xff] (%p50_p3), %v190_v0  ;;  %195 = vst [vmem:[%s1707_s27 + $0x18] sm:$0xff] (%p50_p3), %v194_v2  ;;  %v196_v3 = vld [vmem:[%s1702_s26 + $0x6c] sm:$0xff] (%p50_p3) }
  0x14   : > { %193 = vst [vmem:[%s1707_s27 + $0xc] sm:$0xff] (%p50_p3), %v192_v1  ;;  %v200_v5 = vld [vmem:[%s1702_s26 + $0xb4] sm:$0xff] (%p50_p3)  ;;  %197 = vst [vmem:[%s1707_s27 + $0x24] sm:$0xff] (%p50_p3), %v196_v3  ;;  %v204_v7 = vld [vmem:[%s1702_s26 + $0xfc] sm:$0xff] (%p50_p3) }
  0x15   : > { %199 = vst [vmem:[%s1707_s27 + $0x30] sm:$0xff] %v198_v4  ;;  %201 = vst [vmem:[%s1707_s27 + $0x3c] sm:$0xff] %v200_v5  ;;  %v202_v6 = vld [vmem:[%s1702_s26 + $0xd8] sm:$0xff]  ;;  %v206_v8 = vld [vmem:[%s1702_s26 + $0x120] sm:$0xff] }
  0x16   : > { %203 = vst [vmem:[%s1707_s27 + $0x48] sm:$0xff] %v202_v6  ;;  %205 = vst [vmem:[%s1707_s27 + $0x54] sm:$0xff] %v204_v7  ;;  %v208_v9 = vld [vmem:[%s1702_s26 + $0x144] sm:$0xff]  ;;  %v212_v11 = vld [vmem:[%s1702_s26 + $0x18c] sm:$0xff] }
  0x17   : > { %207 = vst [vmem:[%s1707_s27 + $0x60] sm:$0xff] %v206_v8  ;;  %v210_v10 = vld [vmem:[%s1702_s26 + $0x168] sm:$0xff]  ;;  %209 = vst [vmem:[%s1707_s27 + $0x6c] sm:$0xff] %v208_v9  ;;  %v214_v12 = vld [vmem:[%s1702_s26 + $0x1b0] sm:$0xff] }
  0x18   : > { %211 = vst [vmem:[%s1707_s27 + $0x78] sm:$0xff] %v210_v10  ;;  %213 = vst [vmem:[%s1707_s27 + $0x84] sm:$0xff] %v212_v11  ;;  %v216_v13 = vld [vmem:[%s1702_s26 + $0x1d4] sm:$0xff]  ;;  %v220_v15 = vld [vmem:[%s1702_s26 + $0x21c] sm:$0xff] }
  0x19   : > { %v218_v14 = vld [vmem:[%s1702_s26 + $0x1f8] sm:$0xff]  ;;  %215 = vst [vmem:[%s1707_s27 + $0x90] sm:$0xff] %v214_v12  ;;  %217 = vst [vmem:[%s1707_s27 + $0x9c] sm:$0xff] %v216_v13  ;;  %v1218_v16 = vld [vmem:[%s1702_s26 + $0x8] sm:$0xf] }
  0x1a   : > { %219 = vst [vmem:[%s1707_s27 + $0xa8] sm:$0xff] %v218_v14  ;;  %v1220_v17 = vld [vmem:[%s1702_s26 + $0x2c] sm:$0xf]  ;;  %221 = vst [vmem:[%s1707_s27 + $0xb4] sm:$0xff] %v220_v15  ;;  %v1222_v18 = vld [vmem:[%s1702_s26 + $0x50] sm:$0xf] }
  0x1b   : > { %1219 = vst [vmem:[%s1707_s27 + $0x8] sm:$0xf] %v1218_v16  ;;  %1221 = vst [vmem:[%s1707_s27 + $0x14] sm:$0xf] %v1220_v17  ;;  %v1224_v19 = vld [vmem:[%s1702_s26 + $0x74] sm:$0xf] }
  0x1c   : > { %v1226_v20 = vld [vmem:[%s1702_s26 + $0x98] sm:$0xf]  ;;  %1223 = vst [vmem:[%s1707_s27 + $0x20] sm:$0xf] %v1222_v18  ;;  %1225 = vst [vmem:[%s1707_s27 + $0x2c] sm:$0xf] %v1224_v19 }
  0x1d   : > { %1227 = vst [vmem:[%s1707_s27 + $0x38] sm:$0xf] %v1226_v20  ;;  %v1228_v21 = vld [vmem:[%s1702_s26 + $0xbc] sm:$0xf]  ;;  %v1230_v22 = vld [vmem:[%s1702_s26 + $0xe0] sm:$0xf] }
  0x1e   : > { %v1232_v23 = vld [vmem:[%s1702_s26 + $0x104] sm:$0xf]  ;;  %1229 = vst [vmem:[%s1707_s27 + $0x44] sm:$0xf] %v1228_v21  ;;  %1231 = vst [vmem:[%s1707_s27 + $0x50] sm:$0xf] %v1230_v22 }
  0x1f   : > { %1233 = vst [vmem:[%s1707_s27 + $0x5c] sm:$0xf] %v1232_v23  ;;  %v1234_v24 = vld [vmem:[%s1702_s26 + $0x128] sm:$0xf]  ;;  %v1236_v25 = vld [vmem:[%s1702_s26 + $0x14c] sm:$0xf] }
  0x20   : > { %v1238_v26 = vld [vmem:[%s1702_s26 + $0x170] sm:$0xf]  ;;  %1235 = vst [vmem:[%s1707_s27 + $0x68] sm:$0xf] %v1234_v24  ;;  %1237 = vst [vmem:[%s1707_s27 + $0x74] sm:$0xf] %v1236_v25 }
  0x21   : > { %1239 = vst [vmem:[%s1707_s27 + $0x80] sm:$0xf] %v1238_v26  ;;  %v1240_v27 = vld [vmem:[%s1702_s26 + $0x194] sm:$0xf]  ;;  %v1242_v28 = vld [vmem:[%s1702_s26 + $0x1b8] sm:$0xf] }
  0x22   : > { %v1244_v29 = vld [vmem:[%s1702_s26 + $0x1dc] sm:$0xf]  ;;  %1241 = vst [vmem:[%s1707_s27 + $0x8c] sm:$0xf] %v1240_v27  ;;  %1243 = vst [vmem:[%s1707_s27 + $0x98] sm:$0xf] %v1242_v28 }
  0x23   : > { %1245 = vst [vmem:[%s1707_s27 + $0xa4] sm:$0xf] %v1244_v29  ;;  %v1246_v30 = vld [vmem:[%s1702_s26 + $0x200] sm:$0xf]  ;;  %v1248_v31 = vld [vmem:[%s1702_s26 + $0x224] sm:$0xf] }
  0x24   : > { %1247 = vst [vmem:[%s1707_s27 + $0xb0] sm:$0xf] %v1246_v30  ;;  %1249 = vst [vmem:[%s1707_s27 + $0xbc] sm:$0xf] %v1248_v31 }
  0x25 PF: > { %p1250_p6 = scmp.ge.s32.totalorder %s1636_s16, 1  ;;  %p277_p7 = scmp.lt.s32.totalorder %s1636_s16, 4 }
  0x27   : > { %p278_p8 = pnand %p1250_p6, %p277_p7 }
  0x28   : > { %s284_s28 = sand.u32 (!%p278_p8), 1, %s1620_s12   ;;  %s323_s29 = smul.u32 (!%p278_p8), 48, %s1628_s14 }
  0x29   : > { %281 = sbr.rel (%p278_p8) target bundleno = 383 (0x17f), region = 54  ;;  %p1252_p10 = scmp.ne.s32.totalorder (!%p278_p8), %s1628_s14, 0 }
  0x2a   : > { %s1500_s30 = smul.u32 (!%p278_p8), 192, %s284_s28  ;;  %p324_p9 = scmp.lt.s32.totalorder (!%p278_p8), %s323_s29, 143 }
  0x2c   : > { %s1779_s8 = scalar_lea.vmem (!%p278_p8), [#allocation3], %s1500_s30 }
  0x30   : > { %s1884_s29 = smov (!%p324_p9, %s323_s29), 143  ;;  %348 = sbr.rel (%p1252_p10) target bundleno = 58 (0x3a), region = 62 }
  0x31   : > { %s1251_s4 = sshll.u32 %s1884_s29, 2  ;;  %v1638_v32 = vmov (!%p1252_p10), 0.0  }
  0x32   : > { %s1777_s7 = scalar_lea.vmem %s1874_s1, %s1251_s4  ;;  %349 = vst [vmem:[#allocation2] sm:$0xff] (!%p1252_p10), %v1638_v32  ;;  %350 = vst [vmem:[#allocation2 + $0x8] sm:$0xff] (!%p1252_p10), %v1638_v32 }
  0x33   : > { %351 = vst [vmem:[#allocation2 + $0x10] sm:$0xff] (!%p1252_p10), %v1638_v32  ;;  %352 = vst [vmem:[#allocation2 + $0x18] sm:$0xff] (!%p1252_p10), %v1638_v32 }
  0x34   : > { %353 = vst [vmem:[#allocation2 + $0x20] sm:$0xff] (!%p1252_p10), %v1638_v32  ;;  %354 = vst [vmem:[#allocation2 + $0x28] sm:$0xff] (!%p1252_p10), %v1638_v32 }
  0x35   : > { %355 = vst [vmem:[#allocation2 + $0x30] sm:$0xff] (!%p1252_p10), %v1638_v32  ;;  %356 = vst [vmem:[#allocation2 + $0x38] sm:$0xff] (!%p1252_p10), %v1638_v32 }
  0x36   : > { %357 = vst [vmem:[#allocation2 + $0x40] sm:$0xff] (!%p1252_p10), %v1638_v32  ;;  %358 = vst [vmem:[#allocation2 + $0x48] sm:$0xff] (!%p1252_p10), %v1638_v32 }
  0x37   : > { %359 = vst [vmem:[#allocation2 + $0x50] sm:$0xff] %v1638_v32  ;;  %360 = vst [vmem:[#allocation2 + $0x58] sm:$0xff] %v1638_v32 }
  0x38   : > { %361 = vst [vmem:[#allocation2 + $0x60] sm:$0xff] %v1638_v32  ;;  %362 = vst [vmem:[#allocation2 + $0x68] sm:$0xff] %v1638_v32 }
  0x39   : > { %363 = vst [vmem:[#allocation2 + $0x70] sm:$0xff] %v1638_v32  ;;  %364 = vst [vmem:[#allocation2 + $0x78] sm:$0xff] %v1638_v32 }
  0x3a PF: > { %v1542_v33 = vld [vmem:[%s1777_s7 + $0x40] sm:$0xff]   ;;  %v1545_v36 = vld [vmem:[%s1777_s7 + $0x48] sm:$0xff]   ;;  %v1548_v39 = vld [vmem:[%s1777_s7 + $0x50] sm:$0xff]   ;;  %p1301_p11 = scmp.ne.s32.totalorder %s1628_s14, 2 }
  0x3b   : > { %v1543_v34 = vld [vmem:[%s1777_s7] sm:$0xff]   ;;  %1387 = vmatprep.subr.bf16.mxu0 %v1542_v33  ;;  %v1546_v37 = vld [vmem:[%s1777_s7 + $0x8] sm:$0xff]   ;;  %v1549_v40 = vld [vmem:[%s1777_s7 + $0x10] sm:$0xff]  }
  0x3c   : > { %v1544_v35 = vld [vmem:[%s1777_s7 + $0x80] sm:$0xff]   ;;  %1388 = vmatpush3.bf16.msra.mxu0 %v1543_v34  ;;  %v1547_v38 = vld [vmem:[%s1777_s7 + $0x88] sm:$0xff]   ;;  %v1550_v41 = vld [vmem:[%s1777_s7 + $0x90] sm:$0xff]  }
  0x3d   : > { %1467 = vmatprep.subr.bf16.mxu1 %v1544_v35  ;;  %1389 = vmatprep.subr.bf16.mxu0 %v1545_v36  ;;  %v1551_v42 = vld [vmem:[%s1777_s7 + $0x58] sm:$0xff]   ;;  %v1554_v45 = vld [vmem:[%s1777_s7 + $0x60] sm:$0xff]   ;;  %v1557_v48 = vld [vmem:[%s1777_s7 + $0x68] sm:$0xff]  }
  0x3e   : > { %1468 = vmatpush3.bf16.msra.mxu1 %v1544_v35  ;;  %v1552_v43 = vld [vmem:[%s1777_s7 + $0x18] sm:$0xff]   ;;  %v1556_v46 = vld [vmem:[%s1777_s7 + $0xa0] sm:$0xff]   ;;  %v1559_v49 = vld [vmem:[%s1777_s7 + $0xa8] sm:$0xff]  }
  0x3f   : > { %1469 = vmatprep.subr.bf16.mxu1 %v1547_v38  ;;  %v1553_v44 = vld [vmem:[%s1777_s7 + $0x98] sm:$0xff]   ;;  %v1555_v47 = vld [vmem:[%s1777_s7 + $0x20] sm:$0xff]   ;;  %v1558_v50 = vld [vmem:[%s1777_s7 + $0x28] sm:$0xff]  }
  0x40   : > { %1390 = vmatpush3.bf16.msra.mxu0 %v1546_v37  ;;  %v1560_v51 = vld [vmem:[%s1777_s7 + $0x70] sm:$0xff]   ;;  %v1563_v54 = vld [vmem:[%s1777_s7 + $0x78] sm:$0xff]   ;;  %v1566_v59 = vld [vmem:[%s1779_s8] ss:$12 sps:$4 sm:$0xff]  }
  0x41   : > { %1391 = vmatprep.subr.bf16.mxu0 %v1548_v39  ;;  %v1561_v52 = vld [vmem:[%s1777_s7 + $0x30] sm:$0xff]   ;;  %v1565_v55 = vld [vmem:[%s1777_s7 + $0xb8] sm:$0xff]   ;;  %v1570_v61 = vld [vmem:[%s1779_s8 + $0x20] ss:$12 sps:$4 sm:$0xff]  }
  0x42   : > { %1470 = vmatpush3.bf16.msra.mxu1 %v1547_v38  ;;  %v1562_v53 = vld [vmem:[%s1777_s7 + $0xb0] sm:$0xff]   ;;  %v1564_v58 = vld [vmem:[%s1777_s7 + $0x38] sm:$0xff]   ;;  %v1586_v5 = vld [vmem:[%s1779_s8 + $0x80] ss:$12 sps:$4 sm:$0xff]  }
  0x43   : > { %1471 = vmatprep.subr.bf16.mxu1 %v1550_v41  ;;  %v1568_v56 = vld [vmem:[%s1779_s8 + $0x4] ss:$12 sps:$4 sm:$0xff]   ;;  %v1569_v57 = vld [vmem:[%s1779_s8 + $0x8] ss:$12 sps:$4 sm:$0xff]   ;;  %v1579_v4 = vld [vmem:[%s1779_s8 + $0x4c] ss:$12 sps:$4 sm:$0xff]  }
  0x44   : > { %1392 = vmatpush3.bf16.msra.mxu0 %v1549_v40  ;;  %765 = vmatprep.mubr.bf16.mxu0 %v1568_v56  ;;  %v1571_v60 = vld [vmem:[%s1779_s8 + $0x1c] ss:$12 sps:$4 sm:$0xff]   ;;  %v1577_v62 = vld [vmem:[%s1779_s8 + $0x38] ss:$12 sps:$4 sm:$0xff]   ;;  %v1574_v0 = vld [vmem:[%s1779_s8 + $0x34] ss:$12 sps:$4 sm:$0xff]  }
  0x45   : > { %1393 = vmatprep.subr.bf16.mxu0 %v1551_v42  ;;  %1483 = vmatprep.mubr.bf16.mxu1 %v1569_v57  ;;  %v1573_v63 = vld [vmem:[%s1779_s8 + $0x18] ss:$12 sps:$4 sm:$0xff]   ;;  %v1578_v1 = vld [vmem:[%s1779_s8 + $0x50] ss:$12 sps:$4 sm:$0xff]   ;;  %v1585_v2 = vld [vmem:[%s1779_s8 + $0x68] ss:$12 sps:$4 sm:$0xff]  }
  0x46   : > { %1472 = vmatpush3.bf16.msra.mxu1 %v1550_v41  ;;  %v1576_v3 = vld [vmem:[%s1779_s8 + $0x30] ss:$12 sps:$4 sm:$0xff]   ;;  %v1593_v6 = vld [vmem:[%s1779_s8 + $0x98] ss:$12 sps:$4 sm:$0xff]   ;;  %v1581_v7 = vld [vmem:[%s1779_s8 + $0x48] ss:$12 sps:$4 sm:$0xff]  }
  0x47   : > { %1473 = vmatprep.subr.bf16.mxu1 %v1553_v44  ;;  %v1582_v8 = vld [vmem:[%s1779_s8 + $0x64] ss:$12 sps:$4 sm:$0xff]   ;;  %v1584_v10 = vld [vmem:[%s1779_s8 + $0x60] ss:$12 sps:$4 sm:$0xff]   ;;  %v1587_v11 = vld [vmem:[%s1779_s8 + $0x7c] ss:$12 sps:$4 sm:$0xff]  }
  0x48   : > { %1394 = vmatpush3.bf16.msra.mxu0 %v1552_v43  ;;  %v1594_v9 = vld [vmem:[%s1779_s8 + $0xb0] ss:$12 sps:$4 sm:$0xff]   ;;  %v1589_v12 = vld [vmem:[%s1779_s8 + $0x78] ss:$12 sps:$4 sm:$0xff]   ;;  %v1590_v13 = vld [vmem:[%s1779_s8 + $0x94] ss:$12 sps:$4 sm:$0xff]  }
  0x49   : > { %1395 = vmatprep.subr.bf16.mxu0 %v1554_v45  ;;  %v1592_v14 = vld [vmem:[%s1779_s8 + $0x90] ss:$12 sps:$4 sm:$0xff]   ;;  %v1595_v15 = vld [vmem:[%s1779_s8 + $0xac] ss:$12 sps:$4 sm:$0xff]   ;;  %v1597_v16 = vld [vmem:[%s1779_s8 + $0xa8] ss:$12 sps:$4 sm:$0xff]  }
  0x4a   : > { %1474 = vmatpush3.bf16.msra.mxu1 %v1553_v44  ;;  %v365_v23 = vld [vmem:[#allocation2] sm:$0xff]  ;;  %v366_v28 = vld [vmem:[#allocation2 + $0x8] sm:$0xff]  ;;  %v367_v38 = vld [vmem:[#allocation2 + $0x10] sm:$0xff] }
  0x4b   : > { %1475 = vmatprep.subr.bf16.mxu1 %v1556_v46  ;;  %v368_v44 = vld [vmem:[#allocation2 + $0x18] sm:$0xff] }
  0x4c   : > { %1396 = vmatpush3.bf16.msra.mxu0 %v1555_v47 }
  0x4d   : > { %1397 = vmatprep.subr.bf16.mxu0 %v1557_v48 }
  0x4e   : > { %1476 = vmatpush3.bf16.msra.mxu1 %v1556_v46 }
  0x4f   : > { %1477 = vmatprep.subr.bf16.mxu1 %v1559_v49 }
  0x50   : > { %1398 = vmatpush3.bf16.msra.mxu0 %v1558_v50 }
  0x51   : > { %1399 = vmatprep.subr.bf16.mxu0 %v1560_v51 }
  0x52   : > { %1478 = vmatpush3.bf16.msra.mxu1 %v1559_v49 }
  0x53   : > { %1479 = vmatprep.subr.bf16.mxu1 %v1562_v53 }
  0x54   : > { %1400 = vmatpush3.bf16.msra.mxu0 %v1561_v52 }
  0x55   : > { %1401 = vmatprep.subr.bf16.mxu0 %v1563_v54 }
  0x56   : > { %1480 = vmatpush3.bf16.msra.mxu1 %v1562_v53 }
  0x57   : > { %1481 = vmatprep.subr.bf16.mxu1 %v1565_v55 }
  0x58   : > { %1402 = vmatpush3.bf16.msra.mxu0 %v1564_v58 }
  0x5a   : > { %1482 = vmatpush3.bf16.msra.mxu1 %v1565_v55  ;;  %v369_v55 = vld [vmem:[#allocation2 + $0x20] sm:$0xff] }
  0x5b   : > { %766 = vmatmul.mubr.bf16.vlgmr.msra.gmra.mrb[0].mxu0 %v1566_v59 }
  0x5c   : > { %773 = vmatprep.mubr.bf16.mxu0 %v1571_v60  ;;  %v370_v60 = vld [vmem:[#allocation2 + $0x28] sm:$0xff] }
  0x5d   : > { %1484 = vmatmul.mubr.bf16.vlgmr.msra.gmra.mrb[0].mxu1 %v1570_v61 }
  0x5e   : > { %1487 = vmatprep.mubr.bf16.mxu1 %v1577_v62 }
  0x63   : > { %774 = vmatmul.mubr.bf16.gmra.mrb[4].mxu0 %v1573_v63 }
  0x64   : > { %781 = vmatprep.mubr.bf16.mxu0 %v1574_v0 }
  0x65   : > { %1488 = vmatmul.mubr.bf16.gmra.mrb[4].mxu1 %v1578_v1 }
  0x66   : > { %1491 = vmatprep.mubr.bf16.mxu1 %v1585_v2 }
  0x6b   : > { %782 = vmatmul.mubr.bf16.gmra.mrb[8].mxu0 %v1576_v3 }
  0x6c   : > { %789 = vmatprep.mubr.bf16.mxu0 %v1579_v4 }
  0x6d   : > { %1492 = vmatmul.mubr.bf16.gmra.mrb[8].mxu1 %v1586_v5 }
  0x6e   : > { %1495 = vmatprep.mubr.bf16.mxu1 %v1593_v6  ;;  %v371_v6 = vld [vmem:[#allocation2 + $0x30] sm:$0xff] }
  0x73   : > { %790 = vmatmul.mubr.bf16.gmra.mrb[12].mxu0 %v1581_v7 }
  0x74   : > { %797 = vmatprep.mubr.bf16.mxu0 %v1582_v8 }
  0x75   : > { %1496 = vmatmul.mubr.bf16.gmra.mrb[12].mxu1 %v1594_v9 }
  0x7b   : > { %798 = vmatmul.mubr.bf16.gmra.mrb[16].mxu0 %v1584_v10 }
  0x7c   : > { %805 = vmatprep.mubr.bf16.mxu0 %v1587_v11 }
  0x83   : > { %806 = vmatmul.mubr.bf16.gmra.mrb[20].mxu0 %v1589_v12  ;;  %v372_v12 = vld [vmem:[#allocation2 + $0x38] sm:$0xff] }
  0x84   : > { %813 = vmatprep.mubr.bf16.mxu0 %v1590_v13 }
  0x8b   : > { %814 = vmatmul.mubr.bf16.gmra.mrb[24].mxu0 %v1592_v14 }
  0x8c   : > { %821 = vmatprep.mubr.bf16.mxu0 %v1595_v15 }
  0x93   : > { %822 = vmatmul.mubr.bf16.gmra.mrb[28].mxu0 %v1597_v16 }
 0x12e   : > { %v1403_v17 = vpop.f32.mrb[0].mxu0 }
 0x12f   : > { %v1404_v18 = vpop.f32.mrb[1].mxu0 }
 0x130   : > { %v1405_v19 = vadd.f32 %v1404_v18, %v1403_v17  ;;  %v1406_v20 = vpop.f32.mrb[2].mxu0  ;;  %v1485_v21 = vpop.f32.mrb[0].mxu1 }
 0x131   : > { %v1407_v22 = vpop.f32.mrb[3].mxu0  ;;  %v864_v24 = vpop.f32.mrb[1].mxu1 }
 0x132   : > { %v1408_v25 = vadd.f32 %v1407_v22, %v1406_v20  ;;  %v865_v26 = vadd.f32 %v1405_v19, %v864_v24  ;;  %v1486_v27 = vpop.f32.mrb[2].mxu1  ;;  %v373_v22 = vld [vmem:[#allocation2 + $0x40] sm:$0xff] }
 0x133   : > { %v867_v29 = vpop.f32.mrb[3].mxu1 }
 0x134   : > { %v927_v30 = vadd.f32 %v865_v26, %v365_v23  ;;  %v868_v31 = vadd.f32 %v1408_v25, %v867_v29  ;;  %v374_v25 = vld [vmem:[#allocation2 + $0x48] sm:$0xff] }
 0x136   : > { %943 = vst [vmem:[#allocation2] sm:$0xff] %v927_v30  ;;  %v928_v32 = vadd.f32 %v868_v31, %v366_v28  ;;  %v1409_v33 = vpop.f32.mrb[4].mxu0 }
 0x137   : > { %v1410_v34 = vpop.f32.mrb[5].mxu0 }
 0x138   : > { %944 = vst [vmem:[#allocation2 + $0x8] sm:$0xff] %v928_v32  ;;  %v1411_v35 = vadd.f32 %v1410_v34, %v1409_v33  ;;  %v1412_v36 = vpop.f32.mrb[6].mxu0  ;;  %v1489_v37 = vpop.f32.mrb[4].mxu1  ;;  %v375_v33 = vld [vmem:[#allocation2 + $0x50] sm:$0xff] }
 0x139   : > { %v1413_v39 = vpop.f32.mrb[7].mxu0  ;;  %v880_v40 = vpop.f32.mrb[5].mxu1 }
 0x13a   : > { %v873_v41 = vadd.f32 %v1485_v21, %v1411_v35  ;;  %v1414_v42 = vadd.f32 %v1413_v39, %v1412_v36  ;;  %v1490_v43 = vpop.f32.mrb[6].mxu1 }
 0x13b   : > { %v883_v45 = vpop.f32.mrb[7].mxu1 }
 0x13c   : > { %v929_v46 = vadd.f32 %v873_v41, %v367_v38  ;;  %v876_v47 = vadd.f32 %v1486_v27, %v1414_v42 }
 0x13e   : > { %945 = vst [vmem:[#allocation2 + $0x10] sm:$0xff] %v929_v46  ;;  %v930_v48 = vadd.f32 %v876_v47, %v368_v44  ;;  %v1415_v49 = vpop.f32.mrb[8].mxu0  ;;  %v377_v46 = vld [vmem:[#allocation2 + $0x60] sm:$0xff] }
 0x13f   : > { %v1416_v50 = vpop.f32.mrb[9].mxu0 }
 0x140   : > { %946 = vst [vmem:[#allocation2 + $0x18] sm:$0xff] %v930_v48  ;;  %v1417_v51 = vadd.f32 %v1416_v50, %v1415_v49  ;;  %v1418_v52 = vpop.f32.mrb[10].mxu0  ;;  %v1493_v53 = vpop.f32.mrb[8].mxu1  ;;  %v378_v49 = vld [vmem:[#allocation2 + $0x68] sm:$0xff] }
 0x141   : > { %v1419_v54 = vpop.f32.mrb[11].mxu0  ;;  %v896_v56 = vpop.f32.mrb[9].mxu1 }
 0x142   : > { %v1420_v57 = vadd.f32 %v1419_v54, %v1418_v52  ;;  %v881_v58 = vadd.f32 %v1417_v51, %v880_v40  ;;  %v1494_v59 = vpop.f32.mrb[10].mxu1 }
 0x143   : > { %v899_v61 = vpop.f32.mrb[11].mxu1 }
 0x144   : > { %v931_v62 = vadd.f32 %v881_v58, %v369_v55  ;;  %v884_v63 = vadd.f32 %v1420_v57, %v883_v45  ;;  %v379_v57 = vld [vmem:[#allocation2 + $0x70] sm:$0xff] }
 0x146   : > { %947 = vst [vmem:[#allocation2 + $0x20] sm:$0xff] %v931_v62  ;;  %v932_v0 = vadd.f32 %v884_v63, %v370_v60  ;;  %v1421_v1 = vpop.f32.mrb[12].mxu0 }
 0x147   : > { %v1422_v2 = vpop.f32.mrb[13].mxu0 }
 0x148   : > { %948 = vst [vmem:[#allocation2 + $0x28] sm:$0xff] %v932_v0  ;;  %v1423_v3 = vadd.f32 %v1422_v2, %v1421_v1  ;;  %v1424_v4 = vpop.f32.mrb[14].mxu0  ;;  %v1497_v5 = vpop.f32.mrb[12].mxu1  ;;  %v963_v1 = vld [vmem:[#allocation2] sm:$0xff] (!%p1301_p11)  ;;  %v964_v2 = vld [vmem:[#allocation2 + $0x8] sm:$0xff] (!%p1301_p11) }
 0x149   : > { %v1425_v7 = vpop.f32.mrb[15].mxu0  ;;  %v912_v8 = vpop.f32.mrb[13].mxu1 }
 0x14a   : > { %v889_v9 = vadd.f32 %v1489_v37, %v1423_v3  ;;  %v1426_v10 = vadd.f32 %v1425_v7, %v1424_v4  ;;  %v1498_v11 = vpop.f32.mrb[14].mxu1  ;;  %v376_v37 = vld [vmem:[#allocation2 + $0x58] sm:$0xff]  ;;  %v1302_v3 = vld [vmem:[%s1875_s2] ss:$0 sm:$0xff] (!%p1301_p11)  ;;  %v965_v7 = vld [vmem:[#allocation2 + $0x10] sm:$0xff] (!%p1301_p11) }
 0x14b   : > { %v915_v13 = vpop.f32.mrb[15].mxu1  ;;  %v986_v4 = vadd.f32 (!%p1301_p11), %v1302_v3, %v963_v1 }
 0x14c   : > { %v933_v14 = vadd.f32 %v889_v9, %v371_v6  ;;  %v892_v15 = vadd.f32 %v1490_v43, %v1426_v10  ;;  %v987_v6 = vadd.f32 (!%p1301_p11), %v1302_v3, %v964_v2  ;;  %v988_v9 = vadd.f32 (!%p1301_p11), %v1302_v3, %v965_v7 }
 0x14e   : > { %949 = vst [vmem:[#allocation2 + $0x30] sm:$0xff] %v933_v14  ;;  %v934_v16 = vadd.f32 %v892_v15, %v372_v12  ;;  %v1427_v17 = vpop.f32.mrb[16].mxu0  ;;  %v1002_v15 = vmax.f32 (!%p1301_p11), %v986_v4, 0.0 }
 0x14f   : > { %v1428_v18 = vpop.f32.mrb[17].mxu0 }
 0x150   : > { %950 = vst [vmem:[#allocation2 + $0x38] sm:$0xff] %v934_v16  ;;  %v1429_v19 = vadd.f32 %v1428_v18, %v1427_v17  ;;  %v1430_v20 = vpop.f32.mrb[18].mxu0  ;;  %v1003_v16 = vmax.f32 (!%p1301_p11), %v987_v6, 0.0 }
 0x151   : > { %v1431_v21 = vpop.f32.mrb[19].mxu0 }
 0x152   : > { %v1432_v23 = vadd.f32 %v1431_v21, %v1430_v20  ;;  %v897_v24 = vadd.f32 %v1429_v19, %v896_v56 }
 0x154   : > { %v935_v26 = vadd.f32 %v897_v24, %v373_v22  ;;  %v900_v27 = vadd.f32 %v1432_v23, %v899_v61  ;;  %v380_v61 = vld [vmem:[#allocation2 + $0x78] sm:$0xff]  ;;  %v1004_v22 = vmax.f32 (!%p1301_p11), %v988_v9, 0.0 }
 0x156   : > { %951 = vst [vmem:[#allocation2 + $0x40] sm:$0xff] %v935_v26  ;;  %v936_v28 = vadd.f32 %v900_v27, %v374_v25  ;;  %v1433_v29 = vpop.f32.mrb[20].mxu0 }
 0x157   : > { %v1434_v30 = vpop.f32.mrb[21].mxu0  ;;  %v970_v14 = vld [vmem:[#allocation2 + $0x38] sm:$0xff] (!%p1301_p11) }
 0x158   : > { %952 = vst [vmem:[#allocation2 + $0x48] sm:$0xff] %v936_v28  ;;  %v1435_v31 = vadd.f32 %v1434_v30, %v1433_v29  ;;  %v1436_v32 = vpop.f32.mrb[22].mxu0  ;;  %v993_v25 = vadd.f32 (!%p1301_p11), %v1302_v3, %v970_v14  ;;  %v1343_v28 = vpack.c.bf16 (!%p1301_p11), %v1003_v16, %v1002_v15 }
 0x159   : > { %v1437_v34 = vpop.f32.mrb[23].mxu0 }
 0x15a   : > { %v905_v35 = vadd.f32 %v1493_v53, %v1435_v31  ;;  %v1438_v36 = vadd.f32 %v1437_v34, %v1436_v32  ;;  %v1009_v34 = vmax.f32 (!%p1301_p11), %v993_v25, 0.0  ;;  %1344 = vst [vmem:[%s1876_s3] sm:$0xff] (!%p1301_p11), %v1343_v28  }
 0x15c   : > { %v937_v38 = vadd.f32 %v905_v35, %v375_v33  ;;  %v908_v39 = vadd.f32 %v1494_v59, %v1438_v36 }
 0x15d   : > { %v971_v19 = vld [vmem:[#allocation2 + $0x40] sm:$0xff] (!%p1301_p11) }
 0x15e   : > { %953 = vst [vmem:[#allocation2 + $0x50] sm:$0xff] %v937_v38  ;;  %v938_v40 = vadd.f32 %v908_v39, %v376_v37  ;;  %v1439_v41 = vpop.f32.mrb[24].mxu0  ;;  %v994_v31 = vadd.f32 (!%p1301_p11), %v1302_v3, %v971_v19 }
 0x15f   : > { %v1440_v42 = vpop.f32.mrb[25].mxu0  ;;  %v972_v20 = vld [vmem:[#allocation2 + $0x48] sm:$0xff] (!%p1301_p11) }
 0x160   : > { %954 = vst [vmem:[#allocation2 + $0x58] sm:$0xff] %v938_v40  ;;  %v1441_v43 = vadd.f32 %v1440_v42, %v1439_v41  ;;  %v1442_v44 = vpop.f32.mrb[26].mxu0  ;;  %v995_v35 = vadd.f32 (!%p1301_p11), %v1302_v3, %v972_v20  ;;  %v1010_v40 = vmax.f32 (!%p1301_p11), %v994_v31, 0.0 }
 0x161   : > { %v1443_v45 = vpop.f32.mrb[27].mxu0 }
 0x162   : > { %v1444_v47 = vadd.f32 %v1443_v45, %v1442_v44  ;;  %v913_v48 = vadd.f32 %v1441_v43, %v912_v8  ;;  %v967_v8 = vld [vmem:[#allocation2 + $0x20] sm:$0xff] (!%p1301_p11)  ;;  %v1011_v44 = vmax.f32 (!%p1301_p11), %v995_v35, 0.0 }
 0x163   : > { %v990_v12 = vadd.f32 (!%p1301_p11), %v1302_v3, %v967_v8 }
 0x164   : > { %v939_v50 = vadd.f32 %v913_v48, %v377_v46  ;;  %v916_v51 = vadd.f32 %v1444_v47, %v915_v13  ;;  %v969_v13 = vld [vmem:[#allocation2 + $0x30] sm:$0xff] (!%p1301_p11) }
 0x165   : > { %v992_v18 = vadd.f32 (!%p1301_p11), %v1302_v3, %v969_v13  ;;  %v973_v21 = vld [vmem:[#allocation2 + $0x50] sm:$0xff] (!%p1301_p11)  ;;  %v1006_v24 = vmax.f32 (!%p1301_p11), %v990_v12, 0.0 }
 0x166   : > { %955 = vst [vmem:[#allocation2 + $0x60] sm:$0xff] %v939_v50  ;;  %v940_v52 = vadd.f32 %v916_v51, %v378_v49  ;;  %v1445_v53 = vpop.f32.mrb[28].mxu0  ;;  %v996_v36 = vadd.f32 (!%p1301_p11), %v1302_v3, %v973_v21  ;;  %v1363_v51 = vpack.c.bf16 (!%p1301_p11), %v1011_v44, %v1010_v40 }
 0x167   : > { %v1446_v54 = vpop.f32.mrb[29].mxu0  ;;  %v974_v26 = vld [vmem:[#allocation2 + $0x58] sm:$0xff] (!%p1301_p11)  ;;  %v1008_v30 = vmax.f32 (!%p1301_p11), %v992_v18, 0.0 }
 0x168   : > { %956 = vst [vmem:[#allocation2 + $0x68] sm:$0xff] %v940_v52  ;;  %v1447_v55 = vadd.f32 %v1446_v54, %v1445_v53  ;;  %v1448_v56 = vpop.f32.mrb[30].mxu0  ;;  %v997_v41 = vadd.f32 (!%p1301_p11), %v1302_v3, %v974_v26  ;;  %v1012_v45 = vmax.f32 (!%p1301_p11), %v996_v36, 0.0  ;;  %1383 = vst [vmem:[%s1876_s3 + $0x20] sm:$0xff] (!%p1301_p11), %v1363_v51  }
 0x169   : > { %v1449_v58 = vpop.f32.mrb[31].mxu0  ;;  %v1358_v43 = vpack.c.bf16 (!%p1301_p11), %v1009_v34, %v1008_v30 }
 0x16a   : > { %v921_v59 = vadd.f32 %v1497_v5, %v1447_v55  ;;  %v1450_v60 = vadd.f32 %v1449_v58, %v1448_v56  ;;  %962 = sbr.rel (%p1301_p11) target bundleno = 383 (0x17f), region = 66  ;;  %v966_v5 = vld [vmem:[#allocation2 + $0x18] sm:$0xff] (!%p1301_p11)  ;;  %v1013_v47 = vmax.f32 (!%p1301_p11), %v997_v41, 0.0 }
 0x16b   : > { %v989_v10 = vadd.f32 (!%p1301_p11), %v1302_v3, %v966_v5  ;;  %1382 = vst [vmem:[%s1876_s3 + $0x18] sm:$0xff] (!%p1301_p11), %v1358_v43  }
 0x16c   : > { %v941_v62 = vadd.f32 %v921_v59, %v379_v57  ;;  %v924_v63 = vadd.f32 %v1498_v11, %v1450_v60  ;;  %v968_v11 = vld [vmem:[#allocation2 + $0x28] sm:$0xff] (!%p1301_p11)  ;;  %v1368_v53 = vpack.c.bf16 (!%p1301_p11), %v1013_v47, %v1012_v45 }
 0x16d   : > { %v991_v17 = vadd.f32 (!%p1301_p11), %v1302_v3, %v968_v11  ;;  %v1005_v23 = vmax.f32 (!%p1301_p11), %v989_v10, 0.0  ;;  %v975_v27 = vld [vmem:[#allocation2 + $0x60] sm:$0xff] (!%p1301_p11) }
 0x16e   : > { %957 = vst [vmem:[#allocation2 + $0x70] sm:$0xff] %v941_v62  ;;  %v942_v0 = vadd.f32 %v924_v63, %v380_v61  ;;  %v998_v42 = vadd.f32 (!%p1301_p11), %v1302_v3, %v975_v27  ;;  %1384 = vst [vmem:[%s1876_s3 + $0x28] sm:$0xff] (!%p1301_p11), %v1368_v53  }
 0x16f   : > { %v1007_v29 = vmax.f32 (!%p1301_p11), %v991_v17, 0.0  ;;  %v976_v32 = vld [vmem:[#allocation2 + $0x68] sm:$0xff] (!%p1301_p11)  ;;  %v1348_v33 = vpack.c.bf16 (!%p1301_p11), %v1005_v23, %v1004_v22 }
 0x170   : > { %958 = vst [vmem:[#allocation2 + $0x78] sm:$0xff] %v942_v0  ;;  %v999_v46 = vadd.f32 (!%p1301_p11), %v1302_v3, %v976_v32  ;;  %v1014_v48 = vmax.f32 (!%p1301_p11), %v998_v42, 0.0 }
 0x171   : > { %v1353_v39 = vpack.c.bf16 %v1007_v29, %v1006_v24  ;;  %1380 = vst [vmem:[%s1876_s3 + $0x8] sm:$0xff] %v1348_v33  }
 0x172   : > { %v1015_v52 = vmax.f32 %v999_v46, 0.0 }
 0x173   : > { %1381 = vst [vmem:[%s1876_s3 + $0x10] sm:$0xff] %v1353_v39  }
 0x174   : > { %v1373_v56 = vpack.c.bf16 %v1015_v52, %v1014_v48 }
 0x175   : > { %v977_v37 = vld [vmem:[#allocation2 + $0x70] sm:$0xff] }
 0x176   : > { %v1000_v49 = vadd.f32 %v1302_v3, %v977_v37  ;;  %1385 = vst [vmem:[%s1876_s3 + $0x30] sm:$0xff] %v1373_v56  }
 0x177   : > { %v978_v38 = vld [vmem:[#allocation2 + $0x78] sm:$0xff] }
 0x178   : > { %v1001_v50 = vadd.f32 %v1302_v3, %v978_v38  ;;  %v1016_v54 = vmax.f32 %v1000_v49, 0.0 }
 0x17a   : > { %v1017_v55 = vmax.f32 %v1001_v50, 0.0 }
 0x17c   : > { %v1378_v57 = vpack.c.bf16 %v1017_v55, %v1016_v54 }
 0x17e   : > { %1386 = vst [vmem:[%s1876_s3 + $0x38] sm:$0xff] %v1378_v57  }
 0x17f PF: > { %s13_s16 = sadd.s32 1, %s1636_s16   ;;  %s1877_s12 = smov %s1624_s13 }
 0x180   : > { %p10_p12 = scmp.ge.s32.totalorder %s13_s16, 5   ;;  %s1878_s13 = smov %s1694_s20 }
 0x181   : > { %s1879_s14 = smov %s1632_s15  ;;  %s1880_s15 = smov %s1882_s17 }
 0x182   :  { %12 = sbr.rel (!%p10_p12) target bundleno = 3 (0x3), region = 113 }

// kernel: model_forward.22
= control target key start
LH: loop header
LB: loop body
LE: loop exit
PB: predicated region body
PF: predicated region fallthrough
CT: control target
= control target key end

     0   :  { %s343_s6 = smov 0   ;;  %s345_s7 = smov 0   ;;  %s389_s0 = inlined_call_operand.vmem [shape: bf16[2,16,256], index: 0, kind: input, shape index: {}]   ;;  %s390_s1 = inlined_call_operand.vmem [shape: f32[2,1,256], index: 1, kind: output, shape index: {}]  }
   0x1   :  { %s347_s8 = smov 0  }
   0x2 LB: > { %s23_s9 = sadd.s32 1, %s325_s7  ;;  %p274_p0 = scmp.ge.s32.totalorder %s329_s8, 1  ;;  %s329_s8 = sphi %s347_s8, %s11_s8   ;;  %s325_s7 = sphi %s345_s7, %s394_s7   ;;  %s321_s6 = sphi %s343_s6, %s393_s6  }
   0x3   : > { %p25_p1 = scmp.ge.s32.totalorder %s23_s9, 2  ;;  %p107_p2 = scmp.lt.s32.totalorder %s329_s8, 3 }
   0x5   : > { %s396_s9 = smov (%p25_p1, %s23_s9), 0  ;;  %p108_p3 = pnand %p274_p0, %p107_p2 }
   0x6   : > { %p132_p4 = scmp.lt.s32.totalorder (!%p108_p3), %s321_s6, 1  ;;  %v150_v0 = vlaneseq (!%p108_p3)  ;;  %v331_v2 = vmov (!%p108_p3), 0.0   ;;  %v332_v15 = vmov (!%p108_p3), 1966171168  }
   0x7   : > { %111 = sbr.rel (%p108_p3) target bundleno = 43 (0x2b), region = 24  ;;  %v180_v16 = vunpack.c.l.s4 (!%p108_p3), %v332_v15 }
   0x8   : > { %vm361_vm0 = vcmp.lt.s32.totalorder (!%p108_p3), %v150_v0, 256  ;;  %v183_v22 = vshrl.u32 (!%p108_p3), %v150_v0, 7 }
   0x9   : > { %v181_v21 = vunpack.c.0.s8 (!%p108_p3), %v180_v16 }
   0xb   : > { %v184_v27 = vsub.s32 (!%p108_p3), %v181_v21, %v183_v22 }
   0xe   : > { %s398_s6 = smov (!%p132_p4, %s321_s6), 1 }
   0xf   : > { %s280_s10 = sshll.u32 %s398_s6, 4  ;;  %s277_s11 = sshll.u32 %s398_s6, 1 }
  0x10   : > { %s140_s14 = scalar_lea.vmem %s389_s0, %s280_s10  ;;  %s371_s17 = scalar_lea.vmem %s390_s1, %s277_s11 }
  0x11   : > { %154 = vst.msk [vmem:[%s371_s17] sm:$0x3] %vm361_vm0, %v331_v2  ;;  %v156_v3 = vld [vmem:[%s140_s14] sm:$0xff]  ;;  %v157_v4 = vld [vmem:[%s140_s14 + $0x8] sm:$0xff] }
  0x12   : > { %v158_v5 = vunpack.c.l.bf16 %v156_v3  ;;  %v159_v6 = vunpack.c.h.bf16 %v156_v3  ;;  %v160_v7 = vunpack.c.l.bf16 %v157_v4  ;;  %v161_v8 = vunpack.c.h.bf16 %v157_v4 }
  0x14   : > { %v162_v9 = vadd.f32 %v160_v7, %v158_v5  ;;  %v169_v10 = vadd.f32 %v161_v8, %v159_v6 }
  0x16   : > { %v163_v11 = vrot.slane %v162_v9, 4  ;;  %v170_v12 = vrot.slane %v169_v10, 4 }
  0x18   : > { %v164_v13 = vadd.f32 %v163_v11, %v162_v9  ;;  %v171_v14 = vadd.f32 %v170_v12, %v169_v10  ;;  %v155_v30 = vld [vmem:[%s371_s17] sm:$0x3] }
  0x1a   : > { %v165_v17 = vrot.slane %v164_v13, 2  ;;  %v172_v18 = vrot.slane %v171_v14, 2 }
  0x1c   : > { %v166_v19 = vadd.f32 %v165_v17, %v164_v13  ;;  %v173_v20 = vadd.f32 %v172_v18, %v171_v14 }
  0x1e   : > { %v167_v23 = vrot.slane %v166_v19, 1  ;;  %v174_v24 = vrot.slane %v173_v20, 1 }
  0x20   : > { %v168_v25 = vadd.f32 %v167_v23, %v166_v19  ;;  %v175_v26 = vadd.f32 %v174_v24, %v173_v20 }
  0x22   : > { %v178_v28 = vcombine.low %v168_v25, %v175_v26 }
  0x24   : > { %v185_v29 = vrot.slane %v178_v28, %v184_v27 }
  0x26   : > { %v192_v31 = vrot.slane %v185_v29, %v184_v27 }
  0x28   : > { %v194_v32 = vadd.f32 %v192_v31, %v155_v30 }
  0x2a   : > { %199 = vst.msk [vmem:[%s371_s17] sm:$0x3] %vm361_vm0, %v194_v32 }
  0x2b PF: > { %s11_s8 = sadd.s32 1, %s329_s8   ;;  %s393_s6 = smov %s325_s7 }
  0x2c   : > { %p8_p5 = scmp.ge.s32.totalorder %s11_s8, 4   ;;  %s394_s7 = smov %s396_s9 }
  0x2e   :  { %10 = sbr.rel (!%p8_p5) target bundleno = 2 (0x2), region = 58 }

// kernel: model_forward.21
= control target key start
LH: loop header
LB: loop body
LE: loop exit
PB: predicated region body
PF: predicated region fallthrough
CT: control target
= control target key end

     0   :  { %s1260_s12 = smov 0   ;;  %s1262_s13 = smov 0   ;;  %s1402_s0 = inlined_call_operand.vmem [shape: bf16[32,1152], index: 0, kind: input, shape index: {}]   ;;  %s1403_s1 = inlined_call_operand.vmem [shape: bf16[1152,256], index: 1, kind: input, shape index: {}]   ;;  %s1404_s2 = inlined_call_operand.vmem [shape: f32[1,256], index: 2, kind: input, shape index: {}]   ;;  %s1405_s3 = inlined_call_operand.vmem [shape: bf16[32,256], index: 3, kind: output, shape index: {}]  }
   0x1   :  { %s1264_s14 = smov 0   ;;  %s1266_s15 = smov 0  }
   0x2   :  { %s1268_s16 = smov 0  }
   0x3 LB: > { %s25_s17 = sadd.s32 1, %s1232_s15  ;;  %p48_p1 = scmp.ne.s32.totalorder %s1224_s13, %s1220_s12  ;;  %s1236_s16 = sphi %s1268_s16, %s13_s16   ;;  %s1232_s15 = sphi %s1266_s15, %s1409_s15   ;;  %s1228_s14 = sphi %s1264_s14, %s1408_s14   ;;  %s1224_s13 = sphi %s1262_s13, %s1407_s13   ;;  %s1220_s12 = sphi %s1260_s12, %s1406_s12  }
   0x4   : > { %p26_p0 = scmp.ge.s32.totalorder %s25_s17, 3  ;;  %p49_p2 = scmp.eq.s32.totalorder %s1236_s16, 0 }
   0x5   : > { %s41_s19 = sadd.s32 1, %s1224_s13  ;;  %p983_p5 = scmp.ge.s32.totalorder %s1236_s16, 3 }
   0x6   : > { %s1411_s17 = smov (%p26_p0, %s25_s17), 0  ;;  %p50_p3 = por %p49_p2, %p48_p1 }
   0x7   : > { %s37_s18 = ssub.s32 %s1232_s15, %s1411_s17  ;;  %164 = sbr.rel (%p983_p5) target bundleno = 23 (0x17), region = 20 }
   0x8   : > { %p39_p4 = scmp.eq.s32.totalorder %s37_s18, 0 }
   0xa   : > { %s1295_s20 = scalar_select %p39_p4, %s1224_s13, %s41_s19  }
   0xe   : > { %167 = sbr.rel (!%p50_p3) target bundleno = 23 (0x17), region = 24  ;;  %s169_s21 = sand.u32 (%p50_p3), 1, %s1224_s13  }
   0xf   : > { %s1060_s22 = smul.u32 (%p50_p3), 12, %s1232_s15 }
  0x10   : > { %s1074_s23 = smul.u32 (%p50_p3), 48, %s169_s21 }
  0x11   : > { %s177_s26 = scalar_lea.vmem (%p50_p3), %s1402_s0, %s1060_s22 }
  0x12   : > { %v192_v0 = vld [vmem:[%s177_s26] sm:$0xff] (%p50_p3)  ;;  %v196_v2 = vld [vmem:[%s177_s26 + $0x48] sm:$0xff] (%p50_p3)  ;;  %s171_s27 = scalar_lea.vmem (%p50_p3), [#allocation3], %s1074_s23  ;;  %v989_v6 = vld [vmem:[%s177_s26 + $0x50] sm:$0xf] (%p50_p3) }
  0x13   : > { %v194_v1 = vld [vmem:[%s177_s26 + $0x24] sm:$0xff] (%p50_p3)  ;;  %193 = vst [vmem:[%s171_s27] sm:$0xff] (%p50_p3), %v192_v0  ;;  %197 = vst [vmem:[%s171_s27 + $0x18] sm:$0xff] (%p50_p3), %v196_v2  ;;  %v198_v3 = vld [vmem:[%s177_s26 + $0x6c] sm:$0xff] (%p50_p3) }
  0x14   : > { %195 = vst [vmem:[%s171_s27 + $0xc] sm:$0xff] (%p50_p3), %v194_v1  ;;  %v985_v4 = vld [vmem:[%s177_s26 + $0x8] sm:$0xf] (%p50_p3)  ;;  %v987_v5 = vld [vmem:[%s177_s26 + $0x2c] sm:$0xf] (%p50_p3)  ;;  %199 = vst [vmem:[%s171_s27 + $0x24] sm:$0xff] (%p50_p3), %v198_v3 }
  0x15   : > { %986 = vst [vmem:[%s171_s27 + $0x8] sm:$0xf] %v985_v4  ;;  %988 = vst [vmem:[%s171_s27 + $0x14] sm:$0xf] %v987_v5  ;;  %v991_v7 = vld [vmem:[%s177_s26 + $0x74] sm:$0xf] }
  0x16   : > { %990 = vst [vmem:[%s171_s27 + $0x20] sm:$0xf] %v989_v6  ;;  %992 = vst [vmem:[%s171_s27 + $0x2c] sm:$0xf] %v991_v7 }
  0x17 PF: > { %p993_p6 = scmp.ge.s32.totalorder %s1236_s16, 1  ;;  %p234_p7 = scmp.lt.s32.totalorder %s1236_s16, 4 }
  0x19   : > { %p235_p8 = pnand %p993_p6, %p234_p7 }
  0x1a   : > { %s241_s28 = sand.u32 (!%p235_p8), 1, %s1220_s12   ;;  %s285_s29 = smul.u32 (!%p235_p8), 48, %s1228_s14 }
  0x1b   : > { %238 = sbr.rel (%p235_p8) target bundleno = 348 (0x15c), region = 54  ;;  %p996_p10 = scmp.ne.s32.totalorder (!%p235_p8), %s1228_s14, 0 }
  0x1c   : > { %s1075_s30 = smul.u32 (!%p235_p8), 48, %s241_s28  ;;  %p287_p9 = scmp.lt.s32.totalorder (!%p235_p8), %s285_s29, 143 }
  0x1e   : > { %s1312_s8 = scalar_lea.vmem (!%p235_p8), [#allocation3], %s1075_s30 }
  0x22   : > { %s1413_s29 = smov (!%p287_p9, %s285_s29), 143  ;;  %318 = sbr.rel (%p996_p10) target bundleno = 41 (0x29), region = 62 }
  0x23   : > { %s1061_s4 = sshll.u32 %s1413_s29, 3  ;;  %v1238_v8 = vmov (!%p996_p10), 0.0  }
  0x24   : > { %s1310_s7 = scalar_lea.vmem %s1403_s1, %s1061_s4  ;;  %319 = vst [vmem:[#allocation2] sm:$0xff] (!%p996_p10), %v1238_v8  ;;  %320 = vst [vmem:[#allocation2 + $0x8] sm:$0xff] (!%p996_p10), %v1238_v8 }
  0x25   : > { %321 = vst [vmem:[#allocation2 + $0x10] sm:$0xff] (!%p996_p10), %v1238_v8  ;;  %322 = vst [vmem:[#allocation2 + $0x18] sm:$0xff] (!%p996_p10), %v1238_v8 }
  0x26   : > { %323 = vst [vmem:[#allocation2 + $0x20] sm:$0xff] (!%p996_p10), %v1238_v8  ;;  %324 = vst [vmem:[#allocation2 + $0x28] sm:$0xff] (!%p996_p10), %v1238_v8 }
  0x27   : > { %325 = vst [vmem:[#allocation2 + $0x30] sm:$0xff] (!%p996_p10), %v1238_v8  ;;  %326 = vst [vmem:[#allocation2 + $0x38] sm:$0xff] (!%p996_p10), %v1238_v8 }
  0x29 PF: > { %v1118_v9 = vld [vmem:[%s1310_s7 + $0x4] ss:$8 sps:$4 sm:$0xff]   ;;  %v1120_v10 = vld [vmem:[%s1310_s7] ss:$8 sps:$4 sm:$0xff]   ;;  %v1239_v11 = vmov 0   ;;  %p1051_p11 = scmp.ne.s32.totalorder %s1228_s14, 2 }
  0x2a   : > { %748 = vmatprep.mubr.bf16.mxu0 %v1239_v11  ;;  %663 = vmatprep.subr.bf16.mxu1 %v1118_v9  ;;  %v1121_v12 = vld [vmem:[%s1310_s7 + $0x14] ss:$8 sps:$4 sm:$0xff]   ;;  %v1123_v13 = vld [vmem:[%s1310_s7 + $0x10] ss:$8 sps:$4 sm:$0xff]   ;;  %v1124_v14 = vld [vmem:[%s1310_s7 + $0x24] ss:$8 sps:$4 sm:$0xff]  }
  0x2b   : > { %664 = vmatpush1.bf16.msra.mxu1 %v1120_v10  ;;  %v1126_v15 = vld [vmem:[%s1310_s7 + $0x20] ss:$8 sps:$4 sm:$0xff]   ;;  %v1127_v16 = vld [vmem:[%s1310_s7 + $0x34] ss:$8 sps:$4 sm:$0xff]   ;;  %v1129_v17 = vld [vmem:[%s1310_s7 + $0x30] ss:$8 sps:$4 sm:$0xff]  }
  0x2c   : > { %665 = vmatprep.subr.bf16.mxu1 %v1121_v12  ;;  %v1142_v18 = vld [vmem:[%s1310_s7 + $0x104] ss:$8 sps:$4 sm:$0xff]   ;;  %v1144_v19 = vld [vmem:[%s1310_s7 + $0x100] ss:$8 sps:$4 sm:$0xff]   ;;  %v1148_v21 = vld [vmem:[%s1310_s7 + $0x114] ss:$8 sps:$4 sm:$0xff]  }
  0x2d   : > { %v1130_v20 = vld [vmem:[%s1310_s7 + $0x44] ss:$8 sps:$4 sm:$0xff]   ;;  %716 = vmatprep.subr.bf16.mxu0 %v1142_v18  ;;  %v1150_v22 = vld [vmem:[%s1310_s7 + $0x110] ss:$8 sps:$4 sm:$0xff]   ;;  %v1132_v23 = vld [vmem:[%s1310_s7 + $0x40] ss:$8 sps:$4 sm:$0xff]  }
  0x2e   : > { %717 = vmatpush1.bf16.msra.mxu0 %v1144_v19  ;;  %v1133_v24 = vld [vmem:[%s1310_s7 + $0x54] ss:$8 sps:$4 sm:$0xff]   ;;  %v1154_v25 = vld [vmem:[%s1310_s7 + $0x124] ss:$8 sps:$4 sm:$0xff]   ;;  %v1156_v26 = vld [vmem:[%s1310_s7 + $0x120] ss:$8 sps:$4 sm:$0xff]  }
  0x2f   : > { %666 = vmatpush1.bf16.msra.mxu1 %v1123_v13  ;;  %718 = vmatprep.subr.bf16.mxu0 %v1148_v21  ;;  %v1135_v27 = vld [vmem:[%s1310_s7 + $0x50] ss:$8 sps:$4 sm:$0xff]   ;;  %v1160_v28 = vld [vmem:[%s1310_s7 + $0x134] ss:$8 sps:$4 sm:$0xff]   ;;  %v1136_v29 = vld [vmem:[%s1310_s7 + $0x64] ss:$8 sps:$4 sm:$0xff]  }
  0x30   : > { %667 = vmatprep.subr.bf16.mxu1 %v1124_v14  ;;  %v1162_v30 = vld [vmem:[%s1310_s7 + $0x130] ss:$8 sps:$4 sm:$0xff]   ;;  %v1138_v31 = vld [vmem:[%s1310_s7 + $0x60] ss:$8 sps:$4 sm:$0xff]   ;;  %v1166_v32 = vld [vmem:[%s1310_s7 + $0x144] ss:$8 sps:$4 sm:$0xff]  }
  0x31   : > { %v1139_v33 = vld [vmem:[%s1310_s7 + $0x74] ss:$8 sps:$4 sm:$0xff]   ;;  %v1168_v34 = vld [vmem:[%s1310_s7 + $0x140] ss:$8 sps:$4 sm:$0xff]   ;;  %v1141_v35 = vld [vmem:[%s1310_s7 + $0x70] ss:$8 sps:$4 sm:$0xff]  }
  0x32   : > { %719 = vmatpush1.bf16.msra.mxu0 %v1150_v22  ;;  %v1172_v36 = vld [vmem:[%s1310_s7 + $0x154] ss:$8 sps:$4 sm:$0xff]   ;;  %v1145_v37 = vld [vmem:[%s1310_s7 + $0x84] ss:$8 sps:$4 sm:$0xff]   ;;  %v1174_v38 = vld [vmem:[%s1310_s7 + $0x150] ss:$8 sps:$4 sm:$0xff]  }
  0x33   : > { %668 = vmatpush1.bf16.msra.mxu1 %v1126_v15  ;;  %720 = vmatprep.subr.bf16.mxu0 %v1154_v25  ;;  %v1147_v39 = vld [vmem:[%s1310_s7 + $0x80] ss:$8 sps:$4 sm:$0xff]   ;;  %v1178_v40 = vld [vmem:[%s1310_s7 + $0x164] ss:$8 sps:$4 sm:$0xff]   ;;  %v1151_v41 = vld [vmem:[%s1310_s7 + $0x94] ss:$8 sps:$4 sm:$0xff]  }
  0x34   : > { %669 = vmatprep.subr.bf16.mxu1 %v1127_v16  ;;  %v1153_v42 = vld [vmem:[%s1310_s7 + $0x90] ss:$8 sps:$4 sm:$0xff]   ;;  %v1180_v43 = vld [vmem:[%s1310_s7 + $0x160] ss:$8 sps:$4 sm:$0xff]   ;;  %v1184_v45 = vld [vmem:[%s1310_s7 + $0x174] ss:$8 sps:$4 sm:$0xff]  }
  0x35   : > { %v1193_v44 = vld [vmem:[%s1312_s8 + $0x4] ss:$12 sps:$4 sm:$0xff]   ;;  %v1190_v50 = vld [vmem:[%s1312_s8 + $0x8] ss:$12 sps:$4 sm:$0xff]   ;;  %v1194_v55 = vld [vmem:[%s1312_s8 + $0x20] ss:$12 sps:$4 sm:$0xff]  }
  0x36   : > { %721 = vmatpush1.bf16.msra.mxu0 %v1156_v26  ;;  %v1157_v46 = vld [vmem:[%s1310_s7 + $0xa4] ss:$8 sps:$4 sm:$0xff]   ;;  %695 = vmatprep.mubr.bf16.mxu1 %v1193_v44  ;;  %v1186_v47 = vld [vmem:[%s1310_s7 + $0x170] ss:$8 sps:$4 sm:$0xff]   ;;  %v1159_v48 = vld [vmem:[%s1310_s7 + $0xa0] ss:$8 sps:$4 sm:$0xff]  }
  0x37   : > { %670 = vmatpush1.bf16.msra.mxu1 %v1129_v17  ;;  %722 = vmatprep.subr.bf16.mxu0 %v1160_v28  ;;  %v1163_v49 = vld [vmem:[%s1310_s7 + $0xb4] ss:$8 sps:$4 sm:$0xff]   ;;  %v1165_v51 = vld [vmem:[%s1310_s7 + $0xb0] ss:$8 sps:$4 sm:$0xff]   ;;  %v1169_v52 = vld [vmem:[%s1310_s7 + $0xc4] ss:$8 sps:$4 sm:$0xff]  }
  0x38   : > { %671 = vmatprep.subr.bf16.mxu1 %v1130_v20  ;;  %v1171_v53 = vld [vmem:[%s1310_s7 + $0xc0] ss:$8 sps:$4 sm:$0xff]   ;;  %v1175_v54 = vld [vmem:[%s1310_s7 + $0xd4] ss:$8 sps:$4 sm:$0xff]   ;;  %v1177_v56 = vld [vmem:[%s1310_s7 + $0xd0] ss:$8 sps:$4 sm:$0xff]  }
  0x39   : > { %v1181_v57 = vld [vmem:[%s1310_s7 + $0xe4] ss:$8 sps:$4 sm:$0xff]   ;;  %v1183_v58 = vld [vmem:[%s1310_s7 + $0xe0] ss:$8 sps:$4 sm:$0xff]   ;;  %v1187_v59 = vld [vmem:[%s1310_s7 + $0xf4] ss:$8 sps:$4 sm:$0xff]  }
  0x3a   : > { %723 = vmatpush1.bf16.msra.mxu0 %v1162_v30  ;;  %v1189_v60 = vld [vmem:[%s1310_s7 + $0xf0] ss:$8 sps:$4 sm:$0xff]   ;;  %v327_v8 = vld [vmem:[#allocation2] sm:$0xff] }
  0x3b   : > { %672 = vmatpush1.bf16.msra.mxu1 %v1132_v23  ;;  %724 = vmatprep.subr.bf16.mxu0 %v1166_v32  ;;  %v1191_v61 = vld [vmem:[%s1312_s8] ss:$12 sps:$4 sm:$0xff]   ;;  %v1195_v62 = vld [vmem:[%s1312_s8 + $0x1c] ss:$12 sps:$4 sm:$0xff]   ;;  %v1197_v63 = vld [vmem:[%s1312_s8 + $0x18] ss:$12 sps:$4 sm:$0xff]  }
  0x3c   : > { %673 = vmatprep.subr.bf16.mxu1 %v1133_v24  ;;  %v329_v14 = vld [vmem:[#allocation2 + $0x10] sm:$0xff]  ;;  %v330_v18 = vld [vmem:[#allocation2 + $0x18] sm:$0xff]  ;;  %v331_v24 = vld [vmem:[#allocation2 + $0x20] sm:$0xff] }
  0x3d   : > { %v333_v30 = vld [vmem:[#allocation2 + $0x30] sm:$0xff] }
  0x3e   : > { %725 = vmatpush1.bf16.msra.mxu0 %v1168_v34  ;;  %v334_v34 = vld [vmem:[#allocation2 + $0x38] sm:$0xff] }
  0x3f   : > { %674 = vmatpush1.bf16.msra.mxu1 %v1135_v27  ;;  %726 = vmatprep.subr.bf16.mxu0 %v1172_v36  ;;  %v332_v27 = vld [vmem:[#allocation2 + $0x28] sm:$0xff] }
  0x40   : > { %675 = vmatprep.subr.bf16.mxu1 %v1136_v29 }
  0x42   : > { %727 = vmatpush1.bf16.msra.mxu0 %v1174_v38 }
  0x43   : > { %676 = vmatpush1.bf16.msra.mxu1 %v1138_v31  ;;  %728 = vmatprep.subr.bf16.mxu0 %v1178_v40  ;;  %v799_v40 = vlaneseq (!%p1051_p11) }
  0x44   : > { %677 = vmatprep.subr.bf16.mxu1 %v1139_v33 }
  0x46   : > { %729 = vmatpush1.bf16.msra.mxu0 %v1180_v43 }
  0x47   : > { %678 = vmatpush1.bf16.msra.mxu1 %v1141_v35  ;;  %730 = vmatprep.subr.bf16.mxu0 %v1184_v45 }
  0x48   : > { %679 = vmatprep.subr.bf16.mxu1 %v1145_v37 }
  0x4a   : > { %731 = vmatpush1.bf16.msra.mxu0 %v1186_v47 }
  0x4b   : > { %680 = vmatpush1.bf16.msra.mxu1 %v1147_v39 }
  0x4c   : > { %681 = vmatprep.subr.bf16.mxu1 %v1151_v41  ;;  %v800_v41 = vshrl.u32 (!%p1051_p11), %v799_v40, 7 }
  0x4d   : > { %749 = vmatmul.mubr.bf16.vlgmr.msra.gmra.mrb[0].mxu0 %v1190_v50 }
  0x4e   : > { %758 = vmatprep.mubr.bf16.mxu0 %v1239_v11  ;;  %v328_v11 = vld [vmem:[#allocation2 + $0x8] sm:$0xff]  ;;  %v801_v45 = vsub.s32 (!%p1051_p11), 0, %v800_v41 }
  0x4f   : > { %682 = vmatpush1.bf16.msra.mxu1 %v1153_v42  ;;  %v797_v42 = vld [vmem:[%s1404_s2] sm:$0x3] (!%p1051_p11) }
  0x50   : > { %683 = vmatprep.subr.bf16.mxu1 %v1157_v46  ;;  %v805_v46 = vsub.s32 (!%p1051_p11), 1, %v800_v41  ;;  %v802_v50 = vrot.slane (!%p1051_p11), %v797_v42, %v801_v45 }
  0x53   : > { %684 = vmatpush1.bf16.msra.mxu1 %v1159_v48 }
  0x54   : > { %685 = vmatprep.subr.bf16.mxu1 %v1163_v49 }
  0x55   : > { %759 = vmatmul.mubr.bf16.gmra.mrb[4].mxu0 %v1194_v55 }
  0x57   : > { %686 = vmatpush1.bf16.msra.mxu1 %v1165_v51  ;;  %v806_v51 = vrot.slane (!%p1051_p11), %v797_v42, %v805_v46 }
  0x58   : > { %687 = vmatprep.subr.bf16.mxu1 %v1169_v52 }
  0x5b   : > { %688 = vmatpush1.bf16.msra.mxu1 %v1171_v53 }
  0x5c   : > { %689 = vmatprep.subr.bf16.mxu1 %v1175_v54 }
  0x5f   : > { %690 = vmatpush1.bf16.msra.mxu1 %v1177_v56 }
  0x60   : > { %691 = vmatprep.subr.bf16.mxu1 %v1181_v57 }
  0x63   : > { %692 = vmatpush1.bf16.msra.mxu1 %v1183_v58 }
  0x64   : > { %693 = vmatprep.subr.bf16.mxu1 %v1187_v59 }
  0x67   : > { %694 = vmatpush1.bf16.msra.mxu1 %v1189_v60 }
  0x6a   : > { %696 = vmatmul.mubr.bf16.vlgmr.msra.gmra.mrb[0].mxu1 %v1191_v61 }
  0x6b   : > { %705 = vmatprep.mubr.bf16.mxu1 %v1195_v62 }
  0x72   : > { %706 = vmatmul.mubr.bf16.gmra.mrb[4].mxu1 %v1197_v63 }
 0x120   : > { %v750_v0 = vpop.f32.mrb[0].mxu0 }
 0x121   : > { %v752_v1 = vpop.f32.mrb[1].mxu0 }
 0x122   : > { %v754_v2 = vpop.f32.mrb[2].mxu0 }
 0x123   : > { %v756_v3 = vpop.f32.mrb[3].mxu0 }
 0x128   : > { %v760_v4 = vpop.f32.mrb[4].mxu0 }
 0x129   : > { %v762_v5 = vpop.f32.mrb[5].mxu0 }
 0x12a   : > { %v764_v6 = vpop.f32.mrb[6].mxu0 }
 0x12b   : > { %v766_v7 = vpop.f32.mrb[7].mxu0 }
 0x13d   : > { %v697_v9 = vpop.f32.mrb[0].mxu1 }
 0x13e   : > { %v751_v10 = vadd.f32 %v750_v0, %v697_v9  ;;  %v699_v12 = vpop.f32.mrb[1].mxu1 }
 0x13f   : > { %v753_v13 = vadd.f32 %v752_v1, %v699_v12  ;;  %v701_v15 = vpop.f32.mrb[2].mxu1 }
 0x140   : > { %v769_v16 = vadd.f32 %v751_v10, %v327_v8  ;;  %v755_v17 = vadd.f32 %v754_v2, %v701_v15  ;;  %v703_v19 = vpop.f32.mrb[3].mxu1 }
 0x141   : > { %v770_v20 = vadd.f32 %v753_v13, %v328_v11  ;;  %v757_v21 = vadd.f32 %v756_v3, %v703_v19 }
 0x142   : > { %777 = vst [vmem:[#allocation2] sm:$0xff] %v769_v16  ;;  %v771_v22 = vadd.f32 %v755_v17, %v329_v14 }
 0x143   : > { %778 = vst [vmem:[#allocation2 + $0x8] sm:$0xff] %v770_v20  ;;  %v772_v23 = vadd.f32 %v757_v21, %v330_v18 }
 0x144   : > { %779 = vst [vmem:[#allocation2 + $0x10] sm:$0xff] %v771_v22 }
 0x145   : > { %780 = vst [vmem:[#allocation2 + $0x18] sm:$0xff] %v772_v23  ;;  %v707_v25 = vpop.f32.mrb[4].mxu1 }
 0x146   : > { %v761_v26 = vadd.f32 %v760_v4, %v707_v25  ;;  %v709_v28 = vpop.f32.mrb[5].mxu1 }
 0x147   : > { %v763_v29 = vadd.f32 %v762_v5, %v709_v28  ;;  %v711_v31 = vpop.f32.mrb[6].mxu1  ;;  %788 = sbr.rel (%p1051_p11) target bundleno = 348 (0x15c), region = 66 }
 0x148   : > { %v773_v32 = vadd.f32 %v761_v26, %v331_v24  ;;  %v765_v33 = vadd.f32 %v764_v6, %v711_v31  ;;  %v713_v35 = vpop.f32.mrb[7].mxu1 }
 0x149   : > { %v774_v36 = vadd.f32 %v763_v29, %v332_v27  ;;  %v767_v37 = vadd.f32 %v766_v7, %v713_v35  ;;  %v789_v43 = vld [vmem:[#allocation2] sm:$0xff] (!%p1051_p11) }
 0x14a   : > { %781 = vst [vmem:[#allocation2 + $0x20] sm:$0xff] %v773_v32  ;;  %v775_v38 = vadd.f32 %v765_v33, %v333_v30  ;;  %v790_v44 = vld [vmem:[#allocation2 + $0x8] sm:$0xff] (!%p1051_p11)  ;;  %v809_v55 = vadd.f32 (!%p1051_p11), %v802_v50, %v789_v43 }
 0x14b   : > { %782 = vst [vmem:[#allocation2 + $0x28] sm:$0xff] %v774_v36  ;;  %v776_v39 = vadd.f32 %v767_v37, %v334_v34  ;;  %v791_v47 = vld [vmem:[#allocation2 + $0x10] sm:$0xff] (!%p1051_p11)  ;;  %v810_v56 = vadd.f32 (!%p1051_p11), %v806_v51, %v790_v44 }
 0x14c   : > { %783 = vst [vmem:[#allocation2 + $0x30] sm:$0xff] %v775_v38  ;;  %v792_v48 = vld [vmem:[#allocation2 + $0x18] sm:$0xff] (!%p1051_p11)  ;;  %v811_v57 = vadd.f32 (!%p1051_p11), %v802_v50, %v791_v47  ;;  %v817_v63 = vmax.f32 (!%p1051_p11), %v809_v55, 0.0 }
 0x14d   : > { %784 = vst [vmem:[#allocation2 + $0x38] sm:$0xff] %v776_v39  ;;  %v812_v58 = vadd.f32 (!%p1051_p11), %v806_v51, %v792_v48  ;;  %v818_v0 = vmax.f32 (!%p1051_p11), %v810_v56, 0.0 }
 0x14e   : > { %v819_v1 = vmax.f32 %v811_v57, 0.0 }
 0x14f   : > { %v820_v2 = vmax.f32 %v812_v58, 0.0  ;;  %v1062_v7 = vpack.c.bf16 %v818_v0, %v817_v63 }
 0x151   : > { %v793_v49 = vld [vmem:[#allocation2 + $0x20] sm:$0xff]  ;;  %v1063_v8 = vpack.c.bf16 %v820_v2, %v819_v1  ;;  %849 = vst [vmem:[%s1405_s3] sm:$0xff] %v1062_v7 }
 0x152   : > { %v794_v52 = vld [vmem:[#allocation2 + $0x28] sm:$0xff]  ;;  %v813_v59 = vadd.f32 %v802_v50, %v793_v49 }
 0x153   : > { %v795_v53 = vld [vmem:[#allocation2 + $0x30] sm:$0xff]  ;;  %v814_v60 = vadd.f32 %v806_v51, %v794_v52  ;;  %850 = vst [vmem:[%s1405_s3 + $0x8] sm:$0xff] %v1063_v8 }
 0x154   : > { %v796_v54 = vld [vmem:[#allocation2 + $0x38] sm:$0xff]  ;;  %v815_v61 = vadd.f32 %v802_v50, %v795_v53  ;;  %v821_v3 = vmax.f32 %v813_v59, 0.0 }
 0x155   : > { %v816_v62 = vadd.f32 %v806_v51, %v796_v54  ;;  %v822_v4 = vmax.f32 %v814_v60, 0.0 }
 0x156   : > { %v823_v5 = vmax.f32 %v815_v61, 0.0 }
 0x157   : > { %v824_v6 = vmax.f32 %v816_v62, 0.0  ;;  %v1064_v9 = vpack.c.bf16 %v822_v4, %v821_v3 }
 0x159   : > { %v1065_v10 = vpack.c.bf16 %v824_v6, %v823_v5  ;;  %851 = vst [vmem:[%s1405_s3 + $0x10] sm:$0xff] %v1064_v9 }
 0x15b   : > { %852 = vst [vmem:[%s1405_s3 + $0x18] sm:$0xff] %v1065_v10 }
 0x15c PF: > { %s13_s16 = sadd.s32 1, %s1236_s16   ;;  %s1406_s12 = smov %s1224_s13 }
 0x15d   : > { %p10_p12 = scmp.ge.s32.totalorder %s13_s16, 5   ;;  %s1407_s13 = smov %s1295_s20 }
 0x15e   : > { %s1408_s14 = smov %s1232_s15  ;;  %s1409_s15 = smov %s1411_s17 }
 0x15f   :  { %12 = sbr.rel (!%p10_p12) target bundleno = 3 (0x3), region = 113 }

// kernel: model_forward.23
= control target key start
LH: loop header
LB: loop body
LE: loop exit
PB: predicated region body
PF: predicated region fallthrough
CT: control target
= control target key end

     0   :  { %s575_s17 = smov 0   ;;  %s577_s18 = smov 0   ;;  %s622_s0 = inlined_call_operand.vmem [shape: bf16[2,16,256], index: 0, kind: input, shape index: {}]   ;;  %s623_s1 = inlined_call_operand.vmem [shape: f32[2,1,256], index: 1, kind: input, shape index: {}]   ;;  %s624_s2 = inlined_call_operand.vmem [shape: f32[1,1,256], index: 2, kind: input, shape index: {}]   ;;  %s625_s3 = inlined_call_operand.<no memory space> [shape: f32[1,1], index: 3, kind: input, shape index: {}]   ;;  %s626_s4 = inlined_call_operand.vmem [shape: bf16[2,16,256], index: 4, kind: output, shape index: {}]  }
   0x1   :  { %v9_v0 = vstv %s625_s3  ;;  %s579_s19 = smov 0  }
   0x2   :  { %10 = vst [vmem:[#allocation2] sm:$0x1] %v9_v0 }
   0x3 LB: > { %s28_s3 = sadd.s32 1, %s540_s18  ;;  %p470_p0 = scmp.ge.s32.totalorder %s544_s19, 1  ;;  %s544_s19 = sphi %s579_s19, %s16_s19   ;;  %s540_s18 = sphi %s577_s18, %s628_s18   ;;  %s536_s17 = sphi %s575_s17, %s627_s17  }
   0x4   : > { %p30_p1 = scmp.ge.s32.totalorder %s28_s3, 2  ;;  %p195_p2 = scmp.lt.s32.totalorder %s544_s19, 3 }
   0x6   : > { %s630_s3 = smov (%p30_p1, %s28_s3), 0  ;;  %p196_p3 = pnand %p470_p0, %p195_p2 }
   0x7   : > { %p236_p4 = scmp.lt.s32.totalorder (!%p196_p3), %s536_s17, 1  ;;  %v269_v1 = vlaneseq (!%p196_p3)  ;;  %v283_v3 = vld [vmem:[%s624_s2] sm:$0x3] (!%p196_p3)  ;;  %v546_v20 = vmov (!%p196_p3), 0  }
   0x8   : > { %199 = sbr.rel (%p196_p3) target bundleno = 334 (0x14e), region = 36  ;;  %512 = vset.pattern.permute.xlu1 (!%p196_p3), %v546_v20  ;;  %513 = vset.pattern.permute.xlu0 (!%p196_p3), %v546_v20 }
   0x9   : > { %v270_v2 = vshrl.u32 (!%p196_p3), %v269_v1, 7  ;;  %v476_v24 = vld [vmem:[#allocation2] ss:$0 sm:$0xff] (!%p196_p3) }
   0xb   : > { %v271_v4 = vsub.s32 (!%p196_p3), 0, %v270_v2  ;;  %v275_v5 = vsub.s32 (!%p196_p3), 1, %v270_v2 }
   0xd   : > { %v288_v7 = vrot.slane (!%p196_p3), %v283_v3, %v271_v4  ;;  %v292_v8 = vrot.slane (!%p196_p3), %v283_v3, %v275_v5 }
   0xf   : > { %s632_s17 = smov (!%p236_p4, %s536_s17), 1 }
  0x10   : > { %s483_s22 = sshll.u32 %s632_s17, 4  ;;  %s473_s26 = sshll.u32 %s632_s17, 1 }
  0x11   : > { %s244_s25 = scalar_lea.vmem %s622_s0, %s483_s22  ;;  %s249_s29 = scalar_lea.vmem %s623_s1, %s473_s26 }
  0x12   : > { %v261_v6 = vld [vmem:[%s244_s25] sm:$0xff]  ;;  %v262_v9 = vld [vmem:[%s244_s25 + $0x8] sm:$0xff]  ;;  %s259_s6 = scalar_lea.vmem %s626_s4, %s483_s22 }
  0x13   : > { %v263_v10 = vunpack.c.l.bf16 %v261_v6  ;;  %v264_v11 = vunpack.c.h.bf16 %v261_v6  ;;  %v265_v12 = vunpack.c.l.bf16 %v262_v9  ;;  %v266_v13 = vunpack.c.h.bf16 %v262_v9  ;;  %v267_v21 = vld [vmem:[%s249_s29] sm:$0x3] }
  0x14   : > { %v272_v22 = vrot.slane %v267_v21, %v271_v4  ;;  %v276_v23 = vrot.slane %v267_v21, %v275_v5 }
  0x15   : > { %v295_v14 = vmul.f32 %v288_v7, %v263_v10  ;;  %v296_v15 = vmul.f32 %v292_v8, %v264_v11  ;;  %v297_v16 = vmul.f32 %v288_v7, %v265_v12  ;;  %v298_v17 = vmul.f32 %v292_v8, %v266_v13 }
  0x16   : > { %v280_v37 = vmul.f32 %v276_v23, %v264_v11  ;;  %v279_v38 = vmul.f32 %v272_v22, %v263_v10  ;;  %v281_v44 = vmul.f32 %v272_v22, %v265_v12  ;;  %v282_v45 = vmul.f32 %v276_v23, %v266_v13 }
  0x17   : > { %v299_v18 = vadd.f32 %v296_v15, %v295_v14  ;;  %v302_v19 = vadd.f32 %v298_v17, %v297_v16 }
  0x19   : > { %300 = vadd.xlane.f32.xlu0 %v299_v18 }
  0x1d   : > { %303 = vadd.xlane.f32.xlu0 %v302_v19 }
  0xa6   : > { %v301_v25 = vpop.xlane.xlu0 %300 }
  0xa7   : > { %v312_v26 = vadd.f32 %v476_v24, %v301_v25 }
  0xa9   : > { %v477_v27 = vmul.f32 -1.442695, %v312_v26 }
  0xaa   : > { %v304_v28 = vpop.xlane.xlu0 %303 }
  0xab   : > { %514 = vpow2.f32 %v477_v27  ;;  %v313_v29 = vadd.f32 %v476_v24, %v304_v28 }
  0xad   : > { %v478_v30 = vmul.f32 -1.442695, %v313_v29 }
  0xaf   : > { %516 = vpow2.f32 %v478_v30 }
  0xb5   : > { %v515_v31 = vpop.eup %514 }
  0xb6   : > { %v320_v32 = vadd.f32 1.0, %v515_v31 }
  0xb8   : > { %518 = vrcp.f32 %v320_v32 }
  0xb9   : > { %v517_v33 = vpop.eup %516 }
  0xba   : > { %v321_v34 = vadd.f32 1.0, %v517_v33 }
  0xbc   : > { %520 = vrcp.f32 %v321_v34 }
  0xc2   : > { %v519_v35 = vpop.eup %518 }
  0xc3   : > { %328 = vperm.xlu1 %512, %v519_v35  }
  0xc6   : > { %v521_v36 = vpop.eup %520 }
  0xc7   : > { %333 = vperm.xlu1 %512, %v521_v36  }
 0x142   : > { %v329_v39 = vpop.permute.xlu1 %328 }
 0x143   : > { %v336_v40 = vmul.f32 %v329_v39, %v263_v10  ;;  %v337_v41 = vmul.f32 %v329_v39, %v264_v11 }
 0x145   : > { %v340_v42 = vadd.f32 %v336_v40, %v279_v38  ;;  %v341_v43 = vadd.f32 %v337_v41, %v280_v37 }
 0x146   : > { %v334_v46 = vpop.permute.xlu1 %333 }
 0x147   : > { %v485_v47 = vpack.c.bf16 %v341_v43, %v340_v42  ;;  %v338_v48 = vmul.f32 %v334_v46, %v265_v12  ;;  %v339_v49 = vmul.f32 %v334_v46, %v266_v13 }
 0x149   : > { %v342_v50 = vadd.f32 %v338_v48, %v281_v44  ;;  %v343_v51 = vadd.f32 %v339_v49, %v282_v45  ;;  %356 = vst [vmem:[%s259_s6] sm:$0xff] %v485_v47 }
 0x14b   : > { %v486_v52 = vpack.c.bf16 %v343_v51, %v342_v50 }
 0x14d   : > { %357 = vst [vmem:[%s259_s6 + $0x8] sm:$0xff] %v486_v52 }
 0x14e PF: > { %s16_s19 = sadd.s32 1, %s544_s19   ;;  %s627_s17 = smov %s540_s18 }
 0x14f   : > { %p13_p5 = scmp.ge.s32.totalorder %s16_s19, 4   ;;  %s628_s18 = smov %s630_s3 }
 0x151   :  { %15 = sbr.rel (!%p13_p5) target bundleno = 3 (0x3), region = 69 }

// kernel: model_forward.24
= control target key start
LH: loop header
LB: loop body
LE: loop exit
PB: predicated region body
PF: predicated region fallthrough
CT: control target
= control target key end

     0   :  { %s1659_s12 = smov 0   ;;  %s1661_s13 = smov 0   ;;  %s1873_s0 = inlined_call_operand.vmem [shape: bf16[128,3456], index: 0, kind: input, shape index: {}]   ;;  %s1874_s1 = inlined_call_operand.vmem [shape: bf16[3456,128], index: 1, kind: input, shape index: {}]   ;;  %s1875_s2 = inlined_call_operand.vmem [shape: f32[1,128], index: 2, kind: input, shape index: {}]   ;;  %s1876_s3 = inlined_call_operand.vmem [shape: bf16[128,128], index: 3, kind: output, shape index: {}]  }
   0x1   :  { %s1663_s14 = smov 0   ;;  %s1665_s15 = smov 0  }
   0x2   :  { %s1667_s16 = smov 0  }
   0x3 LB: > { %s25_s17 = sadd.s32 1, %s1632_s15  ;;  %p48_p1 = scmp.ne.s32.totalorder %s1624_s13, %s1620_s12  ;;  %s1636_s16 = sphi %s1667_s16, %s13_s16   ;;  %s1632_s15 = sphi %s1665_s15, %s1880_s15   ;;  %s1628_s14 = sphi %s1663_s14, %s1879_s14   ;;  %s1624_s13 = sphi %s1661_s13, %s1878_s13   ;;  %s1620_s12 = sphi %s1659_s12, %s1877_s12  }
   0x4   : > { %p26_p0 = scmp.ge.s32.totalorder %s25_s17, 9  ;;  %p49_p2 = scmp.eq.s32.totalorder %s1636_s16, 0 }
   0x5   : > { %s41_s19 = sadd.s32 1, %s1624_s13  ;;  %p1216_p5 = scmp.ge.s32.totalorder %s1636_s16, 9 }
   0x6   : > { %s1882_s17 = smov (%p26_p0, %s25_s17), 0  ;;  %p50_p3 = por %p49_p2, %p48_p1 }
   0x7   : > { %s37_s18 = ssub.s32 %s1632_s15, %s1882_s17  ;;  %162 = sbr.rel (%p1216_p5) target bundleno = 37 (0x25), region = 20 }
   0x8   : > { %p39_p4 = scmp.eq.s32.totalorder %s37_s18, 0 }
   0xa   : > { %s1694_s20 = scalar_select %p39_p4, %s1624_s13, %s41_s19  }
   0xe   : > { %165 = sbr.rel (!%p50_p3) target bundleno = 37 (0x25), region = 24  ;;  %s167_s21 = sand.u32 (%p50_p3), 1, %s1624_s13  }
   0xf   : > { %s1323_s22 = smul.u32 (%p50_p3), 12, %s1632_s15 }
  0x10   : > { %s1499_s23 = smul.u32 (%p50_p3), 192, %s167_s21 }
  0x11   : > { %s1702_s26 = scalar_lea.vmem (%p50_p3), %s1873_s0, %s1323_s22 }
  0x12   : > { %v190_v0 = vld [vmem:[%s1702_s26] sm:$0xff] (%p50_p3)  ;;  %v192_v1 = vld [vmem:[%s1702_s26 + $0x6c] sm:$0xff] (%p50_p3)  ;;  %v194_v2 = vld [vmem:[%s1702_s26 + $0xd8] sm:$0xff] (%p50_p3)  ;;  %s1707_s27 = scalar_lea.vmem (%p50_p3), [#allocation3], %s1499_s23 }
  0x13   : > { %191 = vst [vmem:[%s1707_s27] sm:$0xff] (%p50_p3), %v190_v0  ;;  %193 = vst [vmem:[%s1707_s27 + $0xc] sm:$0xff] (%p50_p3), %v192_v1  ;;  %v196_v3 = vld [vmem:[%s1702_s26 + $0x144] sm:$0xff] (%p50_p3)  ;;  %v198_v4 = vld [vmem:[%s1702_s26 + $0x1b0] sm:$0xff] (%p50_p3) }
  0x14   : > { %195 = vst [vmem:[%s1707_s27 + $0x18] sm:$0xff] (%p50_p3), %v194_v2  ;;  %v200_v5 = vld [vmem:[%s1702_s26 + $0x21c] sm:$0xff] (%p50_p3)  ;;  %197 = vst [vmem:[%s1707_s27 + $0x24] sm:$0xff] (%p50_p3), %v196_v3  ;;  %v202_v6 = vld [vmem:[%s1702_s26 + $0x288] sm:$0xff] (%p50_p3) }
  0x15   : > { %199 = vst [vmem:[%s1707_s27 + $0x30] sm:$0xff] %v198_v4  ;;  %201 = vst [vmem:[%s1707_s27 + $0x3c] sm:$0xff] %v200_v5  ;;  %v204_v7 = vld [vmem:[%s1702_s26 + $0x2f4] sm:$0xff]  ;;  %v206_v8 = vld [vmem:[%s1702_s26 + $0x360] sm:$0xff] }
  0x16   : > { %203 = vst [vmem:[%s1707_s27 + $0x48] sm:$0xff] %v202_v6  ;;  %205 = vst [vmem:[%s1707_s27 + $0x54] sm:$0xff] %v204_v7  ;;  %v208_v9 = vld [vmem:[%s1702_s26 + $0x3cc] sm:$0xff]  ;;  %v210_v10 = vld [vmem:[%s1702_s26 + $0x438] sm:$0xff] }
  0x17   : > { %207 = vst [vmem:[%s1707_s27 + $0x60] sm:$0xff] %v206_v8  ;;  %v212_v11 = vld [vmem:[%s1702_s26 + $0x4a4] sm:$0xff]  ;;  %209 = vst [vmem:[%s1707_s27 + $0x6c] sm:$0xff] %v208_v9  ;;  %v214_v12 = vld [vmem:[%s1702_s26 + $0x510] sm:$0xff] }
  0x18   : > { %211 = vst [vmem:[%s1707_s27 + $0x78] sm:$0xff] %v210_v10  ;;  %213 = vst [vmem:[%s1707_s27 + $0x84] sm:$0xff] %v212_v11  ;;  %v216_v13 = vld [vmem:[%s1702_s26 + $0x57c] sm:$0xff]  ;;  %v218_v14 = vld [vmem:[%s1702_s26 + $0x5e8] sm:$0xff] }
  0x19   : > { %215 = vst [vmem:[%s1707_s27 + $0x90] sm:$0xff] %v214_v12  ;;  %217 = vst [vmem:[%s1707_s27 + $0x9c] sm:$0xff] %v216_v13  ;;  %v220_v15 = vld [vmem:[%s1702_s26 + $0x654] sm:$0xff]  ;;  %v1218_v16 = vld [vmem:[%s1702_s26 + $0x8] sm:$0xf] }
  0x1a   : > { %219 = vst [vmem:[%s1707_s27 + $0xa8] sm:$0xff] %v218_v14  ;;  %v1220_v17 = vld [vmem:[%s1702_s26 + $0x74] sm:$0xf]  ;;  %221 = vst [vmem:[%s1707_s27 + $0xb4] sm:$0xff] %v220_v15  ;;  %v1222_v18 = vld [vmem:[%s1702_s26 + $0xe0] sm:$0xf] }
  0x1b   : > { %1219 = vst [vmem:[%s1707_s27 + $0x8] sm:$0xf] %v1218_v16  ;;  %1221 = vst [vmem:[%s1707_s27 + $0x14] sm:$0xf] %v1220_v17  ;;  %v1224_v19 = vld [vmem:[%s1702_s26 + $0x14c] sm:$0xf] }
  0x1c   : > { %v1226_v20 = vld [vmem:[%s1702_s26 + $0x1b8] sm:$0xf]  ;;  %1223 = vst [vmem:[%s1707_s27 + $0x20] sm:$0xf] %v1222_v18  ;;  %1225 = vst [vmem:[%s1707_s27 + $0x2c] sm:$0xf] %v1224_v19 }
  0x1d   : > { %1227 = vst [vmem:[%s1707_s27 + $0x38] sm:$0xf] %v1226_v20  ;;  %v1228_v21 = vld [vmem:[%s1702_s26 + $0x224] sm:$0xf]  ;;  %v1230_v22 = vld [vmem:[%s1702_s26 + $0x290] sm:$0xf] }
  0x1e   : > { %v1232_v23 = vld [vmem:[%s1702_s26 + $0x2fc] sm:$0xf]  ;;  %1229 = vst [vmem:[%s1707_s27 + $0x44] sm:$0xf] %v1228_v21  ;;  %1231 = vst [vmem:[%s1707_s27 + $0x50] sm:$0xf] %v1230_v22 }
  0x1f   : > { %1233 = vst [vmem:[%s1707_s27 + $0x5c] sm:$0xf] %v1232_v23  ;;  %v1234_v24 = vld [vmem:[%s1702_s26 + $0x368] sm:$0xf]  ;;  %v1236_v25 = vld [vmem:[%s1702_s26 + $0x3d4] sm:$0xf] }
  0x20   : > { %v1238_v26 = vld [vmem:[%s1702_s26 + $0x440] sm:$0xf]  ;;  %1235 = vst [vmem:[%s1707_s27 + $0x68] sm:$0xf] %v1234_v24  ;;  %1237 = vst [vmem:[%s1707_s27 + $0x74] sm:$0xf] %v1236_v25 }
  0x21   : > { %1239 = vst [vmem:[%s1707_s27 + $0x80] sm:$0xf] %v1238_v26  ;;  %v1240_v27 = vld [vmem:[%s1702_s26 + $0x4ac] sm:$0xf]  ;;  %v1242_v28 = vld [vmem:[%s1702_s26 + $0x518] sm:$0xf] }
  0x22   : > { %v1244_v29 = vld [vmem:[%s1702_s26 + $0x584] sm:$0xf]  ;;  %1241 = vst [vmem:[%s1707_s27 + $0x8c] sm:$0xf] %v1240_v27  ;;  %1243 = vst [vmem:[%s1707_s27 + $0x98] sm:$0xf] %v1242_v28 }
  0x23   : > { %1245 = vst [vmem:[%s1707_s27 + $0xa4] sm:$0xf] %v1244_v29  ;;  %v1246_v30 = vld [vmem:[%s1702_s26 + $0x5f0] sm:$0xf]  ;;  %v1248_v31 = vld [vmem:[%s1702_s26 + $0x65c] sm:$0xf] }
  0x24   : > { %1247 = vst [vmem:[%s1707_s27 + $0xb0] sm:$0xf] %v1246_v30  ;;  %1249 = vst [vmem:[%s1707_s27 + $0xbc] sm:$0xf] %v1248_v31 }
  0x25 PF: > { %p1250_p6 = scmp.ge.s32.totalorder %s1636_s16, 1  ;;  %p277_p7 = scmp.lt.s32.totalorder %s1636_s16, 10 }
  0x27   : > { %p278_p8 = pnand %p1250_p6, %p277_p7 }
  0x28   : > { %s284_s28 = sand.u32 (!%p278_p8), 1, %s1620_s12   ;;  %s323_s29 = smul.u32 (!%p278_p8), 48, %s1628_s14 }
  0x29   : > { %281 = sbr.rel (%p278_p8) target bundleno = 383 (0x17f), region = 54  ;;  %p1252_p10 = scmp.ne.s32.totalorder (!%p278_p8), %s1628_s14, 0 }
  0x2a   : > { %s1500_s30 = smul.u32 (!%p278_p8), 192, %s284_s28  ;;  %p324_p9 = scmp.lt.s32.totalorder (!%p278_p8), %s323_s29, 431 }
  0x2c   : > { %s1779_s8 = scalar_lea.vmem (!%p278_p8), [#allocation3], %s1500_s30 }
  0x30   : > { %s1884_s29 = smov (!%p324_p9, %s323_s29), 431  ;;  %348 = sbr.rel (%p1252_p10) target bundleno = 58 (0x3a), region = 62 }
  0x31   : > { %s1251_s4 = sshll.u32 %s1884_s29, 2  ;;  %v1638_v32 = vmov (!%p1252_p10), 0.0  }
  0x32   : > { %s1777_s7 = scalar_lea.vmem %s1874_s1, %s1251_s4  ;;  %349 = vst [vmem:[#allocation2] sm:$0xff] (!%p1252_p10), %v1638_v32  ;;  %350 = vst [vmem:[#allocation2 + $0x8] sm:$0xff] (!%p1252_p10), %v1638_v32 }
  0x33   : > { %351 = vst [vmem:[#allocation2 + $0x10] sm:$0xff] (!%p1252_p10), %v1638_v32  ;;  %352 = vst [vmem:[#allocation2 + $0x18] sm:$0xff] (!%p1252_p10), %v1638_v32 }
  0x34   : > { %353 = vst [vmem:[#allocation2 + $0x20] sm:$0xff] (!%p1252_p10), %v1638_v32  ;;  %354 = vst [vmem:[#allocation2 + $0x28] sm:$0xff] (!%p1252_p10), %v1638_v32 }
  0x35   : > { %355 = vst [vmem:[#allocation2 + $0x30] sm:$0xff] (!%p1252_p10), %v1638_v32  ;;  %356 = vst [vmem:[#allocation2 + $0x38] sm:$0xff] (!%p1252_p10), %v1638_v32 }
  0x36   : > { %357 = vst [vmem:[#allocation2 + $0x40] sm:$0xff] (!%p1252_p10), %v1638_v32  ;;  %358 = vst [vmem:[#allocation2 + $0x48] sm:$0xff] (!%p1252_p10), %v1638_v32 }
  0x37   : > { %359 = vst [vmem:[#allocation2 + $0x50] sm:$0xff] %v1638_v32  ;;  %360 = vst [vmem:[#allocation2 + $0x58] sm:$0xff] %v1638_v32 }
  0x38   : > { %361 = vst [vmem:[#allocation2 + $0x60] sm:$0xff] %v1638_v32  ;;  %362 = vst [vmem:[#allocation2 + $0x68] sm:$0xff] %v1638_v32 }
  0x39   : > { %363 = vst [vmem:[#allocation2 + $0x70] sm:$0xff] %v1638_v32  ;;  %364 = vst [vmem:[#allocation2 + $0x78] sm:$0xff] %v1638_v32 }
  0x3a PF: > { %v1542_v33 = vld [vmem:[%s1777_s7 + $0x40] sm:$0xff]   ;;  %v1545_v36 = vld [vmem:[%s1777_s7 + $0x48] sm:$0xff]   ;;  %v1548_v39 = vld [vmem:[%s1777_s7 + $0x50] sm:$0xff]   ;;  %p1301_p11 = scmp.ne.s32.totalorder %s1628_s14, 8 }
  0x3b   : > { %v1543_v34 = vld [vmem:[%s1777_s7] sm:$0xff]   ;;  %1387 = vmatprep.subr.bf16.mxu0 %v1542_v33  ;;  %v1546_v37 = vld [vmem:[%s1777_s7 + $0x8] sm:$0xff]   ;;  %v1549_v40 = vld [vmem:[%s1777_s7 + $0x10] sm:$0xff]  }
  0x3c   : > { %v1544_v35 = vld [vmem:[%s1777_s7 + $0x80] sm:$0xff]   ;;  %1388 = vmatpush3.bf16.msra.mxu0 %v1543_v34  ;;  %v1547_v38 = vld [vmem:[%s1777_s7 + $0x88] sm:$0xff]   ;;  %v1550_v41 = vld [vmem:[%s1777_s7 + $0x90] sm:$0xff]  }
  0x3d   : > { %1467 = vmatprep.subr.bf16.mxu1 %v1544_v35  ;;  %1389 = vmatprep.subr.bf16.mxu0 %v1545_v36  ;;  %v1551_v42 = vld [vmem:[%s1777_s7 + $0x58] sm:$0xff]   ;;  %v1554_v45 = vld [vmem:[%s1777_s7 + $0x60] sm:$0xff]   ;;  %v1557_v48 = vld [vmem:[%s1777_s7 + $0x68] sm:$0xff]  }
  0x3e   : > { %1468 = vmatpush3.bf16.msra.mxu1 %v1544_v35  ;;  %v1552_v43 = vld [vmem:[%s1777_s7 + $0x18] sm:$0xff]   ;;  %v1556_v46 = vld [vmem:[%s1777_s7 + $0xa0] sm:$0xff]   ;;  %v1559_v49 = vld [vmem:[%s1777_s7 + $0xa8] sm:$0xff]  }
  0x3f   : > { %1469 = vmatprep.subr.bf16.mxu1 %v1547_v38  ;;  %v1553_v44 = vld [vmem:[%s1777_s7 + $0x98] sm:$0xff]   ;;  %v1555_v47 = vld [vmem:[%s1777_s7 + $0x20] sm:$0xff]   ;;  %v1558_v50 = vld [vmem:[%s1777_s7 + $0x28] sm:$0xff]  }
  0x40   : > { %1390 = vmatpush3.bf16.msra.mxu0 %v1546_v37  ;;  %v1560_v51 = vld [vmem:[%s1777_s7 + $0x70] sm:$0xff]   ;;  %v1563_v54 = vld [vmem:[%s1777_s7 + $0x78] sm:$0xff]   ;;  %v1566_v59 = vld [vmem:[%s1779_s8] ss:$12 sps:$4 sm:$0xff]  }
  0x41   : > { %1391 = vmatprep.subr.bf16.mxu0 %v1548_v39  ;;  %v1561_v52 = vld [vmem:[%s1777_s7 + $0x30] sm:$0xff]   ;;  %v1565_v55 = vld [vmem:[%s1777_s7 + $0xb8] sm:$0xff]   ;;  %v1570_v61 = vld [vmem:[%s1779_s8 + $0x20] ss:$12 sps:$4 sm:$0xff]  }
  0x42   : > { %1470 = vmatpush3.bf16.msra.mxu1 %v1547_v38  ;;  %v1562_v53 = vld [vmem:[%s1777_s7 + $0xb0] sm:$0xff]   ;;  %v1564_v58 = vld [vmem:[%s1777_s7 + $0x38] sm:$0xff]   ;;  %v1586_v5 = vld [vmem:[%s1779_s8 + $0x80] ss:$12 sps:$4 sm:$0xff]  }
  0x43   : > { %1471 = vmatprep.subr.bf16.mxu1 %v1550_v41  ;;  %v1568_v56 = vld [vmem:[%s1779_s8 + $0x4] ss:$12 sps:$4 sm:$0xff]   ;;  %v1569_v57 = vld [vmem:[%s1779_s8 + $0x8] ss:$12 sps:$4 sm:$0xff]   ;;  %v1579_v4 = vld [vmem:[%s1779_s8 + $0x4c] ss:$12 sps:$4 sm:$0xff]  }
  0x44   : > { %1392 = vmatpush3.bf16.msra.mxu0 %v1549_v40  ;;  %765 = vmatprep.mubr.bf16.mxu0 %v1568_v56  ;;  %v1571_v60 = vld [vmem:[%s1779_s8 + $0x1c] ss:$12 sps:$4 sm:$0xff]   ;;  %v1577_v62 = vld [vmem:[%s1779_s8 + $0x38] ss:$12 sps:$4 sm:$0xff]   ;;  %v1574_v0 = vld [vmem:[%s1779_s8 + $0x34] ss:$12 sps:$4 sm:$0xff]  }
  0x45   : > { %1393 = vmatprep.subr.bf16.mxu0 %v1551_v42  ;;  %1483 = vmatprep.mubr.bf16.mxu1 %v1569_v57  ;;  %v1573_v63 = vld [vmem:[%s1779_s8 + $0x18] ss:$12 sps:$4 sm:$0xff]   ;;  %v1578_v1 = vld [vmem:[%s1779_s8 + $0x50] ss:$12 sps:$4 sm:$0xff]   ;;  %v1585_v2 = vld [vmem:[%s1779_s8 + $0x68] ss:$12 sps:$4 sm:$0xff]  }
  0x46   : > { %1472 = vmatpush3.bf16.msra.mxu1 %v1550_v41  ;;  %v1576_v3 = vld [vmem:[%s1779_s8 + $0x30] ss:$12 sps:$4 sm:$0xff]   ;;  %v1593_v6 = vld [vmem:[%s1779_s8 + $0x98] ss:$12 sps:$4 sm:$0xff]   ;;  %v1581_v7 = vld [vmem:[%s1779_s8 + $0x48] ss:$12 sps:$4 sm:$0xff]  }
  0x47   : > { %1473 = vmatprep.subr.bf16.mxu1 %v1553_v44  ;;  %v1582_v8 = vld [vmem:[%s1779_s8 + $0x64] ss:$12 sps:$4 sm:$0xff]   ;;  %v1584_v10 = vld [vmem:[%s1779_s8 + $0x60] ss:$12 sps:$4 sm:$0xff]   ;;  %v1587_v11 = vld [vmem:[%s1779_s8 + $0x7c] ss:$12 sps:$4 sm:$0xff]  }
  0x48   : > { %1394 = vmatpush3.bf16.msra.mxu0 %v1552_v43  ;;  %v1594_v9 = vld [vmem:[%s1779_s8 + $0xb0] ss:$12 sps:$4 sm:$0xff]   ;;  %v1589_v12 = vld [vmem:[%s1779_s8 + $0x78] ss:$12 sps:$4 sm:$0xff]   ;;  %v1590_v13 = vld [vmem:[%s1779_s8 + $0x94] ss:$12 sps:$4 sm:$0xff]  }
  0x49   : > { %1395 = vmatprep.subr.bf16.mxu0 %v1554_v45  ;;  %v1592_v14 = vld [vmem:[%s1779_s8 + $0x90] ss:$12 sps:$4 sm:$0xff]   ;;  %v1595_v15 = vld [vmem:[%s1779_s8 + $0xac] ss:$12 sps:$4 sm:$0xff]   ;;  %v1597_v16 = vld [vmem:[%s1779_s8 + $0xa8] ss:$12 sps:$4 sm:$0xff]  }
  0x4a   : > { %1474 = vmatpush3.bf16.msra.mxu1 %v1553_v44  ;;  %v365_v23 = vld [vmem:[#allocation2] sm:$0xff]  ;;  %v366_v28 = vld [vmem:[#allocation2 + $0x8] sm:$0xff]  ;;  %v367_v38 = vld [vmem:[#allocation2 + $0x10] sm:$0xff] }
  0x4b   : > { %1475 = vmatprep.subr.bf16.mxu1 %v1556_v46  ;;  %v368_v44 = vld [vmem:[#allocation2 + $0x18] sm:$0xff] }
  0x4c   : > { %1396 = vmatpush3.bf16.msra.mxu0 %v1555_v47 }
  0x4d   : > { %1397 = vmatprep.subr.bf16.mxu0 %v1557_v48 }
  0x4e   : > { %1476 = vmatpush3.bf16.msra.mxu1 %v1556_v46 }
  0x4f   : > { %1477 = vmatprep.subr.bf16.mxu1 %v1559_v49 }
  0x50   : > { %1398 = vmatpush3.bf16.msra.mxu0 %v1558_v50 }
  0x51   : > { %1399 = vmatprep.subr.bf16.mxu0 %v1560_v51 }
  0x52   : > { %1478 = vmatpush3.bf16.msra.mxu1 %v1559_v49 }
  0x53   : > { %1479 = vmatprep.subr.bf16.mxu1 %v1562_v53 }
  0x54   : > { %1400 = vmatpush3.bf16.msra.mxu0 %v1561_v52 }
  0x55   : > { %1401 = vmatprep.subr.bf16.mxu0 %v1563_v54 }
  0x56   : > { %1480 = vmatpush3.bf16.msra.mxu1 %v1562_v53 }
  0x57   : > { %1481 = vmatprep.subr.bf16.mxu1 %v1565_v55 }
  0x58   : > { %1402 = vmatpush3.bf16.msra.mxu0 %v1564_v58 }
  0x5a   : > { %1482 = vmatpush3.bf16.msra.mxu1 %v1565_v55  ;;  %v369_v55 = vld [vmem:[#allocation2 + $0x20] sm:$0xff] }
  0x5b   : > { %766 = vmatmul.mubr.bf16.vlgmr.msra.gmra.mrb[0].mxu0 %v1566_v59 }
  0x5c   : > { %773 = vmatprep.mubr.bf16.mxu0 %v1571_v60  ;;  %v370_v60 = vld [vmem:[#allocation2 + $0x28] sm:$0xff] }
  0x5d   : > { %1484 = vmatmul.mubr.bf16.vlgmr.msra.gmra.mrb[0].mxu1 %v1570_v61 }
  0x5e   : > { %1487 = vmatprep.mubr.bf16.mxu1 %v1577_v62 }
  0x63   : > { %774 = vmatmul.mubr.bf16.gmra.mrb[4].mxu0 %v1573_v63 }
  0x64   : > { %781 = vmatprep.mubr.bf16.mxu0 %v1574_v0 }
  0x65   : > { %1488 = vmatmul.mubr.bf16.gmra.mrb[4].mxu1 %v1578_v1 }
  0x66   : > { %1491 = vmatprep.mubr.bf16.mxu1 %v1585_v2 }
  0x6b   : > { %782 = vmatmul.mubr.bf16.gmra.mrb[8].mxu0 %v1576_v3 }
  0x6c   : > { %789 = vmatprep.mubr.bf16.mxu0 %v1579_v4 }
  0x6d   : > { %1492 = vmatmul.mubr.bf16.gmra.mrb[8].mxu1 %v1586_v5 }
  0x6e   : > { %1495 = vmatprep.mubr.bf16.mxu1 %v1593_v6  ;;  %v371_v6 = vld [vmem:[#allocation2 + $0x30] sm:$0xff] }
  0x73   : > { %790 = vmatmul.mubr.bf16.gmra.mrb[12].mxu0 %v1581_v7 }
  0x74   : > { %797 = vmatprep.mubr.bf16.mxu0 %v1582_v8 }
  0x75   : > { %1496 = vmatmul.mubr.bf16.gmra.mrb[12].mxu1 %v1594_v9 }
  0x7b   : > { %798 = vmatmul.mubr.bf16.gmra.mrb[16].mxu0 %v1584_v10 }
  0x7c   : > { %805 = vmatprep.mubr.bf16.mxu0 %v1587_v11 }
  0x83   : > { %806 = vmatmul.mubr.bf16.gmra.mrb[20].mxu0 %v1589_v12  ;;  %v372_v12 = vld [vmem:[#allocation2 + $0x38] sm:$0xff] }
  0x84   : > { %813 = vmatprep.mubr.bf16.mxu0 %v1590_v13 }
  0x8b   : > { %814 = vmatmul.mubr.bf16.gmra.mrb[24].mxu0 %v1592_v14 }
  0x8c   : > { %821 = vmatprep.mubr.bf16.mxu0 %v1595_v15 }
  0x93   : > { %822 = vmatmul.mubr.bf16.gmra.mrb[28].mxu0 %v1597_v16 }
 0x12e   : > { %v1403_v17 = vpop.f32.mrb[0].mxu0 }
 0x12f   : > { %v1404_v18 = vpop.f32.mrb[1].mxu0 }
 0x130   : > { %v1405_v19 = vadd.f32 %v1404_v18, %v1403_v17  ;;  %v1406_v20 = vpop.f32.mrb[2].mxu0  ;;  %v1485_v21 = vpop.f32.mrb[0].mxu1 }
 0x131   : > { %v1407_v22 = vpop.f32.mrb[3].mxu0  ;;  %v864_v24 = vpop.f32.mrb[1].mxu1 }
 0x132   : > { %v1408_v25 = vadd.f32 %v1407_v22, %v1406_v20  ;;  %v865_v26 = vadd.f32 %v1405_v19, %v864_v24  ;;  %v1486_v27 = vpop.f32.mrb[2].mxu1  ;;  %v373_v22 = vld [vmem:[#allocation2 + $0x40] sm:$0xff] }
 0x133   : > { %v867_v29 = vpop.f32.mrb[3].mxu1 }
 0x134   : > { %v927_v30 = vadd.f32 %v865_v26, %v365_v23  ;;  %v868_v31 = vadd.f32 %v1408_v25, %v867_v29  ;;  %v374_v25 = vld [vmem:[#allocation2 + $0x48] sm:$0xff] }
 0x136   : > { %943 = vst [vmem:[#allocation2] sm:$0xff] %v927_v30  ;;  %v928_v32 = vadd.f32 %v868_v31, %v366_v28  ;;  %v1409_v33 = vpop.f32.mrb[4].mxu0 }
 0x137   : > { %v1410_v34 = vpop.f32.mrb[5].mxu0 }
 0x138   : > { %944 = vst [vmem:[#allocation2 + $0x8] sm:$0xff] %v928_v32  ;;  %v1411_v35 = vadd.f32 %v1410_v34, %v1409_v33  ;;  %v1412_v36 = vpop.f32.mrb[6].mxu0  ;;  %v1489_v37 = vpop.f32.mrb[4].mxu1  ;;  %v375_v33 = vld [vmem:[#allocation2 + $0x50] sm:$0xff] }
 0x139   : > { %v1413_v39 = vpop.f32.mrb[7].mxu0  ;;  %v880_v40 = vpop.f32.mrb[5].mxu1 }
 0x13a   : > { %v873_v41 = vadd.f32 %v1485_v21, %v1411_v35  ;;  %v1414_v42 = vadd.f32 %v1413_v39, %v1412_v36  ;;  %v1490_v43 = vpop.f32.mrb[6].mxu1 }
 0x13b   : > { %v883_v45 = vpop.f32.mrb[7].mxu1 }
 0x13c   : > { %v929_v46 = vadd.f32 %v873_v41, %v367_v38  ;;  %v876_v47 = vadd.f32 %v1486_v27, %v1414_v42 }
 0x13e   : > { %945 = vst [vmem:[#allocation2 + $0x10] sm:$0xff] %v929_v46  ;;  %v930_v48 = vadd.f32 %v876_v47, %v368_v44  ;;  %v1415_v49 = vpop.f32.mrb[8].mxu0  ;;  %v377_v46 = vld [vmem:[#allocation2 + $0x60] sm:$0xff] }
 0x13f   : > { %v1416_v50 = vpop.f32.mrb[9].mxu0 }
 0x140   : > { %946 = vst [vmem:[#allocation2 + $0x18] sm:$0xff] %v930_v48  ;;  %v1417_v51 = vadd.f32 %v1416_v50, %v1415_v49  ;;  %v1418_v52 = vpop.f32.mrb[10].mxu0  ;;  %v1493_v53 = vpop.f32.mrb[8].mxu1  ;;  %v378_v49 = vld [vmem:[#allocation2 + $0x68] sm:$0xff] }
 0x141   : > { %v1419_v54 = vpop.f32.mrb[11].mxu0  ;;  %v896_v56 = vpop.f32.mrb[9].mxu1 }
 0x142   : > { %v1420_v57 = vadd.f32 %v1419_v54, %v1418_v52  ;;  %v881_v58 = vadd.f32 %v1417_v51, %v880_v40  ;;  %v1494_v59 = vpop.f32.mrb[10].mxu1 }
 0x143   : > { %v899_v61 = vpop.f32.mrb[11].mxu1 }
 0x144   : > { %v931_v62 = vadd.f32 %v881_v58, %v369_v55  ;;  %v884_v63 = vadd.f32 %v1420_v57, %v883_v45  ;;  %v379_v57 = vld [vmem:[#allocation2 + $0x70] sm:$0xff] }
 0x146   : > { %947 = vst [vmem:[#allocation2 + $0x20] sm:$0xff] %v931_v62  ;;  %v932_v0 = vadd.f32 %v884_v63, %v370_v60  ;;  %v1421_v1 = vpop.f32.mrb[12].mxu0 }
 0x147   : > { %v1422_v2 = vpop.f32.mrb[13].mxu0 }
 0x148   : > { %948 = vst [vmem:[#allocation2 + $0x28] sm:$0xff] %v932_v0  ;;  %v1423_v3 = vadd.f32 %v1422_v2, %v1421_v1  ;;  %v1424_v4 = vpop.f32.mrb[14].mxu0  ;;  %v1497_v5 = vpop.f32.mrb[12].mxu1  ;;  %v963_v1 = vld [vmem:[#allocation2] sm:$0xff] (!%p1301_p11)  ;;  %v964_v2 = vld [vmem:[#allocation2 + $0x8] sm:$0xff] (!%p1301_p11) }
 0x149   : > { %v1425_v7 = vpop.f32.mrb[15].mxu0  ;;  %v912_v8 = vpop.f32.mrb[13].mxu1 }
 0x14a   : > { %v889_v9 = vadd.f32 %v1489_v37, %v1423_v3  ;;  %v1426_v10 = vadd.f32 %v1425_v7, %v1424_v4  ;;  %v1498_v11 = vpop.f32.mrb[14].mxu1  ;;  %v376_v37 = vld [vmem:[#allocation2 + $0x58] sm:$0xff]  ;;  %v1302_v3 = vld [vmem:[%s1875_s2] ss:$0 sm:$0xff] (!%p1301_p11)  ;;  %v965_v7 = vld [vmem:[#allocation2 + $0x10] sm:$0xff] (!%p1301_p11) }
 0x14b   : > { %v915_v13 = vpop.f32.mrb[15].mxu1  ;;  %v986_v4 = vadd.f32 (!%p1301_p11), %v1302_v3, %v963_v1 }
 0x14c   : > { %v933_v14 = vadd.f32 %v889_v9, %v371_v6  ;;  %v892_v15 = vadd.f32 %v1490_v43, %v1426_v10  ;;  %v987_v6 = vadd.f32 (!%p1301_p11), %v1302_v3, %v964_v2  ;;  %v988_v9 = vadd.f32 (!%p1301_p11), %v1302_v3, %v965_v7 }
 0x14e   : > { %949 = vst [vmem:[#allocation2 + $0x30] sm:$0xff] %v933_v14  ;;  %v934_v16 = vadd.f32 %v892_v15, %v372_v12  ;;  %v1427_v17 = vpop.f32.mrb[16].mxu0  ;;  %v1002_v15 = vmax.f32 (!%p1301_p11), %v986_v4, 0.0 }
 0x14f   : > { %v1428_v18 = vpop.f32.mrb[17].mxu0 }
 0x150   : > { %950 = vst [vmem:[#allocation2 + $0x38] sm:$0xff] %v934_v16  ;;  %v1429_v19 = vadd.f32 %v1428_v18, %v1427_v17  ;;  %v1430_v20 = vpop.f32.mrb[18].mxu0  ;;  %v1003_v16 = vmax.f32 (!%p1301_p11), %v987_v6, 0.0 }
 0x151   : > { %v1431_v21 = vpop.f32.mrb[19].mxu0 }
 0x152   : > { %v1432_v23 = vadd.f32 %v1431_v21, %v1430_v20  ;;  %v897_v24 = vadd.f32 %v1429_v19, %v896_v56 }
 0x154   : > { %v935_v26 = vadd.f32 %v897_v24, %v373_v22  ;;  %v900_v27 = vadd.f32 %v1432_v23, %v899_v61  ;;  %v380_v61 = vld [vmem:[#allocation2 + $0x78] sm:$0xff]  ;;  %v1004_v22 = vmax.f32 (!%p1301_p11), %v988_v9, 0.0 }
 0x156   : > { %951 = vst [vmem:[#allocation2 + $0x40] sm:$0xff] %v935_v26  ;;  %v936_v28 = vadd.f32 %v900_v27, %v374_v25  ;;  %v1433_v29 = vpop.f32.mrb[20].mxu0 }
 0x157   : > { %v1434_v30 = vpop.f32.mrb[21].mxu0  ;;  %v970_v14 = vld [vmem:[#allocation2 + $0x38] sm:$0xff] (!%p1301_p11) }
 0x158   : > { %952 = vst [vmem:[#allocation2 + $0x48] sm:$0xff] %v936_v28  ;;  %v1435_v31 = vadd.f32 %v1434_v30, %v1433_v29  ;;  %v1436_v32 = vpop.f32.mrb[22].mxu0  ;;  %v993_v25 = vadd.f32 (!%p1301_p11), %v1302_v3, %v970_v14  ;;  %v1343_v28 = vpack.c.bf16 (!%p1301_p11), %v1003_v16, %v1002_v15 }
 0x159   : > { %v1437_v34 = vpop.f32.mrb[23].mxu0 }
 0x15a   : > { %v905_v35 = vadd.f32 %v1493_v53, %v1435_v31  ;;  %v1438_v36 = vadd.f32 %v1437_v34, %v1436_v32  ;;  %v1009_v34 = vmax.f32 (!%p1301_p11), %v993_v25, 0.0  ;;  %1344 = vst [vmem:[%s1876_s3] sm:$0xff] (!%p1301_p11), %v1343_v28  }
 0x15c   : > { %v937_v38 = vadd.f32 %v905_v35, %v375_v33  ;;  %v908_v39 = vadd.f32 %v1494_v59, %v1438_v36 }
 0x15d   : > { %v971_v19 = vld [vmem:[#allocation2 + $0x40] sm:$0xff] (!%p1301_p11) }
 0x15e   : > { %953 = vst [vmem:[#allocation2 + $0x50] sm:$0xff] %v937_v38  ;;  %v938_v40 = vadd.f32 %v908_v39, %v376_v37  ;;  %v1439_v41 = vpop.f32.mrb[24].mxu0  ;;  %v994_v31 = vadd.f32 (!%p1301_p11), %v1302_v3, %v971_v19 }
 0x15f   : > { %v1440_v42 = vpop.f32.mrb[25].mxu0  ;;  %v972_v20 = vld [vmem:[#allocation2 + $0x48] sm:$0xff] (!%p1301_p11) }
 0x160   : > { %954 = vst [vmem:[#allocation2 + $0x58] sm:$0xff] %v938_v40  ;;  %v1441_v43 = vadd.f32 %v1440_v42, %v1439_v41  ;;  %v1442_v44 = vpop.f32.mrb[26].mxu0  ;;  %v995_v35 = vadd.f32 (!%p1301_p11), %v1302_v3, %v972_v20  ;;  %v1010_v40 = vmax.f32 (!%p1301_p11), %v994_v31, 0.0 }
 0x161   : > { %v1443_v45 = vpop.f32.mrb[27].mxu0 }
 0x162   : > { %v1444_v47 = vadd.f32 %v1443_v45, %v1442_v44  ;;  %v913_v48 = vadd.f32 %v1441_v43, %v912_v8  ;;  %v967_v8 = vld [vmem:[#allocation2 + $0x20] sm:$0xff] (!%p1301_p11)  ;;  %v1011_v44 = vmax.f32 (!%p1301_p11), %v995_v35, 0.0 }
 0x163   : > { %v990_v12 = vadd.f32 (!%p1301_p11), %v1302_v3, %v967_v8 }
 0x164   : > { %v939_v50 = vadd.f32 %v913_v48, %v377_v46  ;;  %v916_v51 = vadd.f32 %v1444_v47, %v915_v13  ;;  %v969_v13 = vld [vmem:[#allocation2 + $0x30] sm:$0xff] (!%p1301_p11) }
 0x165   : > { %v992_v18 = vadd.f32 (!%p1301_p11), %v1302_v3, %v969_v13  ;;  %v973_v21 = vld [vmem:[#allocation2 + $0x50] sm:$0xff] (!%p1301_p11)  ;;  %v1006_v24 = vmax.f32 (!%p1301_p11), %v990_v12, 0.0 }
 0x166   : > { %955 = vst [vmem:[#allocation2 + $0x60] sm:$0xff] %v939_v50  ;;  %v940_v52 = vadd.f32 %v916_v51, %v378_v49  ;;  %v1445_v53 = vpop.f32.mrb[28].mxu0  ;;  %v996_v36 = vadd.f32 (!%p1301_p11), %v1302_v3, %v973_v21  ;;  %v1363_v51 = vpack.c.bf16 (!%p1301_p11), %v1011_v44, %v1010_v40 }
 0x167   : > { %v1446_v54 = vpop.f32.mrb[29].mxu0  ;;  %v974_v26 = vld [vmem:[#allocation2 + $0x58] sm:$0xff] (!%p1301_p11)  ;;  %v1008_v30 = vmax.f32 (!%p1301_p11), %v992_v18, 0.0 }
 0x168   : > { %956 = vst [vmem:[#allocation2 + $0x68] sm:$0xff] %v940_v52  ;;  %v1447_v55 = vadd.f32 %v1446_v54, %v1445_v53  ;;  %v1448_v56 = vpop.f32.mrb[30].mxu0  ;;  %v997_v41 = vadd.f32 (!%p1301_p11), %v1302_v3, %v974_v26  ;;  %v1012_v45 = vmax.f32 (!%p1301_p11), %v996_v36, 0.0  ;;  %1383 = vst [vmem:[%s1876_s3 + $0x20] sm:$0xff] (!%p1301_p11), %v1363_v51  }
 0x169   : > { %v1449_v58 = vpop.f32.mrb[31].mxu0  ;;  %v1358_v43 = vpack.c.bf16 (!%p1301_p11), %v1009_v34, %v1008_v30 }
 0x16a   : > { %v921_v59 = vadd.f32 %v1497_v5, %v1447_v55  ;;  %v1450_v60 = vadd.f32 %v1449_v58, %v1448_v56  ;;  %962 = sbr.rel (%p1301_p11) target bundleno = 383 (0x17f), region = 66  ;;  %v966_v5 = vld [vmem:[#allocation2 + $0x18] sm:$0xff] (!%p1301_p11)  ;;  %v1013_v47 = vmax.f32 (!%p1301_p11), %v997_v41, 0.0 }
 0x16b   : > { %v989_v10 = vadd.f32 (!%p1301_p11), %v1302_v3, %v966_v5  ;;  %1382 = vst [vmem:[%s1876_s3 + $0x18] sm:$0xff] (!%p1301_p11), %v1358_v43  }
 0x16c   : > { %v941_v62 = vadd.f32 %v921_v59, %v379_v57  ;;  %v924_v63 = vadd.f32 %v1498_v11, %v1450_v60  ;;  %v968_v11 = vld [vmem:[#allocation2 + $0x28] sm:$0xff] (!%p1301_p11)  ;;  %v1368_v53 = vpack.c.bf16 (!%p1301_p11), %v1013_v47, %v1012_v45 }
 0x16d   : > { %v991_v17 = vadd.f32 (!%p1301_p11), %v1302_v3, %v968_v11  ;;  %v1005_v23 = vmax.f32 (!%p1301_p11), %v989_v10, 0.0  ;;  %v975_v27 = vld [vmem:[#allocation2 + $0x60] sm:$0xff] (!%p1301_p11) }
 0x16e   : > { %957 = vst [vmem:[#allocation2 + $0x70] sm:$0xff] %v941_v62  ;;  %v942_v0 = vadd.f32 %v924_v63, %v380_v61  ;;  %v998_v42 = vadd.f32 (!%p1301_p11), %v1302_v3, %v975_v27  ;;  %1384 = vst [vmem:[%s1876_s3 + $0x28] sm:$0xff] (!%p1301_p11), %v1368_v53  }
 0x16f   : > { %v1007_v29 = vmax.f32 (!%p1301_p11), %v991_v17, 0.0  ;;  %v976_v32 = vld [vmem:[#allocation2 + $0x68] sm:$0xff] (!%p1301_p11)  ;;  %v1348_v33 = vpack.c.bf16 (!%p1301_p11), %v1005_v23, %v1004_v22 }
 0x170   : > { %958 = vst [vmem:[#allocation2 + $0x78] sm:$0xff] %v942_v0  ;;  %v999_v46 = vadd.f32 (!%p1301_p11), %v1302_v3, %v976_v32  ;;  %v1014_v48 = vmax.f32 (!%p1301_p11), %v998_v42, 0.0 }
 0x171   : > { %v1353_v39 = vpack.c.bf16 %v1007_v29, %v1006_v24  ;;  %1380 = vst [vmem:[%s1876_s3 + $0x8] sm:$0xff] %v1348_v33  }
 0x172   : > { %v1015_v52 = vmax.f32 %v999_v46, 0.0 }
 0x173   : > { %1381 = vst [vmem:[%s1876_s3 + $0x10] sm:$0xff] %v1353_v39  }
 0x174   : > { %v1373_v56 = vpack.c.bf16 %v1015_v52, %v1014_v48 }
 0x175   : > { %v977_v37 = vld [vmem:[#allocation2 + $0x70] sm:$0xff] }
 0x176   : > { %v1000_v49 = vadd.f32 %v1302_v3, %v977_v37  ;;  %1385 = vst [vmem:[%s1876_s3 + $0x30] sm:$0xff] %v1373_v56  }
 0x177   : > { %v978_v38 = vld [vmem:[#allocation2 + $0x78] sm:$0xff] }
 0x178   : > { %v1001_v50 = vadd.f32 %v1302_v3, %v978_v38  ;;  %v1016_v54 = vmax.f32 %v1000_v49, 0.0 }
 0x17a   : > { %v1017_v55 = vmax.f32 %v1001_v50, 0.0 }
 0x17c   : > { %v1378_v57 = vpack.c.bf16 %v1017_v55, %v1016_v54 }
 0x17e   : > { %1386 = vst [vmem:[%s1876_s3 + $0x38] sm:$0xff] %v1378_v57  }
 0x17f PF: > { %s13_s16 = sadd.s32 1, %s1636_s16   ;;  %s1877_s12 = smov %s1624_s13 }
 0x180   : > { %p10_p12 = scmp.ge.s32.totalorder %s13_s16, 11   ;;  %s1878_s13 = smov %s1694_s20 }
 0x181   : > { %s1879_s14 = smov %s1632_s15  ;;  %s1880_s15 = smov %s1882_s17 }
 0x182   :  { %12 = sbr.rel (!%p10_p12) target bundleno = 3 (0x3), region = 113 }

// kernel: model_forward.29
= control target key start
LH: loop header
LB: loop body
LE: loop exit
PB: predicated region body
PF: predicated region fallthrough
CT: control target
= control target key end

     0   :  { %s1795_s23 = smov 0   ;;  %s1797_s24 = smov 0   ;;  %s2214_s0 = inlined_call_operand.vmem [shape: bf16[2,256,128], index: 0, kind: input, shape index: {}]   ;;  %s2215_s1 = inlined_call_operand.vmem [shape: f32[2,1,128], index: 1, kind: input, shape index: {}]   ;;  %s2216_s2 = inlined_call_operand.vmem [shape: f32[1,1,128], index: 2, kind: input, shape index: {}]   ;;  %s2217_s3 = inlined_call_operand.<no memory space> [shape: f32[1,1], index: 3, kind: input, shape index: {}]   ;;  %s2218_s4 = inlined_call_operand.vmem [shape: bf16[128,128], index: 4, kind: input, shape index: {}]   ;;  %s2219_s5 = inlined_call_operand.vmem [shape: f32[1,128], index: 5, kind: input, shape index: {}]   ;;  %s2220_s6 = inlined_call_operand.vmem [shape: f32[2,256,128], index: 6, kind: output, shape index: {}]  }
   0x1   :  { %v11_v0 = vstv %s2217_s3  ;;  %s1799_s25 = smov 0  }
   0x2   :  { %12 = vst [vmem:[#allocation2] sm:$0x1] %v11_v0 }
   0x3 LB: > { %s30_s3 = sadd.s32 1, %s1750_s24  ;;  %p1349_p0 = scmp.ge.s32.totalorder %s1754_s25, 1  ;;  %s1754_s25 = sphi %s1799_s25, %s18_s25   ;;  %s1750_s24 = sphi %s1797_s24, %s2222_s24   ;;  %s1746_s23 = sphi %s1795_s23, %s2221_s23  }
   0x4   : > { %p32_p1 = scmp.ge.s32.totalorder %s30_s3, 2  ;;  %p243_p2 = scmp.lt.s32.totalorder %s1754_s25, 3 }
   0x6   : > { %s2224_s3 = smov (%p32_p1, %s30_s3), 0  ;;  %p244_p3 = pnand %p1349_p0, %p243_p2 }
   0x7   : > { %p285_p4 = scmp.lt.s32.totalorder (!%p244_p3), %s1746_s23, 1  ;;  %v1825_v2 = vld [vmem:[%s2216_s2] ss:$0 sm:$0xff] (!%p244_p3) }
   0x8   : > { %247 = sbr.rel (%p244_p3) target bundleno = 622 (0x26e), region = 44 }
   0xf   : > { %s2226_s23 = smov (!%p285_p4, %s1746_s23), 1 }
  0x10   : > { %s1400_s26 = sshll.u32 %s2226_s23, 7  ;;  %s1401_s30 = sshll.u32 %s2226_s23, 8 }
  0x11   : > { %s1819_s29 = scalar_lea.vmem %s2214_s0, %s1400_s26  ;;  %s2139_s11 = scalar_lea.vmem %s2220_s6, %s1401_s30 }
  0x12   : > { %v1473_v1 = vld [vmem:[%s1819_s29 + $0x40] sm:$0xff]   ;;  %v1466_v8 = vld [vmem:[%s1819_s29 + $0x8] sm:$0xff]   ;;  %v1467_v20 = vld [vmem:[%s1819_s29 + $0x10] sm:$0xff]  }
  0x13   : > { %v1403_v3 = vld [vmem:[%s1819_s29] sm:$0xff]   ;;  %v1828_v4 = vunpack.c.l.bf16 %v1473_v1  ;;  %v1832_v6 = vunpack.c.h.bf16 %v1473_v1  ;;  %v1845_v13 = vunpack.c.h.bf16 %v1466_v8  ;;  %v1474_v14 = vld [vmem:[%s1819_s29 + $0x48] sm:$0xff]   ;;  %v1848_v15 = vunpack.c.l.bf16 %v1466_v8  ;;  %v1475_v25 = vld [vmem:[%s1819_s29 + $0x50] sm:$0xff]  }
  0x14   : > { %v1830_v5 = vunpack.c.l.bf16 %v1403_v3  ;;  %v1834_v7 = vunpack.c.h.bf16 %v1403_v3  ;;  %v1852_v17 = vunpack.c.h.bf16 %v1474_v14  ;;  %v1856_v19 = vunpack.c.l.bf16 %v1474_v14  ;;  %v1468_v30 = vld [vmem:[%s1819_s29 + $0x18] sm:$0xff]   ;;  %v1469_v40 = vld [vmem:[%s1819_s29 + $0x20] sm:$0xff]   ;;  %v1470_v50 = vld [vmem:[%s1819_s29 + $0x28] sm:$0xff]  }
  0x15   : > { %v434_v9 = vmul.f32 %v1828_v4, %v1825_v2  ;;  %v435_v11 = vmul.f32 %v1832_v6, %v1825_v2  ;;  %v421_v16 = vmul.f32 %v1845_v13, %v1825_v2  ;;  %v420_v18 = vmul.f32 %v1848_v15, %v1825_v2  ;;  %v1476_v35 = vld [vmem:[%s1819_s29 + $0x58] sm:$0xff]   ;;  %v1477_v45 = vld [vmem:[%s1819_s29 + $0x60] sm:$0xff]   ;;  %v1478_v55 = vld [vmem:[%s1819_s29 + $0x68] sm:$0xff]  }
  0x16   : > { %v418_v10 = vmul.f32 %v1830_v5, %v1825_v2  ;;  %v419_v12 = vmul.f32 %v1834_v7, %v1825_v2  ;;  %v437_v21 = vmul.f32 %v1852_v17, %v1825_v2  ;;  %v1861_v22 = vunpack.c.h.bf16 %v1467_v20  ;;  %v1471_v60 = vld [vmem:[%s1819_s29 + $0x30] sm:$0xff]  }
  0x17   : > { %482 = vadd.xlane.f32.xlu1 %v434_v9  ;;  %v436_v23 = vmul.f32 %v1856_v19, %v1825_v2  ;;  %v1865_v24 = vunpack.c.l.bf16 %v1467_v20  ;;  %v1870_v27 = vunpack.c.h.bf16 %v1475_v25  ;;  %v1874_v29 = vunpack.c.l.bf16 %v1475_v25  ;;  %v1479_v1 = vld [vmem:[%s1819_s29 + $0x70] sm:$0xff]  }
  0x18   : > { %450 = vadd.xlane.f32.xlu0 %v418_v10  ;;  %v423_v26 = vmul.f32 %v1861_v22, %v1825_v2  ;;  %v1879_v32 = vunpack.c.h.bf16 %v1468_v30  ;;  %v1883_v34 = vunpack.c.l.bf16 %v1468_v30  ;;  %v1888_v37 = vunpack.c.h.bf16 %v1476_v35 }
  0x19   : > { %v422_v28 = vmul.f32 %v1865_v24, %v1825_v2  ;;  %v439_v31 = vmul.f32 %v1870_v27, %v1825_v2  ;;  %v438_v33 = vmul.f32 %v1874_v29, %v1825_v2  ;;  %v1892_v39 = vunpack.c.l.bf16 %v1476_v35  ;;  %v1597_v35 = vld [vmem:[%s2218_s4 + $0x8] sm:$0xff]  }
  0x1a   : > { %v425_v36 = vmul.f32 %v1879_v32, %v1825_v2  ;;  %v424_v38 = vmul.f32 %v1883_v34, %v1825_v2  ;;  %v441_v41 = vmul.f32 %v1888_v37, %v1825_v2  ;;  %v1897_v42 = vunpack.c.h.bf16 %v1469_v40 }
  0x1b   : > { %484 = vadd.xlane.f32.xlu1 %v435_v11  ;;  %v440_v43 = vmul.f32 %v1892_v39, %v1825_v2  ;;  %v1901_v44 = vunpack.c.l.bf16 %v1469_v40  ;;  %v1906_v47 = vunpack.c.h.bf16 %v1477_v45  ;;  %v1910_v49 = vunpack.c.l.bf16 %v1477_v45 }
  0x1c   : > { %452 = vadd.xlane.f32.xlu0 %v419_v12  ;;  %v427_v46 = vmul.f32 %v1897_v42, %v1825_v2  ;;  %v1915_v52 = vunpack.c.h.bf16 %v1470_v50  ;;  %v1919_v54 = vunpack.c.l.bf16 %v1470_v50  ;;  %v1924_v57 = vunpack.c.h.bf16 %v1478_v55  ;;  %v1472_v12 = vld [vmem:[%s1819_s29 + $0x38] sm:$0xff]  }
  0x1d   : > { %v426_v48 = vmul.f32 %v1901_v44, %v1825_v2  ;;  %v443_v51 = vmul.f32 %v1906_v47, %v1825_v2  ;;  %v442_v53 = vmul.f32 %v1910_v49, %v1825_v2  ;;  %v1928_v59 = vunpack.c.l.bf16 %v1478_v55 }
  0x1e   : > { %v429_v56 = vmul.f32 %v1915_v52, %v1825_v2  ;;  %v428_v58 = vmul.f32 %v1919_v54, %v1825_v2  ;;  %v445_v61 = vmul.f32 %v1924_v57, %v1825_v2  ;;  %v1933_v62 = vunpack.c.h.bf16 %v1471_v60 }
  0x1f   : > { %456 = vadd.xlane.f32.xlu1 %v421_v16  ;;  %v444_v63 = vmul.f32 %v1928_v59, %v1825_v2  ;;  %v1937_v0 = vunpack.c.l.bf16 %v1471_v60  ;;  %v1756_v3 = vmov 0   ;;  %v1942_v9 = vunpack.c.h.bf16 %v1479_v1 }
  0x20   : > { %454 = vadd.xlane.f32.xlu0 %v420_v18  ;;  %1595 = vset.pattern.permute.xlu1 %v1756_v3  ;;  %v431_v8 = vmul.f32 %v1933_v62, %v1825_v2  ;;  %v1946_v11 = vunpack.c.l.bf16 %v1479_v1  ;;  %v1951_v16 = vunpack.c.h.bf16 %v1472_v12  ;;  %v1955_v20 = vunpack.c.l.bf16 %v1472_v12 }
  0x21   : > { %1594 = vset.pattern.permute.xlu0 %v1756_v3  ;;  %v430_v10 = vmul.f32 %v1937_v0, %v1825_v2  ;;  %v447_v14 = vmul.f32 %v1942_v9, %v1825_v2 }
  0x22   : > { %v446_v18 = vmul.f32 %v1946_v11, %v1825_v2 }
  0x23   : > { %488 = vadd.xlane.f32.xlu1 %v437_v21  ;;  %v1480_v21 = vld [vmem:[%s1819_s29 + $0x78] sm:$0xff]   ;;  %s296_s29 = scalar_lea.vmem %s2215_s1, %s2226_s23 }
  0x24   : > { %486 = vadd.xlane.f32.xlu0 %v436_v23  ;;  %v433_v23 = vmul.f32 %v1951_v16, %v1825_v2  ;;  %v1960_v25 = vunpack.c.h.bf16 %v1480_v21 }
  0x26   : > { %v449_v30 = vmul.f32 %v1960_v25, %v1825_v2 }
  0x27   : > { %460 = vadd.xlane.f32.xlu1 %v423_v26  ;;  %v432_v26 = vmul.f32 %v1955_v20, %v1825_v2 }
  0x28   : > { %458 = vadd.xlane.f32.xlu0 %v422_v28  ;;  %v1964_v28 = vunpack.c.l.bf16 %v1480_v21 }
  0x2b   : > { %492 = vadd.xlane.f32.xlu1 %v439_v31  ;;  %v448_v31 = vmul.f32 %v1964_v28, %v1825_v2 }
  0x2c   : > { %490 = vadd.xlane.f32.xlu0 %v438_v33  ;;  %v1596_v33 = vld [vmem:[%s2218_s4] sm:$0xff]  }
  0x2d   : > { %1505 = vmatprep.subr.bf16.mxu0 %v1596_v33  ;;  %1553 = vmatprep.subr.bf16.mxu1 %v1596_v33 }
  0x2e   : > { %1506 = vmatpush3.bf16.msra.mxu0 %v1596_v33  ;;  %1561 = vmatpush3.bf16.msra.mxu1 %v1596_v33 }
  0x2f   : > { %464 = vadd.xlane.f32.xlu1 %v425_v36  ;;  %1507 = vmatprep.subr.bf16.mxu0 %v1597_v35  ;;  %v1976_v36 = vld [vmem:[#allocation2] ss:$0 sm:$0xff] }
  0x30   : > { %462 = vadd.xlane.f32.xlu0 %v424_v38  ;;  %1554 = vmatprep.subr.bf16.mxu1 %v1597_v35 }
  0x32   : > { %1508 = vmatpush3.bf16.msra.mxu0 %v1597_v35  ;;  %1562 = vmatpush3.bf16.msra.mxu1 %v1597_v35 }
  0x33   : > { %496 = vadd.xlane.f32.xlu1 %v441_v41 }
  0x34   : > { %494 = vadd.xlane.f32.xlu0 %v440_v43 }
  0x37   : > { %468 = vadd.xlane.f32.xlu1 %v427_v46 }
  0x38   : > { %466 = vadd.xlane.f32.xlu0 %v426_v48 }
  0x3b   : > { %500 = vadd.xlane.f32.xlu1 %v443_v51 }
  0x3c   : > { %498 = vadd.xlane.f32.xlu0 %v442_v53 }
  0x3f   : > { %472 = vadd.xlane.f32.xlu1 %v429_v56 }
  0x40   : > { %470 = vadd.xlane.f32.xlu0 %v428_v58 }
  0x43   : > { %504 = vadd.xlane.f32.xlu1 %v445_v61 }
  0x44   : > { %502 = vadd.xlane.f32.xlu0 %v444_v63 }
  0x47   : > { %476 = vadd.xlane.f32.xlu1 %v431_v8 }
  0x48   : > { %474 = vadd.xlane.f32.xlu0 %v430_v10 }
  0x4b   : > { %508 = vadd.xlane.f32.xlu1 %v447_v14 }
  0x4c   : > { %506 = vadd.xlane.f32.xlu0 %v446_v18 }
  0x4f   : > { %480 = vadd.xlane.f32.xlu1 %v433_v23 }
  0x50   : > { %478 = vadd.xlane.f32.xlu0 %v432_v26 }
  0x53   : > { %512 = vadd.xlane.f32.xlu1 %v449_v30 }
  0x54   : > { %510 = vadd.xlane.f32.xlu0 %v448_v31 }
  0xa4   : > { %v483_v2 = vpop.xlane.xlu1 %482 }
  0xa5   : > { %v451_v38 = vpop.xlane.xlu0 %450  ;;  %v537_v40 = vadd.f32 %v1976_v36, %v483_v2 }
  0xa6   : > { %v521_v41 = vadd.f32 %v1976_v36, %v451_v38 }
  0xa7   : > { %v1373_v43 = vmul.f32 -1.442695, %v537_v40 }
  0xa8   : > { %v1357_v45 = vmul.f32 -1.442695, %v521_v41  ;;  %v485_v46 = vpop.xlane.xlu1 %484 }
  0xa9   : > { %v453_v48 = vpop.xlane.xlu0 %452  ;;  %v538_v50 = vadd.f32 %v1976_v36, %v485_v46 }
  0xaa   : > { %v522_v51 = vadd.f32 %v1976_v36, %v453_v48  ;;  %1604 = vpow2.f32 %v1357_v45 }
  0xab   : > { %1606 = vpow2.f32 %v1373_v43  ;;  %v1374_v53 = vmul.f32 -1.442695, %v538_v50 }
  0xac   : > { %v1358_v55 = vmul.f32 -1.442695, %v522_v51  ;;  %v457_v56 = vpop.xlane.xlu1 %456 }
  0xad   : > { %v455_v58 = vpop.xlane.xlu0 %454  ;;  %v524_v60 = vadd.f32 %v1976_v36, %v457_v56 }
  0xae   : > { %v523_v61 = vadd.f32 %v1976_v36, %v455_v58  ;;  %1608 = vpow2.f32 %v1358_v55 }
  0xaf   : > { %1610 = vpow2.f32 %v1374_v53  ;;  %v1360_v63 = vmul.f32 -1.442695, %v524_v60 }
  0xb0   : > { %v1359_v1 = vmul.f32 -1.442695, %v523_v61  ;;  %v489_v3 = vpop.xlane.xlu1 %488 }
  0xb1   : > { %v487_v8 = vpop.xlane.xlu0 %486  ;;  %1612 = vpow2.f32 %v1360_v63  ;;  %v540_v31 = vadd.f32 %v1976_v36, %v489_v3 }
  0xb2   : > { %v539_v10 = vadd.f32 %v1976_v36, %v487_v8  ;;  %1614 = vpow2.f32 %v1359_v1 }
  0xb3   : > { %v1376_v48 = vmul.f32 -1.442695, %v540_v31 }
  0xb4   : > { %v1605_v12 = vpop.eup %1604  ;;  %v461_v14 = vpop.xlane.xlu1 %460  ;;  %v1375_v30 = vmul.f32 -1.442695, %v539_v10 }
  0xb5   : > { %v459_v18 = vpop.xlane.xlu0 %458  ;;  %v1607_v21 = vpop.eup %1606  ;;  %v649_v23 = vadd.f32 1.0, %v1605_v12  ;;  %v526_v26 = vadd.f32 %v1976_v36, %v461_v14 }
  0xb6   : > { %v665_v2 = vadd.f32 1.0, %v1607_v21  ;;  %v525_v46 = vadd.f32 %v1976_v36, %v459_v18 }
  0xb7   : > { %1616 = vrcp.f32 %v649_v23  ;;  %v1362_v33 = vmul.f32 -1.442695, %v526_v26  ;;  %v1598_v26 = vld [vmem:[%s2218_s4 + $0x10] sm:$0xff]  }
  0xb8   : > { %v1609_v35 = vpop.eup %1608  ;;  %v493_v38 = vpop.xlane.xlu1 %492  ;;  %v1361_v63 = vmul.f32 -1.442695, %v525_v46  ;;  %1509 = vmatprep.subr.bf16.mxu0 %v1598_v26  ;;  %1555 = vmatprep.subr.bf16.mxu1 %v1598_v26 }
  0xb9   : > { %v491_v40 = vpop.xlane.xlu0 %490  ;;  %v1611_v41 = vpop.eup %1610  ;;  %v650_v43 = vadd.f32 1.0, %v1609_v35  ;;  %1618 = vpow2.f32 %v1362_v33  ;;  %v542_v45 = vadd.f32 %v1976_v36, %v493_v38  ;;  %1510 = vmatpush3.bf16.msra.mxu0 %v1598_v26  ;;  %1563 = vmatpush3.bf16.msra.mxu1 %v1598_v26 }
  0xba   : > { %1620 = vpow2.f32 %v1375_v30  ;;  %v666_v53 = vadd.f32 1.0, %v1611_v41  ;;  %v541_v61 = vadd.f32 %v1976_v36, %v491_v40 }
  0xbb   : > { %1622 = vrcp.f32 %v650_v43  ;;  %v1378_v50 = vmul.f32 -1.442695, %v542_v45  ;;  %v1613_v51 = vpop.eup %1612 }
  0xbc   : > { %1624 = vrcp.f32 %v665_v2  ;;  %v465_v55 = vpop.xlane.xlu1 %464  ;;  %v1615_v58 = vpop.eup %1614  ;;  %v652_v1 = vadd.f32 1.0, %v1613_v51  ;;  %v1377_v23 = vmul.f32 -1.442695, %v541_v61 }
  0xbd   : > { %v463_v56 = vpop.xlane.xlu0 %462  ;;  %1626 = vpow2.f32 %v1378_v50  ;;  %v528_v60 = vadd.f32 %v1976_v36, %v465_v55  ;;  %v651_v8 = vadd.f32 1.0, %v1615_v58 }
  0xbe   : > { %1628 = vpow2.f32 %v1376_v48  ;;  %v527_v12 = vadd.f32 %v1976_v36, %v463_v56  ;;  %v1599_v48 = vld [vmem:[%s2218_s4 + $0x18] sm:$0xff]  }
  0xbf   : > { %v1364_v3 = vmul.f32 -1.442695, %v528_v60  ;;  %1630 = vrcp.f32 %v666_v53  ;;  %1511 = vmatprep.subr.bf16.mxu0 %v1599_v48  ;;  %1556 = vmatprep.subr.bf16.mxu1 %v1599_v48 }
  0xc0   : > { %v497_v10 = vpop.xlane.xlu1 %496  ;;  %v1363_v38 = vmul.f32 -1.442695, %v527_v12  ;;  %1512 = vmatpush3.bf16.msra.mxu0 %v1599_v48  ;;  %1564 = vmatpush3.bf16.msra.mxu1 %v1599_v48 }
  0xc1   : > { %v495_v14 = vpop.xlane.xlu0 %494  ;;  %v1617_v18 = vpop.eup %1616  ;;  %1632 = vpow2.f32 %v1364_v3  ;;  %v544_v21 = vadd.f32 %v1976_v36, %v497_v10 }
  0xc2   : > { %747 = vperm.xlu0 %1594, %v1617_v18   ;;  %1634 = vpow2.f32 %v1361_v63  ;;  %v543_v40 = vadd.f32 %v1976_v36, %v495_v14 }
  0xc3   : > { %v1619_v30 = vpop.eup %1618  ;;  %1636 = vrcp.f32 %v652_v1  ;;  %v1380_v31 = vmul.f32 -1.442695, %v544_v21 }
  0xc4   : > { %v1621_v33 = vpop.eup %1620  ;;  %v654_v35 = vadd.f32 1.0, %v1619_v30  ;;  %1638 = vrcp.f32 %v651_v8  ;;  %v469_v2 = vpop.xlane.xlu1 %468  ;;  %v1379_v58 = vmul.f32 -1.442695, %v543_v40  ;;  %v1600_v8 = vld [vmem:[%s2218_s4 + $0x20] sm:$0xff]  }
  0xc5   : > { %v467_v41 = vpop.xlane.xlu0 %466  ;;  %v1623_v43 = vpop.eup %1622  ;;  %v530_v45 = vadd.f32 %v1976_v36, %v469_v2  ;;  %1640 = vpow2.f32 %v1377_v23  ;;  %v667_v51 = vadd.f32 1.0, %v1621_v33  ;;  %1513 = vmatprep.subr.bf16.mxu0 %v1600_v8  ;;  %1557 = vmatprep.subr.bf16.mxu1 %v1600_v8  ;;  %v1601_v2 = vld [vmem:[%s2218_s4 + $0x28] sm:$0xff]  }
  0xc6   : > { %v1625_v46 = vpop.eup %1624  ;;  %1642 = vrcp.f32 %v654_v35  ;;  %752 = vperm.xlu1 %1595, %v1623_v43   ;;  %v529_v3 = vadd.f32 %v1976_v36, %v467_v41  ;;  %1514 = vmatpush3.bf16.msra.mxu0 %v1600_v8 }
  0xc7   : > { %v1627_v50 = vpop.eup %1626  ;;  %1644 = vpow2.f32 %v1380_v31  ;;  %v1366_v53 = vmul.f32 -1.442695, %v530_v45  ;;  %1565 = vmatpush3.bf16.msra.mxu1 %v1600_v8  ;;  %1515 = vmatprep.subr.bf16.mxu0 %v1601_v2 }
  0xc8   : > { %v670_v55 = vadd.f32 1.0, %v1627_v50  ;;  %v501_v56 = vpop.xlane.xlu1 %500  ;;  %1646 = vpow2.f32 %v1363_v38  ;;  %v1629_v61 = vpop.eup %1628  ;;  %v1365_v35 = vmul.f32 -1.442695, %v529_v3  ;;  %1558 = vmatprep.subr.bf16.mxu1 %v1601_v2 }
  0xc9   : > { %v499_v60 = vpop.xlane.xlu0 %498  ;;  %1648 = vpow2.f32 %v1366_v53  ;;  %v546_v63 = vadd.f32 %v1976_v36, %v501_v56  ;;  %v1631_v1 = vpop.eup %1630  ;;  %v668_v18 = vadd.f32 1.0, %v1629_v61 }
  0xca   : > { %1650 = vrcp.f32 %v670_v55  ;;  %827 = vperm.xlu1 %1595, %v1625_v46   ;;  %v545_v46 = vadd.f32 %v1976_v36, %v499_v60  ;;  %1516 = vmatpush3.bf16.msra.mxu0 %v1601_v2  ;;  %v1602_v60 = vld [vmem:[%s2218_s4 + $0x30] sm:$0xff]  }
  0xcb   : > { %v1633_v10 = vpop.eup %1632  ;;  %1652 = vrcp.f32 %v667_v51  ;;  %v1382_v12 = vmul.f32 -1.442695, %v546_v63  ;;  %1566 = vmatpush3.bf16.msra.mxu1 %v1601_v2  ;;  %1517 = vmatprep.subr.bf16.mxu0 %v1602_v60 }
  0xcc   : > { %v1635_v14 = vpop.eup %1634  ;;  %v656_v21 = vadd.f32 1.0, %v1633_v10  ;;  %v473_v23 = vpop.xlane.xlu1 %472  ;;  %1654 = vpow2.f32 %v1379_v58  ;;  %v1381_v8 = vmul.f32 -1.442695, %v545_v46  ;;  %1559 = vmatprep.subr.bf16.mxu1 %v1602_v60 }
  0xcd   : > { %v471_v26 = vpop.xlane.xlu0 %470  ;;  %v1637_v30 = vpop.eup %1636  ;;  %1656 = vpow2.f32 %v1382_v12  ;;  %v532_v31 = vadd.f32 %v1976_v36, %v473_v23  ;;  %v653_v40 = vadd.f32 1.0, %v1635_v14 }
  0xce   : > { %v1639_v33 = vpop.eup %1638  ;;  %1658 = vrcp.f32 %v656_v21  ;;  %832 = vperm.xlu1 %1595, %v1631_v1   ;;  %v531_v10 = vadd.f32 %v1976_v36, %v471_v26  ;;  %1518 = vmatpush3.bf16.msra.mxu0 %v1602_v60 }
  0xcf   : > { %v1641_v38 = vpop.eup %1640  ;;  %v1368_v41 = vmul.f32 -1.442695, %v532_v31  ;;  %1660 = vrcp.f32 %v668_v18  ;;  %1567 = vmatpush3.bf16.msra.mxu1 %v1602_v60 }
  0xd0   : > { %v1643_v43 = vpop.eup %1642  ;;  %v505_v45 = vpop.xlane.xlu1 %504  ;;  %v669_v58 = vadd.f32 1.0, %v1641_v38 }
  0xd1   : > { %v503_v48 = vpop.xlane.xlu0 %502  ;;  %v1645_v50 = vpop.eup %1644  ;;  %1662 = vpow2.f32 %v1368_v41  ;;  %v548_v51 = vadd.f32 %v1976_v36, %v505_v45  ;;  %772 = vperm.xlu0 %1594, %v1643_v43  }
  0xd2   : > { %v1647_v53 = vpop.eup %1646  ;;  %v672_v55 = vadd.f32 1.0, %v1645_v50  ;;  %757 = vperm.xlu1 %1595, %v1639_v33   ;;  %1664 = vpow2.f32 %v1365_v35  ;;  %v1603_v35 = vld [vmem:[%s2218_s4 + $0x38] sm:$0xff]   ;;  %v547_v41 = vadd.f32 %v1976_v36, %v503_v48 }
  0xd3   : > { %v1649_v56 = vpop.eup %1648  ;;  %1666 = vrcp.f32 %v653_v40  ;;  %v1384_v61 = vmul.f32 -1.442695, %v548_v51  ;;  %v655_v31 = vadd.f32 1.0, %v1647_v53  ;;  %v1367_v40 = vmul.f32 -1.442695, %v531_v10  ;;  %1519 = vmatprep.subr.bf16.mxu0 %v1603_v35  ;;  %1560 = vmatprep.subr.bf16.mxu1 %v1603_v35 }
  0xd4   : > { %v1651_v63 = vpop.eup %1650  ;;  %1668 = vrcp.f32 %v672_v55  ;;  %v658_v1 = vadd.f32 1.0, %v1649_v56  ;;  %v477_v3 = vpop.xlane.xlu1 %476  ;;  %1520 = vmatpush3.bf16.msra.mxu0 %v1603_v35  ;;  %v1383_v48 = vmul.f32 -1.442695, %v547_v41  ;;  %1568 = vmatpush3.bf16.msra.mxu1 %v1603_v35 }
  0xd5   : > { %v475_v12 = vpop.xlane.xlu0 %474  ;;  %v1653_v14 = vpop.eup %1652  ;;  %1670 = vpow2.f32 %v1384_v61  ;;  %v534_v18 = vadd.f32 %v1976_v36, %v477_v3  ;;  %852 = vperm.xlu0 %1594, %v1651_v63  }
  0xd6   : > { %v1655_v21 = vpop.eup %1654  ;;  %1672 = vrcp.f32 %v658_v1  ;;  %762 = vperm.xlu1 %1595, %v1637_v30  }
  0xd7   : > { %v1657_v23 = vpop.eup %1656  ;;  %1674 = vrcp.f32 %v669_v58  ;;  %v1370_v33 = vmul.f32 -1.442695, %v534_v18  ;;  %v671_v50 = vadd.f32 1.0, %v1655_v21  ;;  %v533_v58 = vadd.f32 %v1976_v36, %v475_v12 }
  0xd8   : > { %v1659_v26 = vpop.eup %1658  ;;  %v674_v2 = vadd.f32 1.0, %v1657_v23  ;;  %v509_v38 = vpop.xlane.xlu1 %508  ;;  %1676 = vpow2.f32 %v1381_v8 }
  0xd9   : > { %1678 = vpow2.f32 %v1370_v33  ;;  %v550_v30 = vadd.f32 %v1976_v36, %v509_v38  ;;  %782 = vperm.xlu0 %1594, %v1659_v26   ;;  %v507_v43 = vpop.xlane.xlu0 %506  ;;  %v1661_v45 = vpop.eup %1660  ;;  %v1369_v23 = vmul.f32 -1.442695, %v533_v58 }
  0xda   : > { %1680 = vrcp.f32 %v674_v2  ;;  %837 = vperm.xlu1 %1595, %v1653_v14   ;;  %v549_v12 = vadd.f32 %v1976_v36, %v507_v43 }
  0xdb   : > { %v1663_v46 = vpop.eup %1662  ;;  %1682 = vrcp.f32 %v655_v31  ;;  %v1386_v51 = vmul.f32 -1.442695, %v550_v30 }
  0xdc   : > { %v1665_v53 = vpop.eup %1664  ;;  %v660_v55 = vadd.f32 1.0, %v1663_v46  ;;  %v481_v56 = vpop.xlane.xlu1 %480  ;;  %1684 = vpow2.f32 %v1367_v40  ;;  %v1385_v41 = vmul.f32 -1.442695, %v549_v12 }
  0xdd   : > { %v1667_v61 = vpop.eup %1666  ;;  %1686 = vpow2.f32 %v1386_v51  ;;  %v536_v60 = vadd.f32 %v1976_v36, %v481_v56  ;;  %v657_v3 = vadd.f32 1.0, %v1665_v53  ;;  %v479_v10 = vpop.xlane.xlu0 %478 }
  0xde   : > { %v1669_v63 = vpop.eup %1668  ;;  %1688 = vrcp.f32 %v660_v55  ;;  %842 = vperm.xlu1 %1595, %v1661_v45   ;;  %v535_v30 = vadd.f32 %v1976_v36, %v479_v10 }
  0xdf   : > { %v1671_v1 = vpop.eup %1670  ;;  %1690 = vrcp.f32 %v671_v50  ;;  %v1372_v8 = vmul.f32 -1.442695, %v536_v60  ;;  %862 = vperm.xlu0 %1594, %v1669_v63  }
  0xe0   : > { %v1673_v14 = vpop.eup %1672  ;;  %v676_v18 = vadd.f32 1.0, %v1671_v1  ;;  %v513_v21 = vpop.xlane.xlu1 %512  ;;  %1692 = vpow2.f32 %v1383_v48  ;;  %v1371_v56 = vmul.f32 -1.442695, %v535_v30 }
  0xe1   : > { %v1675_v31 = vpop.eup %1674  ;;  %1694 = vpow2.f32 %v1372_v8  ;;  %v552_v33 = vadd.f32 %v1976_v36, %v513_v21  ;;  %v511_v43 = vpop.xlane.xlu0 %510 }
  0xe2   : > { %v1677_v35 = vpop.eup %1676  ;;  %1696 = vrcp.f32 %v676_v18  ;;  %767 = vperm.xlu1 %1595, %v1667_v61   ;;  %v551_v48 = vadd.f32 %v1976_v36, %v511_v43 }
  0xe3   : > { %v1679_v26 = vpop.eup %1678  ;;  %1698 = vrcp.f32 %v657_v3  ;;  %v1388_v2 = vmul.f32 -1.442695, %v552_v33  ;;  %792 = vperm.xlu0 %1594, %v1673_v14   ;;  %v673_v46 = vadd.f32 1.0, %v1677_v35 }
  0xe4   : > { %v1681_v38 = vpop.eup %1680  ;;  %v662_v40 = vadd.f32 1.0, %v1679_v26  ;;  %1700 = vpow2.f32 %v1369_v23  ;;  %v1387_v8 = vmul.f32 -1.442695, %v551_v48 }
  0xe5   : > { %v1683_v45 = vpop.eup %1682  ;;  %1702 = vpow2.f32 %v1388_v2 }
  0xe6   : > { %v1685_v50 = vpop.eup %1684  ;;  %1704 = vrcp.f32 %v662_v40  ;;  %847 = vperm.xlu1 %1595, %v1675_v31  }
  0xe7   : > { %v1687_v51 = vpop.eup %1686  ;;  %872 = vperm.xlu0 %1594, %v1681_v38   ;;  %1706 = vpow2.f32 %v1385_v41  ;;  %v659_v61 = vadd.f32 1.0, %v1685_v50 }
  0xe8   : > { %v1689_v53 = vpop.eup %1688  ;;  %v678_v55 = vadd.f32 1.0, %v1687_v51  ;;  %1708 = vrcp.f32 %v673_v46 }
  0xe9   : > { %v1691_v58 = vpop.eup %1690 }
  0xea   : > { %v1693_v60 = vpop.eup %1692  ;;  %1710 = vrcp.f32 %v678_v55  ;;  %777 = vperm.xlu1 %1595, %v1683_v45  }
  0xeb   : > { %v1695_v63 = vpop.eup %1694  ;;  %802 = vperm.xlu0 %1594, %v1689_v53   ;;  %1712 = vpow2.f32 %v1371_v56  ;;  %v675_v14 = vadd.f32 1.0, %v1693_v60  ;;  %v2032_v56 = vld [vmem:[%s296_s29] ss:$0 sm:$0xff] }
  0xec   : > { %v1697_v1 = vpop.eup %1696  ;;  %v664_v3 = vadd.f32 1.0, %v1695_v63  ;;  %1714 = vrcp.f32 %v659_v61  ;;  %v379_v61 = vmul.f32 %v1830_v5, %v2032_v56  ;;  %v380_v60 = vmul.f32 %v1834_v7, %v2032_v56 }
  0xed   : > { %v1699_v10 = vpop.eup %1698 }
  0xee   : > { %v1701_v18 = vpop.eup %1700  ;;  %1716 = vrcp.f32 %v664_v3  ;;  %857 = vperm.xlu1 %1595, %v1691_v58  }
  0xef   : > { %v1703_v21 = vpop.eup %1702  ;;  %882 = vperm.xlu0 %1594, %v1697_v1   ;;  %1718 = vpow2.f32 %v1387_v8  ;;  %v661_v12 = vadd.f32 1.0, %v1701_v18 }
  0xf0   : > { %v1705_v36 = vpop.eup %1704  ;;  %v680_v23 = vadd.f32 1.0, %v1703_v21  ;;  %1720 = vrcp.f32 %v675_v14  ;;  %v395_v21 = vmul.f32 %v1828_v4, %v2032_v56 }
  0xf1   : > { %v1707_v31 = vpop.eup %1706 }
  0xf2   : > { %1722 = vrcp.f32 %v680_v23  ;;  %787 = vperm.xlu1 %1595, %v1699_v10   ;;  %v1709_v33 = vpop.eup %1708  ;;  %v677_v26 = vadd.f32 1.0, %v1707_v31 }
  0xf3   : > { %812 = vperm.xlu0 %1594, %v1705_v36   ;;  %1724 = vrcp.f32 %v661_v12  ;;  %v396_v36 = vmul.f32 %v1832_v6, %v2032_v56 }
  0xf4   : > { %v1711_v35 = vpop.eup %1710  ;;  %1726 = vrcp.f32 %v677_v26  ;;  %v381_v26 = vmul.f32 %v1848_v15, %v2032_v56 }
  0xf5   : > { %v1713_v2 = vpop.eup %1712 }
  0xf6   : > { %867 = vperm.xlu1 %1595, %v1709_v33   ;;  %v1715_v38 = vpop.eup %1714  ;;  %v663_v41 = vadd.f32 1.0, %v1713_v2 }
  0xf7   : > { %892 = vperm.xlu0 %1594, %v1711_v35  }
  0xf8   : > { %v1717_v40 = vpop.eup %1716  ;;  %1728 = vrcp.f32 %v663_v41 }
  0xf9   : > { %v1719_v30 = vpop.eup %1718 }
  0xfa   : > { %797 = vperm.xlu1 %1595, %v1715_v38   ;;  %v1721_v45 = vpop.eup %1720  ;;  %v679_v43 = vadd.f32 1.0, %v1719_v30 }
  0xfb   : > { %822 = vperm.xlu0 %1594, %v1717_v40  }
  0xfc   : > { %v1723_v46 = vpop.eup %1722  ;;  %1730 = vrcp.f32 %v679_v43 }
  0xfd   : > { %v1725_v50 = vpop.eup %1724 }
  0xfe   : > { %877 = vperm.xlu1 %1595, %v1721_v45   ;;  %v1727_v51 = vpop.eup %1726 }
  0xff   : > { %902 = vperm.xlu0 %1594, %v1723_v46  }
 0x102   : > { %807 = vperm.xlu1 %1595, %v1725_v50   ;;  %v1729_v53 = vpop.eup %1728  ;;  %v397_v50 = vmul.f32 %v1856_v19, %v2032_v56 }
 0x106   : > { %887 = vperm.xlu1 %1595, %v1727_v51   ;;  %v1731_v55 = vpop.eup %1730 }
 0x10a   : > { %817 = vperm.xlu1 %1595, %v1729_v53  }
 0x10e   : > { %897 = vperm.xlu1 %1595, %v1731_v55  }
 0x141   : > { %v748_v48 = vpop.permute.xlu0 %747 }
 0x142   : > { %v905_v58 = vmul.f32 %v1830_v5, %v748_v48 }
 0x144   : > { %v937_v3 = vadd.f32 %v905_v58, %v379_v61 }
 0x145   : > { %v753_v63 = vpop.permute.xlu1 %752 }
 0x146   : > { %v906_v1 = vmul.f32 %v1834_v7, %v753_v63  ;;  %v383_v63 = vmul.f32 %v1865_v24, %v2032_v56 }
 0x148   : > { %v938_v8 = vadd.f32 %v906_v1, %v380_v60 }
 0x149   : > { %v828_v10 = vpop.permute.xlu1 %827 }
 0x14a   : > { %v969_v14 = vpack.c.bf16 %v938_v8, %v937_v3  ;;  %v921_v18 = vmul.f32 %v1828_v4, %v828_v10  ;;  %v382_v4 = vmul.f32 %v1845_v13, %v2032_v56  ;;  %v400_v10 = vmul.f32 %v1870_v27, %v2032_v56 }
 0x14c   : > { %1521 = vmatprep.mubr.bf16.mxu0 %v969_v14  ;;  %v953_v31 = vadd.f32 %v921_v18, %v395_v21 }
 0x14d   : > { %v833_v5 = vpop.permute.xlu1 %832 }
 0x14e   : > { %v922_v23 = vmul.f32 %v1832_v6, %v833_v5 }
 0x150   : > { %v773_v12 = vpop.permute.xlu0 %772  ;;  %v954_v33 = vadd.f32 %v922_v23, %v396_v36 }
 0x151   : > { %v758_v7 = vpop.permute.xlu1 %757  ;;  %v910_v58 = vmul.f32 %v1861_v22, %v773_v12 }
 0x152   : > { %v977_v35 = vpack.c.bf16 %v954_v33, %v953_v31  ;;  %v907_v2 = vmul.f32 %v1848_v15, %v758_v7  ;;  %v398_v15 = vmul.f32 %v1852_v17, %v2032_v56 }
 0x154   : > { %1537 = vmatprep.mubr.bf16.mxu1 %v977_v35  ;;  %v853_v38 = vpop.permute.xlu0 %852  ;;  %v939_v30 = vadd.f32 %v907_v2, %v381_v26 }
 0x155   : > { %v763_v40 = vpop.permute.xlu1 %762  ;;  %v926_v14 = vmul.f32 %v1870_v27, %v853_v38  ;;  %v385_v27 = vmul.f32 %v1883_v34, %v2032_v56 }
 0x156   : > { %v908_v41 = vmul.f32 %v1845_v13, %v763_v40  ;;  %v384_v13 = vmul.f32 %v1861_v22, %v2032_v56  ;;  %v399_v22 = vmul.f32 %v1874_v29, %v2032_v56 }
 0x157   : > { %v958_v12 = vadd.f32 %v926_v14, %v400_v10 }
 0x158   : > { %v940_v6 = vadd.f32 %v908_v41, %v382_v4  ;;  %v783_v45 = vpop.permute.xlu0 %782 }
 0x159   : > { %v838_v46 = vpop.permute.xlu1 %837  ;;  %v912_v31 = vmul.f32 %v1879_v32, %v783_v45 }
 0x15a   : > { %v970_v43 = vpack.c.bf16 %v940_v6, %v939_v30  ;;  %v923_v51 = vmul.f32 %v1856_v19, %v838_v46 }
 0x15c   : > { %1522 = vmatmul.mubr.bf16.vlgmr.msra.gmra.mrb[0].mxu0 %v970_v43  ;;  %v955_v61 = vadd.f32 %v923_v51, %v397_v50 }
 0x15d   : > { %v843_v53 = vpop.permute.xlu1 %842 }
 0x15e   : > { %v924_v55 = vmul.f32 %v1852_v17, %v843_v53  ;;  %v863_v48 = vpop.permute.xlu0 %862  ;;  %v942_v17 = vadd.f32 %v910_v58, %v384_v13 }
 0x15f   : > { %v928_v38 = vmul.f32 %v1888_v37, %v863_v48 }
 0x160   : > { %v956_v60 = vadd.f32 %v924_v55, %v398_v15 }
 0x161   : > { %v768_v1 = vpop.permute.xlu1 %767 }
 0x162   : > { %v909_v19 = vmul.f32 %v1865_v24, %v768_v1  ;;  %v793_v3 = vpop.permute.xlu0 %792  ;;  %v978_v8 = vpack.c.bf16 %v956_v60, %v955_v61  ;;  %v386_v24 = vmul.f32 %v1879_v32, %v2032_v56  ;;  %v401_v32 = vmul.f32 %v1892_v39, %v2032_v56 }
 0x163   : > { %v914_v46 = vmul.f32 %v1897_v42, %v793_v3 }
 0x164   : > { %v941_v18 = vadd.f32 %v909_v19, %v383_v63  ;;  %1538 = vmatmul.mubr.bf16.vlgmr.msra.gmra.mrb[0].mxu1 %v978_v8  ;;  %v944_v4 = vadd.f32 %v912_v31, %v386_v24  ;;  %v390_v63 = vmul.f32 %v1915_v52, %v2032_v56 }
 0x165   : > { %v848_v21 = vpop.permute.xlu1 %847 }
 0x166   : > { %v925_v36 = vmul.f32 %v1874_v29, %v848_v21  ;;  %v873_v5 = vpop.permute.xlu0 %872  ;;  %v971_v23 = vpack.c.bf16 %v942_v17, %v941_v18  ;;  %v402_v29 = vmul.f32 %v1888_v37, %v2032_v56  ;;  %v387_v37 = vmul.f32 %v1901_v44, %v2032_v56 }
 0x167   : > { %v930_v48 = vmul.f32 %v1906_v47, %v873_v5 }
 0x168   : > { %v957_v33 = vadd.f32 %v925_v36, %v399_v22  ;;  %1525 = vmatprep.mubr.bf16.mxu0 %v971_v23  ;;  %v960_v45 = vadd.f32 %v928_v38, %v402_v29 }
 0x169   : > { %v778_v7 = vpop.permute.xlu1 %777 }
 0x16a   : > { %v911_v35 = vmul.f32 %v1883_v34, %v778_v7  ;;  %v979_v26 = vpack.c.bf16 %v958_v12, %v957_v33  ;;  %v803_v2 = vpop.permute.xlu0 %802  ;;  %v388_v34 = vmul.f32 %v1897_v42, %v2032_v56  ;;  %v403_v42 = vmul.f32 %v1910_v49, %v2032_v56 }
 0x16b   : > { %v916_v19 = vmul.f32 %v1915_v52, %v803_v2  ;;  %v405_v52 = vmul.f32 %v1928_v59, %v2032_v56 }
 0x16c   : > { %v943_v40 = vadd.f32 %v911_v35, %v385_v27  ;;  %1541 = vmatprep.mubr.bf16.mxu1 %v979_v26  ;;  %v946_v55 = vadd.f32 %v914_v46, %v388_v34  ;;  %v408_v35 = vmul.f32 %v1942_v9, %v2032_v56 }
 0x16d   : > { %v858_v41 = vpop.permute.xlu1 %857  ;;  %v948_v14 = vadd.f32 %v916_v19, %v390_v63 }
 0x16e   : > { %v927_v30 = vmul.f32 %v1892_v39, %v858_v41  ;;  %v972_v6 = vpack.c.bf16 %v944_v4, %v943_v40  ;;  %v883_v50 = vpop.permute.xlu0 %882  ;;  %v404_v39 = vmul.f32 %v1906_v47, %v2032_v56  ;;  %v389_v47 = vmul.f32 %v1919_v54, %v2032_v56 }
 0x16f   : > { %v932_v18 = vmul.f32 %v1924_v57, %v883_v50 }
 0x170   : > { %v959_v43 = vadd.f32 %v927_v30, %v401_v32  ;;  %1526 = vmatmul.mubr.bf16.gmra.mrb[4].mxu0 %v972_v6  ;;  %v962_v1 = vadd.f32 %v930_v48, %v404_v39  ;;  %v2134_v48 = vld [vmem:[%s2219_s5] ss:$0 sm:$0xff] }
 0x171   : > { %v788_v51 = vpop.permute.xlu1 %787 }
 0x172   : > { %v913_v15 = vmul.f32 %v1901_v44, %v788_v51  ;;  %v980_v53 = vpack.c.bf16 %v960_v45, %v959_v43  ;;  %v813_v44 = vpop.permute.xlu0 %812 }
 0x173   : > { %v918_v12 = vmul.f32 %v1933_v62, %v813_v44 }
 0x174   : > { %v945_v13 = vadd.f32 %v913_v15, %v387_v37  ;;  %1542 = vmatmul.mubr.bf16.gmra.mrb[4].mxu1 %v980_v53 }
 0x175   : > { %v868_v58 = vpop.permute.xlu1 %867 }
 0x176   : > { %v929_v61 = vmul.f32 %v1910_v49, %v868_v58  ;;  %v973_v60 = vpack.c.bf16 %v946_v55, %v945_v13  ;;  %v406_v49 = vmul.f32 %v1924_v57, %v2032_v56  ;;  %v893_v21 = vpop.permute.xlu0 %892  ;;  %v391_v57 = vmul.f32 %v1937_v0, %v2032_v56 }
 0x177   : > { %v934_v29 = vmul.f32 %v1942_v9, %v893_v21  ;;  %v393_v9 = vmul.f32 %v1955_v20, %v2032_v56 }
 0x178   : > { %v961_v3 = vadd.f32 %v929_v61, %v403_v42  ;;  %1529 = vmatprep.mubr.bf16.mxu0 %v973_v60  ;;  %v964_v24 = vadd.f32 %v932_v18, %v406_v49 }
 0x179   : > { %v798_v8 = vpop.permute.xlu1 %797  ;;  %v966_v32 = vadd.f32 %v934_v29, %v408_v35 }
 0x17a   : > { %v915_v10 = vmul.f32 %v1919_v54, %v798_v8  ;;  %v981_v17 = vpack.c.bf16 %v962_v1, %v961_v3  ;;  %v392_v54 = vmul.f32 %v1933_v62, %v2032_v56  ;;  %v407_v62 = vmul.f32 %v1946_v11, %v2032_v56 }
 0x17c   : > { %v947_v22 = vadd.f32 %v915_v10, %v389_v47  ;;  %1545 = vmatprep.mubr.bf16.mxu1 %v981_v17  ;;  %v950_v26 = vadd.f32 %v918_v12, %v392_v54 }
 0x17d   : > { %v878_v36 = vpop.permute.xlu1 %877 }
 0x17e   : > { %v931_v5 = vmul.f32 %v1928_v59, %v878_v36  ;;  %v974_v23 = vpack.c.bf16 %v948_v14, %v947_v22  ;;  %v823_v59 = vpop.permute.xlu0 %822 }
 0x17f   : > { %v920_v41 = vmul.f32 %v1951_v16, %v823_v59 }
 0x180   : > { %v963_v31 = vadd.f32 %v931_v5, %v405_v52  ;;  %1530 = vmatmul.mubr.bf16.gmra.mrb[8].mxu0 %v974_v23 }
 0x181   : > { %v808_v33 = vpop.permute.xlu1 %807 }
 0x182   : > { %v917_v27 = vmul.f32 %v1937_v0, %v808_v33  ;;  %v982_v7 = vpack.c.bf16 %v964_v24, %v963_v31  ;;  %v394_v0 = vmul.f32 %v1951_v16, %v2032_v56  ;;  %v903_v6 = vpop.permute.xlu0 %902  ;;  %v409_v16 = vmul.f32 %v1964_v28, %v2032_v56 }
 0x183   : > { %v936_v37 = vmul.f32 %v1960_v25, %v903_v6 }
 0x184   : > { %v949_v2 = vadd.f32 %v917_v27, %v391_v57  ;;  %1546 = vmatmul.mubr.bf16.gmra.mrb[8].mxu1 %v982_v7  ;;  %v952_v43 = vadd.f32 %v920_v41, %v394_v0 }
 0x185   : > { %v888_v4 = vpop.permute.xlu1 %887 }
 0x186   : > { %v933_v38 = vmul.f32 %v1946_v11, %v888_v4  ;;  %v975_v40 = vpack.c.bf16 %v950_v26, %v949_v2  ;;  %v410_v11 = vmul.f32 %v1960_v25, %v2032_v56 }
 0x188   : > { %v965_v30 = vadd.f32 %v933_v38, %v407_v62  ;;  %1533 = vmatprep.mubr.bf16.mxu0 %v975_v40  ;;  %v968_v39 = vadd.f32 %v936_v37, %v410_v11 }
 0x189   : > { %v818_v34 = vpop.permute.xlu1 %817 }
 0x18a   : > { %v919_v45 = vmul.f32 %v1955_v20, %v818_v34  ;;  %v983_v46 = vpack.c.bf16 %v966_v32, %v965_v30 }
 0x18c   : > { %v951_v50 = vadd.f32 %v919_v45, %v393_v9  ;;  %1549 = vmatprep.mubr.bf16.mxu1 %v983_v46 }
 0x18d   : > { %v898_v51 = vpop.permute.xlu1 %897 }
 0x18e   : > { %v935_v15 = vmul.f32 %v1964_v28, %v898_v51  ;;  %v976_v53 = vpack.c.bf16 %v952_v43, %v951_v50 }
 0x190   : > { %v967_v55 = vadd.f32 %v935_v15, %v409_v16  ;;  %1534 = vmatmul.mubr.bf16.gmra.mrb[12].mxu0 %v976_v53 }
 0x192   : > { %v984_v20 = vpack.c.bf16 %v968_v39, %v967_v55 }
 0x194   : > { %1550 = vmatmul.mubr.bf16.gmra.mrb[12].mxu1 %v984_v20 }
 0x22f   : > { %v1523_v25 = vpop.f32.mrb[0].mxu0 }
 0x230   : > { %v1099_v28 = vadd.f32 %v1523_v25, %v2134_v48  ;;  %v1090_v56 = vpop.f32.mrb[1].mxu0 }
 0x231   : > { %v1091_v13 = vadd.f32 %v2134_v48, %v1090_v56  ;;  %v1524_v42 = vpop.f32.mrb[2].mxu0 }
 0x232   : > { %1219 = vst [vmem:[%s2139_s11 + $0x10] sm:$0xff] %v1099_v28  ;;  %v1102_v58 = vadd.f32 %v1524_v42, %v2134_v48  ;;  %v1093_v61 = vpop.f32.mrb[3].mxu0 }
 0x233   : > { %1217 = vst [vmem:[%s2139_s11] sm:$0xff] %v1091_v13  ;;  %v1094_v60 = vadd.f32 %v2134_v48, %v1093_v61 }
 0x234   : > { %1220 = vst [vmem:[%s2139_s11 + $0x18] sm:$0xff] %v1102_v58 }
 0x235   : > { %1218 = vst [vmem:[%s2139_s11 + $0x8] sm:$0xff] %v1094_v60 }
 0x237   : > { %v1539_v63 = vpop.f32.mrb[0].mxu1 }
 0x238   : > { %v1163_v44 = vadd.f32 %v1539_v63, %v2134_v48  ;;  %v1154_v1 = vpop.f32.mrb[1].mxu1 }
 0x239   : > { %v1155_v19 = vadd.f32 %v2134_v48, %v1154_v1  ;;  %v1540_v3 = vpop.f32.mrb[2].mxu1 }
 0x23a   : > { %1235 = vst [vmem:[%s2139_s11 + $0x90] sm:$0xff] %v1163_v44  ;;  %v1166_v47 = vadd.f32 %v1540_v3, %v2134_v48  ;;  %v1157_v8 = vpop.f32.mrb[3].mxu1 }
 0x23b   : > { %1233 = vst [vmem:[%s2139_s11 + $0x80] sm:$0xff] %v1155_v19  ;;  %v1158_v10 = vadd.f32 %v2134_v48, %v1157_v8 }
 0x23c   : > { %1236 = vst [vmem:[%s2139_s11 + $0x98] sm:$0xff] %v1166_v47 }
 0x23d   : > { %1234 = vst [vmem:[%s2139_s11 + $0x88] sm:$0xff] %v1158_v10 }
 0x243   : > { %v1527_v17 = vpop.f32.mrb[4].mxu0 }
 0x244   : > { %v1115_v49 = vadd.f32 %v1527_v17, %v2134_v48  ;;  %v1106_v14 = vpop.f32.mrb[5].mxu0 }
 0x245   : > { %v1107_v18 = vadd.f32 %v2134_v48, %v1106_v14  ;;  %v1528_v22 = vpop.f32.mrb[6].mxu0 }
 0x246   : > { %1223 = vst [vmem:[%s2139_s11 + $0x30] sm:$0xff] %v1115_v49  ;;  %v1118_v52 = vadd.f32 %v1528_v22, %v2134_v48  ;;  %v1109_v21 = vpop.f32.mrb[7].mxu0 }
 0x247   : > { %1221 = vst [vmem:[%s2139_s11 + $0x20] sm:$0xff] %v1107_v18  ;;  %v1110_v36 = vadd.f32 %v2134_v48, %v1109_v21  ;;  %v1543_v5 = vpop.f32.mrb[4].mxu1 }
 0x248   : > { %1224 = vst [vmem:[%s2139_s11 + $0x38] sm:$0xff] %v1118_v52  ;;  %v1179_v23 = vadd.f32 %v1543_v5, %v2134_v48  ;;  %v1170_v54 = vpop.f32.mrb[5].mxu1 }
 0x249   : > { %1222 = vst [vmem:[%s2139_s11 + $0x28] sm:$0xff] %v1110_v36  ;;  %v1171_v24 = vadd.f32 %v2134_v48, %v1170_v54  ;;  %v1544_v12 = vpop.f32.mrb[6].mxu1 }
 0x24a   : > { %1239 = vst [vmem:[%s2139_s11 + $0xb0] sm:$0xff] %v1179_v23  ;;  %v1182_v31 = vadd.f32 %v1544_v12, %v2134_v48  ;;  %v1173_v57 = vpop.f32.mrb[7].mxu1 }
 0x24b   : > { %1237 = vst [vmem:[%s2139_s11 + $0xa0] sm:$0xff] %v1171_v24  ;;  %v1174_v33 = vadd.f32 %v2134_v48, %v1173_v57 }
 0x24c   : > { %1240 = vst [vmem:[%s2139_s11 + $0xb8] sm:$0xff] %v1182_v31 }
 0x24d   : > { %1238 = vst [vmem:[%s2139_s11 + $0xa8] sm:$0xff] %v1174_v33 }
 0x253   : > { %v1531_v27 = vpop.f32.mrb[8].mxu0 }
 0x254   : > { %v1131_v7 = vadd.f32 %v1531_v27, %v2134_v48  ;;  %v1122_v35 = vpop.f32.mrb[9].mxu0 }
 0x255   : > { %v1123_v59 = vadd.f32 %v2134_v48, %v1122_v35  ;;  %v1532_v26 = vpop.f32.mrb[10].mxu0 }
 0x256   : > { %1227 = vst [vmem:[%s2139_s11 + $0x50] sm:$0xff] %v1131_v7  ;;  %v1134_v29 = vadd.f32 %v1532_v26, %v2134_v48  ;;  %v1125_v2 = vpop.f32.mrb[11].mxu0 }
 0x257   : > { %1225 = vst [vmem:[%s2139_s11 + $0x40] sm:$0xff] %v1123_v59  ;;  %v1126_v62 = vadd.f32 %v2134_v48, %v1125_v2  ;;  %v1547_v4 = vpop.f32.mrb[8].mxu1 }
 0x258   : > { %1228 = vst [vmem:[%s2139_s11 + $0x58] sm:$0xff] %v1134_v29  ;;  %v1195_v38 = vadd.f32 %v1547_v4, %v2134_v48  ;;  %v1186_v40 = vpop.f32.mrb[9].mxu1 }
 0x259   : > { %1226 = vst [vmem:[%s2139_s11 + $0x48] sm:$0xff] %v1126_v62  ;;  %v1187_v0 = vadd.f32 %v2134_v48, %v1186_v40  ;;  %v1548_v32 = vpop.f32.mrb[10].mxu1 }
 0x25a   : > { %1243 = vst [vmem:[%s2139_s11 + $0xd0] sm:$0xff] %v1195_v38  ;;  %v1198_v41 = vadd.f32 %v1548_v32, %v2134_v48  ;;  %v1189_v30 = vpop.f32.mrb[11].mxu1 }
 0x25b   : > { %1241 = vst [vmem:[%s2139_s11 + $0xc0] sm:$0xff] %v1187_v0  ;;  %v1190_v9 = vadd.f32 %v2134_v48, %v1189_v30 }
 0x25c   : > { %1244 = vst [vmem:[%s2139_s11 + $0xd8] sm:$0xff] %v1198_v41 }
 0x25d   : > { %1242 = vst [vmem:[%s2139_s11 + $0xc8] sm:$0xff] %v1190_v9 }
 0x263   : > { %v1535_v6 = vpop.f32.mrb[12].mxu0 }
 0x264   : > { %v1147_v34 = vadd.f32 %v1535_v6, %v2134_v48  ;;  %v1138_v45 = vpop.f32.mrb[13].mxu0 }
 0x265   : > { %v1139_v46 = vadd.f32 %v2134_v48, %v1138_v45  ;;  %v1536_v11 = vpop.f32.mrb[14].mxu0 }
 0x266   : > { %1231 = vst [vmem:[%s2139_s11 + $0x70] sm:$0xff] %v1147_v34  ;;  %v1150_v43 = vadd.f32 %v1536_v11, %v2134_v48  ;;  %v1141_v37 = vpop.f32.mrb[15].mxu0 }
 0x267   : > { %1229 = vst [vmem:[%s2139_s11 + $0x60] sm:$0xff] %v1139_v46  ;;  %v1142_v50 = vadd.f32 %v2134_v48, %v1141_v37  ;;  %v1551_v16 = vpop.f32.mrb[12].mxu1 }
 0x268   : > { %1232 = vst [vmem:[%s2139_s11 + $0x78] sm:$0xff] %v1150_v43  ;;  %v1211_v51 = vadd.f32 %v1551_v16, %v2134_v48  ;;  %v1202_v15 = vpop.f32.mrb[13].mxu1 }
 0x269   : > { %1230 = vst [vmem:[%s2139_s11 + $0x68] sm:$0xff] %v1142_v50  ;;  %v1203_v53 = vadd.f32 %v2134_v48, %v1202_v15  ;;  %v1552_v39 = vpop.f32.mrb[14].mxu1 }
 0x26a   : > { %1247 = vst [vmem:[%s2139_s11 + $0xf0] sm:$0xff] %v1211_v51  ;;  %v1214_v55 = vadd.f32 %v1552_v39, %v2134_v48  ;;  %v1205_v20 = vpop.f32.mrb[15].mxu1 }
 0x26b   : > { %1245 = vst [vmem:[%s2139_s11 + $0xe0] sm:$0xff] %v1203_v53  ;;  %v1206_v25 = vadd.f32 %v2134_v48, %v1205_v20 }
 0x26c   : > { %1248 = vst [vmem:[%s2139_s11 + $0xf8] sm:$0xff] %v1214_v55 }
 0x26d   : > { %1246 = vst [vmem:[%s2139_s11 + $0xe8] sm:$0xff] %v1206_v25 }
 0x26e PF: > { %s18_s25 = sadd.s32 1, %s1754_s25   ;;  %s2221_s23 = smov %s1750_s24 }
 0x26f   : > { %p15_p5 = scmp.ge.s32.totalorder %s18_s25, 4   ;;  %s2222_s24 = smov %s2224_s3 }
 0x271   :  { %17 = sbr.rel (!%p15_p5) target bundleno = 3 (0x3), region = 77 }

// kernel: model_forward.27
= control target key start
LH: loop header
LB: loop body
LE: loop exit
PB: predicated region body
PF: predicated region fallthrough
CT: control target
= control target key end

     0   :  { %s2500_s12 = smov 0   ;;  %s2502_s13 = smov 0   ;;  %s2887_s0 = inlined_call_operand.vmem [shape: bf16[512,2304], index: 0, kind: input, shape index: {}]   ;;  %s2888_s1 = inlined_call_operand.vmem [shape: bf16[2304,128], index: 1, kind: input, shape index: {}]   ;;  %s2889_s2 = inlined_call_operand.vmem [shape: f32[1,128], index: 2, kind: input, shape index: {}]   ;;  %s2890_s3 = inlined_call_operand.vmem [shape: bf16[512,128], index: 3, kind: output, shape index: {}]  }
   0x1   :  { %s2504_s14 = smov 0   ;;  %s2506_s15 = smov 0  }
   0x2   :  { %s2508_s16 = smov 0   ;;  %s2510_s17 = smov 0  }
   0x3   :  { %s2512_s18 = smov 0  }
   0x4 LB: > { %s25_s19 = sadd.s32 1, %s2469_s16  ;;  %s32_s20 = sadd.s32 1, %s2473_s17  ;;  %s2477_s18 = sphi %s2512_s18, %s13_s18   ;;  %s2473_s17 = sphi %s2510_s17, %s2896_s17   ;;  %s2469_s16 = sphi %s2508_s16, %s2895_s16   ;;  %s2465_s15 = sphi %s2506_s15, %s2894_s15   ;;  %s2461_s14 = sphi %s2504_s14, %s2893_s14   ;;  %s2457_s13 = sphi %s2502_s13, %s2892_s13   ;;  %s2453_s12 = sphi %s2500_s12, %s2891_s12  }
   0x5   : > { %p26_p0 = scmp.ge.s32.totalorder %s25_s19, 6  ;;  %p48_p1 = scmp.ne.s32.totalorder %s2457_s13, %s2453_s12 }
   0x6   : > { %p49_p2 = scmp.eq.s32.totalorder %s2477_s18, 0  ;;  %s41_s24 = sadd.s32 1, %s2457_s13 }
   0x7   : > { %s2898_s19 = smov (%p26_p0, %s25_s19), 0  ;;  %s2900_s20 = smov (!%p26_p0, %s32_s20), %s2473_s17 }
   0x8   : > { %p50_p3 = por %p49_p2, %p48_p1  ;;  %p34_p4 = scmp.ge.s32.totalorder %s2900_s20, 2 }
   0x9   : > { %s37_s21 = ssub.s32 %s2469_s16, %s2898_s19  ;;  %p1767_p6 = scmp.ge.s32.totalorder %s2477_s18, 12 }
   0xa   : > { %s2902_s20 = smov (%p34_p4, %s2900_s20), 0 }
   0xb   : > { %s36_s22 = ssub.s32 %s2473_s17, %s2902_s20  ;;  %162 = sbr.rel (%p1767_p6) target bundleno = 64 (0x40), region = 20 }
   0xc   : > { %s38_s23 = sor.u32 %s37_s21, %s36_s22 }
   0xd   : > { %p39_p5 = scmp.eq.s32.totalorder %s38_s23, 0 }
   0xf   : > { %s2551_s25 = scalar_select %p39_p5, %s2457_s13, %s41_s24  }
  0x12   : > { %165 = sbr.rel (!%p50_p3) target bundleno = 64 (0x40), region = 24  ;;  %s167_s26 = sand.u32 (%p50_p3), 1, %s2457_s13  }
  0x13   : > { %s171_s27 = smul.u32 (%p50_p3), 3, %s2469_s16 }
  0x14   : > { %s2275_s28 = smul.u32 (%p50_p3), 384, %s167_s26 }
  0x15   : > { %s2276_s29 = smul.u32 (%p50_p3), 576, %s2473_s17 }
  0x16   : > { %s2565_s8 = scalar_lea.vmem (%p50_p3), [#allocation3], %s2275_s28 }
  0x17   : > { %s173_s30 = sadd.s32 (%p50_p3), %s2276_s29, %s171_s27 }
  0x18   : > { %s1770_s4 = sshll.u32 (%p50_p3), %s173_s30, 2 }
  0x19   : > { %s2560_s7 = scalar_lea.vmem %s2887_s0, %s1770_s4 }
  0x1a   : > { %v190_v0 = vld [vmem:[%s2560_s7] sm:$0xff]  ;;  %v192_v1 = vld [vmem:[%s2560_s7 + $0x48] sm:$0xff]  ;;  %v194_v2 = vld [vmem:[%s2560_s7 + $0x90] sm:$0xff] }
  0x1b   : > { %191 = vst [vmem:[%s2565_s8] sm:$0xff] %v190_v0  ;;  %193 = vst [vmem:[%s2565_s8 + $0xc] sm:$0xff] %v192_v1  ;;  %v196_v3 = vld [vmem:[%s2560_s7 + $0xd8] sm:$0xff]  ;;  %v198_v4 = vld [vmem:[%s2560_s7 + $0x120] sm:$0xff] }
  0x1c   : > { %195 = vst [vmem:[%s2565_s8 + $0x18] sm:$0xff] %v194_v2  ;;  %v200_v5 = vld [vmem:[%s2560_s7 + $0x168] sm:$0xff]  ;;  %197 = vst [vmem:[%s2565_s8 + $0x24] sm:$0xff] %v196_v3  ;;  %v202_v6 = vld [vmem:[%s2560_s7 + $0x1b0] sm:$0xff] }
  0x1d   : > { %199 = vst [vmem:[%s2565_s8 + $0x30] sm:$0xff] %v198_v4  ;;  %201 = vst [vmem:[%s2565_s8 + $0x3c] sm:$0xff] %v200_v5  ;;  %v204_v7 = vld [vmem:[%s2560_s7 + $0x1f8] sm:$0xff]  ;;  %v206_v8 = vld [vmem:[%s2560_s7 + $0x240] sm:$0xff] }
  0x1e   : > { %203 = vst [vmem:[%s2565_s8 + $0x48] sm:$0xff] %v202_v6  ;;  %205 = vst [vmem:[%s2565_s8 + $0x54] sm:$0xff] %v204_v7  ;;  %v208_v9 = vld [vmem:[%s2560_s7 + $0x288] sm:$0xff]  ;;  %v210_v10 = vld [vmem:[%s2560_s7 + $0x2d0] sm:$0xff] }
  0x1f   : > { %207 = vst [vmem:[%s2565_s8 + $0x60] sm:$0xff] %v206_v8  ;;  %v212_v11 = vld [vmem:[%s2560_s7 + $0x318] sm:$0xff]  ;;  %209 = vst [vmem:[%s2565_s8 + $0x6c] sm:$0xff] %v208_v9  ;;  %v214_v12 = vld [vmem:[%s2560_s7 + $0x360] sm:$0xff] }
  0x20   : > { %211 = vst [vmem:[%s2565_s8 + $0x78] sm:$0xff] %v210_v10  ;;  %213 = vst [vmem:[%s2565_s8 + $0x84] sm:$0xff] %v212_v11  ;;  %v216_v13 = vld [vmem:[%s2560_s7 + $0x3a8] sm:$0xff]  ;;  %v218_v14 = vld [vmem:[%s2560_s7 + $0x3f0] sm:$0xff] }
  0x21   : > { %215 = vst [vmem:[%s2565_s8 + $0x90] sm:$0xff] %v214_v12  ;;  %217 = vst [vmem:[%s2565_s8 + $0x9c] sm:$0xff] %v216_v13  ;;  %v220_v15 = vld [vmem:[%s2560_s7 + $0x438] sm:$0xff]  ;;  %v222_v16 = vld [vmem:[%s2560_s7 + $0x480] sm:$0xff] }
  0x22   : > { %219 = vst [vmem:[%s2565_s8 + $0xa8] sm:$0xff] %v218_v14  ;;  %v224_v17 = vld [vmem:[%s2560_s7 + $0x4c8] sm:$0xff]  ;;  %221 = vst [vmem:[%s2565_s8 + $0xb4] sm:$0xff] %v220_v15  ;;  %v226_v18 = vld [vmem:[%s2560_s7 + $0x510] sm:$0xff] }
  0x23   : > { %223 = vst [vmem:[%s2565_s8 + $0xc0] sm:$0xff] %v222_v16  ;;  %225 = vst [vmem:[%s2565_s8 + $0xcc] sm:$0xff] %v224_v17  ;;  %v228_v19 = vld [vmem:[%s2560_s7 + $0x558] sm:$0xff]  ;;  %v230_v20 = vld [vmem:[%s2560_s7 + $0x5a0] sm:$0xff] }
  0x24   : > { %227 = vst [vmem:[%s2565_s8 + $0xd8] sm:$0xff] %v226_v18  ;;  %229 = vst [vmem:[%s2565_s8 + $0xe4] sm:$0xff] %v228_v19  ;;  %v232_v21 = vld [vmem:[%s2560_s7 + $0x5e8] sm:$0xff]  ;;  %v234_v22 = vld [vmem:[%s2560_s7 + $0x630] sm:$0xff] }
  0x25   : > { %231 = vst [vmem:[%s2565_s8 + $0xf0] sm:$0xff] %v230_v20  ;;  %v236_v23 = vld [vmem:[%s2560_s7 + $0x678] sm:$0xff]  ;;  %233 = vst [vmem:[%s2565_s8 + $0xfc] sm:$0xff] %v232_v21  ;;  %v238_v24 = vld [vmem:[%s2560_s7 + $0x6c0] sm:$0xff] }
  0x26   : > { %235 = vst [vmem:[%s2565_s8 + $0x108] sm:$0xff] %v234_v22  ;;  %237 = vst [vmem:[%s2565_s8 + $0x114] sm:$0xff] %v236_v23  ;;  %v240_v25 = vld [vmem:[%s2560_s7 + $0x708] sm:$0xff]  ;;  %v242_v26 = vld [vmem:[%s2560_s7 + $0x750] sm:$0xff] }
  0x27   : > { %239 = vst [vmem:[%s2565_s8 + $0x120] sm:$0xff] %v238_v24  ;;  %241 = vst [vmem:[%s2565_s8 + $0x12c] sm:$0xff] %v240_v25  ;;  %v244_v27 = vld [vmem:[%s2560_s7 + $0x798] sm:$0xff]  ;;  %v246_v28 = vld [vmem:[%s2560_s7 + $0x7e0] sm:$0xff] }
  0x28   : > { %243 = vst [vmem:[%s2565_s8 + $0x138] sm:$0xff] %v242_v26  ;;  %v248_v29 = vld [vmem:[%s2560_s7 + $0x828] sm:$0xff]  ;;  %245 = vst [vmem:[%s2565_s8 + $0x144] sm:$0xff] %v244_v27  ;;  %v250_v30 = vld [vmem:[%s2560_s7 + $0x870] sm:$0xff] }
  0x29   : > { %247 = vst [vmem:[%s2565_s8 + $0x150] sm:$0xff] %v246_v28  ;;  %249 = vst [vmem:[%s2565_s8 + $0x15c] sm:$0xff] %v248_v29  ;;  %v252_v31 = vld [vmem:[%s2560_s7 + $0x8b8] sm:$0xff]  ;;  %v1771_v32 = vld [vmem:[%s2560_s7 + $0x8] sm:$0xf] }
  0x2a   : > { %251 = vst [vmem:[%s2565_s8 + $0x168] sm:$0xff] %v250_v30  ;;  %253 = vst [vmem:[%s2565_s8 + $0x174] sm:$0xff] %v252_v31  ;;  %v1773_v33 = vld [vmem:[%s2560_s7 + $0x50] sm:$0xf]  ;;  %v1775_v34 = vld [vmem:[%s2560_s7 + $0x98] sm:$0xf] }
  0x2b   : > { %1772 = vst [vmem:[%s2565_s8 + $0x8] sm:$0xf] %v1771_v32  ;;  %v1777_v35 = vld [vmem:[%s2560_s7 + $0xe0] sm:$0xf]  ;;  %1774 = vst [vmem:[%s2565_s8 + $0x14] sm:$0xf] %v1773_v33 }
  0x2c   : > { %1776 = vst [vmem:[%s2565_s8 + $0x20] sm:$0xf] %v1775_v34  ;;  %1778 = vst [vmem:[%s2565_s8 + $0x2c] sm:$0xf] %v1777_v35  ;;  %v1779_v36 = vld [vmem:[%s2560_s7 + $0x128] sm:$0xf] }
  0x2d   : > { %v1781_v37 = vld [vmem:[%s2560_s7 + $0x170] sm:$0xf]  ;;  %v1783_v38 = vld [vmem:[%s2560_s7 + $0x1b8] sm:$0xf]  ;;  %1780 = vst [vmem:[%s2565_s8 + $0x38] sm:$0xf] %v1779_v36 }
  0x2e   : > { %1782 = vst [vmem:[%s2565_s8 + $0x44] sm:$0xf] %v1781_v37  ;;  %1784 = vst [vmem:[%s2565_s8 + $0x50] sm:$0xf] %v1783_v38  ;;  %v1785_v39 = vld [vmem:[%s2560_s7 + $0x200] sm:$0xf] }
  0x2f   : > { %v1787_v40 = vld [vmem:[%s2560_s7 + $0x248] sm:$0xf]  ;;  %v1789_v41 = vld [vmem:[%s2560_s7 + $0x290] sm:$0xf]  ;;  %1786 = vst [vmem:[%s2565_s8 + $0x5c] sm:$0xf] %v1785_v39 }
  0x30   : > { %1788 = vst [vmem:[%s2565_s8 + $0x68] sm:$0xf] %v1787_v40  ;;  %1790 = vst [vmem:[%s2565_s8 + $0x74] sm:$0xf] %v1789_v41  ;;  %v1791_v42 = vld [vmem:[%s2560_s7 + $0x2d8] sm:$0xf] }
  0x31   : > { %v1793_v43 = vld [vmem:[%s2560_s7 + $0x320] sm:$0xf]  ;;  %v1795_v44 = vld [vmem:[%s2560_s7 + $0x368] sm:$0xf]  ;;  %1792 = vst [vmem:[%s2565_s8 + $0x80] sm:$0xf] %v1791_v42 }
  0x32   : > { %1794 = vst [vmem:[%s2565_s8 + $0x8c] sm:$0xf] %v1793_v43  ;;  %1796 = vst [vmem:[%s2565_s8 + $0x98] sm:$0xf] %v1795_v44  ;;  %v1797_v45 = vld [vmem:[%s2560_s7 + $0x3b0] sm:$0xf] }
  0x33   : > { %v1799_v46 = vld [vmem:[%s2560_s7 + $0x3f8] sm:$0xf]  ;;  %v1801_v47 = vld [vmem:[%s2560_s7 + $0x440] sm:$0xf]  ;;  %1798 = vst [vmem:[%s2565_s8 + $0xa4] sm:$0xf] %v1797_v45 }
  0x34   : > { %1800 = vst [vmem:[%s2565_s8 + $0xb0] sm:$0xf] %v1799_v46  ;;  %1802 = vst [vmem:[%s2565_s8 + $0xbc] sm:$0xf] %v1801_v47  ;;  %v1803_v48 = vld [vmem:[%s2560_s7 + $0x488] sm:$0xf] }
  0x35   : > { %v1805_v49 = vld [vmem:[%s2560_s7 + $0x4d0] sm:$0xf]  ;;  %v1807_v50 = vld [vmem:[%s2560_s7 + $0x518] sm:$0xf]  ;;  %1804 = vst [vmem:[%s2565_s8 + $0xc8] sm:$0xf] %v1803_v48 }
  0x36   : > { %1806 = vst [vmem:[%s2565_s8 + $0xd4] sm:$0xf] %v1805_v49  ;;  %1808 = vst [vmem:[%s2565_s8 + $0xe0] sm:$0xf] %v1807_v50  ;;  %v1809_v51 = vld [vmem:[%s2560_s7 + $0x560] sm:$0xf] }
  0x37   : > { %v1811_v52 = vld [vmem:[%s2560_s7 + $0x5a8] sm:$0xf]  ;;  %v1813_v53 = vld [vmem:[%s2560_s7 + $0x5f0] sm:$0xf]  ;;  %1810 = vst [vmem:[%s2565_s8 + $0xec] sm:$0xf] %v1809_v51 }
  0x38   : > { %1812 = vst [vmem:[%s2565_s8 + $0xf8] sm:$0xf] %v1811_v52  ;;  %1814 = vst [vmem:[%s2565_s8 + $0x104] sm:$0xf] %v1813_v53  ;;  %v1815_v54 = vld [vmem:[%s2560_s7 + $0x638] sm:$0xf] }
  0x39   : > { %v1817_v55 = vld [vmem:[%s2560_s7 + $0x680] sm:$0xf]  ;;  %v1819_v56 = vld [vmem:[%s2560_s7 + $0x6c8] sm:$0xf]  ;;  %1816 = vst [vmem:[%s2565_s8 + $0x110] sm:$0xf] %v1815_v54 }
  0x3a   : > { %1818 = vst [vmem:[%s2565_s8 + $0x11c] sm:$0xf] %v1817_v55  ;;  %1820 = vst [vmem:[%s2565_s8 + $0x128] sm:$0xf] %v1819_v56  ;;  %v1821_v57 = vld [vmem:[%s2560_s7 + $0x710] sm:$0xf] }
  0x3b   : > { %v1823_v58 = vld [vmem:[%s2560_s7 + $0x758] sm:$0xf]  ;;  %v1825_v59 = vld [vmem:[%s2560_s7 + $0x7a0] sm:$0xf]  ;;  %1822 = vst [vmem:[%s2565_s8 + $0x134] sm:$0xf] %v1821_v57 }
  0x3c   : > { %1824 = vst [vmem:[%s2565_s8 + $0x140] sm:$0xf] %v1823_v58  ;;  %1826 = vst [vmem:[%s2565_s8 + $0x14c] sm:$0xf] %v1825_v59  ;;  %v1827_v60 = vld [vmem:[%s2560_s7 + $0x7e8] sm:$0xf] }
  0x3d   : > { %v1829_v61 = vld [vmem:[%s2560_s7 + $0x830] sm:$0xf]  ;;  %v1831_v62 = vld [vmem:[%s2560_s7 + $0x878] sm:$0xf]  ;;  %1828 = vst [vmem:[%s2565_s8 + $0x158] sm:$0xf] %v1827_v60 }
  0x3e   : > { %1830 = vst [vmem:[%s2565_s8 + $0x164] sm:$0xf] %v1829_v61  ;;  %1832 = vst [vmem:[%s2565_s8 + $0x170] sm:$0xf] %v1831_v62  ;;  %v1833_v63 = vld [vmem:[%s2560_s7 + $0x8c0] sm:$0xf] }
  0x3f   : > { %1834 = vst [vmem:[%s2565_s8 + $0x17c] sm:$0xf] %v1833_v63 }
  0x40 PF: > { %p1835_p7 = scmp.ge.s32.totalorder %s2477_s18, 1  ;;  %p341_p8 = scmp.lt.s32.totalorder %s2477_s18, 13 }
  0x42   : > { %p342_p9 = pnand %p1835_p7, %p341_p8 }
  0x43   : > { %s348_s9 = sand.u32 (!%p342_p9), 1, %s2453_s12   ;;  %s387_s10 = smul.u32 (!%p342_p9), 48, %s2461_s14 }
  0x44   : > { %345 = sbr.rel (%p342_p9) target bundleno = 456 (0x1c8), region = 54  ;;  %s1837_s21 = sshll.u32 (!%p342_p9), %s2465_s15, 5 }
  0x45   : > { %s2277_s11 = smul.u32 (!%p342_p9), 384, %s348_s9  ;;  %p388_p10 = scmp.lt.s32.totalorder (!%p342_p9), %s387_s10, 287 }
  0x46   : > { %p400_p11 = scmp.lt.s32.totalorder (!%p342_p9), %s1837_s21, 63  ;;  %p1839_p12 = scmp.ne.s32.totalorder (!%p342_p9), %s2461_s14, 0 }
  0x47   : > { %s2707_s12 = scalar_lea.vmem (!%p342_p9), [#allocation3], %s2277_s11 }
  0x4b   : > { %s2904_s10 = smov (!%p388_p10, %s387_s10), 287  ;;  %s2906_s21 = smov (!%p400_p11, %s1837_s21), 63 }
  0x4c   : > { %s1836_s22 = sshll.u32 %s2904_s10, 2  ;;  %s1838_s27 = sshll.u32 %s2906_s21, 2  ;;  %v2479_v0 = vmov (!%p1839_p12), 0.0  }
  0x4d   : > { %s2700_s26 = scalar_lea.vmem %s2888_s1, %s1836_s22  ;;  %s2705_s30 = scalar_lea.vmem %s2890_s3, %s1838_s27  ;;  %413 = vst [vmem:[#allocation2] sm:$0xff] (!%p1839_p12), %v2479_v0  ;;  %414 = vst [vmem:[#allocation2 + $0x8] sm:$0xff] (!%p1839_p12), %v2479_v0 }
  0x4e   : > { %412 = sbr.rel (%p1839_p12) target bundleno = 93 (0x5d), region = 62  ;;  %415 = vst [vmem:[#allocation2 + $0x10] sm:$0xff] (!%p1839_p12), %v2479_v0  ;;  %416 = vst [vmem:[#allocation2 + $0x18] sm:$0xff] (!%p1839_p12), %v2479_v0 }
  0x4f   : > { %417 = vst [vmem:[#allocation2 + $0x20] sm:$0xff] (!%p1839_p12), %v2479_v0  ;;  %418 = vst [vmem:[#allocation2 + $0x28] sm:$0xff] (!%p1839_p12), %v2479_v0 }
  0x50   : > { %419 = vst [vmem:[#allocation2 + $0x30] sm:$0xff] (!%p1839_p12), %v2479_v0  ;;  %420 = vst [vmem:[#allocation2 + $0x38] sm:$0xff] (!%p1839_p12), %v2479_v0 }
  0x51   : > { %421 = vst [vmem:[#allocation2 + $0x40] sm:$0xff] (!%p1839_p12), %v2479_v0  ;;  %422 = vst [vmem:[#allocation2 + $0x48] sm:$0xff] (!%p1839_p12), %v2479_v0 }
  0x52   : > { %423 = vst [vmem:[#allocation2 + $0x50] sm:$0xff] (!%p1839_p12), %v2479_v0  ;;  %424 = vst [vmem:[#allocation2 + $0x58] sm:$0xff] (!%p1839_p12), %v2479_v0 }
  0x53   : > { %425 = vst [vmem:[#allocation2 + $0x60] sm:$0xff] (!%p1839_p12), %v2479_v0  ;;  %426 = vst [vmem:[#allocation2 + $0x68] sm:$0xff] (!%p1839_p12), %v2479_v0 }
  0x54   : > { %427 = vst [vmem:[#allocation2 + $0x70] sm:$0xff] (!%p1839_p12), %v2479_v0  ;;  %428 = vst [vmem:[#allocation2 + $0x78] sm:$0xff] (!%p1839_p12), %v2479_v0 }
  0x55   : > { %429 = vst [vmem:[#allocation2 + $0x80] sm:$0xff] %v2479_v0  ;;  %430 = vst [vmem:[#allocation2 + $0x88] sm:$0xff] %v2479_v0 }
  0x56   : > { %431 = vst [vmem:[#allocation2 + $0x90] sm:$0xff] %v2479_v0  ;;  %432 = vst [vmem:[#allocation2 + $0x98] sm:$0xff] %v2479_v0 }
  0x57   : > { %433 = vst [vmem:[#allocation2 + $0xa0] sm:$0xff] %v2479_v0  ;;  %434 = vst [vmem:[#allocation2 + $0xa8] sm:$0xff] %v2479_v0 }
  0x58   : > { %435 = vst [vmem:[#allocation2 + $0xb0] sm:$0xff] %v2479_v0  ;;  %436 = vst [vmem:[#allocation2 + $0xb8] sm:$0xff] %v2479_v0 }
  0x59   : > { %437 = vst [vmem:[#allocation2 + $0xc0] sm:$0xff] %v2479_v0  ;;  %438 = vst [vmem:[#allocation2 + $0xc8] sm:$0xff] %v2479_v0 }
  0x5a   : > { %439 = vst [vmem:[#allocation2 + $0xd0] sm:$0xff] %v2479_v0  ;;  %440 = vst [vmem:[#allocation2 + $0xd8] sm:$0xff] %v2479_v0 }
  0x5b   : > { %441 = vst [vmem:[#allocation2 + $0xe0] sm:$0xff] %v2479_v0  ;;  %442 = vst [vmem:[#allocation2 + $0xe8] sm:$0xff] %v2479_v0 }
  0x5c   : > { %443 = vst [vmem:[#allocation2 + $0xf0] sm:$0xff] %v2479_v0  ;;  %444 = vst [vmem:[#allocation2 + $0xf8] sm:$0xff] %v2479_v0 }
  0x5d PF: > { %v2335_v1 = vld [vmem:[%s2700_s26 + $0x40] sm:$0xff]   ;;  %v2337_v3 = vld [vmem:[%s2700_s26 + $0x48] sm:$0xff]   ;;  %v2339_v5 = vld [vmem:[%s2700_s26 + $0x50] sm:$0xff]   ;;  %p1912_p13 = scmp.ne.s32.totalorder %s2461_s14, 5 }
  0x5e   : > { %v2336_v2 = vld [vmem:[%s2700_s26] sm:$0xff]   ;;  %2075 = vmatprep.subr.bf16.mxu0 %v2335_v1  ;;  %2259 = vmatprep.subr.bf16.mxu1 %v2335_v1  ;;  %v2338_v4 = vld [vmem:[%s2700_s26 + $0x8] sm:$0xff]   ;;  %v2340_v6 = vld [vmem:[%s2700_s26 + $0x10] sm:$0xff]  }
  0x5f   : > { %2076 = vmatpush3.bf16.msra.mxu0 %v2336_v2  ;;  %2267 = vmatpush3.bf16.msra.mxu1 %v2336_v2  ;;  %v2341_v7 = vld [vmem:[%s2700_s26 + $0x58] sm:$0xff]   ;;  %v2343_v9 = vld [vmem:[%s2700_s26 + $0x60] sm:$0xff]   ;;  %v2345_v11 = vld [vmem:[%s2700_s26 + $0x68] sm:$0xff]  }
  0x60   : > { %2077 = vmatprep.subr.bf16.mxu0 %v2337_v3  ;;  %2260 = vmatprep.subr.bf16.mxu1 %v2337_v3  ;;  %v2342_v8 = vld [vmem:[%s2700_s26 + $0x18] sm:$0xff]   ;;  %v2344_v10 = vld [vmem:[%s2700_s26 + $0x20] sm:$0xff]   ;;  %v2346_v14 = vld [vmem:[%s2700_s26 + $0x28] sm:$0xff]  }
  0x61   : > { %v2353_v12 = vld [vmem:[%s2707_s12 + $0x4] ss:$12 sps:$4 sm:$0xff]   ;;  %v2349_v17 = vld [vmem:[%s2700_s26 + $0x78] sm:$0xff]   ;;  %v2351_v20 = vld [vmem:[%s2707_s12] ss:$12 sps:$4 sm:$0xff]  }
  0x62   : > { %v2356_v13 = vld [vmem:[%s2707_s12 + $0x124] ss:$12 sps:$4 sm:$0xff]   ;;  %1021 = vmatprep.mubr.bf16.mxu0 %v2353_v12  ;;  %v2350_v18 = vld [vmem:[%s2700_s26 + $0x38] sm:$0xff]   ;;  %v2354_v21 = vld [vmem:[%s2707_s12 + $0x120] ss:$12 sps:$4 sm:$0xff]  }
  0x63   : > { %2078 = vmatpush3.bf16.msra.mxu0 %v2338_v4  ;;  %2268 = vmatpush3.bf16.msra.mxu1 %v2338_v4  ;;  %v2347_v15 = vld [vmem:[%s2700_s26 + $0x70] sm:$0xff]   ;;  %v2357_v19 = vld [vmem:[%s2700_s26 + $0x80] sm:$0xff]   ;;  %v2359_v22 = vld [vmem:[%s2707_s12 + $0x1c] ss:$12 sps:$4 sm:$0xff]  }
  0x64   : > { %2079 = vmatprep.subr.bf16.mxu0 %v2339_v5  ;;  %2261 = vmatprep.subr.bf16.mxu1 %v2339_v5  ;;  %v2348_v16 = vld [vmem:[%s2700_s26 + $0x30] sm:$0xff]   ;;  %v2358_v23 = vld [vmem:[%s2700_s26 + $0x88] sm:$0xff]   ;;  %v2363_v25 = vld [vmem:[%s2707_s12 + $0x18] ss:$12 sps:$4 sm:$0xff]  }
  0x65   : > { %1117 = vmatprep.mubr.bf16.mxu1 %v2356_v13  ;;  %v2361_v24 = vld [vmem:[%s2707_s12 + $0x13c] ss:$12 sps:$4 sm:$0xff]   ;;  %v2365_v26 = vld [vmem:[%s2700_s26 + $0x90] sm:$0xff]   ;;  %v2364_v27 = vld [vmem:[%s2707_s12 + $0x138] ss:$12 sps:$4 sm:$0xff]  }
  0x66   : > { %v2366_v28 = vld [vmem:[%s2700_s26 + $0x98] sm:$0xff]   ;;  %v2367_v29 = vld [vmem:[%s2707_s12 + $0x34] ss:$12 sps:$4 sm:$0xff]   ;;  %v2374_v34 = vld [vmem:[%s2700_s26 + $0xa8] sm:$0xff]  }
  0x67   : > { %2080 = vmatpush3.bf16.msra.mxu0 %v2340_v6  ;;  %2269 = vmatpush3.bf16.msra.mxu1 %v2340_v6  ;;  %v2369_v30 = vld [vmem:[%s2707_s12 + $0x154] ss:$12 sps:$4 sm:$0xff]   ;;  %v2371_v32 = vld [vmem:[%s2707_s12 + $0x30] ss:$12 sps:$4 sm:$0xff]   ;;  %v2375_v35 = vld [vmem:[%s2707_s12 + $0x4c] ss:$12 sps:$4 sm:$0xff]  }
  0x68   : > { %2081 = vmatprep.subr.bf16.mxu0 %v2341_v7  ;;  %2262 = vmatprep.subr.bf16.mxu1 %v2341_v7  ;;  %v2373_v31 = vld [vmem:[%s2700_s26 + $0xa0] sm:$0xff]   ;;  %v2372_v33 = vld [vmem:[%s2707_s12 + $0x150] ss:$12 sps:$4 sm:$0xff]   ;;  %v2377_v36 = vld [vmem:[%s2707_s12 + $0x16c] ss:$12 sps:$4 sm:$0xff]  }
  0x69   : > { %v2381_v37 = vld [vmem:[%s2700_s26 + $0xb0] sm:$0xff]   ;;  %v2382_v41 = vld [vmem:[%s2700_s26 + $0xb8] sm:$0xff]   ;;  %v2386_v43 = vld [vmem:[%s2707_s12 + $0x60] ss:$12 sps:$4 sm:$0xff]  }
  0x6a   : > { %v2379_v38 = vld [vmem:[%s2707_s12 + $0x48] ss:$12 sps:$4 sm:$0xff]   ;;  %v2383_v40 = vld [vmem:[%s2707_s12 + $0x64] ss:$12 sps:$4 sm:$0xff]   ;;  %v2387_v44 = vld [vmem:[%s2707_s12 + $0x20] ss:$12 sps:$4 sm:$0xff]  }
  0x6b   : > { %2082 = vmatpush3.bf16.msra.mxu0 %v2342_v8  ;;  %2270 = vmatpush3.bf16.msra.mxu1 %v2342_v8  ;;  %v2380_v39 = vld [vmem:[%s2707_s12 + $0x168] ss:$12 sps:$4 sm:$0xff]   ;;  %v2390_v46 = vld [vmem:[%s2707_s12 + $0x38] ss:$12 sps:$4 sm:$0xff]   ;;  %v2392_v48 = vld [vmem:[%s2707_s12 + $0x50] ss:$12 sps:$4 sm:$0xff]  }
  0x6c   : > { %2083 = vmatprep.subr.bf16.mxu0 %v2343_v9  ;;  %2263 = vmatprep.subr.bf16.mxu1 %v2343_v9  ;;  %v2385_v42 = vld [vmem:[%s2707_s12 + $0x8] ss:$12 sps:$4 sm:$0xff]   ;;  %v2391_v47 = vld [vmem:[%s2707_s12 + $0x78] ss:$12 sps:$4 sm:$0xff]   ;;  %v2396_v51 = vld [vmem:[%s2707_s12 + $0x90] ss:$12 sps:$4 sm:$0xff]  }
  0x6d   : > { %v2388_v45 = vld [vmem:[%s2707_s12 + $0x7c] ss:$12 sps:$4 sm:$0xff]   ;;  %v2393_v49 = vld [vmem:[%s2707_s12 + $0x94] ss:$12 sps:$4 sm:$0xff]   ;;  %v2398_v53 = vld [vmem:[%s2707_s12 + $0xac] ss:$12 sps:$4 sm:$0xff]  }
  0x6e   : > { %v2395_v50 = vld [vmem:[%s2707_s12 + $0x68] ss:$12 sps:$4 sm:$0xff]   ;;  %v2397_v52 = vld [vmem:[%s2707_s12 + $0x80] ss:$12 sps:$4 sm:$0xff]   ;;  %v2400_v54 = vld [vmem:[%s2707_s12 + $0x98] ss:$12 sps:$4 sm:$0xff]  }
  0x6f   : > { %2084 = vmatpush3.bf16.msra.mxu0 %v2344_v10  ;;  %2271 = vmatpush3.bf16.msra.mxu1 %v2344_v10  ;;  %v2401_v55 = vld [vmem:[%s2707_s12 + $0xa8] ss:$12 sps:$4 sm:$0xff]   ;;  %v2402_v56 = vld [vmem:[%s2707_s12 + $0xb0] ss:$12 sps:$4 sm:$0xff]   ;;  %v2406_v59 = vld [vmem:[%s2707_s12 + $0xc0] ss:$12 sps:$4 sm:$0xff]  }
  0x70   : > { %2085 = vmatprep.subr.bf16.mxu0 %v2345_v11  ;;  %2264 = vmatprep.subr.bf16.mxu1 %v2345_v11  ;;  %v2403_v57 = vld [vmem:[%s2707_s12 + $0xc4] ss:$12 sps:$4 sm:$0xff]   ;;  %v2405_v58 = vld [vmem:[%s2707_s12 + $0xc8] ss:$12 sps:$4 sm:$0xff]   ;;  %v2407_v60 = vld [vmem:[%s2707_s12 + $0xe0] ss:$12 sps:$4 sm:$0xff]  }
  0x71   : > { %v2408_v61 = vld [vmem:[%s2707_s12 + $0xdc] ss:$12 sps:$4 sm:$0xff]   ;;  %v2410_v62 = vld [vmem:[%s2707_s12 + $0xf8] ss:$12 sps:$4 sm:$0xff]   ;;  %v2413_v1 = vld [vmem:[%s2707_s12 + $0xf4] ss:$12 sps:$4 sm:$0xff]  }
  0x72   : > { %v2411_v63 = vld [vmem:[%s2707_s12 + $0xd8] ss:$12 sps:$4 sm:$0xff]   ;;  %v2412_v0 = vld [vmem:[%s2707_s12 + $0x110] ss:$12 sps:$4 sm:$0xff]   ;;  %v2415_v2 = vld [vmem:[%s2707_s12 + $0x128] ss:$12 sps:$4 sm:$0xff]  }
  0x73   : > { %2086 = vmatpush3.bf16.msra.mxu0 %v2346_v14  ;;  %2272 = vmatpush3.bf16.msra.mxu1 %v2346_v14  ;;  %v2416_v3 = vld [vmem:[%s2707_s12 + $0xf0] ss:$12 sps:$4 sm:$0xff]   ;;  %v2417_v4 = vld [vmem:[%s2707_s12 + $0x140] ss:$12 sps:$4 sm:$0xff]   ;;  %v2420_v6 = vld [vmem:[%s2707_s12 + $0x158] ss:$12 sps:$4 sm:$0xff]  }
  0x74   : > { %2087 = vmatprep.subr.bf16.mxu0 %v2347_v15  ;;  %2265 = vmatprep.subr.bf16.mxu1 %v2347_v15  ;;  %v2418_v5 = vld [vmem:[%s2707_s12 + $0x10c] ss:$12 sps:$4 sm:$0xff]   ;;  %v2421_v7 = vld [vmem:[%s2707_s12 + $0x108] ss:$12 sps:$4 sm:$0xff]   ;;  %v2422_v8 = vld [vmem:[%s2707_s12 + $0x170] ss:$12 sps:$4 sm:$0xff]  }
  0x77   : > { %2088 = vmatpush3.bf16.msra.mxu0 %v2348_v16  ;;  %2273 = vmatpush3.bf16.msra.mxu1 %v2348_v16 }
  0x78   : > { %2089 = vmatprep.subr.bf16.mxu0 %v2349_v17  ;;  %2266 = vmatprep.subr.bf16.mxu1 %v2349_v17 }
  0x7b   : > { %2090 = vmatpush3.bf16.msra.mxu0 %v2350_v18  ;;  %2274 = vmatpush3.bf16.msra.mxu1 %v2350_v18 }
  0x7c   : > { %2211 = vmatprep.subr.bf16.mxu1 %v2357_v19 }
  0x7e   : > { %1022 = vmatmul.mubr.bf16.vlgmr.msra.gmra.mrb[0].mxu0 %v2351_v20  ;;  %1118 = vmatmul.mubr.bf16.vlgmr.msra.gmra.mrb[0].mxu1 %v2354_v21 }
  0x7f   : > { %2212 = vmatpush3.bf16.msra.mxu1 %v2357_v19  ;;  %1029 = vmatprep.mubr.bf16.mxu0 %v2359_v22 }
  0x80   : > { %2213 = vmatprep.subr.bf16.mxu1 %v2358_v23  ;;  %1125 = vmatprep.mubr.bf16.mxu1 %v2361_v24 }
  0x83   : > { %2214 = vmatpush3.bf16.msra.mxu1 %v2358_v23 }
  0x84   : > { %2215 = vmatprep.subr.bf16.mxu1 %v2365_v26 }
  0x86   : > { %1030 = vmatmul.mubr.bf16.gmra.mrb[4].mxu0 %v2363_v25  ;;  %1126 = vmatmul.mubr.bf16.gmra.mrb[4].mxu1 %v2364_v27 }
  0x87   : > { %2216 = vmatpush3.bf16.msra.mxu1 %v2365_v26  ;;  %1037 = vmatprep.mubr.bf16.mxu0 %v2367_v29 }
  0x88   : > { %2217 = vmatprep.subr.bf16.mxu1 %v2366_v28  ;;  %1133 = vmatprep.mubr.bf16.mxu1 %v2369_v30 }
  0x8b   : > { %2218 = vmatpush3.bf16.msra.mxu1 %v2366_v28 }
  0x8c   : > { %2219 = vmatprep.subr.bf16.mxu1 %v2373_v31 }
  0x8e   : > { %1038 = vmatmul.mubr.bf16.gmra.mrb[8].mxu0 %v2371_v32  ;;  %1134 = vmatmul.mubr.bf16.gmra.mrb[8].mxu1 %v2372_v33 }
  0x8f   : > { %2220 = vmatpush3.bf16.msra.mxu1 %v2373_v31  ;;  %1045 = vmatprep.mubr.bf16.mxu0 %v2375_v35 }
  0x90   : > { %2221 = vmatprep.subr.bf16.mxu1 %v2374_v34  ;;  %1141 = vmatprep.mubr.bf16.mxu1 %v2377_v36 }
  0x93   : > { %2222 = vmatpush3.bf16.msra.mxu1 %v2374_v34 }
  0x94   : > { %2223 = vmatprep.subr.bf16.mxu1 %v2381_v37 }
  0x96   : > { %1046 = vmatmul.mubr.bf16.gmra.mrb[12].mxu0 %v2379_v38  ;;  %1142 = vmatmul.mubr.bf16.gmra.mrb[12].mxu1 %v2380_v39 }
  0x97   : > { %2224 = vmatpush3.bf16.msra.mxu1 %v2381_v37  ;;  %1053 = vmatprep.mubr.bf16.mxu0 %v2383_v40 }
  0x98   : > { %2225 = vmatprep.subr.bf16.mxu1 %v2382_v41  ;;  %2227 = vmatprep.mubr.bf16.mxu1 %v2385_v42 }
  0x9b   : > { %2226 = vmatpush3.bf16.msra.mxu1 %v2382_v41 }
  0x9e   : > { %1054 = vmatmul.mubr.bf16.gmra.mrb[16].mxu0 %v2386_v43  ;;  %2228 = vmatmul.mubr.bf16.vlgmr.msra.gmra.mrb[16].mxu1 %v2387_v44 }
  0x9f   : > { %1061 = vmatprep.mubr.bf16.mxu0 %v2388_v45  ;;  %2231 = vmatprep.mubr.bf16.mxu1 %v2390_v46 }
  0xa6   : > { %1062 = vmatmul.mubr.bf16.gmra.mrb[20].mxu0 %v2391_v47  ;;  %2232 = vmatmul.mubr.bf16.gmra.mrb[20].mxu1 %v2392_v48 }
  0xa7   : > { %1069 = vmatprep.mubr.bf16.mxu0 %v2393_v49  ;;  %2235 = vmatprep.mubr.bf16.mxu1 %v2395_v50 }
  0xae   : > { %1070 = vmatmul.mubr.bf16.gmra.mrb[24].mxu0 %v2396_v51  ;;  %2236 = vmatmul.mubr.bf16.gmra.mrb[24].mxu1 %v2397_v52 }
  0xaf   : > { %1077 = vmatprep.mubr.bf16.mxu0 %v2398_v53  ;;  %2239 = vmatprep.mubr.bf16.mxu1 %v2400_v54 }
  0xb6   : > { %1078 = vmatmul.mubr.bf16.gmra.mrb[28].mxu0 %v2401_v55  ;;  %2240 = vmatmul.mubr.bf16.gmra.mrb[28].mxu1 %v2402_v56 }
  0xb7   : > { %1085 = vmatprep.mubr.bf16.mxu0 %v2403_v57  ;;  %2243 = vmatprep.mubr.bf16.mxu1 %v2405_v58  ;;  %v447_v58 = vld [vmem:[#allocation2 + $0x10] sm:$0xff] }
  0xbe   : > { %1086 = vmatmul.mubr.bf16.gmra.mrb[32].mxu0 %v2406_v59  ;;  %2244 = vmatmul.mubr.bf16.gmra.mrb[32].mxu1 %v2407_v60 }
  0xbf   : > { %1093 = vmatprep.mubr.bf16.mxu0 %v2408_v61  ;;  %2247 = vmatprep.mubr.bf16.mxu1 %v2410_v62  ;;  %v445_v62 = vld [vmem:[#allocation2] sm:$0xff] }
  0xc6   : > { %1094 = vmatmul.mubr.bf16.gmra.mrb[36].mxu0 %v2411_v63  ;;  %2248 = vmatmul.mubr.bf16.gmra.mrb[36].mxu1 %v2412_v0 }
  0xc7   : > { %1101 = vmatprep.mubr.bf16.mxu0 %v2413_v1  ;;  %2251 = vmatprep.mubr.bf16.mxu1 %v2415_v2 }
  0xce   : > { %1102 = vmatmul.mubr.bf16.gmra.mrb[40].mxu0 %v2416_v3  ;;  %2252 = vmatmul.mubr.bf16.gmra.mrb[40].mxu1 %v2417_v4  ;;  %v448_v3 = vld [vmem:[#allocation2 + $0x18] sm:$0xff] }
  0xcf   : > { %1109 = vmatprep.mubr.bf16.mxu0 %v2418_v5  ;;  %2255 = vmatprep.mubr.bf16.mxu1 %v2420_v6 }
  0xd6   : > { %1110 = vmatmul.mubr.bf16.gmra.mrb[44].mxu0 %v2421_v7  ;;  %2256 = vmatmul.mubr.bf16.gmra.mrb[44].mxu1 %v2422_v8  ;;  %v446_v8 = vld [vmem:[#allocation2 + $0x8] sm:$0xff] }
 0x151   : > { %v2091_v9 = vpop.f32.mrb[0].mxu0  ;;  %v2163_v10 = vpop.f32.mrb[0].mxu1 }
 0x152   : > { %v2092_v11 = vpop.f32.mrb[1].mxu0  ;;  %v2164_v12 = vpop.f32.mrb[1].mxu1 }
 0x153   : > { %v2093_v13 = vadd.f32 %v2092_v11, %v2091_v9  ;;  %v2782_v14 = vadd.f32 %v2164_v12, %v2163_v10  ;;  %v2094_v15 = vpop.f32.mrb[2].mxu0  ;;  %v2166_v16 = vpop.f32.mrb[2].mxu1 }
 0x154   : > { %v2095_v17 = vpop.f32.mrb[3].mxu0  ;;  %v2167_v18 = vpop.f32.mrb[3].mxu1 }
 0x155   : > { %v2096_v19 = vadd.f32 %v2095_v17, %v2094_v15  ;;  %v2784_v20 = vadd.f32 %v2167_v18, %v2166_v16  ;;  %v451_v18 = vld [vmem:[#allocation2 + $0x30] sm:$0xff] }
 0x159   : > { %v2097_v21 = vpop.f32.mrb[4].mxu0  ;;  %v2169_v22 = vpop.f32.mrb[4].mxu1 }
 0x15a   : > { %v2098_v23 = vpop.f32.mrb[5].mxu0  ;;  %v2170_v24 = vpop.f32.mrb[5].mxu1 }
 0x15b   : > { %v2099_v25 = vadd.f32 %v2098_v23, %v2097_v21  ;;  %v2786_v26 = vadd.f32 %v2170_v24, %v2169_v22  ;;  %v2100_v27 = vpop.f32.mrb[6].mxu0  ;;  %v2172_v28 = vpop.f32.mrb[6].mxu1  ;;  %v449_v23 = vld [vmem:[#allocation2 + $0x20] sm:$0xff] }
 0x15c   : > { %v2101_v29 = vpop.f32.mrb[7].mxu0  ;;  %v2173_v30 = vpop.f32.mrb[7].mxu1 }
 0x15d   : > { %v2102_v31 = vadd.f32 %v2101_v29, %v2100_v27  ;;  %v2788_v32 = vadd.f32 %v2173_v30, %v2172_v28  ;;  %v452_v29 = vld [vmem:[#allocation2 + $0x38] sm:$0xff] }
 0x161   : > { %v2103_v33 = vpop.f32.mrb[8].mxu0  ;;  %v2175_v34 = vpop.f32.mrb[8].mxu1 }
 0x162   : > { %v2104_v35 = vpop.f32.mrb[9].mxu0  ;;  %v2176_v36 = vpop.f32.mrb[9].mxu1 }
 0x163   : > { %v2105_v37 = vadd.f32 %v2104_v35, %v2103_v33  ;;  %v2790_v38 = vadd.f32 %v2176_v36, %v2175_v34  ;;  %v2106_v39 = vpop.f32.mrb[10].mxu0  ;;  %v2178_v40 = vpop.f32.mrb[10].mxu1  ;;  %v450_v34 = vld [vmem:[#allocation2 + $0x28] sm:$0xff] }
 0x164   : > { %v2107_v41 = vpop.f32.mrb[11].mxu0  ;;  %v2179_v42 = vpop.f32.mrb[11].mxu1 }
 0x165   : > { %v2108_v43 = vadd.f32 %v2107_v41, %v2106_v39  ;;  %v2792_v44 = vadd.f32 %v2179_v42, %v2178_v40 }
 0x169   : > { %v2109_v45 = vpop.f32.mrb[12].mxu0  ;;  %v2181_v46 = vpop.f32.mrb[12].mxu1 }
 0x16a   : > { %v2110_v47 = vpop.f32.mrb[13].mxu0  ;;  %v2182_v48 = vpop.f32.mrb[13].mxu1 }
 0x16b   : > { %v2111_v49 = vadd.f32 %v2110_v47, %v2109_v45  ;;  %v2794_v50 = vadd.f32 %v2182_v48, %v2181_v46  ;;  %v2112_v51 = vpop.f32.mrb[14].mxu0  ;;  %v2184_v52 = vpop.f32.mrb[14].mxu1  ;;  %v455_v46 = vld [vmem:[#allocation2 + $0x50] sm:$0xff] }
 0x16c   : > { %v2113_v53 = vpop.f32.mrb[15].mxu0  ;;  %v2185_v54 = vpop.f32.mrb[15].mxu1 }
 0x16d   : > { %v2114_v55 = vadd.f32 %v2113_v53, %v2112_v51  ;;  %v2796_v56 = vadd.f32 %v2185_v54, %v2184_v52 }
 0x171   : > { %v2115_v57 = vpop.f32.mrb[16].mxu0  ;;  %v2229_v59 = vpop.f32.mrb[16].mxu1 }
 0x172   : > { %v1193_v60 = vadd.f32 %v2229_v59, %v2099_v25  ;;  %v2116_v61 = vpop.f32.mrb[17].mxu0  ;;  %v1184_v63 = vpop.f32.mrb[17].mxu1 }
 0x173   : > { %v2117_v0 = vadd.f32 %v2116_v61, %v2115_v57  ;;  %v1185_v1 = vadd.f32 %v2093_v13, %v1184_v63  ;;  %v2118_v2 = vpop.f32.mrb[18].mxu0  ;;  %v2230_v4 = vpop.f32.mrb[18].mxu1 }
 0x174   : > { %v1313_v5 = vadd.f32 %v1193_v60, %v447_v58  ;;  %v1196_v6 = vadd.f32 %v2230_v4, %v2102_v31  ;;  %v2119_v7 = vpop.f32.mrb[19].mxu0  ;;  %v1187_v9 = vpop.f32.mrb[19].mxu1  ;;  %v454_v60 = vld [vmem:[#allocation2 + $0x48] sm:$0xff] }
 0x175   : > { %v1311_v10 = vadd.f32 %v1185_v1, %v445_v62  ;;  %v2120_v11 = vadd.f32 %v2119_v7, %v2118_v2  ;;  %v1188_v12 = vadd.f32 %v2096_v19, %v1187_v9 }
 0x176   : > { %1345 = vst [vmem:[#allocation2 + $0x10] sm:$0xff] %v1313_v5  ;;  %v1314_v15 = vadd.f32 %v1196_v6, %v448_v3  ;;  %v457_v6 = vld [vmem:[#allocation2 + $0x60] sm:$0xff] }
 0x177   : > { %1343 = vst [vmem:[#allocation2] sm:$0xff] %v1311_v10  ;;  %v1312_v16 = vadd.f32 %v1188_v12, %v446_v8 }
 0x178   : > { %1346 = vst [vmem:[#allocation2 + $0x18] sm:$0xff] %v1314_v15  ;;  %v459_v15 = vld [vmem:[#allocation2 + $0x70] sm:$0xff] }
 0x179   : > { %1344 = vst [vmem:[#allocation2 + $0x8] sm:$0xff] %v1312_v16  ;;  %v2121_v17 = vpop.f32.mrb[20].mxu0  ;;  %v2233_v13 = vpop.f32.mrb[20].mxu1 }
 0x17a   : > { %v1209_v21 = vadd.f32 %v2233_v13, %v2111_v49  ;;  %v2122_v22 = vpop.f32.mrb[21].mxu0  ;;  %v1200_v24 = vpop.f32.mrb[21].mxu1  ;;  %v453_v49 = vld [vmem:[#allocation2 + $0x40] sm:$0xff] }
 0x17b   : > { %v2123_v25 = vadd.f32 %v2122_v22, %v2121_v17  ;;  %v1201_v27 = vadd.f32 %v2105_v37, %v1200_v24  ;;  %v2124_v28 = vpop.f32.mrb[22].mxu0  ;;  %v2234_v30 = vpop.f32.mrb[22].mxu1  ;;  %v458_v17 = vld [vmem:[#allocation2 + $0x68] sm:$0xff] }
 0x17c   : > { %v1317_v31 = vadd.f32 %v1209_v21, %v451_v18  ;;  %v1212_v19 = vadd.f32 %v2234_v30, %v2114_v55  ;;  %v2125_v33 = vpop.f32.mrb[23].mxu0  ;;  %v1203_v35 = vpop.f32.mrb[23].mxu1  ;;  %v456_v55 = vld [vmem:[#allocation2 + $0x58] sm:$0xff] }
 0x17d   : > { %v1315_v36 = vadd.f32 %v1201_v27, %v449_v23  ;;  %v2126_v39 = vadd.f32 %v2125_v33, %v2124_v28  ;;  %v1204_v40 = vadd.f32 %v2108_v43, %v1203_v35  ;;  %v460_v23 = vld [vmem:[#allocation2 + $0x78] sm:$0xff] }
 0x17e   : > { %1349 = vst [vmem:[#allocation2 + $0x30] sm:$0xff] %v1317_v31  ;;  %v1318_v41 = vadd.f32 %v1212_v19, %v452_v29 }
 0x17f   : > { %1347 = vst [vmem:[#allocation2 + $0x20] sm:$0xff] %v1315_v36  ;;  %v1316_v42 = vadd.f32 %v1204_v40, %v450_v34  ;;  %v461_v36 = vld [vmem:[#allocation2 + $0x80] sm:$0xff] }
 0x180   : > { %1350 = vst [vmem:[#allocation2 + $0x38] sm:$0xff] %v1318_v41 }
 0x181   : > { %1348 = vst [vmem:[#allocation2 + $0x28] sm:$0xff] %v1316_v42  ;;  %v2127_v45 = vpop.f32.mrb[24].mxu0  ;;  %v2237_v37 = vpop.f32.mrb[24].mxu1 }
 0x182   : > { %v1225_v47 = vadd.f32 %v2237_v37, %v2123_v25  ;;  %v2128_v48 = vpop.f32.mrb[25].mxu0  ;;  %v1216_v51 = vpop.f32.mrb[25].mxu1 }
 0x183   : > { %v2129_v52 = vadd.f32 %v2128_v48, %v2127_v45  ;;  %v1217_v53 = vadd.f32 %v2117_v0, %v1216_v51  ;;  %v2130_v54 = vpop.f32.mrb[26].mxu0  ;;  %v2238_v57 = vpop.f32.mrb[26].mxu1  ;;  %v462_v45 = vld [vmem:[#allocation2 + $0x88] sm:$0xff] }
 0x184   : > { %v1321_v58 = vadd.f32 %v1225_v47, %v455_v46  ;;  %v1228_v43 = vadd.f32 %v2238_v57, %v2126_v39  ;;  %v2131_v59 = vpop.f32.mrb[27].mxu0  ;;  %v1219_v61 = vpop.f32.mrb[27].mxu1  ;;  %v463_v57 = vld [vmem:[#allocation2 + $0x90] sm:$0xff] }
 0x185   : > { %v1319_v62 = vadd.f32 %v1217_v53, %v453_v49  ;;  %v2132_v63 = vadd.f32 %v2131_v59, %v2130_v54  ;;  %v1220_v1 = vadd.f32 %v2120_v11, %v1219_v61  ;;  %v464_v61 = vld [vmem:[#allocation2 + $0x98] sm:$0xff] }
 0x186   : > { %1353 = vst [vmem:[#allocation2 + $0x50] sm:$0xff] %v1321_v58  ;;  %v1322_v2 = vadd.f32 %v1228_v43, %v456_v55 }
 0x187   : > { %1351 = vst [vmem:[#allocation2 + $0x40] sm:$0xff] %v1319_v62  ;;  %v1320_v3 = vadd.f32 %v1220_v1, %v454_v60 }
 0x188   : > { %1354 = vst [vmem:[#allocation2 + $0x58] sm:$0xff] %v1322_v2 }
 0x189   : > { %1352 = vst [vmem:[#allocation2 + $0x48] sm:$0xff] %v1320_v3  ;;  %v2133_v4 = vpop.f32.mrb[28].mxu0  ;;  %v2241_v5 = vpop.f32.mrb[28].mxu1  ;;  %v471_v3 = vld [vmem:[#allocation2 + $0xd0] sm:$0xff] }
 0x18a   : > { %v2134_v0 = vpop.f32.mrb[29].mxu0  ;;  %v1232_v7 = vpop.f32.mrb[29].mxu1 }
 0x18b   : > { %v2135_v8 = vadd.f32 %v2134_v0, %v2133_v4  ;;  %v1233_v9 = vadd.f32 %v2129_v52, %v1232_v7  ;;  %v2136_v10 = vpop.f32.mrb[30].mxu0  ;;  %v2242_v12 = vpop.f32.mrb[30].mxu1 }
 0x18c   : > { %v2137_v16 = vpop.f32.mrb[31].mxu0  ;;  %v1235_v18 = vpop.f32.mrb[31].mxu1 }
 0x18d   : > { %v1241_v11 = vadd.f32 %v2241_v5, %v2135_v8  ;;  %v1323_v13 = vadd.f32 %v1233_v9, %v457_v6  ;;  %v2138_v21 = vadd.f32 %v2137_v16, %v2136_v10  ;;  %v1236_v22 = vadd.f32 %v2132_v63, %v1235_v18  ;;  %v469_v6 = vld [vmem:[#allocation2 + $0xc0] sm:$0xff] }
 0x18f   : > { %v1325_v24 = vadd.f32 %v1241_v11, %v459_v15  ;;  %1355 = vst [vmem:[#allocation2 + $0x60] sm:$0xff] %v1323_v13  ;;  %v1244_v25 = vadd.f32 %v2242_v12, %v2138_v21  ;;  %v1324_v27 = vadd.f32 %v1236_v22, %v458_v17  ;;  %v472_v12 = vld [vmem:[#allocation2 + $0xd8] sm:$0xff]  ;;  %v465_v17 = vld [vmem:[#allocation2 + $0xa0] sm:$0xff]  ;;  %v470_v13 = vld [vmem:[#allocation2 + $0xc8] sm:$0xff] }
 0x191   : > { %1357 = vst [vmem:[#allocation2 + $0x70] sm:$0xff] %v1325_v24  ;;  %v1326_v28 = vadd.f32 %v1244_v25, %v460_v23  ;;  %1356 = vst [vmem:[#allocation2 + $0x68] sm:$0xff] %v1324_v27  ;;  %v2139_v29 = vpop.f32.mrb[32].mxu0  ;;  %v2245_v30 = vpop.f32.mrb[32].mxu1  ;;  %v466_v27 = vld [vmem:[#allocation2 + $0xa8] sm:$0xff] }
 0x192   : > { %v2140_v31 = vpop.f32.mrb[33].mxu0  ;;  %v1248_v19 = vpop.f32.mrb[33].mxu1 }
 0x193   : > { %1358 = vst [vmem:[#allocation2 + $0x78] sm:$0xff] %v1326_v28  ;;  %v2141_v33 = vadd.f32 %v2140_v31, %v2139_v29  ;;  %v2142_v34 = vpop.f32.mrb[34].mxu0  ;;  %v2246_v35 = vpop.f32.mrb[34].mxu1  ;;  %v475_v31 = vld [vmem:[#allocation2 + $0xf0] sm:$0xff] }
 0x194   : > { %v2143_v39 = vpop.f32.mrb[35].mxu0  ;;  %v1251_v40 = vpop.f32.mrb[35].mxu1 }
 0x195   : > { %v1249_v41 = vadd.f32 %v2141_v33, %v1248_v19  ;;  %v2144_v42 = vadd.f32 %v2143_v39, %v2142_v34 }
 0x197   : > { %v1327_v46 = vadd.f32 %v1249_v41, %v461_v36  ;;  %v1252_v37 = vadd.f32 %v2144_v42, %v1251_v40  ;;  %v476_v41 = vld [vmem:[#allocation2 + $0xf8] sm:$0xff] }
 0x199   : > { %1359 = vst [vmem:[#allocation2 + $0x80] sm:$0xff] %v1327_v46  ;;  %v1328_v47 = vadd.f32 %v1252_v37, %v462_v45  ;;  %v2145_v48 = vpop.f32.mrb[36].mxu0  ;;  %v2798_v49 = vpop.f32.mrb[36].mxu1  ;;  %v467_v46 = vld [vmem:[#allocation2 + $0xb0] sm:$0xff] }
 0x19a   : > { %v2146_v51 = vpop.f32.mrb[37].mxu0  ;;  %v1264_v52 = vpop.f32.mrb[37].mxu1 }
 0x19b   : > { %1360 = vst [vmem:[#allocation2 + $0x88] sm:$0xff] %v1328_v47  ;;  %v2147_v53 = vadd.f32 %v2146_v51, %v2145_v48  ;;  %v2148_v54 = vpop.f32.mrb[38].mxu0  ;;  %v2800_v55 = vpop.f32.mrb[38].mxu1  ;;  %v474_v48 = vld [vmem:[#allocation2 + $0xe8] sm:$0xff] }
 0x19c   : > { %v2149_v58 = vpop.f32.mrb[39].mxu0  ;;  %v1267_v43 = vpop.f32.mrb[39].mxu1 }
 0x19d   : > { %v1257_v59 = vadd.f32 %v2245_v30, %v2147_v53  ;;  %v2150_v60 = vadd.f32 %v2149_v58, %v2148_v54  ;;  %v468_v58 = vld [vmem:[#allocation2 + $0xb8] sm:$0xff] }
 0x19f   : > { %v1329_v62 = vadd.f32 %v1257_v59, %v463_v57  ;;  %v1260_v63 = vadd.f32 %v2246_v35, %v2150_v60  ;;  %v473_v35 = vld [vmem:[#allocation2 + $0xe0] sm:$0xff]  ;;  %v1380_v60 = vld [vmem:[#allocation2 + $0x8] sm:$0xff] (!%p1912_p13) }
 0x1a1   : > { %1361 = vst [vmem:[#allocation2 + $0x90] sm:$0xff] %v1329_v62  ;;  %v1330_v1 = vadd.f32 %v1260_v63, %v464_v61  ;;  %v2151_v2 = vpop.f32.mrb[40].mxu0  ;;  %v2253_v4 = vpop.f32.mrb[40].mxu1  ;;  %v1381_v62 = vld [vmem:[#allocation2 + $0x10] sm:$0xff] (!%p1912_p13)  ;;  %v1382_v63 = vld [vmem:[#allocation2 + $0x18] sm:$0xff] (!%p1912_p13) }
 0x1a2   : > { %v1289_v5 = vadd.f32 %v2253_v4, %v2786_v26  ;;  %v2152_v0 = vpop.f32.mrb[41].mxu0  ;;  %v1280_v7 = vpop.f32.mrb[41].mxu1  ;;  %v1384_v4 = vld [vmem:[#allocation2 + $0x28] sm:$0xff] (!%p1912_p13) }
 0x1a3   : > { %1362 = vst [vmem:[#allocation2 + $0x98] sm:$0xff] %v1330_v1  ;;  %v2153_v8 = vadd.f32 %v2152_v0, %v2151_v2  ;;  %v1281_v9 = vadd.f32 %v2782_v14, %v1280_v7  ;;  %v2154_v10 = vpop.f32.mrb[42].mxu0  ;;  %v2254_v15 = vpop.f32.mrb[42].mxu1  ;;  %v1383_v1 = vld [vmem:[#allocation2 + $0x20] sm:$0xff] (!%p1912_p13)  ;;  %v1385_v0 = vld [vmem:[#allocation2 + $0x30] sm:$0xff] (!%p1912_p13) }
 0x1a4   : > { %v1337_v16 = vadd.f32 %v1289_v5, %v471_v3  ;;  %v1292_v18 = vadd.f32 %v2254_v15, %v2788_v32  ;;  %v2155_v11 = vpop.f32.mrb[43].mxu0  ;;  %v1283_v21 = vpop.f32.mrb[43].mxu1  ;;  %v1388_v15 = vld [vmem:[#allocation2 + $0x48] sm:$0xff] (!%p1912_p13) }
 0x1a5   : > { %v1265_v22 = vadd.f32 %v2153_v8, %v1264_v52  ;;  %v1335_v23 = vadd.f32 %v1281_v9, %v469_v6  ;;  %v2156_v26 = vadd.f32 %v2155_v11, %v2154_v10  ;;  %v1284_v24 = vadd.f32 %v2784_v20, %v1283_v21  ;;  %v1386_v6 = vld [vmem:[#allocation2 + $0x38] sm:$0xff] (!%p1912_p13) }
 0x1a6   : > { %1369 = vst [vmem:[#allocation2 + $0xd0] sm:$0xff] %v1337_v16  ;;  %v1338_v25 = vadd.f32 %v1292_v18, %v472_v12  ;;  %v1387_v12 = vld [vmem:[#allocation2 + $0x40] sm:$0xff] (!%p1912_p13)  ;;  %v1389_v16 = vld [vmem:[#allocation2 + $0x50] sm:$0xff] (!%p1912_p13)  ;;  %v1390_v21 = vld [vmem:[#allocation2 + $0x58] sm:$0xff] (!%p1912_p13) }
 0x1a7   : > { %v1331_v28 = vadd.f32 %v1265_v22, %v465_v17  ;;  %1367 = vst [vmem:[#allocation2 + $0xc0] sm:$0xff] %v1335_v23  ;;  %v1268_v14 = vadd.f32 %v2156_v26, %v1267_v43  ;;  %v1336_v29 = vadd.f32 %v1284_v24, %v470_v13  ;;  %v1391_v22 = vld [vmem:[#allocation2 + $0x60] sm:$0xff] (!%p1912_p13) }
 0x1a8   : > { %1370 = vst [vmem:[#allocation2 + $0xd8] sm:$0xff] %v1338_v25 }
 0x1a9   : > { %1363 = vst [vmem:[#allocation2 + $0xa0] sm:$0xff] %v1331_v28  ;;  %v1332_v30 = vadd.f32 %v1268_v14, %v466_v27  ;;  %1368 = vst [vmem:[#allocation2 + $0xc8] sm:$0xff] %v1336_v29  ;;  %v2157_v32 = vpop.f32.mrb[44].mxu0  ;;  %v2257_v19 = vpop.f32.mrb[44].mxu1  ;;  %v1392_v27 = vld [vmem:[#allocation2 + $0x68] sm:$0xff] (!%p1912_p13) }
 0x1aa   : > { %v1305_v33 = vadd.f32 %v2257_v19, %v2794_v50  ;;  %v2158_v34 = vpop.f32.mrb[45].mxu0  ;;  %v1296_v36 = vpop.f32.mrb[45].mxu1 }
 0x1ab   : > { %1364 = vst [vmem:[#allocation2 + $0xa8] sm:$0xff] %v1332_v30  ;;  %v2159_v20 = vadd.f32 %v2158_v34, %v2157_v32  ;;  %v1297_v39 = vadd.f32 %v2790_v38, %v1296_v36  ;;  %v2160_v40 = vpop.f32.mrb[46].mxu0  ;;  %v2258_v42 = vpop.f32.mrb[46].mxu1  ;;  %v1393_v32 = vld [vmem:[#allocation2 + $0x70] sm:$0xff] (!%p1912_p13)  ;;  %v1395_v36 = vld [vmem:[#allocation2 + $0x80] sm:$0xff] (!%p1912_p13) }
 0x1ac   : > { %v1341_v45 = vadd.f32 %v1305_v33, %v475_v31  ;;  %v1308_v37 = vadd.f32 %v2258_v42, %v2796_v56  ;;  %v2161_v47 = vpop.f32.mrb[47].mxu0  ;;  %v1299_v51 = vpop.f32.mrb[47].mxu1  ;;  %v1394_v31 = vld [vmem:[#allocation2 + $0x78] sm:$0xff] (!%p1912_p13) }
 0x1ad   : > { %v1273_v52 = vadd.f32 %v2798_v49, %v2159_v20  ;;  %v1339_v50 = vadd.f32 %v1297_v39, %v473_v35  ;;  %v2162_v53 = vadd.f32 %v2161_v47, %v2160_v40  ;;  %v1300_v54 = vadd.f32 %v2792_v44, %v1299_v51  ;;  %1378 = sbr.rel (%p1912_p13) target bundleno = 456 (0x1c8), region = 66  ;;  %v1379_v49 = vld [vmem:[#allocation2] sm:$0xff] (!%p1912_p13)  ;;  %v1396_v20 = vld [vmem:[#allocation2 + $0x88] sm:$0xff] (!%p1912_p13)  ;;  %v1398_v51 = vld [vmem:[#allocation2 + $0x98] sm:$0xff] (!%p1912_p13) }
 0x1ae   : > { %1373 = vst [vmem:[#allocation2 + $0xf0] sm:$0xff] %v1341_v45  ;;  %v1342_v57 = vadd.f32 %v1308_v37, %v476_v41  ;;  %v2816_v44 = vld [vmem:[%s2889_s2] ss:$0 sm:$0xff] (!%p1912_p13)  ;;  %v1397_v45 = vld [vmem:[#allocation2 + $0x90] sm:$0xff] (!%p1912_p13) }
 0x1af   : > { %v1333_v38 = vadd.f32 %v1273_v52, %v467_v46  ;;  %1371 = vst [vmem:[#allocation2 + $0xe0] sm:$0xff] %v1339_v50  ;;  %v1276_v43 = vadd.f32 %v2800_v55, %v2162_v53  ;;  %v1340_v59 = vadd.f32 %v1300_v54, %v474_v48  ;;  %v1418_v61 = vadd.f32 (!%p1912_p13), %v2816_v44, %v1379_v49 }
 0x1b0   : > { %1374 = vst [vmem:[#allocation2 + $0xf8] sm:$0xff] %v1342_v57  ;;  %v1419_v55 = vadd.f32 (!%p1912_p13), %v2816_v44, %v1380_v60  ;;  %v1420_v2 = vadd.f32 (!%p1912_p13), %v2816_v44, %v1381_v62  ;;  %v1421_v3 = vadd.f32 (!%p1912_p13), %v2816_v44, %v1382_v63  ;;  %v1422_v5 = vadd.f32 (!%p1912_p13), %v2816_v44, %v1383_v1  ;;  %v1399_v57 = vld [vmem:[#allocation2 + $0xa0] sm:$0xff] (!%p1912_p13) }
 0x1b1   : > { %1365 = vst [vmem:[#allocation2 + $0xb0] sm:$0xff] %v1333_v38  ;;  %v1334_v56 = vadd.f32 %v1276_v43, %v468_v58  ;;  %1372 = vst [vmem:[#allocation2 + $0xe8] sm:$0xff] %v1340_v59  ;;  %v1450_v7 = vmax.f32 (!%p1912_p13), %v1418_v61, 0.0  ;;  %v1423_v9 = vadd.f32 (!%p1912_p13), %v2816_v44, %v1384_v4  ;;  %v1424_v10 = vadd.f32 (!%p1912_p13), %v2816_v44, %v1385_v0  ;;  %v1403_v1 = vld [vmem:[#allocation2 + $0xc0] sm:$0xff] (!%p1912_p13) }
 0x1b2   : > { %v1451_v8 = vmax.f32 (!%p1912_p13), %v1419_v55, 0.0  ;;  %v1452_v17 = vmax.f32 (!%p1912_p13), %v1420_v2, 0.0  ;;  %v1453_v18 = vmax.f32 (!%p1912_p13), %v1421_v3, 0.0  ;;  %v1454_v11 = vmax.f32 (!%p1912_p13), %v1422_v5, 0.0  ;;  %v1400_v58 = vld [vmem:[#allocation2 + $0xa8] sm:$0xff] (!%p1912_p13) }
 0x1b3   : > { %1366 = vst [vmem:[#allocation2 + $0xb8] sm:$0xff] %v1334_v56  ;;  %v1425_v13 = vadd.f32 (!%p1912_p13), %v2816_v44, %v1386_v6  ;;  %v1455_v26 = vmax.f32 (!%p1912_p13), %v1423_v9, 0.0  ;;  %v1456_v24 = vmax.f32 (!%p1912_p13), %v1424_v10, 0.0  ;;  %v1426_v25 = vadd.f32 (!%p1912_p13), %v2816_v44, %v1387_v12  ;;  %v1404_v2 = vld [vmem:[#allocation2 + $0xc8] sm:$0xff] (!%p1912_p13)  ;;  %v1405_v6 = vld [vmem:[#allocation2 + $0xd0] sm:$0xff] (!%p1912_p13)  ;;  %v1406_v12 = vld [vmem:[#allocation2 + $0xd8] sm:$0xff] (!%p1912_p13) }
 0x1b4   : > { %v1983_v23 = vpack.c.bf16 %v1451_v8, %v1450_v7  ;;  %v1988_v28 = vpack.c.bf16 %v1453_v18, %v1452_v17  ;;  %v1427_v29 = vadd.f32 %v2816_v44, %v1388_v15  ;;  %v1428_v30 = vadd.f32 %v2816_v44, %v1389_v16 }
 0x1b5   : > { %v1457_v14 = vmax.f32 %v1425_v13, 0.0  ;;  %v1993_v19 = vpack.c.bf16 %v1455_v26, %v1454_v11  ;;  %v1458_v33 = vmax.f32 %v1426_v25, 0.0  ;;  %v1429_v34 = vadd.f32 %v2816_v44, %v1390_v21 }
 0x1b6   : > { %1984 = vst [vmem:[%s2705_s30] sm:$0xff] %v1983_v23   ;;  %v1430_v35 = vadd.f32 %v2816_v44, %v1391_v22  ;;  %2060 = vst [vmem:[%s2705_s30 + $0x8] sm:$0xff] %v1988_v28   ;;  %v1459_v40 = vmax.f32 %v1427_v29, 0.0  ;;  %v1460_v41 = vmax.f32 %v1428_v30, 0.0  ;;  %v1431_v42 = vadd.f32 %v2816_v44, %v1392_v27  ;;  %v1407_v11 = vld [vmem:[#allocation2 + $0xe0] sm:$0xff] }
 0x1b7   : > { %v1998_v39 = vpack.c.bf16 %v1457_v14, %v1456_v24  ;;  %2061 = vst [vmem:[%s2705_s30 + $0x10] sm:$0xff] %v1993_v19   ;;  %v1461_v46 = vmax.f32 %v1429_v34, 0.0  ;;  %v1432_v47 = vadd.f32 %v2816_v44, %v1393_v32  ;;  %v1433_v48 = vadd.f32 %v2816_v44, %v1394_v31  ;;  %v1409_v24 = vld [vmem:[#allocation2 + $0xf0] sm:$0xff]  ;;  %v1410_v25 = vld [vmem:[#allocation2 + $0xf8] sm:$0xff] }
 0x1b8   : > { %v1462_v37 = vmax.f32 %v1430_v35, 0.0  ;;  %v2003_v52 = vpack.c.bf16 %v1459_v40, %v1458_v33  ;;  %v1463_v50 = vmax.f32 %v1431_v42, 0.0  ;;  %v1434_v53 = vadd.f32 %v2816_v44, %v1395_v36  ;;  %v1401_v49 = vld [vmem:[#allocation2 + $0xb0] sm:$0xff]  ;;  %v1408_v13 = vld [vmem:[#allocation2 + $0xe8] sm:$0xff] }
 0x1b9   : > { %2062 = vst [vmem:[%s2705_s30 + $0x18] sm:$0xff] %v1998_v39   ;;  %v1435_v54 = vadd.f32 %v2816_v44, %v1396_v20  ;;  %v2008_v38 = vpack.c.bf16 %v1461_v46, %v1460_v41  ;;  %v1464_v43 = vmax.f32 %v1432_v47, 0.0  ;;  %v1465_v59 = vmax.f32 %v1433_v48, 0.0 }
 0x1ba   : > { %v1436_v56 = vadd.f32 %v2816_v44, %v1397_v45  ;;  %v1402_v60 = vld [vmem:[#allocation2 + $0xb8] sm:$0xff]  ;;  %2063 = vst [vmem:[%s2705_s30 + $0x20] sm:$0xff] %v2003_v52   ;;  %v2013_v61 = vpack.c.bf16 %v1463_v50, %v1462_v37  ;;  %v1466_v55 = vmax.f32 %v1434_v53, 0.0  ;;  %v1437_v63 = vadd.f32 %v2816_v44, %v1398_v51 }
 0x1bb   : > { %v1467_v62 = vmax.f32 %v1435_v54, 0.0  ;;  %2064 = vst [vmem:[%s2705_s30 + $0x28] sm:$0xff] %v2008_v38   ;;  %v2018_v3 = vpack.c.bf16 %v1465_v59, %v1464_v43  ;;  %v1438_v5 = vadd.f32 %v2816_v44, %v1399_v57  ;;  %v1439_v0 = vadd.f32 %v2816_v44, %v1400_v58 }
 0x1bc   : > { %v1468_v4 = vmax.f32 %v1436_v56, 0.0  ;;  %2065 = vst [vmem:[%s2705_s30 + $0x30] sm:$0xff] %v2013_v61   ;;  %v1469_v8 = vmax.f32 %v1437_v63, 0.0  ;;  %v1440_v9 = vadd.f32 %v2816_v44, %v1401_v49  ;;  %v1441_v10 = vadd.f32 %v2816_v44, %v1402_v60 }
 0x1bd   : > { %v2023_v7 = vpack.c.bf16 %v1467_v62, %v1466_v55  ;;  %2066 = vst [vmem:[%s2705_s30 + $0x38] sm:$0xff] %v2018_v3   ;;  %v1470_v15 = vmax.f32 %v1438_v5, 0.0  ;;  %v1471_v16 = vmax.f32 %v1439_v0, 0.0  ;;  %v1442_v17 = vadd.f32 %v2816_v44, %v1403_v1 }
 0x1be   : > { %v1443_v18 = vadd.f32 %v2816_v44, %v1404_v2  ;;  %v2028_v21 = vpack.c.bf16 %v1469_v8, %v1468_v4  ;;  %v1472_v22 = vmax.f32 %v1440_v9, 0.0  ;;  %v1473_v23 = vmax.f32 %v1441_v10, 0.0 }
 0x1bf   : > { %2067 = vst [vmem:[%s2705_s30 + $0x40] sm:$0xff] %v2023_v7   ;;  %v1444_v26 = vadd.f32 %v2816_v44, %v1405_v6  ;;  %v2033_v27 = vpack.c.bf16 %v1471_v16, %v1470_v15  ;;  %v1474_v28 = vmax.f32 %v1442_v17, 0.0  ;;  %v1445_v29 = vadd.f32 %v2816_v44, %v1406_v12 }
 0x1c0   : > { %v1475_v14 = vmax.f32 %v1443_v18, 0.0  ;;  %2068 = vst [vmem:[%s2705_s30 + $0x48] sm:$0xff] %v2028_v21   ;;  %v2038_v30 = vpack.c.bf16 %v1473_v23, %v1472_v22  ;;  %v1446_v31 = vadd.f32 %v2816_v44, %v1407_v11  ;;  %v1447_v19 = vadd.f32 %v2816_v44, %v1408_v13 }
 0x1c1   : > { %v1476_v32 = vmax.f32 %v1444_v26, 0.0  ;;  %2069 = vst [vmem:[%s2705_s30 + $0x50] sm:$0xff] %v2033_v27   ;;  %v1477_v34 = vmax.f32 %v1445_v29, 0.0  ;;  %v1448_v35 = vadd.f32 %v2816_v44, %v1409_v24  ;;  %v1449_v36 = vadd.f32 %v2816_v44, %v1410_v25 }
 0x1c2   : > { %v2043_v33 = vpack.c.bf16 %v1475_v14, %v1474_v28  ;;  %2070 = vst [vmem:[%s2705_s30 + $0x58] sm:$0xff] %v2038_v30   ;;  %v1478_v20 = vmax.f32 %v1446_v31, 0.0  ;;  %v1479_v39 = vmax.f32 %v1447_v19, 0.0 }
 0x1c3   : > { %v2048_v40 = vpack.c.bf16 %v1477_v34, %v1476_v32  ;;  %v1480_v41 = vmax.f32 %v1448_v35, 0.0  ;;  %v1481_v42 = vmax.f32 %v1449_v36, 0.0 }
 0x1c4   : > { %2071 = vst [vmem:[%s2705_s30 + $0x60] sm:$0xff] %v2043_v33   ;;  %v2053_v45 = vpack.c.bf16 %v1479_v39, %v1478_v20 }
 0x1c5   : > { %2072 = vst [vmem:[%s2705_s30 + $0x68] sm:$0xff] %v2048_v40   ;;  %v2058_v46 = vpack.c.bf16 %v1481_v42, %v1480_v41 }
 0x1c6   : > { %2073 = vst [vmem:[%s2705_s30 + $0x70] sm:$0xff] %v2053_v45  }
 0x1c7   : > { %2074 = vst [vmem:[%s2705_s30 + $0x78] sm:$0xff] %v2058_v46  }
 0x1c8 PF: > { %s13_s18 = sadd.s32 1, %s2477_s18   ;;  %s2891_s12 = smov %s2457_s13 }
 0x1c9   : > { %p10_p0 = scmp.ge.s32.totalorder %s13_s18, 14   ;;  %s2892_s13 = smov %s2551_s25 }
 0x1ca   : > { %s2893_s14 = smov %s2469_s16  ;;  %s2894_s15 = smov %s2473_s17 }
 0x1cb   : > { %s2895_s16 = smov %s2898_s19  ;;  %s2896_s17 = smov %s2902_s20 }
 0x1cc   :  { %12 = sbr.rel (!%p10_p0) target bundleno = 4 (0x4), region = 113 }

</bundles_post_ra>
